<compile_context>
chip_gen: v6e
topology: v6e:2x2x1
jax: 0.10.0
libtpu: 0.0.40
codegen_flags: <defaults>
</compile_context>

<pallas_src>
import functools
import math

import jax
import jax.numpy as jnp
from jax.experimental import pallas as pl
from jax.experimental.pallas import tpu as pltpu  # noqa: F401  (TPU backend; CompilerParams for prod shapes)

# Keep f32 matmul precision everywhere so kernel and reference agree
# (important because the floored logits quantize attention scores).
jax.config.update("jax_default_matmul_precision", "highest")

_LN_EPS = 1e-5


def _layer_norm(z, gamma, beta):
    mu = jnp.mean(z, axis=-1, keepdims=True)
    var = jnp.mean(jnp.square(z - mu), axis=-1, keepdims=True)
    return (z - mu) * jax.lax.rsqrt(var + _LN_EPS) * gamma + beta


def _mha_core(q, k, v, add_mask, wo, bo, *, batch, t_q, t_k, num_heads, head_dim):
    """Multi-head attention on already-projected q/k/v (rows = batch*seq).

    q: (batch*t_q, D); k, v: (batch*t_k, D); add_mask: (batch, t_k) additive 0/-inf.
    Returns (batch*t_q, D) after the single fused output projection.
    """
    inv_scale = jnp.float32(1.0 / math.sqrt(head_dim))
    outs = []
    for b in range(batch):                       # static unroll (small batch)
        qb = q[b * t_q:(b + 1) * t_q, :]
        kb = k[b * t_k:(b + 1) * t_k, :]
        vb = v[b * t_k:(b + 1) * t_k, :]
        amb = add_mask[b:b + 1, :]               # (1, t_k), hoisted out of head loop
        heads = []
        for h in range(num_heads):               # static unroll (small num_heads)
            lo, hi = h * head_dim, (h + 1) * head_dim
            s = jax.lax.dot_general(qb[:, lo:hi], kb[:, lo:hi],
                                    (((1,), (1,)), ((), ())),
                                    preferred_element_type=jnp.float32)
            # `scores // sqrt(dk)` in the PyTorch reference == floor division.
            s = jnp.floor(s * inv_scale) + amb
            m = jnp.max(s, axis=-1, keepdims=True)
            e = jnp.exp(s - m)
            denom = jnp.sum(e, axis=-1, keepdims=True)
            w = e * pl.reciprocal(denom, approx=False)   # approx=True for prod
            heads.append(jnp.dot(w, vb[:, lo:hi],
                                 preferred_element_type=jnp.float32))
        outs.append(jnp.concatenate(heads, axis=-1))     # (t_q, D)
    attn = jnp.concatenate(outs, axis=0)                 # (batch*t_q, D)
    # Single output projection over the full model dim (one MXU push).
    return jnp.dot(attn, wo, preferred_element_type=jnp.float32) + bo


def _decoder_layer_kernel(
        # activations / masks
        x_ref, enc_ref, tmask_ref, emask_ref,
        # masked self-attention (packed QKV) + LayerNorm
        wqkv1_ref, bqkv1_ref, wo1_ref, bo1_ref, g1_ref, be1_ref,
        # cross attention (Q on x, packed KV on encoding) + LayerNorm
        wq2_ref, bq2_ref, wkv2_ref, bkv2_ref, wo2_ref, bo2_ref, g2_ref, be2_ref,
        # feed-forward + LayerNorm
        wf1_ref, bf1_ref, wf2_ref, bf2_ref, g3_ref, be3_ref,
        # output
        o_ref,
        *, batch, t_q, t_k, num_heads, head_dim):
    d_model = num_heads * head_dim
    neg_inf = jnp.float32(-jnp.inf)
    zero = jnp.float32(0.0)

    x = x_ref[...]          # (batch*t_q, D) — residual stays in VMEM/vregs
    enc = enc_ref[...]      # (batch*t_k, D)

    # Additive key masks, built ONCE per attention block (hoisted).
    tmask_add = jnp.where(tmask_ref[...] == 0.0, neg_inf, zero)   # (B, t_q)
    emask_add = jnp.where(emask_ref[...] == 0.0, neg_inf, zero)   # (B, t_k)

    # ---- 1) masked self-attention + residual + LayerNorm -------------------
    # Fused QKV projection: ONE (rows, D) @ (D, 3D) matmul.
    qkv = jnp.dot(x, wqkv1_ref[...],
                  preferred_element_type=jnp.float32) + bqkv1_ref[...]
    y = _mha_core(qkv[:, :d_model], qkv[:, d_model:2 * d_model],
                  qkv[:, 2 * d_model:], tmask_add,
                  wo1_ref[...], bo1_ref[...],
                  batch=batch, t_q=t_q, t_k=t_q,
                  num_heads=num_heads, head_dim=head_dim)
    x = _layer_norm(x + y, g1_ref[...], be1_ref[...])

    # ---- 2) cross attention over the encoding + residual + LayerNorm -------
    q2 = jnp.dot(x, wq2_ref[...],
                 preferred_element_type=jnp.float32) + bq2_ref[...]
    kv2 = jnp.dot(enc, wkv2_ref[...],
                  preferred_element_type=jnp.float32) + bkv2_ref[...]
    y = _mha_core(q2, kv2[:, :d_model], kv2[:, d_model:], emask_add,
                  wo2_ref[...], bo2_ref[...],
                  batch=batch, t_q=t_q, t_k=t_k,
                  num_heads=num_heads, head_dim=head_dim)
    x = _layer_norm(x + y, g2_ref[...], be2_ref[...])

    # ---- 3) feed-forward (Linear -> ReLU -> Linear) + residual + LayerNorm --
    h = jnp.dot(x, wf1_ref[...],
                preferred_element_type=jnp.float32) + bf1_ref[...]
    h = jnp.maximum(h, 0.0)          # ReLU (dropout = identity in eval mode)
    y = jnp.dot(h, wf2_ref[...],
                preferred_element_type=jnp.float32) + bf2_ref[...]
    x = _layer_norm(x + y, g3_ref[...], be3_ref[...])

    o_ref[...] = x.astype(o_ref.dtype)


@functools.partial(jax.jit, static_argnames=("num_heads",))
def decoder_layer_forward(target, encoding, target_mask, encoding_mask,
                          params, *, num_heads):
    """x = LN(x + MaskedMHA(x,x,x)); x = LN(x + MHA(x,enc,enc)); x = LN(x + FFN(x))."""
    B, Tq, D = target.shape
    _, Tk, _ = encoding.shape
    head_dim = D // num_heads

    sa, ca, ff = params["self_attn"], params["cross_attn"], params["ffn"]
    g1, be1 = params["ln1"]
    g2, be2 = params["ln2"]
    g3, be3 = params["ln3"]

    kernel = functools.partial(_decoder_layer_kernel,
                               batch=B, t_q=Tq, t_k=Tk,
                               num_heads=num_heads, head_dim=head_dim)

    # Single fused invocation: the whole (tiny) problem lives in VMEM, so no
    # grid / BlockSpecs are needed — every operand is copied in whole.
    out = pl.pallas_call(
        kernel,
        out_shape=jax.ShapeDtypeStruct((B * Tq, D), target.dtype),
    )(
        target.reshape(B * Tq, D),            # batch folded into MXU rows
        encoding.reshape(B * Tk, D),
        target_mask.astype(jnp.float32),
        encoding_mask.astype(jnp.float32),
        sa["wqkv"], sa["bqkv"], sa["wo"], sa["bo"], g1, be1,
        ca["wq"], ca["bq"], ca["wkv"], ca["bkv"], ca["wo"], ca["bo"], g2, be2,
        ff["w1"], ff["b1"], ff["w2"], ff["b2"], g3, be3,
    )
    return out.reshape(B, Tq, D)


# ---------------------------------------------------------------------------
# Parameter construction (PyTorch-style Linear init; LayerNorm gamma=1, beta=0)
# Per-head Linear(d_model, head_dim) weights are packed head-major along the
# output columns; Q/K/V (resp. K/V) are packed side by side for fused matmuls.
# ---------------------------------------------------------------------------
def init_params(key, d_model, num_heads, d_ff):
    keys = iter(jax.random.split(key, 16))

    def uniform(fan_in, shape):
        bound = 1.0 / math.sqrt(fan_in)
        return jax.random.uniform(next(keys), shape, jnp.float32, -bound, bound)

    # masked self-attention: packed (D, 3D) QKV, implied output Linear(D, D)
    wqkv1 = uniform(d_model, (d_model, 3 * d_model))
    bqkv1 = uniform(d_model, (1, 3 * d_model))
    wo1 = uniform(d_model, (d_model, d_model))
    bo1 = uniform(d_model, (1, d_model))
    # cross attention: Q on x, packed (D, 2D) KV on the encoding
    wq2 = uniform(d_model, (d_model, d_model))
    bq2 = uniform(d_model, (1, d_model))
    wkv2 = uniform(d_model, (d_model, 2 * d_model))
    bkv2 = uniform(d_model, (1, 2 * d_model))
    wo2 = uniform(d_model, (d_model, d_model))
    bo2 = uniform(d_model, (1, d_model))
    # feed-forward
    w1 = uniform(d_model, (d_model, d_ff))
    b1 = uniform(d_model, (1, d_ff))
    w2 = uniform(d_ff, (d_ff, d_model))
    b2 = uniform(d_ff, (1, d_model))

    def layer_norm():
        return (jnp.ones((1, d_model), jnp.float32),
                jnp.zeros((1, d_model), jnp.float32))

    return {
        "self_attn": {"wqkv": wqkv1, "bqkv": bqkv1, "wo": wo1, "bo": bo1},
        "cross_attn": {"wq": wq2, "bq": bq2, "wkv": wkv2, "bkv": bkv2,
                       "wo": wo2, "bo": bo2},
        "ffn": {"w1": w1, "b1": b1, "w2": w2, "b2": b2},
        "ln1": layer_norm(), "ln2": layer_norm(), "ln3": layer_norm(),
    }


# ---------------------------------------------------------------------------
# Plain-JAX reference mirroring the PyTorch structure (per-head SelfAttention
# -> concat -> output Linear; eval-mode dropout = identity).
# ---------------------------------------------------------------------------
def _ref_layernorm(x, gamma, beta, eps=1e-5):
    mu = jnp.mean(x, axis=-1, keepdims=True)
    var = jnp.mean(jnp.square(x - mu), axis=-1, keepdims=True)
    return (x - mu) * jax.lax.rsqrt(var + eps) * gamma + beta


def _ref_mha(xq, xkv, mask, wq, bq, wk, bk, wv, bv, wo, bo, num_heads):
    d_model = wq.shape[0]
    hd = d_model // num_heads
    inv = jnp.float32(1.0 / math.sqrt(hd))
    outs = []
    for h in range(num_heads):
        sl = slice(h * hd, (h + 1) * hd)
        q = xq @ wq[:, sl] + bq[:, sl]
        k = xkv @ wk[:, sl] + bk[:, sl]
        v = xkv @ wv[:, sl] + bv[:, sl]
        s = jnp.einsum("btd,bsd->bts", q, k)
        s = jnp.floor(s * inv)                      # `//` in the PyTorch code
        s = jnp.where(mask[:, None, :] == 0.0, -jnp.inf, s)
        w = jax.nn.softmax(s, axis=-1)
        outs.append(jnp.einsum("bts,bsd->btd", w, v))
    return jnp.concatenate(outs, axis=-1) @ wo + bo


def _ref_decoder_layer(target, encoding, tmask, emask, params, num_heads):
    D = target.shape[-1]
    sa, ca, ff = params["self_attn"], params["cross_attn"], params["ffn"]
    x = target
    x = x + _ref_mha(x, x, tmask,
                     sa["wqkv"][:, :D], sa["bqkv"][:, :D],
                     sa["wqkv"][:, D:2 * D], sa["bqkv"][:, D:2 * D],
                     sa["wqkv"][:, 2 * D:], sa["bqkv"][:, 2 * D:],
                     sa["wo"], sa["bo"], num_heads)
    x = _ref_layernorm(x, *params["ln1"])
    x = x + _ref_mha(x, encoding, emask,
                     ca["wq"], ca["bq"],
                     ca["wkv"][:, :D], ca["bkv"][:, :D],
                     ca["wkv"][:, D:], ca["bkv"][:, D:],
                     ca["wo"], ca["bo"], num_heads)
    x = _ref_layernorm(x, *params["ln2"])
    x = x + (jnp.maximum(x @ ff["w1"] + ff["b1"], 0.0) @ ff["w2"] + ff["b2"])
    return _ref_layernorm(x, *params["ln3"])


if __name__ == "__main__":
    # Small shapes: batch=2, target seq=8, encoder seq=16, d_model=32, 4 heads, d_ff=64.
    B, T_TGT, T_SRC = 2, 8, 16
    D_MODEL, NUM_HEADS, D_FF = 32, 4, 64

    key = jax.random.PRNGKey(0)
    k_tgt, k_enc, k_par = jax.random.split(key, 3)
    target = 0.5 * jax.random.normal(k_tgt, (B, T_TGT, D_MODEL), jnp.float32)
    encoding = 0.5 * jax.random.normal(k_enc, (B, T_SRC, D_MODEL), jnp.float32)

    # Padding masks: 1 = valid token, 0 = padding (never fully-padded rows).
    target_mask = jnp.ones((B, T_TGT), jnp.float32).at[1, -2:].set(0.0)
    encoding_mask = jnp.ones((B, T_SRC), jnp.float32).at[1, -4:].set(0.0)

    params = init_params(k_par, D_MODEL, NUM_HEADS, D_FF)

    y = decoder_layer_forward(target, encoding, target_mask, encoding_mask,
                              params, num_heads=NUM_HEADS)
    y = jax.block_until_ready(y)

    y_ref = _ref_decoder_layer(target, encoding, target_mask, encoding_mask,
                               params, NUM_HEADS)

    assert y.shape == (B, T_TGT, D_MODEL)
    max_diff = float(jnp.max(jnp.abs(y - y_ref)))
    assert jnp.allclose(y, y_ref, atol=2e-3, rtol=2e-3), f"max abs diff = {max_diff}"

    print("KERNEL_OK")
</pallas_src>

<mosaic_0001>
module attributes {stable_mosaic.version = 11 : i64} {
  func.func @_decoder_layer_kernel(%arg0: memref<16x32xf32, #tpu.memory_space<vmem>>, %arg1: memref<32x32xf32, #tpu.memory_space<vmem>>, %arg2: memref<2x8xf32, #tpu.memory_space<vmem>>, %arg3: memref<2x16xf32, #tpu.memory_space<vmem>>, %arg4: memref<32x96xf32, #tpu.memory_space<vmem>>, %arg5: memref<1x96xf32, #tpu.memory_space<vmem>>, %arg6: memref<32x32xf32, #tpu.memory_space<vmem>>, %arg7: memref<1x32xf32, #tpu.memory_space<vmem>>, %arg8: memref<1x32xf32, #tpu.memory_space<vmem>>, %arg9: memref<1x32xf32, #tpu.memory_space<vmem>>, %arg10: memref<32x32xf32, #tpu.memory_space<vmem>>, %arg11: memref<1x32xf32, #tpu.memory_space<vmem>>, %arg12: memref<32x64xf32, #tpu.memory_space<vmem>>, %arg13: memref<1x64xf32, #tpu.memory_space<vmem>>, %arg14: memref<32x32xf32, #tpu.memory_space<vmem>>, %arg15: memref<1x32xf32, #tpu.memory_space<vmem>>, %arg16: memref<1x32xf32, #tpu.memory_space<vmem>>, %arg17: memref<1x32xf32, #tpu.memory_space<vmem>>, %arg18: memref<32x64xf32, #tpu.memory_space<vmem>>, %arg19: memref<1x64xf32, #tpu.memory_space<vmem>>, %arg20: memref<64x32xf32, #tpu.memory_space<vmem>>, %arg21: memref<1x32xf32, #tpu.memory_space<vmem>>, %arg22: memref<1x32xf32, #tpu.memory_space<vmem>>, %arg23: memref<1x32xf32, #tpu.memory_space<vmem>>, %arg24: memref<16x32xf32, #tpu.memory_space<vmem>>) attributes {dimension_semantics = [], scalar_prefetch = 0 : i64, scratch_operands = 0 : i64, tpu.core_type = #tpu.core_type<tc>} {
    %c0 = arith.constant 0 : index
    %c0_0 = arith.constant 0 : index
    %0 = vector.load %arg0[%c0, %c0_0] : memref<16x32xf32, #tpu.memory_space<vmem>>, vector<16x32xf32>
    %c0_1 = arith.constant 0 : index
    %c0_2 = arith.constant 0 : index
    %1 = vector.load %arg1[%c0_1, %c0_2] : memref<32x32xf32, #tpu.memory_space<vmem>>, vector<32x32xf32>
    %c0_3 = arith.constant 0 : index
    %c0_4 = arith.constant 0 : index
    %2 = vector.load %arg2[%c0_3, %c0_4] : memref<2x8xf32, #tpu.memory_space<vmem>>, vector<2x8xf32>
    %cst = arith.constant 0.000000e+00 : f32
    %3 = vector.broadcast %cst : f32 to vector<2x8xf32>
    %4 = arith.cmpf oeq, %2, %3 : vector<2x8xf32>
    %cst_5 = arith.constant 0xFF800000 : f32
    %cst_6 = arith.constant 0.000000e+00 : f32
    %5 = vector.broadcast %cst_5 : f32 to vector<2x8xf32>
    %6 = vector.broadcast %cst_6 : f32 to vector<2x8xf32>
    %7 = arith.select %4, %5, %6 : vector<2x8xi1>, vector<2x8xf32>
    %c0_7 = arith.constant 0 : index
    %c0_8 = arith.constant 0 : index
    %8 = vector.load %arg3[%c0_7, %c0_8] : memref<2x16xf32, #tpu.memory_space<vmem>>, vector<2x16xf32>
    %cst_9 = arith.constant 0.000000e+00 : f32
    %9 = vector.broadcast %cst_9 : f32 to vector<2x16xf32>
    %10 = arith.cmpf oeq, %8, %9 : vector<2x16xf32>
    %cst_10 = arith.constant 0xFF800000 : f32
    %cst_11 = arith.constant 0.000000e+00 : f32
    %11 = vector.broadcast %cst_10 : f32 to vector<2x16xf32>
    %12 = vector.broadcast %cst_11 : f32 to vector<2x16xf32>
    %13 = arith.select %10, %11, %12 : vector<2x16xi1>, vector<2x16xf32>
    %c0_12 = arith.constant 0 : index
    %c0_13 = arith.constant 0 : index
    %14 = vector.load %arg4[%c0_12, %c0_13] : memref<32x96xf32, #tpu.memory_space<vmem>>, vector<32x96xf32>
    %cst_14 = arith.constant dense<0.000000e+00> : vector<16x96xf32>
    %15 = tpu.matmul %0, %14, %cst_14 {dimension_numbers = #tpu.dot_dimension_numbers<[1], [0], [0], [1], [0, 0, 1, 1], [], []>, precision = #tpu.contract_precision<fp32>} : vector<16x32xf32>, vector<32x96xf32>, vector<16x96xf32> -> vector<16x96xf32>
    %c0_15 = arith.constant 0 : index
    %c0_16 = arith.constant 0 : index
    %16 = vector.load %arg5[%c0_15, %c0_16] : memref<1x96xf32, #tpu.memory_space<vmem>>, vector<1x96xf32>
    %17 = vector.broadcast %16 : vector<1x96xf32> to vector<16x96xf32>
    %18 = arith.addf %15, %17 : vector<16x96xf32>
    %19 = vector.extract_strided_slice %18 {offsets = [0, 0], sizes = [16, 32], strides = [1, 1]} : vector<16x96xf32> to vector<16x32xf32>
    %20 = vector.extract_strided_slice %18 {offsets = [0, 32], sizes = [16, 32], strides = [1, 1]} : vector<16x96xf32> to vector<16x32xf32>
    %21 = vector.extract_strided_slice %18 {offsets = [0, 64], sizes = [16, 32], strides = [1, 1]} : vector<16x96xf32> to vector<16x32xf32>
    %c0_17 = arith.constant 0 : index
    %c0_18 = arith.constant 0 : index
    %22 = vector.load %arg6[%c0_17, %c0_18] : memref<32x32xf32, #tpu.memory_space<vmem>>, vector<32x32xf32>
    %c0_19 = arith.constant 0 : index
    %c0_20 = arith.constant 0 : index
    %23 = vector.load %arg7[%c0_19, %c0_20] : memref<1x32xf32, #tpu.memory_space<vmem>>, vector<1x32xf32>
    %24 = vector.extract_strided_slice %19 {offsets = [0, 0], sizes = [8, 32], strides = [1, 1]} : vector<16x32xf32> to vector<8x32xf32>
    %25 = vector.extract_strided_slice %20 {offsets = [0, 0], sizes = [8, 32], strides = [1, 1]} : vector<16x32xf32> to vector<8x32xf32>
    %26 = vector.extract_strided_slice %21 {offsets = [0, 0], sizes = [8, 32], strides = [1, 1]} : vector<16x32xf32> to vector<8x32xf32>
    %27 = vector.extract_strided_slice %7 {offsets = [0, 0], sizes = [1, 8], strides = [1, 1]} : vector<2x8xf32> to vector<1x8xf32>
    %28 = vector.extract_strided_slice %24 {offsets = [0, 0], sizes = [8, 8], strides = [1, 1]} : vector<8x32xf32> to vector<8x8xf32>
    %29 = vector.extract_strided_slice %25 {offsets = [0, 0], sizes = [8, 8], strides = [1, 1]} : vector<8x32xf32> to vector<8x8xf32>
    %cst_21 = arith.constant dense<0.000000e+00> : vector<8x8xf32>
    %30 = tpu.matmul %28, %29, %cst_21 {dimension_numbers = #tpu.dot_dimension_numbers<[1], [1], [0], [0], [0, 0, 1, 0], [], []>, precision = #tpu.contract_precision<fp32>} : vector<8x8xf32>, vector<8x8xf32>, vector<8x8xf32> -> vector<8x8xf32>
    %cst_22 = arith.constant 0.353553385 : f32
    %31 = vector.broadcast %cst_22 : f32 to vector<8x8xf32>
    %32 = arith.mulf %30, %31 : vector<8x8xf32>
    %33 = math.floor %32 : vector<8x8xf32>
    %34 = vector.broadcast %27 : vector<1x8xf32> to vector<8x8xf32>
    %35 = arith.addf %33, %34 : vector<8x8xf32>
    %cst_23 = arith.constant dense<0xFF800000> : vector<8xf32>
    %36 = vector.multi_reduction <maximumf>, %35, %cst_23 [1] : vector<8x8xf32> to vector<8xf32>
    %37 = vector.shape_cast %36 : vector<8xf32> to vector<8x1xf32>
    %38 = vector.broadcast %37 : vector<8x1xf32> to vector<8x8xf32>
    %39 = arith.subf %35, %38 : vector<8x8xf32>
    %40 = math.exp %39 : vector<8x8xf32>
    %cst_24 = arith.constant dense<0.000000e+00> : vector<8xf32>
    %41 = vector.multi_reduction <add>, %40, %cst_24 [1] : vector<8x8xf32> to vector<8xf32>
    %42 = vector.shape_cast %41 : vector<8xf32> to vector<8x1xf32>
    %43 = tpu.reciprocal %42 : vector<8x1xf32> -> vector<8x1xf32>
    %44 = vector.broadcast %43 : vector<8x1xf32> to vector<8x8xf32>
    %45 = arith.mulf %40, %44 : vector<8x8xf32>
    %46 = vector.extract_strided_slice %26 {offsets = [0, 0], sizes = [8, 8], strides = [1, 1]} : vector<8x32xf32> to vector<8x8xf32>
    %cst_25 = arith.constant dense<0.000000e+00> : vector<8x8xf32>
    %47 = tpu.matmul %45, %46, %cst_25 {dimension_numbers = #tpu.dot_dimension_numbers<[1], [0], [0], [1], [0, 0, 1, 1], [], []>, precision = #tpu.contract_precision<fp32>} : vector<8x8xf32>, vector<8x8xf32>, vector<8x8xf32> -> vector<8x8xf32>
    %48 = vector.extract_strided_slice %24 {offsets = [0, 8], sizes = [8, 8], strides = [1, 1]} : vector<8x32xf32> to vector<8x8xf32>
    %49 = vector.extract_strided_slice %25 {offsets = [0, 8], sizes = [8, 8], strides = [1, 1]} : vector<8x32xf32> to vector<8x8xf32>
    %cst_26 = arith.constant dense<0.000000e+00> : vector<8x8xf32>
    %50 = tpu.matmul %48, %49, %cst_26 {dimension_numbers = #tpu.dot_dimension_numbers<[1], [1], [0], [0], [0, 0, 1, 0], [], []>, precision = #tpu.contract_precision<fp32>} : vector<8x8xf32>, vector<8x8xf32>, vector<8x8xf32> -> vector<8x8xf32>
    %cst_27 = arith.constant 0.353553385 : f32
    %51 = vector.broadcast %cst_27 : f32 to vector<8x8xf32>
    %52 = arith.mulf %50, %51 : vector<8x8xf32>
    %53 = math.floor %52 : vector<8x8xf32>
    %54 = vector.broadcast %27 : vector<1x8xf32> to vector<8x8xf32>
    %55 = arith.addf %53, %54 : vector<8x8xf32>
    %cst_28 = arith.constant dense<0xFF800000> : vector<8xf32>
    %56 = vector.multi_reduction <maximumf>, %55, %cst_28 [1] : vector<8x8xf32> to vector<8xf32>
    %57 = vector.shape_cast %56 : vector<8xf32> to vector<8x1xf32>
    %58 = vector.broadcast %57 : vector<8x1xf32> to vector<8x8xf32>
    %59 = arith.subf %55, %58 : vector<8x8xf32>
    %60 = math.exp %59 : vector<8x8xf32>
    %cst_29 = arith.constant dense<0.000000e+00> : vector<8xf32>
    %61 = vector.multi_reduction <add>, %60, %cst_29 [1] : vector<8x8xf32> to vector<8xf32>
    %62 = vector.shape_cast %61 : vector<8xf32> to vector<8x1xf32>
    %63 = tpu.reciprocal %62 : vector<8x1xf32> -> vector<8x1xf32>
    %64 = vector.broadcast %63 : vector<8x1xf32> to vector<8x8xf32>
    %65 = arith.mulf %60, %64 : vector<8x8xf32>
    %66 = vector.extract_strided_slice %26 {offsets = [0, 8], sizes = [8, 8], strides = [1, 1]} : vector<8x32xf32> to vector<8x8xf32>
    %cst_30 = arith.constant dense<0.000000e+00> : vector<8x8xf32>
    %67 = tpu.matmul %65, %66, %cst_30 {dimension_numbers = #tpu.dot_dimension_numbers<[1], [0], [0], [1], [0, 0, 1, 1], [], []>, precision = #tpu.contract_precision<fp32>} : vector<8x8xf32>, vector<8x8xf32>, vector<8x8xf32> -> vector<8x8xf32>
    %68 = vector.extract_strided_slice %24 {offsets = [0, 16], sizes = [8, 8], strides = [1, 1]} : vector<8x32xf32> to vector<8x8xf32>
    %69 = vector.extract_strided_slice %25 {offsets = [0, 16], sizes = [8, 8], strides = [1, 1]} : vector<8x32xf32> to vector<8x8xf32>
    %cst_31 = arith.constant dense<0.000000e+00> : vector<8x8xf32>
    %70 = tpu.matmul %68, %69, %cst_31 {dimension_numbers = #tpu.dot_dimension_numbers<[1], [1], [0], [0], [0, 0, 1, 0], [], []>, precision = #tpu.contract_precision<fp32>} : vector<8x8xf32>, vector<8x8xf32>, vector<8x8xf32> -> vector<8x8xf32>
    %cst_32 = arith.constant 0.353553385 : f32
    %71 = vector.broadcast %cst_32 : f32 to vector<8x8xf32>
    %72 = arith.mulf %70, %71 : vector<8x8xf32>
    %73 = math.floor %72 : vector<8x8xf32>
    %74 = vector.broadcast %27 : vector<1x8xf32> to vector<8x8xf32>
    %75 = arith.addf %73, %74 : vector<8x8xf32>
    %cst_33 = arith.constant dense<0xFF800000> : vector<8xf32>
    %76 = vector.multi_reduction <maximumf>, %75, %cst_33 [1] : vector<8x8xf32> to vector<8xf32>
    %77 = vector.shape_cast %76 : vector<8xf32> to vector<8x1xf32>
    %78 = vector.broadcast %77 : vector<8x1xf32> to vector<8x8xf32>
    %79 = arith.subf %75, %78 : vector<8x8xf32>
    %80 = math.exp %79 : vector<8x8xf32>
    %cst_34 = arith.constant dense<0.000000e+00> : vector<8xf32>
    %81 = vector.multi_reduction <add>, %80, %cst_34 [1] : vector<8x8xf32> to vector<8xf32>
    %82 = vector.shape_cast %81 : vector<8xf32> to vector<8x1xf32>
    %83 = tpu.reciprocal %82 : vector<8x1xf32> -> vector<8x1xf32>
    %84 = vector.broadcast %83 : vector<8x1xf32> to vector<8x8xf32>
    %85 = arith.mulf %80, %84 : vector<8x8xf32>
    %86 = vector.extract_strided_slice %26 {offsets = [0, 16], sizes = [8, 8], strides = [1, 1]} : vector<8x32xf32> to vector<8x8xf32>
    %cst_35 = arith.constant dense<0.000000e+00> : vector<8x8xf32>
    %87 = tpu.matmul %85, %86, %cst_35 {dimension_numbers = #tpu.dot_dimension_numbers<[1], [0], [0], [1], [0, 0, 1, 1], [], []>, precision = #tpu.contract_precision<fp32>} : vector<8x8xf32>, vector<8x8xf32>, vector<8x8xf32> -> vector<8x8xf32>
    %88 = vector.extract_strided_slice %24 {offsets = [0, 24], sizes = [8, 8], strides = [1, 1]} : vector<8x32xf32> to vector<8x8xf32>
    %89 = vector.extract_strided_slice %25 {offsets = [0, 24], sizes = [8, 8], strides = [1, 1]} : vector<8x32xf32> to vector<8x8xf32>
    %cst_36 = arith.constant dense<0.000000e+00> : vector<8x8xf32>
    %90 = tpu.matmul %88, %89, %cst_36 {dimension_numbers = #tpu.dot_dimension_numbers<[1], [1], [0], [0], [0, 0, 1, 0], [], []>, precision = #tpu.contract_precision<fp32>} : vector<8x8xf32>, vector<8x8xf32>, vector<8x8xf32> -> vector<8x8xf32>
    %cst_37 = arith.constant 0.353553385 : f32
    %91 = vector.broadcast %cst_37 : f32 to vector<8x8xf32>
    %92 = arith.mulf %90, %91 : vector<8x8xf32>
    %93 = math.floor %92 : vector<8x8xf32>
    %94 = vector.broadcast %27 : vector<1x8xf32> to vector<8x8xf32>
    %95 = arith.addf %93, %94 : vector<8x8xf32>
    %cst_38 = arith.constant dense<0xFF800000> : vector<8xf32>
    %96 = vector.multi_reduction <maximumf>, %95, %cst_38 [1] : vector<8x8xf32> to vector<8xf32>
    %97 = vector.shape_cast %96 : vector<8xf32> to vector<8x1xf32>
    %98 = vector.broadcast %97 : vector<8x1xf32> to vector<8x8xf32>
    %99 = arith.subf %95, %98 : vector<8x8xf32>
    %100 = math.exp %99 : vector<8x8xf32>
    %cst_39 = arith.constant dense<0.000000e+00> : vector<8xf32>
    %101 = vector.multi_reduction <add>, %100, %cst_39 [1] : vector<8x8xf32> to vector<8xf32>
    %102 = vector.shape_cast %101 : vector<8xf32> to vector<8x1xf32>
    %103 = tpu.reciprocal %102 : vector<8x1xf32> -> vector<8x1xf32>
    %104 = vector.broadcast %103 : vector<8x1xf32> to vector<8x8xf32>
    %105 = arith.mulf %100, %104 : vector<8x8xf32>
    %106 = vector.extract_strided_slice %26 {offsets = [0, 24], sizes = [8, 8], strides = [1, 1]} : vector<8x32xf32> to vector<8x8xf32>
    %cst_40 = arith.constant dense<0.000000e+00> : vector<8x8xf32>
    %107 = tpu.matmul %105, %106, %cst_40 {dimension_numbers = #tpu.dot_dimension_numbers<[1], [0], [0], [1], [0, 0, 1, 1], [], []>, precision = #tpu.contract_precision<fp32>} : vector<8x8xf32>, vector<8x8xf32>, vector<8x8xf32> -> vector<8x8xf32>
    %108 = tpu.concatenate %47, %67, %87, %107 in 1 : vector<8x8xf32>, vector<8x8xf32>, vector<8x8xf32>, vector<8x8xf32> -> vector<8x32xf32>
    %109 = vector.extract_strided_slice %19 {offsets = [8, 0], sizes = [8, 32], strides = [1, 1]} : vector<16x32xf32> to vector<8x32xf32>
    %110 = vector.extract_strided_slice %20 {offsets = [8, 0], sizes = [8, 32], strides = [1, 1]} : vector<16x32xf32> to vector<8x32xf32>
    %111 = vector.extract_strided_slice %21 {offsets = [8, 0], sizes = [8, 32], strides = [1, 1]} : vector<16x32xf32> to vector<8x32xf32>
    %112 = vector.extract_strided_slice %7 {offsets = [1, 0], sizes = [1, 8], strides = [1, 1]} : vector<2x8xf32> to vector<1x8xf32>
    %113 = vector.extract_strided_slice %109 {offsets = [0, 0], sizes = [8, 8], strides = [1, 1]} : vector<8x32xf32> to vector<8x8xf32>
    %114 = vector.extract_strided_slice %110 {offsets = [0, 0], sizes = [8, 8], strides = [1, 1]} : vector<8x32xf32> to vector<8x8xf32>
    %cst_41 = arith.constant dense<0.000000e+00> : vector<8x8xf32>
    %115 = tpu.matmul %113, %114, %cst_41 {dimension_numbers = #tpu.dot_dimension_numbers<[1], [1], [0], [0], [0, 0, 1, 0], [], []>, precision = #tpu.contract_precision<fp32>} : vector<8x8xf32>, vector<8x8xf32>, vector<8x8xf32> -> vector<8x8xf32>
    %cst_42 = arith.constant 0.353553385 : f32
    %116 = vector.broadcast %cst_42 : f32 to vector<8x8xf32>
    %117 = arith.mulf %115, %116 : vector<8x8xf32>
    %118 = math.floor %117 : vector<8x8xf32>
    %119 = vector.broadcast %112 : vector<1x8xf32> to vector<8x8xf32>
    %120 = arith.addf %118, %119 : vector<8x8xf32>
    %cst_43 = arith.constant dense<0xFF800000> : vector<8xf32>
    %121 = vector.multi_reduction <maximumf>, %120, %cst_43 [1] : vector<8x8xf32> to vector<8xf32>
    %122 = vector.shape_cast %121 : vector<8xf32> to vector<8x1xf32>
    %123 = vector.broadcast %122 : vector<8x1xf32> to vector<8x8xf32>
    %124 = arith.subf %120, %123 : vector<8x8xf32>
    %125 = math.exp %124 : vector<8x8xf32>
    %cst_44 = arith.constant dense<0.000000e+00> : vector<8xf32>
    %126 = vector.multi_reduction <add>, %125, %cst_44 [1] : vector<8x8xf32> to vector<8xf32>
    %127 = vector.shape_cast %126 : vector<8xf32> to vector<8x1xf32>
    %128 = tpu.reciprocal %127 : vector<8x1xf32> -> vector<8x1xf32>
    %129 = vector.broadcast %128 : vector<8x1xf32> to vector<8x8xf32>
    %130 = arith.mulf %125, %129 : vector<8x8xf32>
    %131 = vector.extract_strided_slice %111 {offsets = [0, 0], sizes = [8, 8], strides = [1, 1]} : vector<8x32xf32> to vector<8x8xf32>
    %cst_45 = arith.constant dense<0.000000e+00> : vector<8x8xf32>
    %132 = tpu.matmul %130, %131, %cst_45 {dimension_numbers = #tpu.dot_dimension_numbers<[1], [0], [0], [1], [0, 0, 1, 1], [], []>, precision = #tpu.contract_precision<fp32>} : vector<8x8xf32>, vector<8x8xf32>, vector<8x8xf32> -> vector<8x8xf32>
    %133 = vector.extract_strided_slice %109 {offsets = [0, 8], sizes = [8, 8], strides = [1, 1]} : vector<8x32xf32> to vector<8x8xf32>
    %134 = vector.extract_strided_slice %110 {offsets = [0, 8], sizes = [8, 8], strides = [1, 1]} : vector<8x32xf32> to vector<8x8xf32>
    %cst_46 = arith.constant dense<0.000000e+00> : vector<8x8xf32>
    %135 = tpu.matmul %133, %134, %cst_46 {dimension_numbers = #tpu.dot_dimension_numbers<[1], [1], [0], [0], [0, 0, 1, 0], [], []>, precision = #tpu.contract_precision<fp32>} : vector<8x8xf32>, vector<8x8xf32>, vector<8x8xf32> -> vector<8x8xf32>
    %cst_47 = arith.constant 0.353553385 : f32
    %136 = vector.broadcast %cst_47 : f32 to vector<8x8xf32>
    %137 = arith.mulf %135, %136 : vector<8x8xf32>
    %138 = math.floor %137 : vector<8x8xf32>
    %139 = vector.broadcast %112 : vector<1x8xf32> to vector<8x8xf32>
    %140 = arith.addf %138, %139 : vector<8x8xf32>
    %cst_48 = arith.constant dense<0xFF800000> : vector<8xf32>
    %141 = vector.multi_reduction <maximumf>, %140, %cst_48 [1] : vector<8x8xf32> to vector<8xf32>
    %142 = vector.shape_cast %141 : vector<8xf32> to vector<8x1xf32>
    %143 = vector.broadcast %142 : vector<8x1xf32> to vector<8x8xf32>
    %144 = arith.subf %140, %143 : vector<8x8xf32>
    %145 = math.exp %144 : vector<8x8xf32>
    %cst_49 = arith.constant dense<0.000000e+00> : vector<8xf32>
    %146 = vector.multi_reduction <add>, %145, %cst_49 [1] : vector<8x8xf32> to vector<8xf32>
    %147 = vector.shape_cast %146 : vector<8xf32> to vector<8x1xf32>
    %148 = tpu.reciprocal %147 : vector<8x1xf32> -> vector<8x1xf32>
    %149 = vector.broadcast %148 : vector<8x1xf32> to vector<8x8xf32>
    %150 = arith.mulf %145, %149 : vector<8x8xf32>
    %151 = vector.extract_strided_slice %111 {offsets = [0, 8], sizes = [8, 8], strides = [1, 1]} : vector<8x32xf32> to vector<8x8xf32>
    %cst_50 = arith.constant dense<0.000000e+00> : vector<8x8xf32>
    %152 = tpu.matmul %150, %151, %cst_50 {dimension_numbers = #tpu.dot_dimension_numbers<[1], [0], [0], [1], [0, 0, 1, 1], [], []>, precision = #tpu.contract_precision<fp32>} : vector<8x8xf32>, vector<8x8xf32>, vector<8x8xf32> -> vector<8x8xf32>
    %153 = vector.extract_strided_slice %109 {offsets = [0, 16], sizes = [8, 8], strides = [1, 1]} : vector<8x32xf32> to vector<8x8xf32>
    %154 = vector.extract_strided_slice %110 {offsets = [0, 16], sizes = [8, 8], strides = [1, 1]} : vector<8x32xf32> to vector<8x8xf32>
    %cst_51 = arith.constant dense<0.000000e+00> : vector<8x8xf32>
    %155 = tpu.matmul %153, %154, %cst_51 {dimension_numbers = #tpu.dot_dimension_numbers<[1], [1], [0], [0], [0, 0, 1, 0], [], []>, precision = #tpu.contract_precision<fp32>} : vector<8x8xf32>, vector<8x8xf32>, vector<8x8xf32> -> vector<8x8xf32>
    %cst_52 = arith.constant 0.353553385 : f32
    %156 = vector.broadcast %cst_52 : f32 to vector<8x8xf32>
    %157 = arith.mulf %155, %156 : vector<8x8xf32>
    %158 = math.floor %157 : vector<8x8xf32>
    %159 = vector.broadcast %112 : vector<1x8xf32> to vector<8x8xf32>
    %160 = arith.addf %158, %159 : vector<8x8xf32>
    %cst_53 = arith.constant dense<0xFF800000> : vector<8xf32>
    %161 = vector.multi_reduction <maximumf>, %160, %cst_53 [1] : vector<8x8xf32> to vector<8xf32>
    %162 = vector.shape_cast %161 : vector<8xf32> to vector<8x1xf32>
    %163 = vector.broadcast %162 : vector<8x1xf32> to vector<8x8xf32>
    %164 = arith.subf %160, %163 : vector<8x8xf32>
    %165 = math.exp %164 : vector<8x8xf32>
    %cst_54 = arith.constant dense<0.000000e+00> : vector<8xf32>
    %166 = vector.multi_reduction <add>, %165, %cst_54 [1] : vector<8x8xf32> to vector<8xf32>
    %167 = vector.shape_cast %166 : vector<8xf32> to vector<8x1xf32>
    %168 = tpu.reciprocal %167 : vector<8x1xf32> -> vector<8x1xf32>
    %169 = vector.broadcast %168 : vector<8x1xf32> to vector<8x8xf32>
    %170 = arith.mulf %165, %169 : vector<8x8xf32>
    %171 = vector.extract_strided_slice %111 {offsets = [0, 16], sizes = [8, 8], strides = [1, 1]} : vector<8x32xf32> to vector<8x8xf32>
    %cst_55 = arith.constant dense<0.000000e+00> : vector<8x8xf32>
    %172 = tpu.matmul %170, %171, %cst_55 {dimension_numbers = #tpu.dot_dimension_numbers<[1], [0], [0], [1], [0, 0, 1, 1], [], []>, precision = #tpu.contract_precision<fp32>} : vector<8x8xf32>, vector<8x8xf32>, vector<8x8xf32> -> vector<8x8xf32>
    %173 = vector.extract_strided_slice %109 {offsets = [0, 24], sizes = [8, 8], strides = [1, 1]} : vector<8x32xf32> to vector<8x8xf32>
    %174 = vector.extract_strided_slice %110 {offsets = [0, 24], sizes = [8, 8], strides = [1, 1]} : vector<8x32xf32> to vector<8x8xf32>
    %cst_56 = arith.constant dense<0.000000e+00> : vector<8x8xf32>
    %175 = tpu.matmul %173, %174, %cst_56 {dimension_numbers = #tpu.dot_dimension_numbers<[1], [1], [0], [0], [0, 0, 1, 0], [], []>, precision = #tpu.contract_precision<fp32>} : vector<8x8xf32>, vector<8x8xf32>, vector<8x8xf32> -> vector<8x8xf32>
    %cst_57 = arith.constant 0.353553385 : f32
    %176 = vector.broadcast %cst_57 : f32 to vector<8x8xf32>
    %177 = arith.mulf %175, %176 : vector<8x8xf32>
    %178 = math.floor %177 : vector<8x8xf32>
    %179 = vector.broadcast %112 : vector<1x8xf32> to vector<8x8xf32>
    %180 = arith.addf %178, %179 : vector<8x8xf32>
    %cst_58 = arith.constant dense<0xFF800000> : vector<8xf32>
    %181 = vector.multi_reduction <maximumf>, %180, %cst_58 [1] : vector<8x8xf32> to vector<8xf32>
    %182 = vector.shape_cast %181 : vector<8xf32> to vector<8x1xf32>
    %183 = vector.broadcast %182 : vector<8x1xf32> to vector<8x8xf32>
    %184 = arith.subf %180, %183 : vector<8x8xf32>
    %185 = math.exp %184 : vector<8x8xf32>
    %cst_59 = arith.constant dense<0.000000e+00> : vector<8xf32>
    %186 = vector.multi_reduction <add>, %185, %cst_59 [1] : vector<8x8xf32> to vector<8xf32>
    %187 = vector.shape_cast %186 : vector<8xf32> to vector<8x1xf32>
    %188 = tpu.reciprocal %187 : vector<8x1xf32> -> vector<8x1xf32>
    %189 = vector.broadcast %188 : vector<8x1xf32> to vector<8x8xf32>
    %190 = arith.mulf %185, %189 : vector<8x8xf32>
    %191 = vector.extract_strided_slice %111 {offsets = [0, 24], sizes = [8, 8], strides = [1, 1]} : vector<8x32xf32> to vector<8x8xf32>
    %cst_60 = arith.constant dense<0.000000e+00> : vector<8x8xf32>
    %192 = tpu.matmul %190, %191, %cst_60 {dimension_numbers = #tpu.dot_dimension_numbers<[1], [0], [0], [1], [0, 0, 1, 1], [], []>, precision = #tpu.contract_precision<fp32>} : vector<8x8xf32>, vector<8x8xf32>, vector<8x8xf32> -> vector<8x8xf32>
    %193 = tpu.concatenate %132, %152, %172, %192 in 1 : vector<8x8xf32>, vector<8x8xf32>, vector<8x8xf32>, vector<8x8xf32> -> vector<8x32xf32>
    %194 = tpu.concatenate %108, %193 in 0 : vector<8x32xf32>, vector<8x32xf32> -> vector<16x32xf32>
    %cst_61 = arith.constant dense<0.000000e+00> : vector<16x32xf32>
    %195 = tpu.matmul %194, %22, %cst_61 {dimension_numbers = #tpu.dot_dimension_numbers<[1], [0], [0], [1], [0, 0, 1, 1], [], []>, precision = #tpu.contract_precision<fp32>} : vector<16x32xf32>, vector<32x32xf32>, vector<16x32xf32> -> vector<16x32xf32>
    %196 = vector.broadcast %23 : vector<1x32xf32> to vector<16x32xf32>
    %197 = arith.addf %195, %196 : vector<16x32xf32>
    %198 = arith.addf %0, %197 : vector<16x32xf32>
    %c0_62 = arith.constant 0 : index
    %c0_63 = arith.constant 0 : index
    %199 = vector.load %arg8[%c0_62, %c0_63] : memref<1x32xf32, #tpu.memory_space<vmem>>, vector<1x32xf32>
    %c0_64 = arith.constant 0 : index
    %c0_65 = arith.constant 0 : index
    %200 = vector.load %arg9[%c0_64, %c0_65] : memref<1x32xf32, #tpu.memory_space<vmem>>, vector<1x32xf32>
    %cst_66 = arith.constant dense<0.000000e+00> : vector<16xf32>
    %201 = vector.multi_reduction <add>, %198, %cst_66 [1] : vector<16x32xf32> to vector<16xf32>
    %202 = vector.shape_cast %201 : vector<16xf32> to vector<16x1xf32>
    %cst_67 = arith.constant 3.200000e+01 : f32
    %203 = vector.broadcast %cst_67 : f32 to vector<16x1xf32>
    %204 = arith.divf %202, %203 : vector<16x1xf32>
    %205 = vector.broadcast %204 : vector<16x1xf32> to vector<16x32xf32>
    %206 = arith.subf %198, %205 : vector<16x32xf32>
    %207 = arith.mulf %206, %206 : vector<16x32xf32>
    %cst_68 = arith.constant dense<0.000000e+00> : vector<16xf32>
    %208 = vector.multi_reduction <add>, %207, %cst_68 [1] : vector<16x32xf32> to vector<16xf32>
    %209 = vector.shape_cast %208 : vector<16xf32> to vector<16x1xf32>
    %cst_69 = arith.constant 3.200000e+01 : f32
    %210 = vector.broadcast %cst_69 : f32 to vector<16x1xf32>
    %211 = arith.divf %209, %210 : vector<16x1xf32>
    %212 = vector.broadcast %204 : vector<16x1xf32> to vector<16x32xf32>
    %213 = arith.subf %198, %212 : vector<16x32xf32>
    %cst_70 = arith.constant 9.99999974E-6 : f32
    %214 = vector.broadcast %cst_70 : f32 to vector<16x1xf32>
    %215 = arith.addf %211, %214 : vector<16x1xf32>
    %216 = math.rsqrt %215 : vector<16x1xf32>
    %217 = vector.broadcast %216 : vector<16x1xf32> to vector<16x32xf32>
    %218 = arith.mulf %213, %217 : vector<16x32xf32>
    %219 = vector.broadcast %199 : vector<1x32xf32> to vector<16x32xf32>
    %220 = arith.mulf %218, %219 : vector<16x32xf32>
    %221 = vector.broadcast %200 : vector<1x32xf32> to vector<16x32xf32>
    %222 = arith.addf %220, %221 : vector<16x32xf32>
    %c0_71 = arith.constant 0 : index
    %c0_72 = arith.constant 0 : index
    %223 = vector.load %arg10[%c0_71, %c0_72] : memref<32x32xf32, #tpu.memory_space<vmem>>, vector<32x32xf32>
    %cst_73 = arith.constant dense<0.000000e+00> : vector<16x32xf32>
    %224 = tpu.matmul %222, %223, %cst_73 {dimension_numbers = #tpu.dot_dimension_numbers<[1], [0], [0], [1], [0, 0, 1, 1], [], []>, precision = #tpu.contract_precision<fp32>} : vector<16x32xf32>, vector<32x32xf32>, vector<16x32xf32> -> vector<16x32xf32>
    %c0_74 = arith.constant 0 : index
    %c0_75 = arith.constant 0 : index
    %225 = vector.load %arg11[%c0_74, %c0_75] : memref<1x32xf32, #tpu.memory_space<vmem>>, vector<1x32xf32>
    %226 = vector.broadcast %225 : vector<1x32xf32> to vector<16x32xf32>
    %227 = arith.addf %224, %226 : vector<16x32xf32>
    %c0_76 = arith.constant 0 : index
    %c0_77 = arith.constant 0 : index
    %228 = vector.load %arg12[%c0_76, %c0_77] : memref<32x64xf32, #tpu.memory_space<vmem>>, vector<32x64xf32>
    %cst_78 = arith.constant dense<0.000000e+00> : vector<32x64xf32>
    %229 = tpu.matmul %1, %228, %cst_78 {dimension_numbers = #tpu.dot_dimension_numbers<[1], [0], [0], [1], [0, 0, 1, 1], [], []>, precision = #tpu.contract_precision<fp32>} : vector<32x32xf32>, vector<32x64xf32>, vector<32x64xf32> -> vector<32x64xf32>
    %c0_79 = arith.constant 0 : index
    %c0_80 = arith.constant 0 : index
    %230 = vector.load %arg13[%c0_79, %c0_80] : memref<1x64xf32, #tpu.memory_space<vmem>>, vector<1x64xf32>
    %231 = vector.broadcast %230 : vector<1x64xf32> to vector<32x64xf32>
    %232 = arith.addf %229, %231 : vector<32x64xf32>
    %233 = vector.extract_strided_slice %232 {offsets = [0, 0], sizes = [32, 32], strides = [1, 1]} : vector<32x64xf32> to vector<32x32xf32>
    %234 = vector.extract_strided_slice %232 {offsets = [0, 32], sizes = [32, 32], strides = [1, 1]} : vector<32x64xf32> to vector<32x32xf32>
    %c0_81 = arith.constant 0 : index
    %c0_82 = arith.constant 0 : index
    %235 = vector.load %arg14[%c0_81, %c0_82] : memref<32x32xf32, #tpu.memory_space<vmem>>, vector<32x32xf32>
    %c0_83 = arith.constant 0 : index
    %c0_84 = arith.constant 0 : index
    %236 = vector.load %arg15[%c0_83, %c0_84] : memref<1x32xf32, #tpu.memory_space<vmem>>, vector<1x32xf32>
    %237 = vector.extract_strided_slice %227 {offsets = [0, 0], sizes = [8, 32], strides = [1, 1]} : vector<16x32xf32> to vector<8x32xf32>
    %238 = vector.extract_strided_slice %233 {offsets = [0, 0], sizes = [16, 32], strides = [1, 1]} : vector<32x32xf32> to vector<16x32xf32>
    %239 = vector.extract_strided_slice %234 {offsets = [0, 0], sizes = [16, 32], strides = [1, 1]} : vector<32x32xf32> to vector<16x32xf32>
    %240 = vector.extract_strided_slice %13 {offsets = [0, 0], sizes = [1, 16], strides = [1, 1]} : vector<2x16xf32> to vector<1x16xf32>
    %241 = vector.extract_strided_slice %237 {offsets = [0, 0], sizes = [8, 8], strides = [1, 1]} : vector<8x32xf32> to vector<8x8xf32>
    %242 = vector.extract_strided_slice %238 {offsets = [0, 0], sizes = [16, 8], strides = [1, 1]} : vector<16x32xf32> to vector<16x8xf32>
    %cst_85 = arith.constant dense<0.000000e+00> : vector<8x16xf32>
    %243 = tpu.matmul %241, %242, %cst_85 {dimension_numbers = #tpu.dot_dimension_numbers<[1], [1], [0], [0], [0, 0, 1, 0], [], []>, precision = #tpu.contract_precision<fp32>} : vector<8x8xf32>, vector<16x8xf32>, vector<8x16xf32> -> vector<8x16xf32>
    %cst_86 = arith.constant 0.353553385 : f32
    %244 = vector.broadcast %cst_86 : f32 to vector<8x16xf32>
    %245 = arith.mulf %243, %244 : vector<8x16xf32>
    %246 = math.floor %245 : vector<8x16xf32>
    %247 = vector.broadcast %240 : vector<1x16xf32> to vector<8x16xf32>
    %248 = arith.addf %246, %247 : vector<8x16xf32>
    %cst_87 = arith.constant dense<0xFF800000> : vector<8xf32>
    %249 = vector.multi_reduction <maximumf>, %248, %cst_87 [1] : vector<8x16xf32> to vector<8xf32>
    %250 = vector.shape_cast %249 : vector<8xf32> to vector<8x1xf32>
    %251 = vector.broadcast %250 : vector<8x1xf32> to vector<8x16xf32>
    %252 = arith.subf %248, %251 : vector<8x16xf32>
    %253 = math.exp %252 : vector<8x16xf32>
    %cst_88 = arith.constant dense<0.000000e+00> : vector<8xf32>
    %254 = vector.multi_reduction <add>, %253, %cst_88 [1] : vector<8x16xf32> to vector<8xf32>
    %255 = vector.shape_cast %254 : vector<8xf32> to vector<8x1xf32>
    %256 = tpu.reciprocal %255 : vector<8x1xf32> -> vector<8x1xf32>
    %257 = vector.broadcast %256 : vector<8x1xf32> to vector<8x16xf32>
    %258 = arith.mulf %253, %257 : vector<8x16xf32>
    %259 = vector.extract_strided_slice %239 {offsets = [0, 0], sizes = [16, 8], strides = [1, 1]} : vector<16x32xf32> to vector<16x8xf32>
    %cst_89 = arith.constant dense<0.000000e+00> : vector<8x8xf32>
    %260 = tpu.matmul %258, %259, %cst_89 {dimension_numbers = #tpu.dot_dimension_numbers<[1], [0], [0], [1], [0, 0, 1, 1], [], []>, precision = #tpu.contract_precision<fp32>} : vector<8x16xf32>, vector<16x8xf32>, vector<8x8xf32> -> vector<8x8xf32>
    %261 = vector.extract_strided_slice %237 {offsets = [0, 8], sizes = [8, 8], strides = [1, 1]} : vector<8x32xf32> to vector<8x8xf32>
    %262 = vector.extract_strided_slice %238 {offsets = [0, 8], sizes = [16, 8], strides = [1, 1]} : vector<16x32xf32> to vector<16x8xf32>
    %cst_90 = arith.constant dense<0.000000e+00> : vector<8x16xf32>
    %263 = tpu.matmul %261, %262, %cst_90 {dimension_numbers = #tpu.dot_dimension_numbers<[1], [1], [0], [0], [0, 0, 1, 0], [], []>, precision = #tpu.contract_precision<fp32>} : vector<8x8xf32>, vector<16x8xf32>, vector<8x16xf32> -> vector<8x16xf32>
    %cst_91 = arith.constant 0.353553385 : f32
    %264 = vector.broadcast %cst_91 : f32 to vector<8x16xf32>
    %265 = arith.mulf %263, %264 : vector<8x16xf32>
    %266 = math.floor %265 : vector<8x16xf32>
    %267 = vector.broadcast %240 : vector<1x16xf32> to vector<8x16xf32>
    %268 = arith.addf %266, %267 : vector<8x16xf32>
    %cst_92 = arith.constant dense<0xFF800000> : vector<8xf32>
    %269 = vector.multi_reduction <maximumf>, %268, %cst_92 [1] : vector<8x16xf32> to vector<8xf32>
    %270 = vector.shape_cast %269 : vector<8xf32> to vector<8x1xf32>
    %271 = vector.broadcast %270 : vector<8x1xf32> to vector<8x16xf32>
    %272 = arith.subf %268, %271 : vector<8x16xf32>
    %273 = math.exp %272 : vector<8x16xf32>
    %cst_93 = arith.constant dense<0.000000e+00> : vector<8xf32>
    %274 = vector.multi_reduction <add>, %273, %cst_93 [1] : vector<8x16xf32> to vector<8xf32>
    %275 = vector.shape_cast %274 : vector<8xf32> to vector<8x1xf32>
    %276 = tpu.reciprocal %275 : vector<8x1xf32> -> vector<8x1xf32>
    %277 = vector.broadcast %276 : vector<8x1xf32> to vector<8x16xf32>
    %278 = arith.mulf %273, %277 : vector<8x16xf32>
    %279 = vector.extract_strided_slice %239 {offsets = [0, 8], sizes = [16, 8], strides = [1, 1]} : vector<16x32xf32> to vector<16x8xf32>
    %cst_94 = arith.constant dense<0.000000e+00> : vector<8x8xf32>
    %280 = tpu.matmul %278, %279, %cst_94 {dimension_numbers = #tpu.dot_dimension_numbers<[1], [0], [0], [1], [0, 0, 1, 1], [], []>, precision = #tpu.contract_precision<fp32>} : vector<8x16xf32>, vector<16x8xf32>, vector<8x8xf32> -> vector<8x8xf32>
    %281 = vector.extract_strided_slice %237 {offsets = [0, 16], sizes = [8, 8], strides = [1, 1]} : vector<8x32xf32> to vector<8x8xf32>
    %282 = vector.extract_strided_slice %238 {offsets = [0, 16], sizes = [16, 8], strides = [1, 1]} : vector<16x32xf32> to vector<16x8xf32>
    %cst_95 = arith.constant dense<0.000000e+00> : vector<8x16xf32>
    %283 = tpu.matmul %281, %282, %cst_95 {dimension_numbers = #tpu.dot_dimension_numbers<[1], [1], [0], [0], [0, 0, 1, 0], [], []>, precision = #tpu.contract_precision<fp32>} : vector<8x8xf32>, vector<16x8xf32>, vector<8x16xf32> -> vector<8x16xf32>
    %cst_96 = arith.constant 0.353553385 : f32
    %284 = vector.broadcast %cst_96 : f32 to vector<8x16xf32>
    %285 = arith.mulf %283, %284 : vector<8x16xf32>
    %286 = math.floor %285 : vector<8x16xf32>
    %287 = vector.broadcast %240 : vector<1x16xf32> to vector<8x16xf32>
    %288 = arith.addf %286, %287 : vector<8x16xf32>
    %cst_97 = arith.constant dense<0xFF800000> : vector<8xf32>
    %289 = vector.multi_reduction <maximumf>, %288, %cst_97 [1] : vector<8x16xf32> to vector<8xf32>
    %290 = vector.shape_cast %289 : vector<8xf32> to vector<8x1xf32>
    %291 = vector.broadcast %290 : vector<8x1xf32> to vector<8x16xf32>
    %292 = arith.subf %288, %291 : vector<8x16xf32>
    %293 = math.exp %292 : vector<8x16xf32>
    %cst_98 = arith.constant dense<0.000000e+00> : vector<8xf32>
    %294 = vector.multi_reduction <add>, %293, %cst_98 [1] : vector<8x16xf32> to vector<8xf32>
    %295 = vector.shape_cast %294 : vector<8xf32> to vector<8x1xf32>
    %296 = tpu.reciprocal %295 : vector<8x1xf32> -> vector<8x1xf32>
    %297 = vector.broadcast %296 : vector<8x1xf32> to vector<8x16xf32>
    %298 = arith.mulf %293, %297 : vector<8x16xf32>
    %299 = vector.extract_strided_slice %239 {offsets = [0, 16], sizes = [16, 8], strides = [1, 1]} : vector<16x32xf32> to vector<16x8xf32>
    %cst_99 = arith.constant dense<0.000000e+00> : vector<8x8xf32>
    %300 = tpu.matmul %298, %299, %cst_99 {dimension_numbers = #tpu.dot_dimension_numbers<[1], [0], [0], [1], [0, 0, 1, 1], [], []>, precision = #tpu.contract_precision<fp32>} : vector<8x16xf32>, vector<16x8xf32>, vector<8x8xf32> -> vector<8x8xf32>
    %301 = vector.extract_strided_slice %237 {offsets = [0, 24], sizes = [8, 8], strides = [1, 1]} : vector<8x32xf32> to vector<8x8xf32>
    %302 = vector.extract_strided_slice %238 {offsets = [0, 24], sizes = [16, 8], strides = [1, 1]} : vector<16x32xf32> to vector<16x8xf32>
    %cst_100 = arith.constant dense<0.000000e+00> : vector<8x16xf32>
    %303 = tpu.matmul %301, %302, %cst_100 {dimension_numbers = #tpu.dot_dimension_numbers<[1], [1], [0], [0], [0, 0, 1, 0], [], []>, precision = #tpu.contract_precision<fp32>} : vector<8x8xf32>, vector<16x8xf32>, vector<8x16xf32> -> vector<8x16xf32>
    %cst_101 = arith.constant 0.353553385 : f32
    %304 = vector.broadcast %cst_101 : f32 to vector<8x16xf32>
    %305 = arith.mulf %303, %304 : vector<8x16xf32>
    %306 = math.floor %305 : vector<8x16xf32>
    %307 = vector.broadcast %240 : vector<1x16xf32> to vector<8x16xf32>
    %308 = arith.addf %306, %307 : vector<8x16xf32>
    %cst_102 = arith.constant dense<0xFF800000> : vector<8xf32>
    %309 = vector.multi_reduction <maximumf>, %308, %cst_102 [1] : vector<8x16xf32> to vector<8xf32>
    %310 = vector.shape_cast %309 : vector<8xf32> to vector<8x1xf32>
    %311 = vector.broadcast %310 : vector<8x1xf32> to vector<8x16xf32>
    %312 = arith.subf %308, %311 : vector<8x16xf32>
    %313 = math.exp %312 : vector<8x16xf32>
    %cst_103 = arith.constant dense<0.000000e+00> : vector<8xf32>
    %314 = vector.multi_reduction <add>, %313, %cst_103 [1] : vector<8x16xf32> to vector<8xf32>
    %315 = vector.shape_cast %314 : vector<8xf32> to vector<8x1xf32>
    %316 = tpu.reciprocal %315 : vector<8x1xf32> -> vector<8x1xf32>
    %317 = vector.broadcast %316 : vector<8x1xf32> to vector<8x16xf32>
    %318 = arith.mulf %313, %317 : vector<8x16xf32>
    %319 = vector.extract_strided_slice %239 {offsets = [0, 24], sizes = [16, 8], strides = [1, 1]} : vector<16x32xf32> to vector<16x8xf32>
    %cst_104 = arith.constant dense<0.000000e+00> : vector<8x8xf32>
    %320 = tpu.matmul %318, %319, %cst_104 {dimension_numbers = #tpu.dot_dimension_numbers<[1], [0], [0], [1], [0, 0, 1, 1], [], []>, precision = #tpu.contract_precision<fp32>} : vector<8x16xf32>, vector<16x8xf32>, vector<8x8xf32> -> vector<8x8xf32>
    %321 = tpu.concatenate %260, %280, %300, %320 in 1 : vector<8x8xf32>, vector<8x8xf32>, vector<8x8xf32>, vector<8x8xf32> -> vector<8x32xf32>
    %322 = vector.extract_strided_slice %227 {offsets = [8, 0], sizes = [8, 32], strides = [1, 1]} : vector<16x32xf32> to vector<8x32xf32>
    %323 = vector.extract_strided_slice %233 {offsets = [16, 0], sizes = [16, 32], strides = [1, 1]} : vector<32x32xf32> to vector<16x32xf32>
    %324 = vector.extract_strided_slice %234 {offsets = [16, 0], sizes = [16, 32], strides = [1, 1]} : vector<32x32xf32> to vector<16x32xf32>
    %325 = vector.extract_strided_slice %13 {offsets = [1, 0], sizes = [1, 16], strides = [1, 1]} : vector<2x16xf32> to vector<1x16xf32>
    %326 = vector.extract_strided_slice %322 {offsets = [0, 0], sizes = [8, 8], strides = [1, 1]} : vector<8x32xf32> to vector<8x8xf32>
    %327 = vector.extract_strided_slice %323 {offsets = [0, 0], sizes = [16, 8], strides = [1, 1]} : vector<16x32xf32> to vector<16x8xf32>
    %cst_105 = arith.constant dense<0.000000e+00> : vector<8x16xf32>
    %328 = tpu.matmul %326, %327, %cst_105 {dimension_numbers = #tpu.dot_dimension_numbers<[1], [1], [0], [0], [0, 0, 1, 0], [], []>, precision = #tpu.contract_precision<fp32>} : vector<8x8xf32>, vector<16x8xf32>, vector<8x16xf32> -> vector<8x16xf32>
    %cst_106 = arith.constant 0.353553385 : f32
    %329 = vector.broadcast %cst_106 : f32 to vector<8x16xf32>
    %330 = arith.mulf %328, %329 : vector<8x16xf32>
    %331 = math.floor %330 : vector<8x16xf32>
    %332 = vector.broadcast %325 : vector<1x16xf32> to vector<8x16xf32>
    %333 = arith.addf %331, %332 : vector<8x16xf32>
    %cst_107 = arith.constant dense<0xFF800000> : vector<8xf32>
    %334 = vector.multi_reduction <maximumf>, %333, %cst_107 [1] : vector<8x16xf32> to vector<8xf32>
    %335 = vector.shape_cast %334 : vector<8xf32> to vector<8x1xf32>
    %336 = vector.broadcast %335 : vector<8x1xf32> to vector<8x16xf32>
    %337 = arith.subf %333, %336 : vector<8x16xf32>
    %338 = math.exp %337 : vector<8x16xf32>
    %cst_108 = arith.constant dense<0.000000e+00> : vector<8xf32>
    %339 = vector.multi_reduction <add>, %338, %cst_108 [1] : vector<8x16xf32> to vector<8xf32>
    %340 = vector.shape_cast %339 : vector<8xf32> to vector<8x1xf32>
    %341 = tpu.reciprocal %340 : vector<8x1xf32> -> vector<8x1xf32>
    %342 = vector.broadcast %341 : vector<8x1xf32> to vector<8x16xf32>
    %343 = arith.mulf %338, %342 : vector<8x16xf32>
    %344 = vector.extract_strided_slice %324 {offsets = [0, 0], sizes = [16, 8], strides = [1, 1]} : vector<16x32xf32> to vector<16x8xf32>
    %cst_109 = arith.constant dense<0.000000e+00> : vector<8x8xf32>
    %345 = tpu.matmul %343, %344, %cst_109 {dimension_numbers = #tpu.dot_dimension_numbers<[1], [0], [0], [1], [0, 0, 1, 1], [], []>, precision = #tpu.contract_precision<fp32>} : vector<8x16xf32>, vector<16x8xf32>, vector<8x8xf32> -> vector<8x8xf32>
    %346 = vector.extract_strided_slice %322 {offsets = [0, 8], sizes = [8, 8], strides = [1, 1]} : vector<8x32xf32> to vector<8x8xf32>
    %347 = vector.extract_strided_slice %323 {offsets = [0, 8], sizes = [16, 8], strides = [1, 1]} : vector<16x32xf32> to vector<16x8xf32>
    %cst_110 = arith.constant dense<0.000000e+00> : vector<8x16xf32>
    %348 = tpu.matmul %346, %347, %cst_110 {dimension_numbers = #tpu.dot_dimension_numbers<[1], [1], [0], [0], [0, 0, 1, 0], [], []>, precision = #tpu.contract_precision<fp32>} : vector<8x8xf32>, vector<16x8xf32>, vector<8x16xf32> -> vector<8x16xf32>
    %cst_111 = arith.constant 0.353553385 : f32
    %349 = vector.broadcast %cst_111 : f32 to vector<8x16xf32>
    %350 = arith.mulf %348, %349 : vector<8x16xf32>
    %351 = math.floor %350 : vector<8x16xf32>
    %352 = vector.broadcast %325 : vector<1x16xf32> to vector<8x16xf32>
    %353 = arith.addf %351, %352 : vector<8x16xf32>
    %cst_112 = arith.constant dense<0xFF800000> : vector<8xf32>
    %354 = vector.multi_reduction <maximumf>, %353, %cst_112 [1] : vector<8x16xf32> to vector<8xf32>
    %355 = vector.shape_cast %354 : vector<8xf32> to vector<8x1xf32>
    %356 = vector.broadcast %355 : vector<8x1xf32> to vector<8x16xf32>
    %357 = arith.subf %353, %356 : vector<8x16xf32>
    %358 = math.exp %357 : vector<8x16xf32>
    %cst_113 = arith.constant dense<0.000000e+00> : vector<8xf32>
    %359 = vector.multi_reduction <add>, %358, %cst_113 [1] : vector<8x16xf32> to vector<8xf32>
    %360 = vector.shape_cast %359 : vector<8xf32> to vector<8x1xf32>
    %361 = tpu.reciprocal %360 : vector<8x1xf32> -> vector<8x1xf32>
    %362 = vector.broadcast %361 : vector<8x1xf32> to vector<8x16xf32>
    %363 = arith.mulf %358, %362 : vector<8x16xf32>
    %364 = vector.extract_strided_slice %324 {offsets = [0, 8], sizes = [16, 8], strides = [1, 1]} : vector<16x32xf32> to vector<16x8xf32>
    %cst_114 = arith.constant dense<0.000000e+00> : vector<8x8xf32>
    %365 = tpu.matmul %363, %364, %cst_114 {dimension_numbers = #tpu.dot_dimension_numbers<[1], [0], [0], [1], [0, 0, 1, 1], [], []>, precision = #tpu.contract_precision<fp32>} : vector<8x16xf32>, vector<16x8xf32>, vector<8x8xf32> -> vector<8x8xf32>
    %366 = vector.extract_strided_slice %322 {offsets = [0, 16], sizes = [8, 8], strides = [1, 1]} : vector<8x32xf32> to vector<8x8xf32>
    %367 = vector.extract_strided_slice %323 {offsets = [0, 16], sizes = [16, 8], strides = [1, 1]} : vector<16x32xf32> to vector<16x8xf32>
    %cst_115 = arith.constant dense<0.000000e+00> : vector<8x16xf32>
    %368 = tpu.matmul %366, %367, %cst_115 {dimension_numbers = #tpu.dot_dimension_numbers<[1], [1], [0], [0], [0, 0, 1, 0], [], []>, precision = #tpu.contract_precision<fp32>} : vector<8x8xf32>, vector<16x8xf32>, vector<8x16xf32> -> vector<8x16xf32>
    %cst_116 = arith.constant 0.353553385 : f32
    %369 = vector.broadcast %cst_116 : f32 to vector<8x16xf32>
    %370 = arith.mulf %368, %369 : vector<8x16xf32>
    %371 = math.floor %370 : vector<8x16xf32>
    %372 = vector.broadcast %325 : vector<1x16xf32> to vector<8x16xf32>
    %373 = arith.addf %371, %372 : vector<8x16xf32>
    %cst_117 = arith.constant dense<0xFF800000> : vector<8xf32>
    %374 = vector.multi_reduction <maximumf>, %373, %cst_117 [1] : vector<8x16xf32> to vector<8xf32>
    %375 = vector.shape_cast %374 : vector<8xf32> to vector<8x1xf32>
    %376 = vector.broadcast %375 : vector<8x1xf32> to vector<8x16xf32>
    %377 = arith.subf %373, %376 : vector<8x16xf32>
    %378 = math.exp %377 : vector<8x16xf32>
    %cst_118 = arith.constant dense<0.000000e+00> : vector<8xf32>
    %379 = vector.multi_reduction <add>, %378, %cst_118 [1] : vector<8x16xf32> to vector<8xf32>
    %380 = vector.shape_cast %379 : vector<8xf32> to vector<8x1xf32>
    %381 = tpu.reciprocal %380 : vector<8x1xf32> -> vector<8x1xf32>
    %382 = vector.broadcast %381 : vector<8x1xf32> to vector<8x16xf32>
    %383 = arith.mulf %378, %382 : vector<8x16xf32>
    %384 = vector.extract_strided_slice %324 {offsets = [0, 16], sizes = [16, 8], strides = [1, 1]} : vector<16x32xf32> to vector<16x8xf32>
    %cst_119 = arith.constant dense<0.000000e+00> : vector<8x8xf32>
    %385 = tpu.matmul %383, %384, %cst_119 {dimension_numbers = #tpu.dot_dimension_numbers<[1], [0], [0], [1], [0, 0, 1, 1], [], []>, precision = #tpu.contract_precision<fp32>} : vector<8x16xf32>, vector<16x8xf32>, vector<8x8xf32> -> vector<8x8xf32>
    %386 = vector.extract_strided_slice %322 {offsets = [0, 24], sizes = [8, 8], strides = [1, 1]} : vector<8x32xf32> to vector<8x8xf32>
    %387 = vector.extract_strided_slice %323 {offsets = [0, 24], sizes = [16, 8], strides = [1, 1]} : vector<16x32xf32> to vector<16x8xf32>
    %cst_120 = arith.constant dense<0.000000e+00> : vector<8x16xf32>
    %388 = tpu.matmul %386, %387, %cst_120 {dimension_numbers = #tpu.dot_dimension_numbers<[1], [1], [0], [0], [0, 0, 1, 0], [], []>, precision = #tpu.contract_precision<fp32>} : vector<8x8xf32>, vector<16x8xf32>, vector<8x16xf32> -> vector<8x16xf32>
    %cst_121 = arith.constant 0.353553385 : f32
    %389 = vector.broadcast %cst_121 : f32 to vector<8x16xf32>
    %390 = arith.mulf %388, %389 : vector<8x16xf32>
    %391 = math.floor %390 : vector<8x16xf32>
    %392 = vector.broadcast %325 : vector<1x16xf32> to vector<8x16xf32>
    %393 = arith.addf %391, %392 : vector<8x16xf32>
    %cst_122 = arith.constant dense<0xFF800000> : vector<8xf32>
    %394 = vector.multi_reduction <maximumf>, %393, %cst_122 [1] : vector<8x16xf32> to vector<8xf32>
    %395 = vector.shape_cast %394 : vector<8xf32> to vector<8x1xf32>
    %396 = vector.broadcast %395 : vector<8x1xf32> to vector<8x16xf32>
    %397 = arith.subf %393, %396 : vector<8x16xf32>
    %398 = math.exp %397 : vector<8x16xf32>
    %cst_123 = arith.constant dense<0.000000e+00> : vector<8xf32>
    %399 = vector.multi_reduction <add>, %398, %cst_123 [1] : vector<8x16xf32> to vector<8xf32>
    %400 = vector.shape_cast %399 : vector<8xf32> to vector<8x1xf32>
    %401 = tpu.reciprocal %400 : vector<8x1xf32> -> vector<8x1xf32>
    %402 = vector.broadcast %401 : vector<8x1xf32> to vector<8x16xf32>
    %403 = arith.mulf %398, %402 : vector<8x16xf32>
    %404 = vector.extract_strided_slice %324 {offsets = [0, 24], sizes = [16, 8], strides = [1, 1]} : vector<16x32xf32> to vector<16x8xf32>
    %cst_124 = arith.constant dense<0.000000e+00> : vector<8x8xf32>
    %405 = tpu.matmul %403, %404, %cst_124 {dimension_numbers = #tpu.dot_dimension_numbers<[1], [0], [0], [1], [0, 0, 1, 1], [], []>, precision = #tpu.contract_precision<fp32>} : vector<8x16xf32>, vector<16x8xf32>, vector<8x8xf32> -> vector<8x8xf32>
    %406 = tpu.concatenate %345, %365, %385, %405 in 1 : vector<8x8xf32>, vector<8x8xf32>, vector<8x8xf32>, vector<8x8xf32> -> vector<8x32xf32>
    %407 = tpu.concatenate %321, %406 in 0 : vector<8x32xf32>, vector<8x32xf32> -> vector<16x32xf32>
    %cst_125 = arith.constant dense<0.000000e+00> : vector<16x32xf32>
    %408 = tpu.matmul %407, %235, %cst_125 {dimension_numbers = #tpu.dot_dimension_numbers<[1], [0], [0], [1], [0, 0, 1, 1], [], []>, precision = #tpu.contract_precision<fp32>} : vector<16x32xf32>, vector<32x32xf32>, vector<16x32xf32> -> vector<16x32xf32>
    %409 = vector.broadcast %236 : vector<1x32xf32> to vector<16x32xf32>
    %410 = arith.addf %408, %409 : vector<16x32xf32>
    %411 = arith.addf %222, %410 : vector<16x32xf32>
    %c0_126 = arith.constant 0 : index
    %c0_127 = arith.constant 0 : index
    %412 = vector.load %arg16[%c0_126, %c0_127] : memref<1x32xf32, #tpu.memory_space<vmem>>, vector<1x32xf32>
    %c0_128 = arith.constant 0 : index
    %c0_129 = arith.constant 0 : index
    %413 = vector.load %arg17[%c0_128, %c0_129] : memref<1x32xf32, #tpu.memory_space<vmem>>, vector<1x32xf32>
    %cst_130 = arith.constant dense<0.000000e+00> : vector<16xf32>
    %414 = vector.multi_reduction <add>, %411, %cst_130 [1] : vector<16x32xf32> to vector<16xf32>
    %415 = vector.shape_cast %414 : vector<16xf32> to vector<16x1xf32>
    %cst_131 = arith.constant 3.200000e+01 : f32
    %416 = vector.broadcast %cst_131 : f32 to vector<16x1xf32>
    %417 = arith.divf %415, %416 : vector<16x1xf32>
    %418 = vector.broadcast %417 : vector<16x1xf32> to vector<16x32xf32>
    %419 = arith.subf %411, %418 : vector<16x32xf32>
    %420 = arith.mulf %419, %419 : vector<16x32xf32>
    %cst_132 = arith.constant dense<0.000000e+00> : vector<16xf32>
    %421 = vector.multi_reduction <add>, %420, %cst_132 [1] : vector<16x32xf32> to vector<16xf32>
    %422 = vector.shape_cast %421 : vector<16xf32> to vector<16x1xf32>
    %cst_133 = arith.constant 3.200000e+01 : f32
    %423 = vector.broadcast %cst_133 : f32 to vector<16x1xf32>
    %424 = arith.divf %422, %423 : vector<16x1xf32>
    %425 = vector.broadcast %417 : vector<16x1xf32> to vector<16x32xf32>
    %426 = arith.subf %411, %425 : vector<16x32xf32>
    %cst_134 = arith.constant 9.99999974E-6 : f32
    %427 = vector.broadcast %cst_134 : f32 to vector<16x1xf32>
    %428 = arith.addf %424, %427 : vector<16x1xf32>
    %429 = math.rsqrt %428 : vector<16x1xf32>
    %430 = vector.broadcast %429 : vector<16x1xf32> to vector<16x32xf32>
    %431 = arith.mulf %426, %430 : vector<16x32xf32>
    %432 = vector.broadcast %412 : vector<1x32xf32> to vector<16x32xf32>
    %433 = arith.mulf %431, %432 : vector<16x32xf32>
    %434 = vector.broadcast %413 : vector<1x32xf32> to vector<16x32xf32>
    %435 = arith.addf %433, %434 : vector<16x32xf32>
    %c0_135 = arith.constant 0 : index
    %c0_136 = arith.constant 0 : index
    %436 = vector.load %arg18[%c0_135, %c0_136] : memref<32x64xf32, #tpu.memory_space<vmem>>, vector<32x64xf32>
    %cst_137 = arith.constant dense<0.000000e+00> : vector<16x64xf32>
    %437 = tpu.matmul %435, %436, %cst_137 {dimension_numbers = #tpu.dot_dimension_numbers<[1], [0], [0], [1], [0, 0, 1, 1], [], []>, precision = #tpu.contract_precision<fp32>} : vector<16x32xf32>, vector<32x64xf32>, vector<16x64xf32> -> vector<16x64xf32>
    %c0_138 = arith.constant 0 : index
    %c0_139 = arith.constant 0 : index
    %438 = vector.load %arg19[%c0_138, %c0_139] : memref<1x64xf32, #tpu.memory_space<vmem>>, vector<1x64xf32>
    %439 = vector.broadcast %438 : vector<1x64xf32> to vector<16x64xf32>
    %440 = arith.addf %437, %439 : vector<16x64xf32>
    %cst_140 = arith.constant 0.000000e+00 : f32
    %441 = vector.broadcast %cst_140 : f32 to vector<16x64xf32>
    %442 = arith.maximumf %440, %441 : vector<16x64xf32>
    %c0_141 = arith.constant 0 : index
    %c0_142 = arith.constant 0 : index
    %443 = vector.load %arg20[%c0_141, %c0_142] : memref<64x32xf32, #tpu.memory_space<vmem>>, vector<64x32xf32>
    %cst_143 = arith.constant dense<0.000000e+00> : vector<16x32xf32>
    %444 = tpu.matmul %442, %443, %cst_143 {dimension_numbers = #tpu.dot_dimension_numbers<[1], [0], [0], [1], [0, 0, 1, 1], [], []>, precision = #tpu.contract_precision<fp32>} : vector<16x64xf32>, vector<64x32xf32>, vector<16x32xf32> -> vector<16x32xf32>
    %c0_144 = arith.constant 0 : index
    %c0_145 = arith.constant 0 : index
    %445 = vector.load %arg21[%c0_144, %c0_145] : memref<1x32xf32, #tpu.memory_space<vmem>>, vector<1x32xf32>
    %446 = vector.broadcast %445 : vector<1x32xf32> to vector<16x32xf32>
    %447 = arith.addf %444, %446 : vector<16x32xf32>
    %448 = arith.addf %435, %447 : vector<16x32xf32>
    %c0_146 = arith.constant 0 : index
    %c0_147 = arith.constant 0 : index
    %449 = vector.load %arg22[%c0_146, %c0_147] : memref<1x32xf32, #tpu.memory_space<vmem>>, vector<1x32xf32>
    %c0_148 = arith.constant 0 : index
    %c0_149 = arith.constant 0 : index
    %450 = vector.load %arg23[%c0_148, %c0_149] : memref<1x32xf32, #tpu.memory_space<vmem>>, vector<1x32xf32>
    %cst_150 = arith.constant dense<0.000000e+00> : vector<16xf32>
    %451 = vector.multi_reduction <add>, %448, %cst_150 [1] : vector<16x32xf32> to vector<16xf32>
    %452 = vector.shape_cast %451 : vector<16xf32> to vector<16x1xf32>
    %cst_151 = arith.constant 3.200000e+01 : f32
    %453 = vector.broadcast %cst_151 : f32 to vector<16x1xf32>
    %454 = arith.divf %452, %453 : vector<16x1xf32>
    %455 = vector.broadcast %454 : vector<16x1xf32> to vector<16x32xf32>
    %456 = arith.subf %448, %455 : vector<16x32xf32>
    %457 = arith.mulf %456, %456 : vector<16x32xf32>
    %cst_152 = arith.constant dense<0.000000e+00> : vector<16xf32>
    %458 = vector.multi_reduction <add>, %457, %cst_152 [1] : vector<16x32xf32> to vector<16xf32>
    %459 = vector.shape_cast %458 : vector<16xf32> to vector<16x1xf32>
    %cst_153 = arith.constant 3.200000e+01 : f32
    %460 = vector.broadcast %cst_153 : f32 to vector<16x1xf32>
    %461 = arith.divf %459, %460 : vector<16x1xf32>
    %462 = vector.broadcast %454 : vector<16x1xf32> to vector<16x32xf32>
    %463 = arith.subf %448, %462 : vector<16x32xf32>
    %cst_154 = arith.constant 9.99999974E-6 : f32
    %464 = vector.broadcast %cst_154 : f32 to vector<16x1xf32>
    %465 = arith.addf %461, %464 : vector<16x1xf32>
    %466 = math.rsqrt %465 : vector<16x1xf32>
    %467 = vector.broadcast %466 : vector<16x1xf32> to vector<16x32xf32>
    %468 = arith.mulf %463, %467 : vector<16x32xf32>
    %469 = vector.broadcast %449 : vector<1x32xf32> to vector<16x32xf32>
    %470 = arith.mulf %468, %469 : vector<16x32xf32>
    %471 = vector.broadcast %450 : vector<1x32xf32> to vector<16x32xf32>
    %472 = arith.addf %470, %471 : vector<16x32xf32>
    %c0_155 = arith.constant 0 : index
    %c0_156 = arith.constant 0 : index
    %473 = vector.load %arg24[%c0_155, %c0_156] : memref<16x32xf32, #tpu.memory_space<vmem>>, vector<16x32xf32>
    tpu.vector_store %arg24[%c0_155, %c0_156], %472 {strides = array<i32>} : memref<16x32xf32, #tpu.memory_space<vmem>>, vector<16x32xf32>,
    return
  }
}

</mosaic_0001>

<bundles_post_ra>
// kernel: decoder_layer_forward.1
= control target key start
LH: loop header
LB: loop body
LE: loop exit
PB: predicated region body
PF: predicated region fallthrough
CT: control target
= control target key end

     0   :  { %s24435_s0 = inlined_call_operand.hbm [shape: f32[16,32], index: 0, kind: input, shape index: {}]   ;;  %s24436_s1 = inlined_call_operand.vmem [shape: f32[32,32], index: 1, kind: input, shape index: {}]   ;;  %s24437_s2 = inlined_call_operand.vmem [shape: f32[2,8], index: 2, kind: input, shape index: {}]   ;;  %s24438_s3 = inlined_call_operand.vmem [shape: f32[2,16], index: 3, kind: input, shape index: {}]   ;;  %s24439_s4 = inlined_call_operand.vmem [shape: f32[32,96], index: 4, kind: input, shape index: {}]   ;;  %s24440_s5 = inlined_call_operand.vmem [shape: f32[1,96], index: 5, kind: input, shape index: {}]   ;;  %s24441_s6 = inlined_call_operand.vmem [shape: f32[32,32], index: 6, kind: input, shape index: {}]   ;;  %s24442_s7 = inlined_call_operand.vmem [shape: f32[1,32], index: 7, kind: input, shape index: {}]   ;;  %s24443_s8 = inlined_call_operand.vmem [shape: f32[1,32], index: 8, kind: input, shape index: {}]   ;;  %s24444_s9 = inlined_call_operand.vmem [shape: f32[1,32], index: 9, kind: input, shape index: {}]   ;;  %s24445_s10 = inlined_call_operand.hbm [shape: f32[32,32], index: 10, kind: input, shape index: {}]   ;;  %s24446_s11 = inlined_call_operand.vmem [shape: f32[1,32], index: 11, kind: input, shape index: {}]   ;;  %s24447_s12 = inlined_call_operand.hbm [shape: f32[32,64], index: 12, kind: input, shape index: {}]   ;;  %s24448_s13 = inlined_call_operand.vmem [shape: f32[1,64], index: 13, kind: input, shape index: {}]   ;;  %s24449_s14 = inlined_call_operand.hbm [shape: f32[32,32], index: 14, kind: input, shape index: {}]   ;;  %s24450_s15 = inlined_call_operand.vmem [shape: f32[1,32], index: 15, kind: input, shape index: {}]   ;;  %s24451_s16 = inlined_call_operand.vmem [shape: f32[1,32], index: 16, kind: input, shape index: {}]   ;;  %s24452_s17 = inlined_call_operand.vmem [shape: f32[1,32], index: 17, kind: input, shape index: {}]   ;;  %s24453_s18 = inlined_call_operand.hbm [shape: f32[32,64], index: 18, kind: input, shape index: {}]   ;;  %s24454_s19 = inlined_call_operand.vmem [shape: f32[1,64], index: 19, kind: input, shape index: {}]   ;;  %s24455_s20 = inlined_call_operand.vmem [shape: f32[64,32], index: 20, kind: input, shape index: {}]   ;;  %s24456_s21 = inlined_call_operand.vmem [shape: f32[1,32], index: 21, kind: input, shape index: {}]   ;;  %s24457_s22 = inlined_call_operand.vmem [shape: f32[1,32], index: 22, kind: input, shape index: {}]   ;;  %s24458_s23 = inlined_call_operand.vmem [shape: f32[1,32], index: 23, kind: input, shape index: {}]   ;;  %s24459_s24 = inlined_call_operand.hbm [shape: f32[16,32], index: 24, kind: output, shape index: {}]  }
   0x1   :  { %24463 = sst [smem:[#allocation16_spill]] %s24435_s0 }
   0x2   :  { %24464 = sst [smem:[#allocation17_spill]] %s24436_s1 }
   0x3   :  { %24465 = sst [smem:[#allocation18_spill]] %s24437_s2 }
   0x4   :  { %24466 = sst [smem:[#allocation19_spill]] %s24438_s3 }
   0x5   :  { %24467 = sst [smem:[#allocation20_spill]] %s24439_s4 }
   0x6   :  { %24468 = sst [smem:[#allocation21_spill]] %s24440_s5 }
   0x7   :  { %24469 = sst [smem:[#allocation22_spill]] %s24441_s6 }
   0x8   :  { %24470 = sst [smem:[#allocation23_spill]] %s24442_s7 }
   0x9   :  { %24471 = sst [smem:[#allocation24_spill]] %s24443_s8 }
   0xa   :  { %29 = vsyncpa [#allocation3], 0 }
   0xb   :  { %30 = vsyncpa [#allocation6], 0 }
   0xc   :  { %31 = vsyncpa [#allocation9], 0 }
   0xd   :  { %32 = vsyncpa [#allocation4], 0  ;;  %s22031_s5 = smov [#allocation5]   ;;  %s22032_s27 = smov [#allocation8]  }
   0xe   :  { %s68_s26 = sshll.u32 %s22031_s5, 4  ;;  %s96_s28 = sshll.u32 %s22032_s27, 4  ;;  %s69_s26 = int_to_ptr.vmem [resolvable:$true] %s68_s26  ;;  %s97_s28 = int_to_ptr.vmem [resolvable:$true] %s96_s28 }
   0xf   :  { %s21911_s6 = scalar_lea.vmem %s69_s26, 512  ;;  %p21916_p1 = scmp.lt.s32.totalorder %s69_s26, %s69_s26 }
  0x10   :  { %p21912_p0 = scmp.ne.s32.totalorder %s69_s26, %s21911_s6  ;;  %p21917_p2 = scmp.lt.s32.totalorder %s21911_s6, %s21911_s6 }
  0x12   :  { %p21918_p3 = por %p21917_p2, %p21916_p1 }
  0x14   :  { %p21919_p4 = pnand %p21918_p3, %p21912_p0 }
  0x16   :  { %21922 = shalt.err (!%p21919_p4)
}
  0x17   :  { %s22033_s2 = smov 128   ;;  %s22034_s29 = smov 8  }
  0x18   :  { %74 = dma.hbm_to_vmem [thread:$0]  %s24445_s10, 512, %s69_s26, [#allocation6], %s22033_s2, %s22033_s2, %s22034_s29  }
  0x19   :  { %s21931_s30 = scalar_lea.vmem %s97_s28, 512  ;;  %p21936_p6 = scmp.lt.s32.totalorder %s97_s28, %s97_s28 }
  0x1a   :  { %p21932_p5 = scmp.ne.s32.totalorder %s97_s28, %s21931_s30  ;;  %p21937_p7 = scmp.lt.s32.totalorder %s21931_s30, %s21931_s30 }
  0x1c   :  { %p21938_p8 = por %p21937_p7, %p21936_p6 }
  0x1e   :  { %p21939_p9 = pnand %p21938_p8, %p21932_p5 }
  0x20   :  { %21942 = shalt.err (!%p21939_p9)
}
  0x21   :  { %102 = dma.hbm_to_vmem [thread:$0]  %s24449_s14, 512, %s97_s28, [#allocation9], %s22033_s2, %s22033_s2, %s22034_s29  }
  0x22   :  { %s22035_s8 = smov [#allocation2]   ;;  %s22036_s1 = smov [#allocation7]  }
  0x23   :  { %s38_s4 = sshll.u32 %s22035_s8, 4  ;;  %s82_s5 = sshll.u32 %s22036_s1, 4  ;;  %s39_s4 = int_to_ptr.vmem [resolvable:$true] %s38_s4  ;;  %s83_s5 = int_to_ptr.vmem [resolvable:$true] %s82_s5 }
  0x24   :  { %s21951_s10 = scalar_lea.vmem %s39_s4, 256  ;;  %p21956_p11 = scmp.lt.s32.totalorder %s39_s4, %s39_s4 }
  0x25   :  { %p21952_p10 = scmp.ne.s32.totalorder %s39_s4, %s21951_s10  ;;  %p21957_p12 = scmp.lt.s32.totalorder %s21951_s10, %s21951_s10 }
  0x27   :  { %p21958_p13 = por %p21957_p12, %p21956_p11 }
  0x29   :  { %p21959_p0 = pnand %p21958_p13, %p21952_p10 }
  0x2b   :  { %21962 = shalt.err (!%p21959_p0)
}
  0x2c   :  { %s24472_s6 = sld [smem:[#allocation16_spill]]  ;;  %s21971_s14 = scalar_lea.vmem %s83_s5, 512 }
  0x2d   :  { %p21972_p1 = scmp.ne.s32.totalorder %s83_s5, %s21971_s14  ;;  %p21976_p2 = scmp.lt.s32.totalorder %s83_s5, %s83_s5 }
  0x2e   :  { %p21977_p3 = scmp.lt.s32.totalorder %s21971_s14, %s21971_s14 }
  0x30   :  { %p21978_p4 = por %p21977_p3, %p21976_p2 }
  0x32   :  { %44 = dma.hbm_to_vmem [thread:$0]  %s24472_s6, 256, %s39_s4, [#allocation3], %s22033_s2, %s22033_s2, %s22034_s29  }
  0x33   :  { %p21979_p5 = pnand %p21978_p4, %p21972_p1 }
  0x35   :  { %21982 = shalt.err (!%p21979_p5)
}
  0x36   :  { %88 = dma.hbm_to_vmem [thread:$0]  %s24447_s12, 512, %s83_s5, [#allocation6], %s22033_s2, %s22033_s2, %s22034_s29  }
  0x37   :  { %s22037_s7 = smov [#allocation10]  }
  0x38   :  { %s114_s30 = sshll.u32 %s22037_s7, 4  ;;  %s115_s30 = int_to_ptr.vmem [resolvable:$true] %s114_s30 }
  0x39   :  { %s21991_s3 = scalar_lea.vmem %s115_s30, 512  ;;  %p21996_p7 = scmp.lt.s32.totalorder %s115_s30, %s115_s30 }
  0x3a   :  { %p21992_p6 = scmp.ne.s32.totalorder %s115_s30, %s21991_s3  ;;  %p21997_p8 = scmp.lt.s32.totalorder %s21991_s3, %s21991_s3 }
  0x3c   :  { %p21998_p9 = por %p21997_p8, %p21996_p7 }
  0x3e   :  { %p21999_p10 = pnand %p21998_p9, %p21992_p6 }
  0x40   :  { %22002 = shalt.err (!%p21999_p10)
}
  0x41   :  { %120 = dma.hbm_to_vmem [thread:$0]  %s24453_s18, 512, %s115_s30, [#allocation9], %s22033_s2, %s22033_s2, %s22034_s29  }
  0x42   :  { %22023 = dma.done.wait [#allocation3], 256  }
  0x43   :  { %22024 = vsyncadd [#allocation3], 4294967040 }
  0x44   :  { %22025 = dma.done.wait [#allocation6], 1024  }
  0x45   :  { %22026 = vsyncadd [#allocation6], 4294966272 }
  0x46   :  { %22027 = dma.done.wait [#allocation9], 1024  }
  0x47   :  { %22028 = vsyncadd [#allocation9], 4294966272  ;;  %vm169_vm0 = vcmask 261120   ;;  %s24473_s1 = sld [smem:[#allocation20_spill]]  ;;  %v146_v7 = vld [vmem:[#allocation2] sm:$0xff]  ;;  %v147_v8 = vld [vmem:[#allocation2 + $0x8] sm:$0xff] }
  0x48   :  { %v171_v10 = vsel %vm169_vm0, %v146_v7, 0  ;;  %v174_v11 = vsel %vm169_vm0, %v147_v8, 0  ;;  %s24474_s0 = sld [smem:[#allocation21_spill]]  ;;  %v22038_v55 = vmov 0.0   ;;  %vm22039_vm1 = vmmov 0   ;;  %s22040_s7 = smov 64  }
  0x49   :  { %v22233_v13 = vand.u32 4294901760, %v171_v10  ;;  %v22236_v15 = vand.u32 4294901760, %v174_v11  ;;  %s22041_s30 = smov 96   ;;  %vm712_vm2 = vcmask 64512   ;;  %s24475_s8 = sld [smem:[#allocation18_spill]]  ;;  %vm4406_vm4 = vcmask 130048  }
  0x4a   :  { %s22042_s12 = smov 88   ;;  %s22043_s4 = smov 120   ;;  %vm4408_vm5 = vcmask 195584   ;;  %vm18686_vm7 = vcmask 523264  }
  0x4b   :  { %v246_v19 = vsub.f32 %v171_v10, %v22233_v13  ;;  %v256_v21 = vsub.f32 %v174_v11, %v22236_v15  ;;  %20140 = vmatprep.mubr.f32.mxu1 %v22233_v13  ;;  %s22045_s5 = smov 80   ;;  %s22046_s10 = smov 112  }
  0x4c   :  { %s22047_s26 = smov 48   ;;  %s22048_s27 = smov 72  }
  0x4d   :  { %v161_v0 = vld [vmem:[%s24473_s1 + $0x18] sm:$0xff]  ;;  %v160_v1 = vld [vmem:[%s24473_s1 + $0x10] sm:$0xff]  ;;  %v159_v2 = vld [vmem:[%s24473_s1 + $0x8] sm:$0xff]  ;;  %v247_v25 = vand.u32 4294901760, %v246_v19  ;;  %v257_v27 = vand.u32 4294901760, %v256_v21  ;;  %s22049_s18 = smov 104  }
  0x4e   :  { %v22218_v3 = vand.u32 4294901760, %v161_v0  ;;  %v22220_v4 = vand.u32 4294901760, %v160_v1  ;;  %v22222_v5 = vand.u32 4294901760, %v159_v2  ;;  %v158_v6 = vld [vmem:[%s24473_s1] sm:$0xff]  ;;  %s22044_s1 = smov 56   ;;  %s22050_s6 = smov 40  }
  0x4f   :  { %v22227_v9 = vand.u32 4294901760, %v158_v6  ;;  %v248_v31 = vsub.f32 %v246_v19, %v247_v25  ;;  %v258_v33 = vsub.f32 %v256_v21, %v257_v27  ;;  %v19340_v38 = vld [vmem:[%s24474_s0] ss:$0 sm:$0xff]  ;;  %s22051_s14 = smov 24   ;;  %s22052_s28 = smov 16  }
  0x50   :  { %20121 = vmatprep.subr.mxu0 %v22218_v3  ;;  %v291_v12 = vsub.f32 %v161_v0, %v22218_v3  ;;  %v298_v14 = vsub.f32 %v160_v1, %v22220_v4  ;;  %v305_v16 = vsub.f32 %v159_v2, %v22222_v5  ;;  %s24476_s3 = sld [smem:[#allocation22_spill]] }
  0x51   :  { %20122 = vmatpush3.msra.mxu0 %v22218_v3  ;;  %v312_v17 = vsub.f32 %v158_v6, %v22227_v9  ;;  %v249_v34 = vand.u32 4294901760, %v248_v31  ;;  %v259_v35 = vand.u32 4294901760, %v258_v33  ;;  %s24477_s25 = sld [smem:[#allocation23_spill]] }
  0x52   :  { %20123 = vmatprep.subr.mxu0 %v22220_v4  ;;  %v292_v18 = vand.u32 4294901760, %v291_v12  ;;  %v299_v20 = vand.u32 4294901760, %v298_v14  ;;  %v306_v22 = vand.u32 4294901760, %v305_v16 }
  0x53   :  { %20124 = vmatpush3.msra.mxu0 %v22220_v4  ;;  %v313_v23 = vand.u32 4294901760, %v312_v17  ;;  %20129 = vmatprep.mubr.f32.mxu0 %v249_v34 }
  0x54   :  { %20125 = vmatprep.subr.mxu0 %v22222_v5  ;;  %v293_v24 = vsub.f32 %v291_v12, %v292_v18  ;;  %v300_v26 = vsub.f32 %v298_v14, %v299_v20  ;;  %v307_v28 = vsub.f32 %v305_v16, %v306_v22 }
  0x55   :  { %20126 = vmatpush3.msra.mxu0 %v22222_v5  ;;  %v314_v29 = vsub.f32 %v312_v17, %v313_v23 }
  0x56   :  { %20127 = vmatprep.subr.mxu0 %v22227_v9  ;;  %v294_v30 = vand.u32 4294901760, %v293_v24  ;;  %v301_v32 = vand.u32 4294901760, %v300_v26  ;;  %v308_v36 = vand.u32 4294901760, %v307_v28 }
  0x57   :  { %20128 = vmatpush3.msra.mxu0 %v22227_v9  ;;  %v315_v37 = vand.u32 4294901760, %v314_v29  ;;  %v152_v29 = vld [vmem:[%s24475_s8] sm:$0x3] }
  0x58   :  { %20132 = vmatprep.subr.mxu1 %v294_v30  ;;  %20143 = vmatprep.subr.mxu0 %v291_v12  ;;  %vm153_vm3 = vcmp.eq.f32.partialorder %v152_v29, 0.0 }
  0x59   :  { %20133 = vmatpush3.msra.mxu1 %v294_v30  ;;  %20130 = vmatmul.mubr.f32.vlgmr.msra.gmra.mxu0 %v259_v35 }
  0x5a   :  { %20134 = vmatprep.subr.mxu1 %v301_v32  ;;  %20144 = vmatpush3.msra.mxu0 %v291_v12 }
  0x5b   :  { %20135 = vmatpush3.msra.mxu1 %v301_v32  ;;  %20145 = vmatprep.subr.mxu0 %v298_v14 }
  0x5c   :  { %20136 = vmatprep.subr.mxu1 %v308_v36  ;;  %20146 = vmatpush3.msra.mxu0 %v298_v14 }
  0x5d   :  { %20137 = vmatpush3.msra.mxu1 %v308_v36  ;;  %20147 = vmatprep.subr.mxu0 %v305_v16 }
  0x5e   :  { %20138 = vmatprep.subr.mxu1 %v315_v37  ;;  %20148 = vmatpush3.msra.mxu0 %v305_v16 }
  0x5f   :  { %20139 = vmatpush3.msra.mxu1 %v315_v37  ;;  %20149 = vmatprep.subr.mxu0 %v312_v17 }
  0x60   :  { %20141 = vmatmul.mubr.f32.vlgmr.msra.gmra.mxu1 %v22236_v15  ;;  %20154 = vmatprep.subr.mxu1 %v22218_v3 }
  0x61   :  { %20150 = vmatpush3.msra.mxu0 %v312_v17  ;;  %20151 = vmatprep.mubr.f32.mxu0 %v246_v19 }
  0x62   :  { %20155 = vmatpush3.msra.mxu1 %v22218_v3  ;;  %20152 = vmatmul.mubr.f32.vlgmr.msra.gmra.mxu0 %v256_v21 }
  0x63   :  { %20156 = vmatprep.subr.mxu1 %v22220_v4  ;;  %20165 = vmatprep.subr.mxu0 %v292_v18 }
  0x64   :  { %20157 = vmatpush3.msra.mxu1 %v22220_v4  ;;  %20166 = vmatpush3.msra.mxu0 %v292_v18 }
  0x65   :  { %20158 = vmatprep.subr.mxu1 %v22222_v5  ;;  %20167 = vmatprep.subr.mxu0 %v299_v20 }
  0x66   :  { %20159 = vmatpush3.msra.mxu1 %v22222_v5  ;;  %20168 = vmatpush3.msra.mxu0 %v299_v20 }
  0x67   :  { %20160 = vmatprep.subr.mxu1 %v22227_v9  ;;  %20169 = vmatprep.subr.mxu0 %v306_v22 }
  0x68   :  { %20161 = vmatpush3.msra.mxu1 %v22227_v9  ;;  %20162 = vmatprep.mubr.f32.mxu1 %v247_v25 }
  0x69   :  { %20170 = vmatpush3.msra.mxu0 %v306_v22  ;;  %20163 = vmatmul.mubr.f32.vlgmr.msra.gmra.mxu1 %v257_v27 }
  0x6a   :  { %20171 = vmatprep.subr.mxu0 %v313_v23  ;;  %20176 = vmatprep.subr.mxu1 %v22218_v3 }
  0x6b   :  { %20172 = vmatpush3.msra.mxu0 %v313_v23  ;;  %20173 = vmatprep.mubr.f32.mxu0 %v22233_v13  ;;  %v1165_v23 = vlaneseq }
  0x6c   :  { %20177 = vmatpush3.msra.mxu1 %v22218_v3  ;;  %20174 = vmatmul.mubr.f32.vlgmr.msra.gmra.mxu0 %v22236_v15 }
  0x6d   :  { %20178 = vmatprep.subr.mxu1 %v22220_v4  ;;  %20184 = vmatprep.mubr.f32.mxu1 %v22233_v13  ;;  %v22324_v31 = vshrl.u32 %v1165_v23, 7 }
  0x6e   :  { %20179 = vmatpush3.msra.mxu1 %v22220_v4  ;;  %20187 = vmatprep.subr.mxu0 %v22038_v55 }
  0x6f   :  { %20180 = vmatprep.subr.mxu1 %v22222_v5  ;;  %20189 = vmatprep.mubr.msk.f32.mxu0 %vm22039_vm1, %v22038_v55  ;;  %v1167_v36 = vsub.s32 0, %v22324_v31 }
  0x70   :  { %20181 = vmatpush3.msra.mxu1 %v22222_v5 }
  0x71   :  { %20182 = vmatprep.subr.mxu1 %v22227_v9 }
  0x72   :  { %20183 = vmatpush3.msra.mxu1 %v22227_v9 }
  0x73   :  { %20185 = vmatmul.mubr.f32.vlgmr.msra.gmra.mxu1 %v22236_v15  ;;  %20192 = vmatprep.subr.mxu1 %v22038_v55 }
  0x74   :  { %20194 = vmatprep.mubr.msk.f32.mxu1 %vm22039_vm1, %v22038_v55 }
 0x119   :  { %v20131_v39 = vpop.f32.mrf.mxu0 }
 0x11a   :  { %v262_v40 = vadd.f32 %v20131_v39, %v19340_v38 }
 0x11b   :  { %v251_v41 = vpop.f32.mrf.mxu0 }
 0x11c   :  { %v252_v46 = vadd.f32 %v19340_v38, %v251_v41  ;;  %v22328_v38 = vsel %vm153_vm3, -inf, %v22038_v55 }
 0x120   :  { %v20142_v42 = vpop.f32.mrf.mxu1 }
 0x121   :  { %v359_v43 = vadd.f32 %v20142_v42, %v262_v40  ;;  %v22333_v42 = vrot.slane %v22328_v38, %v1167_v36 }
 0x122   :  { %v20153_v44 = vpop.f32.mrf.mxu0  ;;  %v352_v47 = vpop.f32.mrf.mxu1 }
 0x123   :  { %v446_v45 = vadd.f32 %v20153_v44, %v359_v43  ;;  %v353_v49 = vadd.f32 %v352_v47, %v252_v46 }
 0x124   :  { %v438_v50 = vpop.f32.mrf.mxu0 }
 0x125   :  { %v439_v56 = vadd.f32 %v438_v50, %v353_v49 }
 0x129   :  { %v20164_v48 = vpop.f32.mrf.mxu1 }
 0x12a   :  { %v531_v51 = vadd.f32 %v20164_v48, %v446_v45 }
 0x12b   :  { %v522_v53 = vpop.f32.mrf.mxu1 }
 0x12c   :  { %v20175_v52 = vpop.f32.mrf.mxu0  ;;  %v523_v57 = vadd.f32 %v522_v53, %v439_v56 }
 0x12d   :  { %v620_v54 = vadd.f32 %v20175_v52, %v531_v51 }
 0x12e   :  { %v613_v58 = vpop.f32.mrf.mxu0 }
 0x12f   :  { %v614_v60 = vadd.f32 %v613_v58, %v523_v57 }
 0x133   :  { %v20186_v59 = vpop.f32.mrf.mxu1 }
 0x134   :  { %v22280_v61 = vadd.f32 %v20186_v59, %v620_v54 }
 0x135   :  { %v694_v62 = vpop.f32.mrf.mxu1 }
 0x136   :  { %v22282_v63 = vadd.f32 %v694_v62, %v614_v60 }
 0x138   :  { %1181 = vrot.lane.b32.xlu1 %v22282_v63, %s22040_s7  ;;  %710 = vrot.lane.b32.xlu0 %v22282_v63, %s22041_s30  ;;  %v713_v0 = vsel %vm712_vm2, %v22282_v63, 0 }
 0x139   :  { %v783_v1 = vand.u32 4294901760, %v713_v0 }
 0x13b   :  { %v784_v2 = vsub.f32 %v713_v0, %v783_v1 }
 0x13d   :  { %v785_v3 = vand.u32 4294901760, %v784_v2 }
 0x13f   :  { %v786_v6 = vsub.f32 %v784_v2, %v785_v3 }
 0x141   :  { %v787_v10 = vand.u32 4294901760, %v786_v6 }
 0x1aa   :  { %v711_v4 = vpop.permute.xlu0 %710  ;;  %v1182_v8 = vpop.permute.xlu1 %1181 }
 0x1ab   :  { %v715_v5 = vsel %vm712_vm2, %v711_v4, 0  ;;  %v22292_v11 = vand.u32 4294901760, %v1182_v8 }
 0x1ac   :  { %v748_v7 = vand.u32 4294901760, %v715_v5 }
 0x1ad   :  { %v22298_v14 = vsub.f32 %v1182_v8, %v22292_v11 }
 0x1ae   :  { %v825_v9 = vsub.f32 %v715_v5, %v748_v7  ;;  %20188 = vmatpush3.xpose.msra.mxu0 %v748_v7 }
 0x1af   :  { %20197 = vmatprep.subr.mxu0 %v22038_v55  ;;  %v1296_v16 = vand.u32 4294901760, %v22298_v14 }
 0x1b0   :  { %v826_v12 = vand.u32 4294901760, %v825_v9 }
 0x1b1   :  { %20190 = vmatmul.mubr.f32.vlgmr.msra.gmra.mxu0 %v787_v10  ;;  %v1297_v17 = vsub.f32 %v22298_v14, %v1296_v16 }
 0x1b2   :  { %v827_v13 = vsub.f32 %v825_v9, %v826_v12  ;;  %20198 = vmatpush3.xpose.msra.mxu0 %v825_v9  ;;  %20199 = vmatprep.mubr.msk.f32.mxu0 %vm22039_vm1, %v22038_v55 }
 0x1b3   :  { %20207 = vmatprep.subr.mxu0 %v22038_v55  ;;  %v1298_v18 = vand.u32 4294901760, %v1297_v17 }
 0x1b4   :  { %v828_v15 = vand.u32 4294901760, %v827_v13 }
 0x1b5   :  { %20200 = vmatmul.mubr.f32.vlgmr.msra.gmra.mxu0 %v784_v2 }
 0x1b6   :  { %20193 = vmatpush3.xpose.msra.mxu1 %v828_v15  ;;  %20208 = vmatpush3.xpose.msra.mxu0 %v826_v12 }
 0x1b7   :  { %20209 = vmatprep.mubr.msk.f32.mxu0 %vm22039_vm1, %v22038_v55  ;;  %20202 = vmatprep.subr.mxu1 %v22038_v55 }
 0x1b8   :  { %20217 = vmatprep.subr.mxu0 %v22038_v55 }
 0x1b9   :  { %20195 = vmatmul.mubr.f32.vlgmr.msra.gmra.mxu1 %v783_v1  ;;  %20210 = vmatmul.mubr.f32.vlgmr.msra.gmra.mxu0 %v783_v1 }
 0x1ba   :  { %20203 = vmatpush3.xpose.msra.mxu1 %v748_v7  ;;  %20218 = vmatpush3.msra.mxu0 %v22292_v11 }
 0x1bb   :  { %20204 = vmatprep.mubr.msk.f32.mxu1 %vm22039_vm1, %v22038_v55  ;;  %20212 = vmatprep.subr.mxu1 %v22038_v55 }
 0x1bc   :  { %20219 = vmatprep.mubr.msk.f32.mxu0 %vm22039_vm1, %v22038_v55  ;;  %20227 = vmatprep.subr.mxu0 %v22038_v55 }
 0x1bd   :  { %20205 = vmatmul.mubr.f32.vlgmr.msra.gmra.mxu1 %v785_v3 }
 0x1be   :  { %20213 = vmatpush3.xpose.msra.mxu1 %v748_v7  ;;  %20214 = vmatprep.mubr.msk.f32.mxu1 %vm22039_vm1, %v22038_v55 }
 0x1bf   :  { %20222 = vmatprep.subr.mxu1 %v22038_v55 }
 0x1c1   :  { %20215 = vmatmul.mubr.f32.vlgmr.msra.gmra.mxu1 %v783_v1 }
 0x1c2   :  { %20223 = vmatpush3.msra.mxu1 %v1298_v18  ;;  %20224 = vmatprep.mubr.msk.f32.mxu1 %vm22039_vm1, %v22038_v55 }
 0x1c3   :  { %20232 = vmatprep.subr.mxu1 %v22038_v55 }
 0x271   :  { %v789_v19 = vpop.f32.mrf.mxu0 }
 0x273   :  { %v20191_v20 = vpop.f32.mrf.mxu0 }
 0x275   :  { %v939_v21 = vpop.f32.mrf.mxu0 }
 0x277   :  { %v20201_v22 = vpop.f32.mrf.mxu0 }
 0x279   :  { %v865_v24 = vpop.f32.mrf.mxu1  ;;  %v1087_v25 = vpop.f32.mrf.mxu0 }
 0x27a   :  { %v866_v26 = vadd.f32 %v865_v24, %v789_v19 }
 0x27b   :  { %v20196_v27 = vpop.f32.mrf.mxu1  ;;  %v20211_v28 = vpop.f32.mrf.mxu0 }
 0x27c   :  { %v940_v30 = vadd.f32 %v939_v21, %v866_v26 }
 0x27d   :  { %v1013_v32 = vpop.f32.mrf.mxu1 }
 0x27e   :  { %v1014_v33 = vadd.f32 %v1013_v32, %v940_v30 }
 0x27f   :  { %v20206_v34 = vpop.f32.mrf.mxu1 }
 0x280   :  { %v1088_v35 = vadd.f32 %v1087_v25, %v1014_v33 }
 0x281   :  { %v1159_v37 = vpop.f32.mrf.mxu1 }
 0x282   :  { %v1160_v39 = vadd.f32 %v1159_v37, %v1088_v35 }
 0x283   :  { %v20216_v40 = vpop.f32.mrf.mxu1 }
 0x284   :  { %v1163_v41 = vmul.f32 0.35355338, %v1160_v39 }
 0x286   :  { %v1164_v43 = vfloor.f32 %v1163_v41 }
 0x288   :  { %v1169_v44 = vadd.f32 %v22333_v42, %v1164_v43 }
 0x28a   :  { %v1170_v45 = vsel %vm712_vm2, %v1169_v44, -inf }
 0x28b   :  { %1171 = vmax.xlane.f32.xlu0 %v1170_v45 }
 0x314   :  { %v1172_v46 = vpop.xlane.xlu0 %1171 }
 0x315   :  { %v1173_v47 = vsub.f32 %v1169_v44, %v1172_v46 }
 0x317   :  { %v1174_v48 = vmul.f32 1.442695, %v1173_v47 }
 0x319   :  { %21824 = vpow2.f32 %v1174_v48 }
 0x326   :  { %v21825_v49 = vpop.eup %21824 }
 0x327   :  { %v1176_v50 = vsel %vm712_vm2, %v21825_v49, 0.0 }
 0x328   :  { %1177 = vadd.xlane.f32.xlu1 %v1176_v50 }
 0x339   :  { %1635 = vrot.lane.b32.xlu1 %v22282_v63, %s22042_s12 }
 0x33d   :  { %1633 = vrot.lane.b32.xlu1 %v22282_v63, %s22043_s4 }
 0x3b1   :  { %v1178_v51 = vpop.xlane.xlu1 %1177 }
 0x3b2   :  { %21826 = vrcp.f32 %v1178_v51 }
 0x3b5   :  { %v1636_v52 = vpop.permute.xlu1 %1635 }
 0x3b6   :  { %v1639_v53 = vsel %vm712_vm2, %v1636_v52, 0 }
 0x3b7   :  { %v1672_v54 = vand.u32 4294901760, %v1639_v53 }
 0x3b9   :  { %v1749_v57 = vsub.f32 %v1639_v53, %v1672_v54  ;;  %v1634_v59 = vpop.permute.xlu1 %1633 }
 0x3ba   :  { %v1637_v1 = vsel %vm712_vm2, %v1634_v59, 0 }
 0x3bb   :  { %v1750_v0 = vand.u32 4294901760, %v1749_v57  ;;  %v1707_v3 = vand.u32 4294901760, %v1637_v1 }
 0x3bd   :  { %v1751_v5 = vsub.f32 %v1749_v57, %v1750_v0  ;;  %v1708_v7 = vsub.f32 %v1637_v1, %v1707_v3 }
 0x3bf   :  { %v21827_v56 = vpop.eup %21826  ;;  %v1752_v9 = vand.u32 4294901760, %v1751_v5  ;;  %v1709_v10 = vand.u32 4294901760, %v1708_v7 }
 0x3c0   :  { %v1180_v58 = vmul.f32 %v21827_v56, %v21825_v49 }
 0x3c2   :  { %v1185_v60 = vsel %vm712_vm2, %v1180_v58, 0 }
 0x3c3   :  { %v1253_v62 = vand.u32 4294901760, %v1185_v60 }
 0x3c5   :  { %v1254_v2 = vsub.f32 %v1185_v60, %v1253_v62  ;;  %20225 = vmatmul.mubr.f32.vlgmr.msra.gmra.mxu1 %v1253_v62 }
 0x3c6   :  { %20233 = vmatpush3.msra.mxu1 %v22292_v11  ;;  %20234 = vmatprep.mubr.msk.f32.mxu1 %vm22039_vm1, %v22038_v55 }
 0x3c7   :  { %20242 = vmatprep.subr.mxu1 %v22038_v55  ;;  %v1255_v4 = vand.u32 4294901760, %v1254_v2 }
 0x3c9   :  { %20235 = vmatmul.mubr.f32.vlgmr.msra.gmra.mxu1 %v1255_v4  ;;  %v1256_v6 = vsub.f32 %v1254_v2, %v1255_v4 }
 0x3ca   :  { %20243 = vmatpush3.msra.mxu1 %v22292_v11  ;;  %20244 = vmatprep.mubr.msk.f32.mxu1 %vm22039_vm1, %v22038_v55  ;;  %v1710_v11 = vsub.f32 %v1708_v7, %v1709_v10 }
 0x3cb   :  { %20252 = vmatprep.subr.mxu1 %v22038_v55  ;;  %v1257_v8 = vand.u32 4294901760, %v1256_v6 }
 0x3cc   :  { %v1711_v12 = vand.u32 4294901760, %v1710_v11 }
 0x3cd   :  { %20220 = vmatmul.mubr.f32.vlgmr.msra.gmra.mxu0 %v1257_v8  ;;  %20245 = vmatmul.mubr.f32.vlgmr.msra.gmra.mxu1 %v1253_v62 }
 0x3ce   :  { %20228 = vmatpush3.msra.mxu0 %v22298_v14  ;;  %20253 = vmatpush3.xpose.msra.mxu1 %v1752_v9 }
 0x3cf   :  { %20229 = vmatprep.mubr.msk.f32.mxu0 %vm22039_vm1, %v22038_v55  ;;  %20237 = vmatprep.subr.mxu0 %v22038_v55 }
 0x3d0   :  { %20254 = vmatprep.mubr.msk.f32.mxu1 %vm22039_vm1, %v22038_v55  ;;  %20262 = vmatprep.subr.mxu1 %v22038_v55 }
 0x3d1   :  { %20230 = vmatmul.mubr.f32.vlgmr.msra.gmra.mxu0 %v1254_v2  ;;  %20255 = vmatmul.mubr.f32.vlgmr.msra.gmra.mxu1 %v1707_v3 }
 0x3d2   :  { %20238 = vmatpush3.msra.mxu0 %v1296_v16  ;;  %20263 = vmatpush3.xpose.msra.mxu1 %v1672_v54 }
 0x3d3   :  { %20239 = vmatprep.mubr.msk.f32.mxu0 %vm22039_vm1, %v22038_v55  ;;  %20247 = vmatprep.subr.mxu0 %v22038_v55 }
 0x3d4   :  { %20264 = vmatprep.mubr.msk.f32.mxu1 %vm22039_vm1, %v22038_v55  ;;  %20272 = vmatprep.subr.mxu1 %v22038_v55 }
 0x3d5   :  { %20240 = vmatmul.mubr.f32.vlgmr.msra.gmra.mxu0 %v1253_v62  ;;  %20265 = vmatmul.mubr.f32.vlgmr.msra.gmra.mxu1 %v1709_v10 }
 0x3d6   :  { %20248 = vmatpush3.xpose.msra.mxu0 %v1672_v54  ;;  %20273 = vmatpush3.xpose.msra.mxu1 %v1672_v54 }
 0x3d7   :  { %20249 = vmatprep.mubr.msk.f32.mxu0 %vm22039_vm1, %v22038_v55  ;;  %20257 = vmatprep.subr.mxu0 %v22038_v55 }
 0x3d8   :  { %20274 = vmatprep.mubr.msk.f32.mxu1 %vm22039_vm1, %v22038_v55  ;;  %20282 = vmatprep.subr.mxu1 %v22038_v55 }
 0x3d9   :  { %20250 = vmatmul.mubr.f32.vlgmr.msra.gmra.mxu0 %v1711_v12  ;;  %20275 = vmatmul.mubr.f32.vlgmr.msra.gmra.mxu1 %v1707_v3 }
 0x3da   :  { %20258 = vmatpush3.xpose.msra.mxu0 %v1749_v57  ;;  %20259 = vmatprep.mubr.msk.f32.mxu0 %vm22039_vm1, %v22038_v55 }
 0x3db   :  { %20267 = vmatprep.subr.mxu0 %v22038_v55  ;;  %20284 = vmatprep.mubr.msk.f32.mxu1 %vm22039_vm1, %v22038_v55 }
 0x3dd   :  { %20260 = vmatmul.mubr.f32.vlgmr.msra.gmra.mxu0 %v1708_v7 }
 0x3de   :  { %20268 = vmatpush3.xpose.msra.mxu0 %v1750_v0  ;;  %20269 = vmatprep.mubr.msk.f32.mxu0 %vm22039_vm1, %v22038_v55 }
 0x3df   :  { %20277 = vmatprep.subr.mxu0 %v22038_v55 }
 0x3e1   :  { %20270 = vmatmul.mubr.f32.vlgmr.msra.gmra.mxu0 %v1707_v3 }
 0x3e2   :  { %20279 = vmatprep.mubr.msk.f32.mxu0 %vm22039_vm1, %v22038_v55 }
 0x485   :  { %v1335_v13 = vpop.f32.mrf.mxu1 }
 0x487   :  { %v20226_v14 = vpop.f32.mrf.mxu1 }
 0x489   :  { %v1483_v15 = vpop.f32.mrf.mxu1 }
 0x48b   :  { %v20236_v16 = vpop.f32.mrf.mxu1 }
 0x48d   :  { %v1259_v17 = vpop.f32.mrf.mxu0  ;;  %v1629_v18 = vpop.f32.mrf.mxu1 }
 0x48e   :  { %v1336_v19 = vadd.f32 %v1335_v13, %v1259_v17 }
 0x48f   :  { %v20221_v20 = vpop.f32.mrf.mxu0  ;;  %v20246_v21 = vpop.f32.mrf.mxu1 }
 0x491   :  { %v1409_v22 = vpop.f32.mrf.mxu0  ;;  %v1789_v23 = vpop.f32.mrf.mxu1 }
 0x492   :  { %v1410_v24 = vadd.f32 %v1409_v22, %v1336_v19 }
 0x493   :  { %v20231_v25 = vpop.f32.mrf.mxu0  ;;  %v20256_v26 = vpop.f32.mrf.mxu1 }
 0x494   :  { %v1484_v27 = vadd.f32 %v1483_v15, %v1410_v24 }
 0x495   :  { %v1557_v28 = vpop.f32.mrf.mxu0  ;;  %v1937_v29 = vpop.f32.mrf.mxu1 }
 0x496   :  { %v1558_v30 = vadd.f32 %v1557_v28, %v1484_v27 }
 0x497   :  { %v20241_v32 = vpop.f32.mrf.mxu0  ;;  %v20266_v33 = vpop.f32.mrf.mxu1 }
 0x498   :  { %v22384_v34 = vadd.f32 %v1629_v18, %v1558_v30 }
 0x499   :  { %v1713_v35 = vpop.f32.mrf.mxu0  ;;  %v2083_v37 = vpop.f32.mrf.mxu1 }
 0x49a   :  { %v1790_v41 = vadd.f32 %v1789_v23, %v1713_v35 }
 0x49b   :  { %v20251_v39 = vpop.f32.mrf.mxu0  ;;  %v20276_v40 = vpop.f32.mrf.mxu1 }
 0x49d   :  { %v1863_v43 = vpop.f32.mrf.mxu0 }
 0x49e   :  { %v1864_v44 = vadd.f32 %v1863_v43, %v1790_v41 }
 0x49f   :  { %v20261_v45 = vpop.f32.mrf.mxu0 }
 0x4a0   :  { %v1938_v46 = vadd.f32 %v1937_v29, %v1864_v44 }
 0x4a1   :  { %v2011_v47 = vpop.f32.mrf.mxu0 }
 0x4a2   :  { %v2012_v48 = vadd.f32 %v2011_v47, %v1938_v46 }
 0x4a3   :  { %v20271_v49 = vpop.f32.mrf.mxu0 }
 0x4a4   :  { %v2084_v50 = vadd.f32 %v2083_v37, %v2012_v48 }
 0x4a6   :  { %v2087_v51 = vmul.f32 0.35355338, %v2084_v50 }
 0x4a8   :  { %v2088_v52 = vfloor.f32 %v2087_v51 }
 0x4aa   :  { %v2089_v53 = vadd.f32 %v2088_v52, %v22333_v42 }
 0x4ac   :  { %v2090_v54 = vsel %vm712_vm2, %v2089_v53, -inf }
 0x4ad   :  { %2091 = vmax.xlane.f32.xlu1 %v2090_v54 }
 0x536   :  { %v2092_v56 = vpop.xlane.xlu1 %2091 }
 0x537   :  { %v2093_v57 = vsub.f32 %v2089_v53, %v2092_v56 }
 0x539   :  { %v2094_v58 = vmul.f32 1.442695, %v2093_v57 }
 0x53b   :  { %21828 = vpow2.f32 %v2094_v58 }
 0x548   :  { %v21829_v59 = vpop.eup %21828 }
 0x549   :  { %v2096_v60 = vsel %vm712_vm2, %v21829_v59, 0.0 }
 0x54a   :  { %2097 = vadd.xlane.f32.xlu0 %v2096_v60 }
 0x560   :  { %2101 = vrot.lane.b32.xlu0 %v22282_v63, %s22044_s1 }
 0x564   :  { %2555 = vrot.lane.b32.xlu0 %v22282_v63, %s22045_s5 }
 0x568   :  { %2553 = vrot.lane.b32.xlu0 %v22282_v63, %s22046_s10 }
 0x5d3   :  { %v2098_v62 = vpop.xlane.xlu0 %2097 }
 0x5d4   :  { %21830 = vrcp.f32 %v2098_v62 }
 0x5d7   :  { %v2102_v0 = vpop.permute.xlu0 %2101 }
 0x5d8   :  { %v2138_v1 = vand.u32 4294901760, %v2102_v0 }
 0x5da   :  { %v2215_v2 = vsub.f32 %v2102_v0, %v2138_v1  ;;  %20278 = vmatpush3.msra.mxu0 %v2138_v1 }
 0x5db   :  { %v2556_v3 = vpop.permute.xlu0 %2555  ;;  %20287 = vmatprep.subr.mxu0 %v22038_v55 }
 0x5dc   :  { %v2216_v4 = vand.u32 4294901760, %v2215_v2  ;;  %v2559_v5 = vsel %vm712_vm2, %v2556_v3, 0 }
 0x5dd   :  { %v2592_v6 = vand.u32 4294901760, %v2559_v5 }
 0x5de   :  { %v2217_v7 = vsub.f32 %v2215_v2, %v2216_v4 }
 0x5df   :  { %v2669_v10 = vsub.f32 %v2559_v5, %v2592_v6  ;;  %v2554_v12 = vpop.permute.xlu0 %2553 }
 0x5e0   :  { %v2218_v8 = vand.u32 4294901760, %v2217_v7  ;;  %v2557_v16 = vsel %vm712_vm2, %v2554_v12, 0 }
 0x5e1   :  { %v21831_v9 = vpop.eup %21830  ;;  %v2670_v15 = vand.u32 4294901760, %v2669_v10  ;;  %v2627_v18 = vand.u32 4294901760, %v2557_v16 }
 0x5e2   :  { %20283 = vmatpush3.msra.mxu1 %v2218_v8  ;;  %v2100_v11 = vmul.f32 %v21831_v9, %v21829_v59 }
 0x5e3   :  { %20292 = vmatprep.subr.mxu1 %v22038_v55  ;;  %v2671_v20 = vsub.f32 %v2669_v10, %v2670_v15  ;;  %v2628_v22 = vsub.f32 %v2557_v16, %v2627_v18 }
 0x5e4   :  { %v2105_v13 = vsel %vm712_vm2, %v2100_v11, 0 }
 0x5e5   :  { %v2173_v14 = vand.u32 4294901760, %v2105_v13  ;;  %v2672_v24 = vand.u32 4294901760, %v2671_v20  ;;  %v2629_v25 = vand.u32 4294901760, %v2628_v22 }
 0x5e7   :  { %v2174_v17 = vsub.f32 %v2105_v13, %v2173_v14  ;;  %20285 = vmatmul.mubr.f32.vlgmr.msra.gmra.mxu1 %v2173_v14  ;;  %v2630_v26 = vsub.f32 %v2628_v22, %v2629_v25 }
 0x5e8   :  { %20293 = vmatpush3.msra.mxu1 %v2138_v1  ;;  %20294 = vmatprep.mubr.msk.f32.mxu1 %vm22039_vm1, %v22038_v55 }
 0x5e9   :  { %20302 = vmatprep.subr.mxu1 %v22038_v55  ;;  %v2175_v19 = vand.u32 4294901760, %v2174_v17  ;;  %v2631_v27 = vand.u32 4294901760, %v2630_v26 }
 0x5eb   :  { %20295 = vmatmul.mubr.f32.vlgmr.msra.gmra.mxu1 %v2175_v19  ;;  %v2176_v21 = vsub.f32 %v2174_v17, %v2175_v19 }
 0x5ec   :  { %20303 = vmatpush3.msra.mxu1 %v2138_v1  ;;  %20304 = vmatprep.mubr.msk.f32.mxu1 %vm22039_vm1, %v22038_v55 }
 0x5ed   :  { %20312 = vmatprep.subr.mxu1 %v22038_v55  ;;  %v2177_v23 = vand.u32 4294901760, %v2176_v21 }
 0x5ef   :  { %20280 = vmatmul.mubr.f32.vlgmr.msra.gmra.mxu0 %v2177_v23  ;;  %20305 = vmatmul.mubr.f32.vlgmr.msra.gmra.mxu1 %v2173_v14 }
 0x5f0   :  { %20288 = vmatpush3.msra.mxu0 %v2215_v2  ;;  %20313 = vmatpush3.xpose.msra.mxu1 %v2672_v24 }
 0x5f1   :  { %20289 = vmatprep.mubr.msk.f32.mxu0 %vm22039_vm1, %v22038_v55  ;;  %20297 = vmatprep.subr.mxu0 %v22038_v55 }
 0x5f2   :  { %20314 = vmatprep.mubr.msk.f32.mxu1 %vm22039_vm1, %v22038_v55  ;;  %20322 = vmatprep.subr.mxu1 %v22038_v55 }
 0x5f3   :  { %20290 = vmatmul.mubr.f32.vlgmr.msra.gmra.mxu0 %v2174_v17  ;;  %20315 = vmatmul.mubr.f32.vlgmr.msra.gmra.mxu1 %v2627_v18 }
 0x5f4   :  { %20298 = vmatpush3.msra.mxu0 %v2216_v4  ;;  %20323 = vmatpush3.xpose.msra.mxu1 %v2592_v6 }
 0x5f5   :  { %20299 = vmatprep.mubr.msk.f32.mxu0 %vm22039_vm1, %v22038_v55  ;;  %20307 = vmatprep.subr.mxu0 %v22038_v55 }
 0x5f6   :  { %20324 = vmatprep.mubr.msk.f32.mxu1 %vm22039_vm1, %v22038_v55  ;;  %20332 = vmatprep.subr.mxu1 %v22038_v55 }
 0x5f7   :  { %20300 = vmatmul.mubr.f32.vlgmr.msra.gmra.mxu0 %v2173_v14  ;;  %20325 = vmatmul.mubr.f32.vlgmr.msra.gmra.mxu1 %v2629_v25 }
 0x5f8   :  { %20308 = vmatpush3.xpose.msra.mxu0 %v2592_v6  ;;  %20333 = vmatpush3.xpose.msra.mxu1 %v2592_v6 }
 0x5f9   :  { %20309 = vmatprep.mubr.msk.f32.mxu0 %vm22039_vm1, %v22038_v55  ;;  %20317 = vmatprep.subr.mxu0 %v22038_v55 }
 0x5fa   :  { %20334 = vmatprep.mubr.msk.f32.mxu1 %vm22039_vm1, %v22038_v55  ;;  %20342 = vmatprep.subr.mxu1 %v22038_v55 }
 0x5fb   :  { %20310 = vmatmul.mubr.f32.vlgmr.msra.gmra.mxu0 %v2631_v27  ;;  %20335 = vmatmul.mubr.f32.vlgmr.msra.gmra.mxu1 %v2627_v18 }
 0x5fc   :  { %20318 = vmatpush3.xpose.msra.mxu0 %v2669_v10  ;;  %20319 = vmatprep.mubr.msk.f32.mxu0 %vm22039_vm1, %v22038_v55 }
 0x5fd   :  { %20327 = vmatprep.subr.mxu0 %v22038_v55  ;;  %20344 = vmatprep.mubr.msk.f32.mxu1 %vm22039_vm1, %v22038_v55 }
 0x5ff   :  { %20320 = vmatmul.mubr.f32.vlgmr.msra.gmra.mxu0 %v2628_v22 }
 0x600   :  { %20328 = vmatpush3.xpose.msra.mxu0 %v2670_v15  ;;  %20329 = vmatprep.mubr.msk.f32.mxu0 %vm22039_vm1, %v22038_v55 }
 0x601   :  { %20337 = vmatprep.subr.mxu0 %v22038_v55 }
 0x603   :  { %20330 = vmatmul.mubr.f32.vlgmr.msra.gmra.mxu0 %v2627_v18 }
 0x604   :  { %20339 = vmatprep.mubr.msk.f32.mxu0 %vm22039_vm1, %v22038_v55 }
 0x6a7   :  { %v2255_v28 = vpop.f32.mrf.mxu1 }
 0x6a9   :  { %v20286_v29 = vpop.f32.mrf.mxu1 }
 0x6ab   :  { %v2403_v30 = vpop.f32.mrf.mxu1 }
 0x6ad   :  { %v20296_v32 = vpop.f32.mrf.mxu1 }
 0x6af   :  { %v2179_v33 = vpop.f32.mrf.mxu0  ;;  %v2549_v35 = vpop.f32.mrf.mxu1 }
 0x6b0   :  { %v2256_v37 = vadd.f32 %v2255_v28, %v2179_v33 }
 0x6b1   :  { %v20281_v39 = vpop.f32.mrf.mxu0  ;;  %v20306_v40 = vpop.f32.mrf.mxu1 }
 0x6b3   :  { %v2329_v41 = vpop.f32.mrf.mxu0  ;;  %v2709_v43 = vpop.f32.mrf.mxu1 }
 0x6b4   :  { %v2330_v44 = vadd.f32 %v2329_v41, %v2256_v37 }
 0x6b5   :  { %v20291_v45 = vpop.f32.mrf.mxu0  ;;  %v20316_v46 = vpop.f32.mrf.mxu1 }
 0x6b6   :  { %v2404_v47 = vadd.f32 %v2403_v30, %v2330_v44 }
 0x6b7   :  { %v2477_v48 = vpop.f32.mrf.mxu0  ;;  %v2857_v49 = vpop.f32.mrf.mxu1 }
 0x6b8   :  { %v2478_v50 = vadd.f32 %v2477_v48, %v2404_v47 }
 0x6b9   :  { %v20301_v51 = vpop.f32.mrf.mxu0  ;;  %v20326_v52 = vpop.f32.mrf.mxu1 }
 0x6ba   :  { %v22434_v53 = vadd.f32 %v2549_v35, %v2478_v50 }
 0x6bb   :  { %v2633_v54 = vpop.f32.mrf.mxu0  ;;  %v3003_v56 = vpop.f32.mrf.mxu1 }
 0x6bc   :  { %v2710_v59 = vadd.f32 %v2709_v43, %v2633_v54 }
 0x6bd   :  { %v20311_v57 = vpop.f32.mrf.mxu0  ;;  %v20336_v58 = vpop.f32.mrf.mxu1 }
 0x6bf   :  { %v2783_v60 = vpop.f32.mrf.mxu0 }
 0x6c0   :  { %v2784_v62 = vadd.f32 %v2783_v60, %v2710_v59 }
 0x6c1   :  { %v20321_v0 = vpop.f32.mrf.mxu0 }
 0x6c2   :  { %v2858_v1 = vadd.f32 %v2857_v49, %v2784_v62 }
 0x6c3   :  { %v2931_v2 = vpop.f32.mrf.mxu0 }
 0x6c4   :  { %v2932_v3 = vadd.f32 %v2931_v2, %v2858_v1 }
 0x6c5   :  { %v20331_v4 = vpop.f32.mrf.mxu0 }
 0x6c6   :  { %v3004_v5 = vadd.f32 %v3003_v56, %v2932_v3 }
 0x6c8   :  { %v3007_v6 = vmul.f32 0.35355338, %v3004_v5 }
 0x6ca   :  { %v3008_v7 = vfloor.f32 %v3007_v6 }
 0x6cc   :  { %v3009_v8 = vadd.f32 %v3008_v7, %v22333_v42 }
 0x6ce   :  { %v3010_v9 = vsel %vm712_vm2, %v3009_v8, -inf }
 0x6cf   :  { %3011 = vmax.xlane.f32.xlu1 %v3010_v9 }
 0x6e0   :  { %3021 = vrot.lane.b32.xlu1 %v22282_v63, %s22047_s26 }
 0x6e4   :  { %3475 = vrot.lane.b32.xlu1 %v22282_v63, %s22048_s27 }
 0x6e8   :  { %3473 = vrot.lane.b32.xlu1 %v22282_v63, %s22049_s18 }
 0x758   :  { %v3012_v10 = vpop.xlane.xlu1 %3011 }
 0x759   :  { %v3013_v11 = vsub.f32 %v3009_v8, %v3012_v10 }
 0x75b   :  { %v3014_v12 = vmul.f32 1.442695, %v3013_v11 }
 0x75c   :  { %v3022_v13 = vpop.permute.xlu1 %3021 }
 0x75d   :  { %21832 = vpow2.f32 %v3014_v12  ;;  %v3058_v14 = vand.u32 4294901760, %v3022_v13 }
 0x75f   :  { %v3135_v15 = vsub.f32 %v3022_v13, %v3058_v14  ;;  %20338 = vmatpush3.msra.mxu0 %v3058_v14 }
 0x760   :  { %20347 = vmatprep.subr.mxu0 %v22038_v55  ;;  %v3476_v22 = vpop.permute.xlu1 %3475 }
 0x761   :  { %v3136_v16 = vand.u32 4294901760, %v3135_v15  ;;  %v3479_v23 = vsel %vm712_vm2, %v3476_v22, 0 }
 0x762   :  { %v3512_v24 = vand.u32 4294901760, %v3479_v23 }
 0x763   :  { %v3137_v17 = vsub.f32 %v3135_v15, %v3136_v16 }
 0x764   :  { %v3589_v26 = vsub.f32 %v3479_v23, %v3512_v24  ;;  %v3474_v28 = vpop.permute.xlu1 %3473 }
 0x765   :  { %v3138_v18 = vand.u32 4294901760, %v3137_v17  ;;  %v3477_v33 = vsel %vm712_vm2, %v3474_v28, 0 }
 0x766   :  { %v3590_v32 = vand.u32 4294901760, %v3589_v26  ;;  %v3547_v37 = vand.u32 4294901760, %v3477_v33 }
 0x767   :  { %20343 = vmatpush3.msra.mxu1 %v3138_v18 }
 0x768   :  { %20352 = vmatprep.subr.mxu1 %v22038_v55  ;;  %v3591_v40 = vsub.f32 %v3589_v26, %v3590_v32  ;;  %v3548_v43 = vsub.f32 %v3477_v33, %v3547_v37 }
 0x76a   :  { %v21833_v19 = vpop.eup %21832  ;;  %v3592_v45 = vand.u32 4294901760, %v3591_v40  ;;  %v3549_v46 = vand.u32 4294901760, %v3548_v43 }
 0x76b   :  { %v3016_v20 = vsel %vm712_vm2, %v21833_v19, 0.0 }
 0x76c   :  { %3017 = vadd.xlane.f32.xlu0 %v3016_v20  ;;  %v3550_v47 = vsub.f32 %v3548_v43, %v3549_v46 }
 0x76e   :  { %v3551_v48 = vand.u32 4294901760, %v3550_v47 }
 0x7f5   :  { %v3018_v21 = vpop.xlane.xlu0 %3017 }
 0x7f6   :  { %21834 = vrcp.f32 %v3018_v21 }
 0x803   :  { %v21835_v25 = vpop.eup %21834 }
 0x804   :  { %v3020_v27 = vmul.f32 %v21835_v25, %v21833_v19 }
 0x806   :  { %v3025_v29 = vsel %vm712_vm2, %v3020_v27, 0 }
 0x807   :  { %v3093_v30 = vand.u32 4294901760, %v3025_v29 }
 0x809   :  { %v3094_v35 = vsub.f32 %v3025_v29, %v3093_v30  ;;  %20345 = vmatmul.mubr.f32.vlgmr.msra.gmra.mxu1 %v3093_v30 }
 0x80a   :  { %20353 = vmatpush3.msra.mxu1 %v3058_v14  ;;  %20354 = vmatprep.mubr.msk.f32.mxu1 %vm22039_vm1, %v22038_v55 }
 0x80b   :  { %20362 = vmatprep.subr.mxu1 %v22038_v55  ;;  %v3095_v39 = vand.u32 4294901760, %v3094_v35 }
 0x80d   :  { %20355 = vmatmul.mubr.f32.vlgmr.msra.gmra.mxu1 %v3095_v39  ;;  %v3096_v41 = vsub.f32 %v3094_v35, %v3095_v39 }
 0x80e   :  { %20363 = vmatpush3.msra.mxu1 %v3058_v14  ;;  %20364 = vmatprep.mubr.msk.f32.mxu1 %vm22039_vm1, %v22038_v55 }
 0x80f   :  { %20372 = vmatprep.subr.mxu1 %v22038_v55  ;;  %v3097_v44 = vand.u32 4294901760, %v3096_v41 }
 0x811   :  { %20340 = vmatmul.mubr.f32.vlgmr.msra.gmra.mxu0 %v3097_v44  ;;  %20365 = vmatmul.mubr.f32.vlgmr.msra.gmra.mxu1 %v3093_v30 }
 0x812   :  { %20348 = vmatpush3.msra.mxu0 %v3135_v15  ;;  %20373 = vmatpush3.xpose.msra.mxu1 %v3592_v45 }
 0x813   :  { %20349 = vmatprep.mubr.msk.f32.mxu0 %vm22039_vm1, %v22038_v55  ;;  %20357 = vmatprep.subr.mxu0 %v22038_v55 }
 0x814   :  { %20374 = vmatprep.mubr.msk.f32.mxu1 %vm22039_vm1, %v22038_v55  ;;  %20382 = vmatprep.subr.mxu1 %v22038_v55 }
 0x815   :  { %20350 = vmatmul.mubr.f32.vlgmr.msra.gmra.mxu0 %v3094_v35  ;;  %20375 = vmatmul.mubr.f32.vlgmr.msra.gmra.mxu1 %v3547_v37 }
 0x816   :  { %20358 = vmatpush3.msra.mxu0 %v3136_v16  ;;  %20383 = vmatpush3.xpose.msra.mxu1 %v3512_v24 }
 0x817   :  { %20359 = vmatprep.mubr.msk.f32.mxu0 %vm22039_vm1, %v22038_v55  ;;  %20367 = vmatprep.subr.mxu0 %v22038_v55 }
 0x818   :  { %20384 = vmatprep.mubr.msk.f32.mxu1 %vm22039_vm1, %v22038_v55  ;;  %20392 = vmatprep.subr.mxu1 %v22038_v55 }
 0x819   :  { %20360 = vmatmul.mubr.f32.vlgmr.msra.gmra.mxu0 %v3093_v30  ;;  %20385 = vmatmul.mubr.f32.vlgmr.msra.gmra.mxu1 %v3549_v46 }
 0x81a   :  { %20368 = vmatpush3.xpose.msra.mxu0 %v3512_v24  ;;  %20393 = vmatpush3.xpose.msra.mxu1 %v3512_v24 }
 0x81b   :  { %20369 = vmatprep.mubr.msk.f32.mxu0 %vm22039_vm1, %v22038_v55  ;;  %20377 = vmatprep.subr.mxu0 %v22038_v55 }
 0x81c   :  { %20394 = vmatprep.mubr.msk.f32.mxu1 %vm22039_vm1, %v22038_v55  ;;  %20402 = vmatprep.subr.mxu1 %v22038_v55 }
 0x81d   :  { %20370 = vmatmul.mubr.f32.vlgmr.msra.gmra.mxu0 %v3551_v48  ;;  %20395 = vmatmul.mubr.f32.vlgmr.msra.gmra.mxu1 %v3547_v37 }
 0x81e   :  { %20378 = vmatpush3.xpose.msra.mxu0 %v3589_v26  ;;  %20379 = vmatprep.mubr.msk.f32.mxu0 %vm22039_vm1, %v22038_v55 }
 0x81f   :  { %20387 = vmatprep.subr.mxu0 %v22038_v55  ;;  %20404 = vmatprep.mubr.msk.f32.mxu1 %vm22039_vm1, %v22038_v55 }
 0x821   :  { %20380 = vmatmul.mubr.f32.vlgmr.msra.gmra.mxu0 %v3548_v43 }
 0x822   :  { %20388 = vmatpush3.xpose.msra.mxu0 %v3590_v32  ;;  %20389 = vmatprep.mubr.msk.f32.mxu0 %vm22039_vm1, %v22038_v55 }
 0x823   :  { %20397 = vmatprep.subr.mxu0 %v22038_v55 }
 0x825   :  { %20390 = vmatmul.mubr.f32.vlgmr.msra.gmra.mxu0 %v3547_v37 }
 0x826   :  { %20399 = vmatprep.mubr.msk.f32.mxu0 %vm22039_vm1, %v22038_v55 }
 0x8c9   :  { %v3175_v49 = vpop.f32.mrf.mxu1 }
 0x8cb   :  { %v20346_v50 = vpop.f32.mrf.mxu1 }
 0x8cd   :  { %v3323_v51 = vpop.f32.mrf.mxu1 }
 0x8cf   :  { %v20356_v52 = vpop.f32.mrf.mxu1 }
 0x8d1   :  { %v3099_v54 = vpop.f32.mrf.mxu0  ;;  %v3469_v56 = vpop.f32.mrf.mxu1 }
 0x8d2   :  { %v3176_v57 = vadd.f32 %v3175_v49, %v3099_v54 }
 0x8d3   :  { %v20341_v58 = vpop.f32.mrf.mxu0  ;;  %v20366_v59 = vpop.f32.mrf.mxu1 }
 0x8d5   :  { %v3249_v60 = vpop.f32.mrf.mxu0  ;;  %v3629_v62 = vpop.f32.mrf.mxu1 }
 0x8d6   :  { %v3250_v0 = vadd.f32 %v3249_v60, %v3176_v57 }
 0x8d7   :  { %v20351_v1 = vpop.f32.mrf.mxu0  ;;  %v20376_v2 = vpop.f32.mrf.mxu1 }
 0x8d8   :  { %v3324_v3 = vadd.f32 %v3323_v51, %v3250_v0  ;;  %v4413_v51 = vsel %vm712_vm2, %v22280_v61, 0 }
 0x8d9   :  { %v3397_v4 = vpop.f32.mrf.mxu0  ;;  %v3777_v5 = vpop.f32.mrf.mxu1  ;;  %v4483_v57 = vand.u32 4294901760, %v4413_v51 }
 0x8da   :  { %v3398_v6 = vadd.f32 %v3397_v4, %v3324_v3 }
 0x8db   :  { %v20361_v7 = vpop.f32.mrf.mxu0  ;;  %v20386_v8 = vpop.f32.mrf.mxu1  ;;  %v4484_v0 = vsub.f32 %v4413_v51, %v4483_v57 }
 0x8dc   :  { %v22484_v9 = vadd.f32 %v3469_v56, %v3398_v6 }
 0x8dd   :  { %v3553_v10 = vpop.f32.mrf.mxu0  ;;  %v3923_v11 = vpop.f32.mrf.mxu1  ;;  %v4485_v3 = vand.u32 4294901760, %v4484_v0 }
 0x8de   :  { %v3630_v14 = vadd.f32 %v3629_v62, %v3553_v10 }
 0x8df   :  { %v20371_v12 = vpop.f32.mrf.mxu0  ;;  %v20396_v13 = vpop.f32.mrf.mxu1 }
 0x8e1   :  { %v3703_v15 = vpop.f32.mrf.mxu0 }
 0x8e2   :  { %v3704_v16 = vadd.f32 %v3703_v15, %v3630_v14 }
 0x8e3   :  { %v20381_v17 = vpop.f32.mrf.mxu0 }
 0x8e4   :  { %v3778_v18 = vadd.f32 %v3777_v5, %v3704_v16  ;;  %v4486_v5 = vsub.f32 %v4484_v0, %v4485_v3 }
 0x8e5   :  { %v3851_v19 = vpop.f32.mrf.mxu0 }
 0x8e6   :  { %v3852_v20 = vadd.f32 %v3851_v19, %v3778_v18  ;;  %v4487_v7 = vand.u32 4294901760, %v4486_v5 }
 0x8e7   :  { %v20391_v21 = vpop.f32.mrf.mxu0 }
 0x8e8   :  { %v3924_v22 = vadd.f32 %v3923_v11, %v3852_v20 }
 0x8ea   :  { %v3927_v23 = vmul.f32 0.35355338, %v3924_v22 }
 0x8ec   :  { %v3928_v24 = vfloor.f32 %v3927_v23 }
 0x8ee   :  { %v3929_v25 = vadd.f32 %v3928_v24, %v22333_v42 }
 0x8f0   :  { %v3930_v26 = vsel %vm712_vm2, %v3929_v25, -inf }
 0x8f1   :  { %3931 = vmax.xlane.f32.xlu1 %v3930_v26 }
 0x902   :  { %4881 = vrot.lane.b32.xlu1 %v22280_v61, %s22040_s7 }
 0x97a   :  { %v3932_v27 = vpop.xlane.xlu1 %3931 }
 0x97b   :  { %v3933_v28 = vsub.f32 %v3929_v25, %v3932_v27 }
 0x97d   :  { %v3934_v29 = vmul.f32 1.442695, %v3933_v28 }
 0x97e   :  { %v4882_v52 = vpop.permute.xlu1 %4881 }
 0x97f   :  { %21836 = vpow2.f32 %v3934_v29  ;;  %v22507_v58 = vand.u32 4294901760, %v4882_v52 }
 0x981   :  { %v22514_v1 = vsub.f32 %v4882_v52, %v22507_v58 }
 0x983   :  { %v4996_v4 = vand.u32 4294901760, %v22514_v1 }
 0x985   :  { %v4997_v6 = vsub.f32 %v22514_v1, %v4996_v4 }
 0x987   :  { %v4998_v8 = vand.u32 4294901760, %v4997_v6 }
 0x98c   :  { %v21837_v30 = vpop.eup %21836 }
 0x98d   :  { %v3936_v32 = vsel %vm712_vm2, %v21837_v30, 0.0 }
 0x98e   :  { %3937 = vadd.xlane.f32.xlu0 %v3936_v32 }
 0x9a4   :  { %3941 = vrot.lane.b32.xlu0 %v22282_v63, %s22050_s6 }
 0x9a8   :  { %4411 = vrot.lane.b32.xlu0 %v22280_v61, %s22041_s30 }
 0xa17   :  { %v3938_v42 = vpop.xlane.xlu0 %3937 }
 0xa18   :  { %21838 = vrcp.f32 %v3938_v42 }
 0xa1b   :  { %v3942_v33 = vpop.permute.xlu0 %3941 }
 0xa1c   :  { %v3978_v35 = vand.u32 4294901760, %v3942_v33 }
 0xa1e   :  { %v4055_v37 = vsub.f32 %v3942_v33, %v3978_v35  ;;  %20398 = vmatpush3.msra.mxu0 %v3978_v35 }
 0xa1f   :  { %v4412_v39 = vpop.permute.xlu0 %4411  ;;  %20407 = vmatprep.subr.mxu0 %v22038_v55 }
 0xa20   :  { %v4056_v40 = vand.u32 4294901760, %v4055_v37  ;;  %v4415_v41 = vsel %vm712_vm2, %v4412_v39, 0 }
 0xa21   :  { %v4448_v43 = vand.u32 4294901760, %v4415_v41 }
 0xa22   :  { %v4057_v44 = vsub.f32 %v4055_v37, %v4056_v40 }
 0xa23   :  { %v22497_v63 = vsub.f32 %v4415_v41, %v4448_v43 }
 0xa24   :  { %v4058_v45 = vand.u32 4294901760, %v4057_v44 }
 0xa25   :  { %v21839_v46 = vpop.eup %21838  ;;  %v4526_v50 = vand.u32 4294901760, %v22497_v63 }
 0xa26   :  { %20403 = vmatpush3.msra.mxu1 %v4058_v45  ;;  %v3940_v47 = vmul.f32 %v21839_v46, %v21837_v30  ;;  %v4867_v46 = vsub.s32 1, %v22324_v31 }
 0xa27   :  { %20412 = vmatprep.subr.mxu1 %v22038_v55  ;;  %v4527_v59 = vsub.f32 %v22497_v63, %v4526_v50 }
 0xa28   :  { %v3945_v48 = vsel %vm712_vm2, %v3940_v47, 0 }
 0xa29   :  { %v4013_v49 = vand.u32 4294901760, %v3945_v48  ;;  %v4528_v2 = vand.u32 4294901760, %v4527_v59 }
 0xa2b   :  { %v4014_v54 = vsub.f32 %v3945_v48, %v4013_v49  ;;  %20405 = vmatmul.mubr.f32.vlgmr.msra.gmra.mxu1 %v4013_v49 }
 0xa2c   :  { %20413 = vmatpush3.msra.mxu1 %v3978_v35  ;;  %20414 = vmatprep.mubr.msk.f32.mxu1 %vm22039_vm1, %v22038_v55 }
 0xa2d   :  { %20422 = vmatprep.subr.mxu1 %v22038_v55  ;;  %v4015_v56 = vand.u32 4294901760, %v4014_v54 }
 0xa2f   :  { %20415 = vmatmul.mubr.f32.vlgmr.msra.gmra.mxu1 %v4015_v56  ;;  %v4016_v60 = vsub.f32 %v4014_v54, %v4015_v56 }
 0xa30   :  { %20423 = vmatpush3.msra.mxu1 %v3978_v35  ;;  %20424 = vmatprep.mubr.msk.f32.mxu1 %vm22039_vm1, %v22038_v55 }
 0xa31   :  { %20432 = vmatprep.subr.mxu1 %v22038_v55  ;;  %v4017_v62 = vand.u32 4294901760, %v4016_v60 }
 0xa33   :  { %20400 = vmatmul.mubr.f32.vlgmr.msra.gmra.mxu0 %v4017_v62  ;;  %20425 = vmatmul.mubr.f32.vlgmr.msra.gmra.mxu1 %v4013_v49 }
 0xa34   :  { %20408 = vmatpush3.msra.mxu0 %v4055_v37  ;;  %20433 = vmatpush3.xpose.msra.mxu1 %v4528_v2 }
 0xa35   :  { %20409 = vmatprep.mubr.msk.f32.mxu0 %vm22039_vm1, %v22038_v55  ;;  %20417 = vmatprep.subr.mxu0 %v22038_v55 }
 0xa36   :  { %20434 = vmatprep.mubr.msk.f32.mxu1 %vm22039_vm1, %v22038_v55  ;;  %20442 = vmatprep.subr.mxu1 %v22038_v55 }
 0xa37   :  { %20410 = vmatmul.mubr.f32.vlgmr.msra.gmra.mxu0 %v4014_v54  ;;  %20435 = vmatmul.mubr.f32.vlgmr.msra.gmra.mxu1 %v4483_v57 }
 0xa38   :  { %20418 = vmatpush3.msra.mxu0 %v4056_v40  ;;  %20443 = vmatpush3.xpose.msra.mxu1 %v4448_v43 }
 0xa39   :  { %20419 = vmatprep.mubr.msk.f32.mxu0 %vm22039_vm1, %v22038_v55  ;;  %20427 = vmatprep.subr.mxu0 %v22038_v55 }
 0xa3a   :  { %20444 = vmatprep.mubr.msk.f32.mxu1 %vm22039_vm1, %v22038_v55  ;;  %20452 = vmatprep.subr.mxu1 %v22038_v55 }
 0xa3b   :  { %20420 = vmatmul.mubr.f32.vlgmr.msra.gmra.mxu0 %v4013_v49  ;;  %20445 = vmatmul.mubr.f32.vlgmr.msra.gmra.mxu1 %v4485_v3  ;;  %v22558_v49 = vrot.slane %v22328_v38, %v4867_v46 }
 0xa3c   :  { %20428 = vmatpush3.xpose.msra.mxu0 %v4448_v43  ;;  %20453 = vmatpush3.xpose.msra.mxu1 %v4448_v43 }
 0xa3d   :  { %20429 = vmatprep.mubr.msk.f32.mxu0 %vm22039_vm1, %v22038_v55  ;;  %20437 = vmatprep.subr.mxu0 %v22038_v55 }
 0xa3e   :  { %20454 = vmatprep.mubr.msk.f32.mxu1 %vm22039_vm1, %v22038_v55  ;;  %20462 = vmatprep.subr.mxu1 %v22038_v55 }
 0xa3f   :  { %20430 = vmatmul.mubr.f32.vlgmr.msra.gmra.mxu0 %v4487_v7  ;;  %20455 = vmatmul.mubr.f32.vlgmr.msra.gmra.mxu1 %v4483_v57 }
 0xa40   :  { %20438 = vmatpush3.xpose.msra.mxu0 %v22497_v63  ;;  %20463 = vmatpush3.msra.mxu1 %v4998_v8 }
 0xa41   :  { %20439 = vmatprep.mubr.msk.f32.mxu0 %vm22039_vm1, %v22038_v55  ;;  %20447 = vmatprep.subr.mxu0 %v22038_v55 }
 0xa42   :  { %20464 = vmatprep.mubr.msk.f32.mxu1 %vm22039_vm1, %v22038_v55  ;;  %20472 = vmatprep.subr.mxu1 %v22038_v55 }
 0xa43   :  { %20440 = vmatmul.mubr.f32.vlgmr.msra.gmra.mxu0 %v4484_v0 }
 0xa44   :  { %20448 = vmatpush3.xpose.msra.mxu0 %v4526_v50  ;;  %20449 = vmatprep.mubr.msk.f32.mxu0 %vm22039_vm1, %v22038_v55 }
 0xa45   :  { %20457 = vmatprep.subr.mxu0 %v22038_v55 }
 0xa47   :  { %20450 = vmatmul.mubr.f32.vlgmr.msra.gmra.mxu0 %v4483_v57 }
 0xa48   :  { %20458 = vmatpush3.msra.mxu0 %v22507_v58  ;;  %20459 = vmatprep.mubr.msk.f32.mxu0 %vm22039_vm1, %v22038_v55 }
 0xa49   :  { %20467 = vmatprep.subr.mxu0 %v22038_v55 }
 0xaeb   :  { %v4095_v10 = vpop.f32.mrf.mxu1 }
 0xaed   :  { %v20406_v11 = vpop.f32.mrf.mxu1 }
 0xaef   :  { %v4243_v12 = vpop.f32.mrf.mxu1 }
 0xaf1   :  { %v20416_v13 = vpop.f32.mrf.mxu1 }
 0xaf3   :  { %v4019_v14 = vpop.f32.mrf.mxu0  ;;  %v4389_v15 = vpop.f32.mrf.mxu1 }
 0xaf4   :  { %v4096_v16 = vadd.f32 %v4095_v10, %v4019_v14 }
 0xaf5   :  { %v20401_v17 = vpop.f32.mrf.mxu0  ;;  %v20426_v18 = vpop.f32.mrf.mxu1 }
 0xaf7   :  { %v4169_v19 = vpop.f32.mrf.mxu0  ;;  %v4565_v20 = vpop.f32.mrf.mxu1 }
 0xaf8   :  { %v4170_v21 = vadd.f32 %v4169_v19, %v4096_v16 }
 0xaf9   :  { %v20411_v22 = vpop.f32.mrf.mxu0  ;;  %v20436_v23 = vpop.f32.mrf.mxu1 }
 0xafa   :  { %v4244_v24 = vadd.f32 %v4243_v12, %v4170_v21 }
 0xafb   :  { %v4317_v25 = vpop.f32.mrf.mxu0  ;;  %v4713_v26 = vpop.f32.mrf.mxu1 }
 0xafc   :  { %v4318_v27 = vadd.f32 %v4317_v25, %v4244_v24 }
 0xafd   :  { %v20421_v28 = vpop.f32.mrf.mxu0  ;;  %v20446_v29 = vpop.f32.mrf.mxu1 }
 0xafe   :  { %v22552_v30 = vadd.f32 %v4389_v15, %v4318_v27 }
 0xaff   :  { %v4489_v32 = vpop.f32.mrf.mxu0  ;;  %v4859_v42 = vpop.f32.mrf.mxu1 }
 0xb00   :  { %v4566_v37 = vadd.f32 %v4565_v20, %v4489_v32 }
 0xb01   :  { %v20431_v33 = vpop.f32.mrf.mxu0  ;;  %v20456_v35 = vpop.f32.mrf.mxu1 }
 0xb03   :  { %v4639_v39 = vpop.f32.mrf.mxu0 }
 0xb04   :  { %v4640_v40 = vadd.f32 %v4639_v39, %v4566_v37 }
 0xb05   :  { %v20441_v41 = vpop.f32.mrf.mxu0 }
 0xb06   :  { %v4714_v43 = vadd.f32 %v4713_v26, %v4640_v40 }
 0xb07   :  { %v4787_v44 = vpop.f32.mrf.mxu0 }
 0xb08   :  { %v4788_v45 = vadd.f32 %v4787_v44, %v4714_v43 }
 0xb09   :  { %v20451_v63 = vpop.f32.mrf.mxu0 }
 0xb0a   :  { %v4860_v47 = vadd.f32 %v4859_v42, %v4788_v45 }
 0xb0c   :  { %v4863_v48 = vmul.f32 0.35355338, %v4860_v47 }
 0xb0e   :  { %v4864_v50 = vfloor.f32 %v4863_v48 }
 0xb10   :  { %v4869_v51 = vadd.f32 %v22558_v49, %v4864_v50 }
 0xb12   :  { %v4870_v52 = vsel %vm712_vm2, %v4869_v51, -inf }
 0xb13   :  { %4871 = vmax.xlane.f32.xlu0 %v4870_v52 }
 0xb9c   :  { %v4872_v54 = vpop.xlane.xlu0 %4871 }
 0xb9d   :  { %v4873_v56 = vsub.f32 %v4869_v51, %v4872_v54 }
 0xb9f   :  { %v4874_v57 = vmul.f32 1.442695, %v4873_v56 }
 0xba1   :  { %21840 = vpow2.f32 %v4874_v57 }
 0xbae   :  { %v21841_v59 = vpop.eup %21840 }
 0xbaf   :  { %v4876_v60 = vsel %vm712_vm2, %v21841_v59, 0.0 }
 0xbb0   :  { %4877 = vadd.xlane.f32.xlu1 %v4876_v60 }
 0xbc1   :  { %5335 = vrot.lane.b32.xlu1 %v22280_v61, %s22042_s12 }
 0xbc5   :  { %5333 = vrot.lane.b32.xlu1 %v22280_v61, %s22043_s4 }
 0xc39   :  { %v4878_v38 = vpop.xlane.xlu1 %4877 }
 0xc3a   :  { %21842 = vrcp.f32 %v4878_v38 }
 0xc3d   :  { %v5336_v62 = vpop.permute.xlu1 %5335 }
 0xc3e   :  { %v5339_v0 = vsel %vm712_vm2, %v5336_v62, 0 }
 0xc3f   :  { %v5372_v2 = vand.u32 4294901760, %v5339_v0 }
 0xc41   :  { %v5449_v5 = vsub.f32 %v5339_v0, %v5372_v2  ;;  %v5334_v7 = vpop.permute.xlu1 %5333 }
 0xc42   :  { %v5337_v12 = vsel %vm712_vm2, %v5334_v7, 0 }
 0xc43   :  { %v5450_v11 = vand.u32 4294901760, %v5449_v5  ;;  %v5407_v14 = vand.u32 4294901760, %v5337_v12 }
 0xc45   :  { %v5451_v16 = vsub.f32 %v5449_v5, %v5450_v11  ;;  %v5408_v18 = vsub.f32 %v5337_v12, %v5407_v14 }
 0xc47   :  { %v21843_v3 = vpop.eup %21842  ;;  %v5452_v20 = vand.u32 4294901760, %v5451_v16  ;;  %v5409_v21 = vand.u32 4294901760, %v5408_v18 }
 0xc48   :  { %v4880_v6 = vmul.f32 %v21843_v3, %v21841_v59 }
 0xc4a   :  { %v4885_v8 = vsel %vm712_vm2, %v4880_v6, 0 }
 0xc4b   :  { %v4953_v10 = vand.u32 4294901760, %v4885_v8 }
 0xc4d   :  { %v4954_v13 = vsub.f32 %v4885_v8, %v4953_v10  ;;  %20465 = vmatmul.mubr.f32.vlgmr.msra.gmra.mxu1 %v4953_v10 }
 0xc4e   :  { %20473 = vmatpush3.msra.mxu1 %v22507_v58  ;;  %20474 = vmatprep.mubr.msk.f32.mxu1 %vm22039_vm1, %v22038_v55 }
 0xc4f   :  { %20482 = vmatprep.subr.mxu1 %v22038_v55  ;;  %v4955_v15 = vand.u32 4294901760, %v4954_v13 }
 0xc51   :  { %20475 = vmatmul.mubr.f32.vlgmr.msra.gmra.mxu1 %v4955_v15  ;;  %v4956_v17 = vsub.f32 %v4954_v13, %v4955_v15 }
 0xc52   :  { %20483 = vmatpush3.msra.mxu1 %v22507_v58  ;;  %20484 = vmatprep.mubr.msk.f32.mxu1 %vm22039_vm1, %v22038_v55  ;;  %v5410_v58 = vsub.f32 %v5408_v18, %v5409_v21 }
 0xc53   :  { %20492 = vmatprep.subr.mxu1 %v22038_v55  ;;  %v4957_v19 = vand.u32 4294901760, %v4956_v17 }
 0xc54   :  { %v5411_v22 = vand.u32 4294901760, %v5410_v58 }
 0xc55   :  { %20460 = vmatmul.mubr.f32.vlgmr.msra.gmra.mxu0 %v4957_v19  ;;  %20485 = vmatmul.mubr.f32.vlgmr.msra.gmra.mxu1 %v4953_v10 }
 0xc56   :  { %20468 = vmatpush3.msra.mxu0 %v22514_v1  ;;  %20493 = vmatpush3.xpose.msra.mxu1 %v5452_v20 }
 0xc57   :  { %20469 = vmatprep.mubr.msk.f32.mxu0 %vm22039_vm1, %v22038_v55  ;;  %20477 = vmatprep.subr.mxu0 %v22038_v55 }
 0xc58   :  { %20494 = vmatprep.mubr.msk.f32.mxu1 %vm22039_vm1, %v22038_v55  ;;  %20502 = vmatprep.subr.mxu1 %v22038_v55 }
 0xc59   :  { %20470 = vmatmul.mubr.f32.vlgmr.msra.gmra.mxu0 %v4954_v13  ;;  %20495 = vmatmul.mubr.f32.vlgmr.msra.gmra.mxu1 %v5407_v14 }
 0xc5a   :  { %20478 = vmatpush3.msra.mxu0 %v4996_v4  ;;  %20503 = vmatpush3.xpose.msra.mxu1 %v5372_v2 }
 0xc5b   :  { %20479 = vmatprep.mubr.msk.f32.mxu0 %vm22039_vm1, %v22038_v55  ;;  %20487 = vmatprep.subr.mxu0 %v22038_v55 }
 0xc5c   :  { %20504 = vmatprep.mubr.msk.f32.mxu1 %vm22039_vm1, %v22038_v55  ;;  %20512 = vmatprep.subr.mxu1 %v22038_v55 }
 0xc5d   :  { %20480 = vmatmul.mubr.f32.vlgmr.msra.gmra.mxu0 %v4953_v10  ;;  %20505 = vmatmul.mubr.f32.vlgmr.msra.gmra.mxu1 %v5409_v21 }
 0xc5e   :  { %20488 = vmatpush3.xpose.msra.mxu0 %v5372_v2  ;;  %20513 = vmatpush3.xpose.msra.mxu1 %v5372_v2 }
 0xc5f   :  { %20489 = vmatprep.mubr.msk.f32.mxu0 %vm22039_vm1, %v22038_v55  ;;  %20497 = vmatprep.subr.mxu0 %v22038_v55 }
 0xc60   :  { %20514 = vmatprep.mubr.msk.f32.mxu1 %vm22039_vm1, %v22038_v55  ;;  %20522 = vmatprep.subr.mxu1 %v22038_v55 }
 0xc61   :  { %20490 = vmatmul.mubr.f32.vlgmr.msra.gmra.mxu0 %v5411_v22  ;;  %20515 = vmatmul.mubr.f32.vlgmr.msra.gmra.mxu1 %v5407_v14 }
 0xc62   :  { %20498 = vmatpush3.xpose.msra.mxu0 %v5449_v5  ;;  %20499 = vmatprep.mubr.msk.f32.mxu0 %vm22039_vm1, %v22038_v55 }
 0xc63   :  { %20507 = vmatprep.subr.mxu0 %v22038_v55  ;;  %20524 = vmatprep.mubr.msk.f32.mxu1 %vm22039_vm1, %v22038_v55 }
 0xc65   :  { %20500 = vmatmul.mubr.f32.vlgmr.msra.gmra.mxu0 %v5408_v18 }
 0xc66   :  { %20508 = vmatpush3.xpose.msra.mxu0 %v5450_v11  ;;  %20509 = vmatprep.mubr.msk.f32.mxu0 %vm22039_vm1, %v22038_v55 }
 0xc67   :  { %20517 = vmatprep.subr.mxu0 %v22038_v55 }
 0xc69   :  { %20510 = vmatmul.mubr.f32.vlgmr.msra.gmra.mxu0 %v5407_v14 }
 0xc6a   :  { %20519 = vmatprep.mubr.msk.f32.mxu0 %vm22039_vm1, %v22038_v55 }
 0xd0d   :  { %v5035_v1 = vpop.f32.mrf.mxu1 }
 0xd0f   :  { %v20466_v4 = vpop.f32.mrf.mxu1 }
 0xd11   :  { %v5183_v23 = vpop.f32.mrf.mxu1 }
 0xd13   :  { %v20476_v24 = vpop.f32.mrf.mxu1 }
 0xd15   :  { %v4959_v25 = vpop.f32.mrf.mxu0  ;;  %v5329_v26 = vpop.f32.mrf.mxu1 }
 0xd16   :  { %v5036_v27 = vadd.f32 %v5035_v1, %v4959_v25 }
 0xd17   :  { %v20461_v28 = vpop.f32.mrf.mxu0  ;;  %v20486_v29 = vpop.f32.mrf.mxu1 }
 0xd19   :  { %v5109_v32 = vpop.f32.mrf.mxu0  ;;  %v5489_v42 = vpop.f32.mrf.mxu1 }
 0xd1a   :  { %v5110_v33 = vadd.f32 %v5109_v32, %v5036_v27 }
 0xd1b   :  { %v20471_v35 = vpop.f32.mrf.mxu0  ;;  %v20496_v37 = vpop.f32.mrf.mxu1 }
 0xd1c   :  { %v5184_v39 = vadd.f32 %v5183_v23, %v5110_v33 }
 0xd1d   :  { %v5257_v40 = vpop.f32.mrf.mxu0  ;;  %v5637_v41 = vpop.f32.mrf.mxu1 }
 0xd1e   :  { %v5258_v43 = vadd.f32 %v5257_v40, %v5184_v39 }
 0xd1f   :  { %v20481_v44 = vpop.f32.mrf.mxu0  ;;  %v20506_v45 = vpop.f32.mrf.mxu1 }
 0xd20   :  { %v22609_v63 = vadd.f32 %v5329_v26, %v5258_v43 }
 0xd21   :  { %v5413_v47 = vpop.f32.mrf.mxu0  ;;  %v5783_v48 = vpop.f32.mrf.mxu1 }
 0xd22   :  { %v5490_v52 = vadd.f32 %v5489_v42, %v5413_v47 }
 0xd23   :  { %v20491_v50 = vpop.f32.mrf.mxu0  ;;  %v20516_v51 = vpop.f32.mrf.mxu1 }
 0xd25   :  { %v5563_v54 = vpop.f32.mrf.mxu0 }
 0xd26   :  { %v5564_v56 = vadd.f32 %v5563_v54, %v5490_v52 }
 0xd27   :  { %v20501_v57 = vpop.f32.mrf.mxu0 }
 0xd28   :  { %v5638_v59 = vadd.f32 %v5637_v41, %v5564_v56 }
 0xd29   :  { %v5711_v60 = vpop.f32.mrf.mxu0 }
 0xd2a   :  { %v5712_v38 = vadd.f32 %v5711_v60, %v5638_v59 }
 0xd2b   :  { %v20511_v62 = vpop.f32.mrf.mxu0 }
 0xd2c   :  { %v5784_v0 = vadd.f32 %v5783_v48, %v5712_v38 }
 0xd2e   :  { %v5787_v2 = vmul.f32 0.35355338, %v5784_v0 }
 0xd30   :  { %v5788_v3 = vfloor.f32 %v5787_v2 }
 0xd32   :  { %v5789_v5 = vadd.f32 %v5788_v3, %v22558_v49 }
 0xd34   :  { %v5790_v6 = vsel %vm712_vm2, %v5789_v5, -inf }
 0xd35   :  { %5791 = vmax.xlane.f32.xlu1 %v5790_v6 }
 0xd46   :  { %6721 = vrot.lane.b32.xlu1 %v22280_v61, %s22047_s26  ;;  %s24478_s26 = sld [smem:[#allocation24_spill]] }
 0xdbe   :  { %v5792_v7 = vpop.xlane.xlu1 %5791 }
 0xdbf   :  { %v5793_v8 = vsub.f32 %v5789_v5, %v5792_v7 }
 0xdc1   :  { %v5794_v10 = vmul.f32 1.442695, %v5793_v8 }
 0xdc2   :  { %v6722_v28 = vpop.permute.xlu1 %6721 }
 0xdc3   :  { %21844 = vpow2.f32 %v5794_v10  ;;  %v22633_v33 = vand.u32 4294901760, %v6722_v28 }
 0xdc5   :  { %v22640_v41 = vsub.f32 %v6722_v28, %v22633_v33 }
 0xdc7   :  { %v6836_v45 = vand.u32 4294901760, %v22640_v41 }
 0xdc9   :  { %v6837_v48 = vsub.f32 %v22640_v41, %v6836_v45 }
 0xdcb   :  { %v6838_v51 = vand.u32 4294901760, %v6837_v48 }
 0xdd0   :  { %v21845_v11 = vpop.eup %21844 }
 0xdd1   :  { %v5796_v12 = vsel %vm712_vm2, %v21845_v11, 0.0 }
 0xdd2   :  { %5797 = vadd.xlane.f32.xlu0 %v5796_v12 }
 0xde8   :  { %5801 = vrot.lane.b32.xlu0 %v22280_v61, %s22044_s1  ;;  %s24480_s1 = sld [smem:[#allocation19_spill]] }
 0xdec   :  { %6255 = vrot.lane.b32.xlu0 %v22280_v61, %s22045_s5 }
 0xdf0   :  { %6253 = vrot.lane.b32.xlu0 %v22280_v61, %s22046_s10 }
 0xe5b   :  { %v5798_v13 = vpop.xlane.xlu0 %5797 }
 0xe5c   :  { %21846 = vrcp.f32 %v5798_v13 }
 0xe5f   :  { %v5802_v14 = vpop.permute.xlu0 %5801 }
 0xe60   :  { %v5838_v15 = vand.u32 4294901760, %v5802_v14 }
 0xe62   :  { %v5915_v16 = vsub.f32 %v5802_v14, %v5838_v15  ;;  %20518 = vmatpush3.msra.mxu0 %v5838_v15 }
 0xe63   :  { %v6256_v17 = vpop.permute.xlu0 %6255  ;;  %20527 = vmatprep.subr.mxu0 %v22038_v55 }
 0xe64   :  { %v5916_v18 = vand.u32 4294901760, %v5915_v16  ;;  %v6259_v19 = vsel %vm712_vm2, %v6256_v17, 0 }
 0xe65   :  { %v6292_v21 = vand.u32 4294901760, %v6259_v19 }
 0xe66   :  { %v5917_v20 = vsub.f32 %v5915_v16, %v5916_v18 }
 0xe67   :  { %v22624_v1 = vsub.f32 %v6259_v19, %v6292_v21  ;;  %v6254_v23 = vpop.permute.xlu0 %6253 }
 0xe68   :  { %v5918_v58 = vand.u32 4294901760, %v5917_v20  ;;  %v6257_v27 = vsel %vm712_vm2, %v6254_v23, 0 }
 0xe69   :  { %v21847_v22 = vpop.eup %21846  ;;  %v6370_v26 = vand.u32 4294901760, %v22624_v1  ;;  %v6327_v32 = vand.u32 4294901760, %v6257_v27 }
 0xe6a   :  { %20523 = vmatpush3.msra.mxu1 %v5918_v58  ;;  %v5800_v4 = vmul.f32 %v21847_v22, %v21845_v11 }
 0xe6b   :  { %20532 = vmatprep.subr.mxu1 %v22038_v55  ;;  %v6371_v35 = vsub.f32 %v22624_v1, %v6370_v26  ;;  %v6328_v39 = vsub.f32 %v6257_v27, %v6327_v32 }
 0xe6c   :  { %v5805_v24 = vsel %vm712_vm2, %v5800_v4, 0 }
 0xe6d   :  { %v5873_v25 = vand.u32 4294901760, %v5805_v24  ;;  %v6372_v43 = vand.u32 4294901760, %v6371_v35  ;;  %v6329_v44 = vand.u32 4294901760, %v6328_v39 }
 0xe6f   :  { %v5874_v29 = vsub.f32 %v5805_v24, %v5873_v25  ;;  %20525 = vmatmul.mubr.f32.vlgmr.msra.gmra.mxu1 %v5873_v25  ;;  %v6330_v47 = vsub.f32 %v6328_v39, %v6329_v44 }
 0xe70   :  { %20533 = vmatpush3.msra.mxu1 %v5838_v15  ;;  %20534 = vmatprep.mubr.msk.f32.mxu1 %vm22039_vm1, %v22038_v55 }
 0xe71   :  { %20542 = vmatprep.subr.mxu1 %v22038_v55  ;;  %v5875_v42 = vand.u32 4294901760, %v5874_v29  ;;  %v6331_v50 = vand.u32 4294901760, %v6330_v47 }
 0xe73   :  { %20535 = vmatmul.mubr.f32.vlgmr.msra.gmra.mxu1 %v5875_v42  ;;  %v5876_v37 = vsub.f32 %v5874_v29, %v5875_v42 }
 0xe74   :  { %20543 = vmatpush3.msra.mxu1 %v5838_v15  ;;  %20544 = vmatprep.mubr.msk.f32.mxu1 %vm22039_vm1, %v22038_v55 }
 0xe75   :  { %20552 = vmatprep.subr.mxu1 %v22038_v55  ;;  %v5877_v40 = vand.u32 4294901760, %v5876_v37 }
 0xe77   :  { %20520 = vmatmul.mubr.f32.vlgmr.msra.gmra.mxu0 %v5877_v40  ;;  %20545 = vmatmul.mubr.f32.vlgmr.msra.gmra.mxu1 %v5873_v25 }
 0xe78   :  { %20528 = vmatpush3.msra.mxu0 %v5915_v16  ;;  %20553 = vmatpush3.xpose.msra.mxu1 %v6372_v43 }
 0xe79   :  { %20529 = vmatprep.mubr.msk.f32.mxu0 %vm22039_vm1, %v22038_v55  ;;  %20537 = vmatprep.subr.mxu0 %v22038_v55 }
 0xe7a   :  { %20554 = vmatprep.mubr.msk.f32.mxu1 %vm22039_vm1, %v22038_v55  ;;  %20562 = vmatprep.subr.mxu1 %v22038_v55 }
 0xe7b   :  { %20530 = vmatmul.mubr.f32.vlgmr.msra.gmra.mxu0 %v5874_v29  ;;  %20555 = vmatmul.mubr.f32.vlgmr.msra.gmra.mxu1 %v6327_v32 }
 0xe7c   :  { %20538 = vmatpush3.msra.mxu0 %v5916_v18  ;;  %20563 = vmatpush3.xpose.msra.mxu1 %v6292_v21 }
 0xe7d   :  { %20539 = vmatprep.mubr.msk.f32.mxu0 %vm22039_vm1, %v22038_v55  ;;  %20547 = vmatprep.subr.mxu0 %v22038_v55 }
 0xe7e   :  { %20564 = vmatprep.mubr.msk.f32.mxu1 %vm22039_vm1, %v22038_v55  ;;  %20572 = vmatprep.subr.mxu1 %v22038_v55 }
 0xe7f   :  { %20540 = vmatmul.mubr.f32.vlgmr.msra.gmra.mxu0 %v5873_v25  ;;  %20565 = vmatmul.mubr.f32.vlgmr.msra.gmra.mxu1 %v6329_v44 }
 0xe80   :  { %20548 = vmatpush3.xpose.msra.mxu0 %v6292_v21  ;;  %20573 = vmatpush3.xpose.msra.mxu1 %v6292_v21 }
 0xe81   :  { %20549 = vmatprep.mubr.msk.f32.mxu0 %vm22039_vm1, %v22038_v55  ;;  %20557 = vmatprep.subr.mxu0 %v22038_v55 }
 0xe82   :  { %20574 = vmatprep.mubr.msk.f32.mxu1 %vm22039_vm1, %v22038_v55  ;;  %20582 = vmatprep.subr.mxu1 %v22038_v55 }
 0xe83   :  { %20550 = vmatmul.mubr.f32.vlgmr.msra.gmra.mxu0 %v6331_v50  ;;  %20575 = vmatmul.mubr.f32.vlgmr.msra.gmra.mxu1 %v6327_v32 }
 0xe84   :  { %20558 = vmatpush3.xpose.msra.mxu0 %v22624_v1  ;;  %20583 = vmatpush3.msra.mxu1 %v6838_v51 }
 0xe85   :  { %20559 = vmatprep.mubr.msk.f32.mxu0 %vm22039_vm1, %v22038_v55  ;;  %20567 = vmatprep.subr.mxu0 %v22038_v55 }
 0xe86   :  { %20584 = vmatprep.mubr.msk.f32.mxu1 %vm22039_vm1, %v22038_v55  ;;  %20592 = vmatprep.subr.mxu1 %v22038_v55 }
 0xe87   :  { %20560 = vmatmul.mubr.f32.vlgmr.msra.gmra.mxu0 %v6328_v39 }
 0xe88   :  { %20568 = vmatpush3.xpose.msra.mxu0 %v6370_v26  ;;  %20569 = vmatprep.mubr.msk.f32.mxu0 %vm22039_vm1, %v22038_v55 }
 0xe89   :  { %20577 = vmatprep.subr.mxu0 %v22038_v55 }
 0xe8b   :  { %20570 = vmatmul.mubr.f32.vlgmr.msra.gmra.mxu0 %v6327_v32 }
 0xe8c   :  { %20578 = vmatpush3.msra.mxu0 %v22633_v33  ;;  %20579 = vmatprep.mubr.msk.f32.mxu0 %vm22039_vm1, %v22038_v55 }
 0xe8d   :  { %20587 = vmatprep.subr.mxu0 %v22038_v55 }
 0xf2f   :  { %v5955_v52 = vpop.f32.mrf.mxu1 }
 0xf31   :  { %v20526_v54 = vpop.f32.mrf.mxu1 }
 0xf33   :  { %v6103_v56 = vpop.f32.mrf.mxu1 }
 0xf35   :  { %v20536_v57 = vpop.f32.mrf.mxu1 }
 0xf37   :  { %v5879_v59 = vpop.f32.mrf.mxu0  ;;  %v6249_v60 = vpop.f32.mrf.mxu1 }
 0xf38   :  { %v5956_v38 = vadd.f32 %v5955_v52, %v5879_v59 }
 0xf39   :  { %v20521_v62 = vpop.f32.mrf.mxu0  ;;  %v20546_v0 = vpop.f32.mrf.mxu1 }
 0xf3b   :  { %v6029_v2 = vpop.f32.mrf.mxu0  ;;  %v6409_v3 = vpop.f32.mrf.mxu1 }
 0xf3c   :  { %v6030_v5 = vadd.f32 %v6029_v2, %v5956_v38 }
 0xf3d   :  { %v20531_v6 = vpop.f32.mrf.mxu0  ;;  %v20556_v7 = vpop.f32.mrf.mxu1 }
 0xf3e   :  { %v6104_v8 = vadd.f32 %v6103_v56, %v6030_v5 }
 0xf3f   :  { %v6177_v10 = vpop.f32.mrf.mxu0  ;;  %v6557_v11 = vpop.f32.mrf.mxu1 }
 0xf40   :  { %v6178_v12 = vadd.f32 %v6177_v10, %v6104_v8 }
 0xf41   :  { %v20541_v13 = vpop.f32.mrf.mxu0  ;;  %v20566_v14 = vpop.f32.mrf.mxu1 }
 0xf42   :  { %v22678_v15 = vadd.f32 %v6249_v60, %v6178_v12 }
 0xf43   :  { %v6333_v16 = vpop.f32.mrf.mxu0  ;;  %v6703_v17 = vpop.f32.mrf.mxu1 }
 0xf44   :  { %v6410_v20 = vadd.f32 %v6409_v3, %v6333_v16 }
 0xf45   :  { %v20551_v18 = vpop.f32.mrf.mxu0  ;;  %v20576_v19 = vpop.f32.mrf.mxu1 }
 0xf47   :  { %v6483_v21 = vpop.f32.mrf.mxu0 }
 0xf48   :  { %v6484_v58 = vadd.f32 %v6483_v21, %v6410_v20 }
 0xf49   :  { %v20561_v22 = vpop.f32.mrf.mxu0 }
 0xf4a   :  { %v6558_v1 = vadd.f32 %v6557_v11, %v6484_v58 }
 0xf4b   :  { %v6631_v4 = vpop.f32.mrf.mxu0 }
 0xf4c   :  { %v6632_v23 = vadd.f32 %v6631_v4, %v6558_v1 }
 0xf4d   :  { %v20571_v24 = vpop.f32.mrf.mxu0 }
 0xf4e   :  { %v6704_v25 = vadd.f32 %v6703_v17, %v6632_v23 }
 0xf50   :  { %v6707_v26 = vmul.f32 0.35355338, %v6704_v25 }
 0xf52   :  { %v6708_v27 = vfloor.f32 %v6707_v26 }
 0xf54   :  { %v6709_v28 = vadd.f32 %v6708_v27, %v22558_v49 }
 0xf56   :  { %v6710_v29 = vsel %vm712_vm2, %v6709_v28, -inf }
 0xf57   :  { %6711 = vmax.xlane.f32.xlu0 %v6710_v29 }
 0xfe0   :  { %v6712_v32 = vpop.xlane.xlu0 %6711 }
 0xfe1   :  { %v6713_v42 = vsub.f32 %v6709_v28, %v6712_v32 }
 0xfe3   :  { %v6714_v35 = vmul.f32 1.442695, %v6713_v42 }
 0xfe5   :  { %21848 = vpow2.f32 %v6714_v35 }
 0xff2   :  { %v21849_v37 = vpop.eup %21848 }
 0xff3   :  { %v6716_v39 = vsel %vm712_vm2, %v21849_v37, 0.0 }
 0xff4   :  { %6717 = vadd.xlane.f32.xlu1 %v6716_v39 }
0x1005   :  { %7175 = vrot.lane.b32.xlu1 %v22280_v61, %s22048_s27 }
0x1009   :  { %7173 = vrot.lane.b32.xlu1 %v22280_v61, %s22049_s18 }
0x107d   :  { %v6718_v40 = vpop.xlane.xlu1 %6717 }
0x107e   :  { %21850 = vrcp.f32 %v6718_v40 }
0x1081   :  { %v7176_v43 = vpop.permute.xlu1 %7175 }
0x1082   :  { %v7179_v44 = vsel %vm712_vm2, %v7176_v43, 0 }
0x1083   :  { %v7212_v47 = vand.u32 4294901760, %v7179_v44 }
0x1085   :  { %v7289_v50 = vsub.f32 %v7179_v44, %v7212_v47  ;;  %v7174_v52 = vpop.permute.xlu1 %7173 }
0x1086   :  { %v7177_v59 = vsel %vm712_vm2, %v7174_v52, 0 }
0x1087   :  { %v7290_v57 = vand.u32 4294901760, %v7289_v50  ;;  %v7247_v38 = vand.u32 4294901760, %v7177_v59 }
0x1089   :  { %v7291_v0 = vsub.f32 %v7289_v50, %v7290_v57  ;;  %v7248_v3 = vsub.f32 %v7177_v59, %v7247_v38 }
0x108b   :  { %v21851_v48 = vpop.eup %21850  ;;  %v7292_v6 = vand.u32 4294901760, %v7291_v0  ;;  %v7249_v7 = vand.u32 4294901760, %v7248_v3 }
0x108c   :  { %v6720_v51 = vmul.f32 %v21851_v48, %v21849_v37 }
0x108e   :  { %v6725_v54 = vsel %vm712_vm2, %v6720_v51, 0 }
0x108f   :  { %v6793_v56 = vand.u32 4294901760, %v6725_v54 }
0x1091   :  { %v6794_v60 = vsub.f32 %v6725_v54, %v6793_v56  ;;  %20585 = vmatmul.mubr.f32.vlgmr.msra.gmra.mxu1 %v6793_v56 }
0x1092   :  { %20593 = vmatpush3.msra.mxu1 %v22633_v33  ;;  %20594 = vmatprep.mubr.msk.f32.mxu1 %vm22039_vm1, %v22038_v55 }
0x1093   :  { %20602 = vmatprep.subr.mxu1 %v22038_v55  ;;  %v6795_v62 = vand.u32 4294901760, %v6794_v60 }
0x1095   :  { %20595 = vmatmul.mubr.f32.vlgmr.msra.gmra.mxu1 %v6795_v62  ;;  %v6796_v2 = vsub.f32 %v6794_v60, %v6795_v62 }
0x1096   :  { %20603 = vmatpush3.msra.mxu1 %v22633_v33  ;;  %20604 = vmatprep.mubr.msk.f32.mxu1 %vm22039_vm1, %v22038_v55  ;;  %v7250_v33 = vsub.f32 %v7248_v3, %v7249_v7 }
0x1097   :  { %20612 = vmatprep.subr.mxu1 %v22038_v55  ;;  %v6797_v5 = vand.u32 4294901760, %v6796_v2 }
0x1098   :  { %v7251_v8 = vand.u32 4294901760, %v7250_v33 }
0x1099   :  { %20580 = vmatmul.mubr.f32.vlgmr.msra.gmra.mxu0 %v6797_v5  ;;  %20605 = vmatmul.mubr.f32.vlgmr.msra.gmra.mxu1 %v6793_v56 }
0x109a   :  { %20588 = vmatpush3.msra.mxu0 %v22640_v41  ;;  %20613 = vmatpush3.xpose.msra.mxu1 %v7292_v6 }
0x109b   :  { %20589 = vmatprep.mubr.msk.f32.mxu0 %vm22039_vm1, %v22038_v55  ;;  %20597 = vmatprep.subr.mxu0 %v22038_v55 }
0x109c   :  { %20614 = vmatprep.mubr.msk.f32.mxu1 %vm22039_vm1, %v22038_v55  ;;  %20622 = vmatprep.subr.mxu1 %v22038_v55 }
0x109d   :  { %20590 = vmatmul.mubr.f32.vlgmr.msra.gmra.mxu0 %v6794_v60  ;;  %20615 = vmatmul.mubr.f32.vlgmr.msra.gmra.mxu1 %v7247_v38 }
0x109e   :  { %20598 = vmatpush3.msra.mxu0 %v6836_v45  ;;  %20623 = vmatpush3.xpose.msra.mxu1 %v7212_v47 }
0x109f   :  { %20599 = vmatprep.mubr.msk.f32.mxu0 %vm22039_vm1, %v22038_v55  ;;  %20607 = vmatprep.subr.mxu0 %v22038_v55 }
0x10a0   :  { %20624 = vmatprep.mubr.msk.f32.mxu1 %vm22039_vm1, %v22038_v55  ;;  %20632 = vmatprep.subr.mxu1 %v22038_v55 }
0x10a1   :  { %20600 = vmatmul.mubr.f32.vlgmr.msra.gmra.mxu0 %v6793_v56  ;;  %20625 = vmatmul.mubr.f32.vlgmr.msra.gmra.mxu1 %v7249_v7 }
0x10a2   :  { %20608 = vmatpush3.xpose.msra.mxu0 %v7212_v47  ;;  %20633 = vmatpush3.xpose.msra.mxu1 %v7212_v47 }
0x10a3   :  { %20609 = vmatprep.mubr.msk.f32.mxu0 %vm22039_vm1, %v22038_v55  ;;  %20617 = vmatprep.subr.mxu0 %v22038_v55 }
0x10a4   :  { %20634 = vmatprep.mubr.msk.f32.mxu1 %vm22039_vm1, %v22038_v55  ;;  %20642 = vmatprep.subr.mxu1 %v22038_v55 }
0x10a5   :  { %20610 = vmatmul.mubr.f32.vlgmr.msra.gmra.mxu0 %v7251_v8  ;;  %20635 = vmatmul.mubr.f32.vlgmr.msra.gmra.mxu1 %v7247_v38 }
0x10a6   :  { %20618 = vmatpush3.xpose.msra.mxu0 %v7289_v50  ;;  %20619 = vmatprep.mubr.msk.f32.mxu0 %vm22039_vm1, %v22038_v55 }
0x10a7   :  { %20627 = vmatprep.subr.mxu0 %v22038_v55  ;;  %20644 = vmatprep.mubr.msk.f32.mxu1 %vm22039_vm1, %v22038_v55 }
0x10a9   :  { %20620 = vmatmul.mubr.f32.vlgmr.msra.gmra.mxu0 %v7248_v3 }
0x10aa   :  { %20628 = vmatpush3.xpose.msra.mxu0 %v7290_v57  ;;  %20629 = vmatprep.mubr.msk.f32.mxu0 %vm22039_vm1, %v22038_v55 }
0x10ab   :  { %20637 = vmatprep.subr.mxu0 %v22038_v55 }
0x10ad   :  { %20630 = vmatmul.mubr.f32.vlgmr.msra.gmra.mxu0 %v7247_v38 }
0x10ae   :  { %20639 = vmatprep.mubr.msk.f32.mxu0 %vm22039_vm1, %v22038_v55 }
0x1151   :  { %v6875_v41 = vpop.f32.mrf.mxu1 }
0x1153   :  { %v20586_v45 = vpop.f32.mrf.mxu1 }
0x1155   :  { %v7023_v10 = vpop.f32.mrf.mxu1 }
0x1157   :  { %v20596_v11 = vpop.f32.mrf.mxu1 }
0x1159   :  { %v6799_v12 = vpop.f32.mrf.mxu0  ;;  %v7169_v13 = vpop.f32.mrf.mxu1 }
0x115a   :  { %v6876_v14 = vadd.f32 %v6875_v41, %v6799_v12 }
0x115b   :  { %v20581_v16 = vpop.f32.mrf.mxu0  ;;  %v20606_v17 = vpop.f32.mrf.mxu1 }
0x115d   :  { %v6949_v18 = vpop.f32.mrf.mxu0  ;;  %v7329_v19 = vpop.f32.mrf.mxu1 }
0x115e   :  { %v6950_v20 = vadd.f32 %v6949_v18, %v6876_v14 }
0x115f   :  { %v20591_v21 = vpop.f32.mrf.mxu0  ;;  %v20616_v58 = vpop.f32.mrf.mxu1 }
0x1160   :  { %v7024_v22 = vadd.f32 %v7023_v10, %v6950_v20  ;;  %v707_v20 = vld [vmem:[%s24476_s3 + $0x18] sm:$0xff]  ;;  %v706_v21 = vld [vmem:[%s24476_s3 + $0x10] sm:$0xff]  ;;  %v705_v58 = vld [vmem:[%s24476_s3 + $0x8] sm:$0xff] }
0x1161   :  { %v7097_v1 = vpop.f32.mrf.mxu0  ;;  %v7477_v4 = vpop.f32.mrf.mxu1 }
0x1162   :  { %v7098_v23 = vadd.f32 %v7097_v1, %v7024_v22  ;;  %v22780_v22 = vand.u32 4294901760, %v707_v20  ;;  %v22782_v1 = vand.u32 4294901760, %v706_v21 }
0x1163   :  { %v20601_v24 = vpop.f32.mrf.mxu0  ;;  %v20626_v25 = vpop.f32.mrf.mxu1 }
0x1164   :  { %v7170_v26 = vadd.f32 %v7169_v13, %v7098_v23  ;;  %v22787_v23 = vsub.f32 %v707_v20, %v22780_v22  ;;  %v22790_v24 = vsub.f32 %v706_v21, %v22782_v1 }
0x1165   :  { %v7253_v27 = vpop.f32.mrf.mxu0  ;;  %v7623_v28 = vpop.f32.mrf.mxu1 }
0x1166   :  { %v7330_v42 = vadd.f32 %v7329_v19, %v7253_v27  ;;  %v22801_v27 = vand.u32 4294901760, %v22790_v24 }
0x1167   :  { %v20611_v29 = vpop.f32.mrf.mxu0  ;;  %v20636_v32 = vpop.f32.mrf.mxu1 }
0x1168   :  { %v8244_v32 = vsub.f32 %v22790_v24, %v22801_v27 }
0x1169   :  { %v7403_v35 = vpop.f32.mrf.mxu0 }
0x116a   :  { %v7404_v37 = vadd.f32 %v7403_v35, %v7330_v42 }
0x116b   :  { %v20621_v39 = vpop.f32.mrf.mxu0 }
0x116c   :  { %v7478_v40 = vadd.f32 %v7477_v4, %v7404_v37  ;;  %v22784_v4 = vand.u32 4294901760, %v705_v58  ;;  %v8245_v37 = vand.u32 4294901760, %v8244_v32 }
0x116d   :  { %v7551_v43 = vpop.f32.mrf.mxu0 }
0x116e   :  { %v7552_v44 = vadd.f32 %v7551_v43, %v7478_v40  ;;  %v22793_v25 = vsub.f32 %v705_v58, %v22784_v4  ;;  %v704_v40 = vld [vmem:[%s24476_s3] sm:$0xff]  ;;  %s24479_s3 = sld [smem:[#allocation17_spill]] }
0x116f   :  { %v20631_v47 = vpop.f32.mrf.mxu0 }
0x1170   :  { %v7624_v48 = vadd.f32 %v7623_v28, %v7552_v44  ;;  %v22804_v28 = vand.u32 4294901760, %v22793_v25  ;;  %v22819_v44 = vand.u32 4294901760, %v704_v40 }
0x1172   :  { %v7627_v50 = vmul.f32 0.35355338, %v7624_v48  ;;  %v8251_v42 = vsub.f32 %v22793_v25, %v22804_v28  ;;  %v22822_v48 = vsub.f32 %v704_v40, %v22819_v44  ;;  %v21900_v40 = vld [vmem:[#allocation2 + $0x8] sm:$0xff] }
0x1174   :  { %v7628_v51 = vfloor.f32 %v7627_v50  ;;  %v8252_v39 = vand.u32 4294901760, %v8251_v42 }
0x1176   :  { %v7629_v52 = vadd.f32 %v7628_v51, %v22558_v49  ;;  %v22827_v51 = vand.u32 4294901760, %v22822_v48 }
0x1178   :  { %v7630_v54 = vsel %vm712_vm2, %v7629_v52, -inf }
0x1179   :  { %7631 = vmax.xlane.f32.xlu1 %v7630_v54  ;;  %v8258_v54 = vsub.f32 %v22822_v48, %v22827_v51 }
0x118a   :  { %4402 = vrot.lane.b32.xlu1 %v22552_v30, %s22051_s14 }
0x1202   :  { %v7632_v56 = vpop.xlane.xlu1 %7631 }
0x1203   :  { %v7633_v57 = vsub.f32 %v7629_v52, %v7632_v56 }
0x1205   :  { %v7634_v59 = vmul.f32 1.442695, %v7633_v57 }
0x1207   :  { %21852 = vpow2.f32 %v7634_v59  ;;  %v8259_v59 = vand.u32 4294901760, %v8258_v54 }
0x1214   :  { %v21853_v60 = vpop.eup %21852 }
0x1215   :  { %v7636_v38 = vsel %vm712_vm2, %v21853_v60, 0.0 }
0x1216   :  { %7637 = vadd.xlane.f32.xlu0 %v7636_v38 }
0x122c   :  { %7641 = vrot.lane.b32.xlu0 %v22280_v61, %s22050_s6 }
0x1230   :  { %4394 = vrot.lane.b32.xlu0 %v22434_v53, %s22034_s29 }
0x1234   :  { %4398 = vrot.lane.b32.xlu0 %v22484_v9, %s22052_s28 }
0x1238   :  { %8094 = vrot.lane.b32.xlu0 %v22678_v15, %s22034_s29  ;;  %v4403_v15 = vpop.permute.xlu1 %4402 }
0x123c   :  { %8098 = vrot.lane.b32.xlu0 %v7170_v26, %s22052_s28  ;;  %v22798_v26 = vand.u32 4294901760, %v22787_v23 }
0x123e   :  { %v8237_v29 = vsub.f32 %v22787_v23, %v22798_v26 }
0x1240   :  { %v8238_v35 = vand.u32 4294901760, %v8237_v29 }
0x129f   :  { %v7638_v30 = vpop.xlane.xlu0 %7637 }
0x12a0   :  { %21854 = vrcp.f32 %v7638_v30 }
0x12a3   :  { %v7642_v49 = vpop.permute.xlu0 %7641 }
0x12a4   :  { %v7678_v62 = vand.u32 4294901760, %v7642_v49 }
0x12a6   :  { %v7755_v0 = vsub.f32 %v7642_v49, %v7678_v62  ;;  %20638 = vmatpush3.msra.mxu0 %v7678_v62 }
0x12a7   :  { %v4395_v2 = vpop.permute.xlu0 %4394  ;;  %20647 = vmatprep.subr.mxu0 %v22038_v55 }
0x12a8   :  { %v7756_v61 = vand.u32 4294901760, %v7755_v0  ;;  %v4405_v9 = vsel %vm712_vm2, %v22384_v34, %v4395_v2 }
0x12aa   :  { %v7757_v53 = vsub.f32 %v7755_v0, %v7756_v61 }
0x12ab   :  { %v4399_v3 = vpop.permute.xlu0 %4398 }
0x12ac   :  { %v7758_v5 = vand.u32 4294901760, %v7757_v53  ;;  %v4407_v6 = vsel %vm4406_vm4, %v4405_v9, %v4399_v3 }
0x12ad   :  { %v21855_v7 = vpop.eup %21854  ;;  %v4409_v33 = vsel %vm4408_vm5, %v4407_v6, %v4403_v15 }
0x12ae   :  { %20643 = vmatpush3.msra.mxu1 %v7758_v5  ;;  %v7640_v8 = vmul.f32 %v21855_v7, %v21853_v60  ;;  %v8115_v41 = vsel %vm169_vm0, %v4409_v33, 0 }
0x12af   :  { %20652 = vmatprep.subr.mxu1 %v22038_v55  ;;  %v22751_v11 = vand.u32 4294901760, %v8115_v41  ;;  %v8095_v15 = vpop.permute.xlu0 %8094 }
0x12b0   :  { %v7645_v45 = vsel %vm712_vm2, %v7640_v8, 0  ;;  %v8105_v6 = vsel %vm712_vm2, %v22609_v63, %v8095_v15 }
0x12b1   :  { %v7713_v10 = vand.u32 4294901760, %v7645_v45  ;;  %v22757_v13 = vsub.f32 %v8115_v41, %v22751_v11 }
0x12b3   :  { %v7714_v34 = vsub.f32 %v7645_v45, %v7713_v10  ;;  %20645 = vmatmul.mubr.f32.vlgmr.msra.gmra.mxu1 %v7713_v10  ;;  %v8191_v17 = vand.u32 4294901760, %v22757_v13  ;;  %v8099_v5 = vpop.permute.xlu0 %8098 }
0x12b4   :  { %20653 = vmatpush3.msra.mxu1 %v7678_v62  ;;  %20654 = vmatprep.mubr.msk.f32.mxu1 %vm22039_vm1, %v22038_v55  ;;  %v8106_v7 = vsel %vm4406_vm4, %v8105_v6, %v8099_v5 }
0x12b5   :  { %20662 = vmatprep.subr.mxu1 %v22038_v55  ;;  %v7715_v12 = vand.u32 4294901760, %v7714_v34  ;;  %v8192_v18 = vsub.f32 %v22757_v13, %v8191_v17 }
0x12b7   :  { %20655 = vmatmul.mubr.f32.vlgmr.msra.gmra.mxu1 %v7715_v12  ;;  %v7716_v14 = vsub.f32 %v7714_v34, %v7715_v12  ;;  %v8193_v19 = vand.u32 4294901760, %v8192_v18 }
0x12b8   :  { %20663 = vmatpush3.msra.mxu1 %v7678_v62  ;;  %20664 = vmatprep.mubr.msk.f32.mxu1 %vm22039_vm1, %v22038_v55 }
0x12b9   :  { %v7717_v16 = vand.u32 4294901760, %v7716_v14  ;;  %20678 = vmatprep.subr.mxu1 %v8238_v35  ;;  %v19341_v14 = vld [vmem:[%s24477_s25] ss:$0 sm:$0xff] }
0x12bb   :  { %20640 = vmatmul.mubr.f32.vlgmr.msra.gmra.mxu0 %v7717_v16  ;;  %20665 = vmatmul.mubr.f32.vlgmr.msra.gmra.mxu1 %v7713_v10 }
0x12bc   :  { %20648 = vmatpush3.msra.mxu0 %v7755_v0  ;;  %20686 = vmatprep.mubr.f32.mxu1 %v22751_v11 }
0x12bd   :  { %20649 = vmatprep.mubr.msk.f32.mxu0 %vm22039_vm1, %v22038_v55  ;;  %20657 = vmatprep.subr.mxu0 %v22038_v55 }
0x12be   :  { %20679 = vmatpush3.msra.mxu1 %v8238_v35 }
0x12bf   :  { %20650 = vmatmul.mubr.f32.vlgmr.msra.gmra.mxu0 %v7714_v34  ;;  %20680 = vmatprep.subr.mxu1 %v8245_v37 }
0x12c0   :  { %20658 = vmatpush3.msra.mxu0 %v7756_v61  ;;  %20659 = vmatprep.mubr.msk.f32.mxu0 %vm22039_vm1, %v22038_v55 }
0x12c1   :  { %20667 = vmatprep.subr.mxu0 %v22780_v22  ;;  %20681 = vmatpush3.msra.mxu1 %v8245_v37 }
0x12c2   :  { %20682 = vmatprep.subr.mxu1 %v8252_v39 }
0x12c3   :  { %20660 = vmatmul.mubr.f32.vlgmr.msra.gmra.mxu0 %v7713_v10  ;;  %20683 = vmatpush3.msra.mxu1 %v8252_v39 }
0x12c4   :  { %20675 = vmatprep.mubr.f32.mxu0 %v8193_v19  ;;  %20668 = vmatpush3.msra.mxu0 %v22780_v22 }
0x12c5   :  { %20669 = vmatprep.subr.mxu0 %v22782_v1  ;;  %20684 = vmatprep.subr.mxu1 %v8259_v59 }
0x12c6   :  { %20670 = vmatpush3.msra.mxu0 %v22782_v1  ;;  %20685 = vmatpush3.msra.mxu1 %v8259_v59 }
0x12c7   :  { %20671 = vmatprep.subr.mxu0 %v22784_v4  ;;  %20700 = vmatprep.subr.mxu1 %v22780_v22 }
0x12c8   :  { %20672 = vmatpush3.msra.mxu0 %v22784_v4 }
0x12c9   :  { %20673 = vmatprep.subr.mxu0 %v22819_v44 }
0x12ca   :  { %20674 = vmatpush3.msra.mxu0 %v22819_v44 }
0x12cb   :  { %20689 = vmatprep.subr.mxu0 %v22787_v23 }
0x1373   :  { %v7795_v43 = vpop.f32.mrf.mxu1 }
0x1375   :  { %v20646_v47 = vpop.f32.mrf.mxu1 }
0x1376   :  { %v21901_v47 = vld [vmem:[#allocation2] sm:$0xff] }
0x1377   :  { %v7943_v50 = vpop.f32.mrf.mxu1 }
0x1379   :  { %v20656_v52 = vpop.f32.mrf.mxu1 }
0x137b   :  { %v7719_v56 = vpop.f32.mrf.mxu0  ;;  %v8089_v57 = vpop.f32.mrf.mxu1 }
0x137c   :  { %v7796_v30 = vadd.f32 %v7795_v43, %v7719_v56 }
0x137d   :  { %v20641_v60 = vpop.f32.mrf.mxu0  ;;  %v20666_v38 = vpop.f32.mrf.mxu1 }
0x137f   :  { %v7869_v49 = vpop.f32.mrf.mxu0 }
0x1380   :  { %v7870_v62 = vadd.f32 %v7869_v49, %v7796_v30 }
0x1381   :  { %v20651_v0 = vpop.f32.mrf.mxu0 }
0x1382   :  { %v7944_v2 = vadd.f32 %v7943_v50, %v7870_v62  ;;  %v8698_v62 = vld [vmem:[#allocation5 + $0x18] sm:$0xff]  ;;  %v8697_v0 = vld [vmem:[#allocation5 + $0x10] sm:$0xff] }
0x1383   :  { %v8017_v61 = vpop.f32.mrf.mxu0 }
0x1384   :  { %v8018_v53 = vadd.f32 %v8017_v61, %v7944_v2  ;;  %v8696_v2 = vld [vmem:[#allocation5 + $0x8] sm:$0xff]  ;;  %v22885_v61 = vand.u32 4294901760, %v8698_v62 }
0x1385   :  { %v20661_v9 = vpop.f32.mrf.mxu0 }
0x1386   :  { %v8090_v3 = vadd.f32 %v8089_v57, %v8018_v53  ;;  %v22887_v53 = vand.u32 4294901760, %v8697_v0  ;;  %v22889_v9 = vand.u32 4294901760, %v8696_v2 }
0x1388   :  { %8102 = vrot.lane.b32.xlu0 %v8090_v3, %s22051_s14  ;;  %v22892_v3 = vsub.f32 %v8698_v62, %v22885_v61  ;;  %v22895_v15 = vsub.f32 %v8697_v0, %v22887_v53  ;;  %v22898_v5 = vsub.f32 %v8696_v2, %v22889_v9  ;;  %v9240_v62 = vld [vmem:[#allocation7] sm:$0xff] }
0x138a   :  { %v22903_v6 = vand.u32 4294901760, %v22892_v3 }
0x13fa   :  { %v8103_v33 = vpop.permute.xlu0 %8102 }
0x13fb   :  { %v8107_v8 = vsel %vm4408_vm5, %v8106_v7, %v8103_v33  ;;  %v22906_v7 = vand.u32 4294901760, %v22895_v15  ;;  %v22909_v33 = vand.u32 4294901760, %v22898_v5 }
0x13fc   :  { %v8118_v41 = vsel %vm169_vm0, %v8107_v8, 0  ;;  %v8829_v8 = vsub.f32 %v22892_v3, %v22903_v6 }
0x13fd   :  { %v8199_v45 = vand.u32 4294901760, %v8118_v41 }
0x13ff   :  { %v8200_v10 = vsub.f32 %v8118_v41, %v8199_v45  ;;  %20687 = vmatmul.mubr.f32.vlgmr.msra.gmra.mxu1 %v8199_v45  ;;  %v8836_v41 = vsub.f32 %v22895_v15, %v22906_v7 }
0x1400   :  { %20701 = vmatpush3.msra.mxu1 %v22780_v22  ;;  %20708 = vmatprep.mubr.f32.mxu1 %v8191_v17 }
0x1401   :  { %20702 = vmatprep.subr.mxu1 %v22782_v1  ;;  %v8201_v34 = vand.u32 4294901760, %v8200_v10 }
0x1402   :  { %20703 = vmatpush3.msra.mxu1 %v22782_v1 }
0x1403   :  { %20704 = vmatprep.subr.mxu1 %v22784_v4  ;;  %v8202_v63 = vsub.f32 %v8200_v10, %v8201_v34 }
0x1404   :  { %20705 = vmatpush3.msra.mxu1 %v22784_v4 }
0x1405   :  { %20706 = vmatprep.subr.mxu1 %v22819_v44  ;;  %v8203_v12 = vand.u32 4294901760, %v8202_v63  ;;  %v8695_v63 = vld [vmem:[#allocation5] sm:$0xff] }
0x1406   :  { %20707 = vmatpush3.msra.mxu1 %v22819_v44 }
0x1407   :  { %20709 = vmatmul.mubr.f32.vlgmr.msra.gmra.mxu1 %v8201_v34  ;;  %20722 = vmatprep.subr.mxu1 %v22780_v22  ;;  %v8837_v34 = vand.u32 4294901760, %v8836_v41 }
0x1408   :  { %20676 = vmatmul.mubr.f32.vlgmr.msra.gmra.mxu0 %v8203_v12  ;;  %20723 = vmatpush3.msra.mxu1 %v22780_v22  ;;  %v22921_v12 = vand.u32 4294901760, %v8695_v63 }
0x1409   :  { %20690 = vmatpush3.msra.mxu0 %v22787_v23  ;;  %20730 = vmatprep.mubr.f32.mxu1 %v22751_v11 }
0x140a   :  { %20691 = vmatprep.subr.mxu0 %v22790_v24  ;;  %20697 = vmatprep.mubr.f32.mxu0 %v22757_v13 }
0x140b   :  { %20724 = vmatprep.subr.mxu1 %v22782_v1  ;;  %20692 = vmatpush3.msra.mxu0 %v22790_v24 }
0x140c   :  { %20725 = vmatpush3.msra.mxu1 %v22782_v1  ;;  %20693 = vmatprep.subr.mxu0 %v22793_v25 }
0x140d   :  { %20726 = vmatprep.subr.mxu1 %v22784_v4  ;;  %20694 = vmatpush3.msra.mxu0 %v22793_v25 }
0x140e   :  { %20727 = vmatpush3.msra.mxu1 %v22784_v4  ;;  %20695 = vmatprep.subr.mxu0 %v22822_v48 }
0x140f   :  { %20728 = vmatprep.subr.mxu1 %v22819_v44  ;;  %20696 = vmatpush3.msra.mxu0 %v22822_v48 }
0x1410   :  { %20729 = vmatpush3.msra.mxu1 %v22819_v44  ;;  %20698 = vmatmul.mubr.f32.vlgmr.msra.gmra.mxu0 %v8200_v10  ;;  %v8830_v10 = vand.u32 4294901760, %v8829_v8 }
0x1411   :  { %20711 = vmatprep.subr.mxu0 %v22798_v26  ;;  %20731 = vmatmul.mubr.f32.vlgmr.msra.gmra.mxu1 %v8199_v45 }
0x1412   :  { %20712 = vmatpush3.msra.mxu0 %v22798_v26  ;;  %20719 = vmatprep.mubr.f32.mxu0 %v22751_v11 }
0x1413   :  { %20713 = vmatprep.subr.mxu0 %v22801_v27  ;;  %20744 = vmatprep.subr.mxu1 %v8830_v10 }
0x1414   :  { %20714 = vmatpush3.msra.mxu0 %v22801_v27  ;;  %20745 = vmatpush3.msra.mxu1 %v8830_v10  ;;  %v22994_v10 = vand.u32 4294901760, %v9240_v62 }
0x1415   :  { %20715 = vmatprep.subr.mxu0 %v22804_v28  ;;  %20746 = vmatprep.subr.mxu1 %v8837_v34 }
0x1416   :  { %20716 = vmatpush3.msra.mxu0 %v22804_v28  ;;  %20747 = vmatpush3.msra.mxu1 %v8837_v34  ;;  %v149_v34 = vld [vmem:[%s24479_s3 + $0x8] sm:$0xff] }
0x1417   :  { %20717 = vmatprep.subr.mxu0 %v22827_v51 }
0x1418   :  { %20718 = vmatpush3.msra.mxu0 %v22827_v51 }
0x1419   :  { %20720 = vmatmul.mubr.f32.vlgmr.msra.gmra.mxu0 %v8199_v45  ;;  %20733 = vmatprep.subr.mxu0 %v22885_v61  ;;  %v8843_v45 = vsub.f32 %v22898_v5, %v22909_v33 }
0x141a   :  { %20734 = vmatpush3.msra.mxu0 %v22885_v61 }
0x141b   :  { %20735 = vmatprep.subr.mxu0 %v22887_v53 }
0x141c   :  { %20736 = vmatpush3.msra.mxu0 %v22887_v53 }
0x141d   :  { %20737 = vmatprep.subr.mxu0 %v22889_v9 }
0x141e   :  { %20738 = vmatpush3.msra.mxu0 %v22889_v9 }
0x141f   :  { %20739 = vmatprep.subr.mxu0 %v22921_v12 }
0x1420   :  { %20740 = vmatpush3.msra.mxu0 %v22921_v12 }
0x1421   :  { %20755 = vmatprep.subr.mxu0 %v22892_v3 }
0x14bf   :  { %v20688_v16 = vpop.f32.mrf.mxu1 }
0x14c1   :  { %v8296_v20 = vpop.f32.mrf.mxu1 }
0x14c7   :  { %v20710_v58 = vpop.f32.mrf.mxu1 }
0x14c8   :  { %v20677_v13 = vpop.f32.mrf.mxu0 }
0x14c9   :  { %v8206_v17 = vadd.f32 %v20677_v13, %v19341_v14  ;;  %v8466_v24 = vpop.f32.mrf.mxu1  ;;  %v8844_v13 = vand.u32 4294901760, %v8843_v45 }
0x14ca   :  { %v8195_v11 = vpop.f32.mrf.mxu0 }
0x14cb   :  { %v8196_v18 = vadd.f32 %v19341_v14, %v8195_v11  ;;  %v8303_v21 = vadd.f32 %v20688_v16, %v8206_v17  ;;  %v22924_v14 = vsub.f32 %v8695_v63, %v22921_v12  ;;  %20748 = vmatprep.subr.mxu1 %v8844_v13  ;;  %v150_v63 = vld [vmem:[%s24479_s3 + $0x10] sm:$0xff] }
0x14cc   :  { %20749 = vmatpush3.msra.mxu1 %v8844_v13 }
0x14cd   :  { %v8297_v4 = vadd.f32 %v8296_v20, %v8196_v18  ;;  %v22929_v16 = vand.u32 4294901760, %v22924_v14 }
0x14cf   :  { %v8850_v11 = vsub.f32 %v22924_v14, %v22929_v16 }
0x14d0   :  { %v20699_v19 = vpop.f32.mrf.mxu0 }
0x14d1   :  { %v8390_v1 = vadd.f32 %v20699_v19, %v8303_v21  ;;  %v20732_v26 = vpop.f32.mrf.mxu1  ;;  %v8851_v17 = vand.u32 4294901760, %v8850_v11 }
0x14d2   :  { %v8382_v22 = vpop.f32.mrf.mxu0 }
0x14d3   :  { %v8383_v23 = vadd.f32 %v8382_v22, %v8297_v4  ;;  %v8475_v25 = vadd.f32 %v20710_v58, %v8390_v1  ;;  %v8638_v37 = vpop.f32.mrf.mxu1  ;;  %20750 = vmatprep.subr.mxu1 %v8851_v17  ;;  %v19342_v4 = vld [vmem:[%s24478_s26] ss:$0 sm:$0xff] }
0x14d4   :  { %20751 = vmatpush3.msra.mxu1 %v8851_v17  ;;  %v9255_v17 = vsel %vm169_vm0, %v149_v34, 0 }
0x14d5   :  { %v8467_v29 = vadd.f32 %v8466_v24, %v8383_v23  ;;  %20766 = vmatprep.subr.mxu1 %v22885_v61  ;;  %v19343_v24 = vld [vmem:[%s24444_s9] ss:$0 sm:$0xff] }
0x14d9   :  { %v20721_v27 = vpop.f32.mrf.mxu0 }
0x14da   :  { %v8564_v28 = vadd.f32 %v20721_v27, %v8475_v25 }
0x14db   :  { %v8557_v32 = vpop.f32.mrf.mxu0 }
0x14dc   :  { %v8645_v42 = vadd.f32 %v20732_v26, %v8564_v28  ;;  %v8558_v35 = vadd.f32 %v8557_v32, %v8467_v29 }
0x14de   :  { %v8639_v39 = vadd.f32 %v8638_v37, %v8558_v35  ;;  %v8649_v43 = vadd.f32 %v21900_v40, %v8645_v42  ;;  %v9243_v40 = vld [vmem:[#allocation7 + $0x18] sm:$0xff] }
0x14e0   :  { %v8655_v44 = vsel %vm169_vm0, %v8649_v43, 0.0  ;;  %v8648_v48 = vadd.f32 %v21901_v47, %v8639_v39  ;;  %v9242_v47 = vld [vmem:[#allocation7 + $0x10] sm:$0xff] }
0x14e1   :  { %8656 = vadd.xlane.f32.xlu1 %v8655_v44 }
0x14e2   :  { %v8652_v50 = vsel %vm169_vm0, %v8648_v48, 0.0 }
0x14e3   :  { %8653 = vadd.xlane.f32.xlu0 %v8652_v50 }
0x156a   :  { %v8657_v51 = vpop.xlane.xlu1 %8656 }
0x156b   :  { %v8660_v52 = vmul.f32 0.03125, %v8657_v51  ;;  %v22960_v51 = vand.u32 4294901760, %v9243_v40 }
0x156c   :  { %v8654_v54 = vpop.xlane.xlu0 %8653 }
0x156d   :  { %v8659_v56 = vmul.f32 0.03125, %v8654_v54  ;;  %v22879_v57 = vsub.f32 %v8649_v43, %v8660_v52  ;;  %v9241_v52 = vld [vmem:[#allocation7 + $0x8] sm:$0xff]  ;;  %v148_v54 = vld [vmem:[%s24479_s3] sm:$0xff] }
0x156f   :  { %v8661_v59 = vsub.f32 %v8648_v48, %v8659_v56  ;;  %v8664_v30 = vmul.f32 %v22879_v57, %v22879_v57 }
0x1571   :  { %v8663_v60 = vmul.f32 %v8661_v59, %v8661_v59  ;;  %v8668_v49 = vsel %vm169_vm0, %v8664_v30, 0.0  ;;  %v22976_v30 = vand.u32 4294901760, %v9241_v52 }
0x1573   :  { %v8665_v38 = vsel %vm169_vm0, %v8663_v60, 0.0  ;;  %v22992_v45 = vsub.f32 %v9241_v52, %v22976_v30 }
0x1574   :  { %8666 = vadd.xlane.f32.xlu0 %v8665_v38  ;;  %v22974_v38 = vsub.f32 %v9243_v40, %v22960_v51 }
0x1576   :  { %v22989_v41 = vand.u32 4294901760, %v22974_v38 }
0x1578   :  { %8669 = vadd.xlane.f32.xlu0 %v8668_v49  ;;  %v9252_v49 = vsel %vm169_vm0, %v148_v54, 0 }
0x1579   :  { %v22985_v8 = vand.u32 4294901760, %v9252_v49 }
0x157b   :  { %v23010_v11 = vsub.f32 %v9252_v49, %v22985_v8 }
0x15fd   :  { %v8667_v18 = vpop.xlane.xlu0 %8666 }
0x15fe   :  { %v8671_v19 = vmul.f32 0.03125, %v8667_v18  ;;  %v23021_v18 = vsub.f32 %v9240_v62, %v22994_v10 }
0x1600   :  { %v8673_v20 = vadd.f32 1e-05, %v8671_v19  ;;  %v9258_v19 = vsel %vm169_vm0, %v150_v63, 0 }
0x1601   :  { %v8670_v21 = vpop.xlane.xlu0 %8669 }
0x1602   :  { %21856 = vrsqrt.f32 %v8673_v20  ;;  %v8672_v58 = vmul.f32 0.03125, %v8670_v21  ;;  %v151_v20 = vld [vmem:[%s24479_s3 + $0x18] sm:$0xff]  ;;  %v23033_v21 = vand.u32 4294901760, %v9255_v17 }
0x1604   :  { %v8674_v22 = vadd.f32 1e-05, %v8672_v58  ;;  %v9334_v58 = vand.u32 4294901760, %v23010_v11 }
0x1606   :  { %21858 = vrsqrt.f32 %v8674_v22  ;;  %v23038_v22 = vand.u32 4294901760, %v9258_v19 }
0x160f   :  { %v21857_v1 = vpop.eup %21856 }
0x1610   :  { %v8677_v23 = vmul.f32 %v21857_v1, %v8661_v59  ;;  %v22968_v59 = vand.u32 4294901760, %v9242_v47 }
0x1612   :  { %v8685_v25 = vmul.f32 %v19342_v4, %v8677_v23  ;;  %v22982_v2 = vsub.f32 %v9242_v47, %v22968_v59  ;;  %v23053_v23 = vsub.f32 %v9255_v17, %v23033_v21 }
0x1613   :  { %v21859_v26 = vpop.eup %21858 }
0x1614   :  { %v22941_v27 = vadd.f32 %v19343_v24, %v8685_v25  ;;  %v8678_v28 = vmul.f32 %v21859_v26, %v22879_v57  ;;  %v23006_v13 = vand.u32 4294901760, %v22982_v2 }
0x1616   :  { %v8707_v29 = vsel %vm169_vm0, %v22941_v27, 0  ;;  %v8686_v32 = vmul.f32 %v19342_v4, %v8678_v28  ;;  %v23046_v4 = vand.u32 4294901760, %v23021_v18 }
0x1617   :  { %v22946_v42 = vand.u32 4294901760, %v8707_v29 }
0x1618   :  { %v22948_v35 = vadd.f32 %v19343_v24, %v8686_v32  ;;  %v23063_v24 = vsub.f32 %v9258_v19, %v23038_v22  ;;  %v9421_v26 = vsub.f32 %v23021_v18, %v23046_v4 }
0x1619   :  { %20752 = vmatprep.mubr.f32.mxu1 %v22946_v42  ;;  %v8782_v37 = vsub.f32 %v8707_v29, %v22946_v42 }
0x161a   :  { %v8710_v39 = vsel %vm169_vm0, %v22948_v35, 0  ;;  %v9354_v32 = vand.u32 4294901760, %v23063_v24 }
0x161b   :  { %v22954_v43 = vand.u32 4294901760, %v8710_v39  ;;  %v8783_v44 = vand.u32 4294901760, %v8782_v37 }
0x161d   :  { %v22957_v48 = vsub.f32 %v8710_v39, %v22954_v43  ;;  %20753 = vmatmul.mubr.f32.vlgmr.msra.gmra.mxu1 %v22954_v43  ;;  %v8784_v50 = vsub.f32 %v8782_v37, %v8783_v44 }
0x161e   :  { %20767 = vmatpush3.msra.mxu1 %v22885_v61  ;;  %20774 = vmatprep.mubr.f32.mxu1 %v8783_v44  ;;  %v19344_v44 = vld [vmem:[%s24446_s11] ss:$0 sm:$0xff] }
0x161f   :  { %20768 = vmatprep.subr.mxu1 %v22887_v53  ;;  %v8785_v56 = vand.u32 4294901760, %v8784_v50  ;;  %v8793_v57 = vand.u32 4294901760, %v22957_v48 }
0x1620   :  { %20769 = vmatpush3.msra.mxu1 %v22887_v53 }
0x1621   :  { %20770 = vmatprep.subr.mxu1 %v22889_v9  ;;  %20741 = vmatprep.mubr.f32.mxu0 %v8785_v56  ;;  %v8794_v60 = vsub.f32 %v22957_v48, %v8793_v57 }
0x1622   :  { %20771 = vmatpush3.msra.mxu1 %v22889_v9 }
0x1623   :  { %20772 = vmatprep.subr.mxu1 %v22921_v12  ;;  %v8795_v0 = vand.u32 4294901760, %v8794_v60 }
0x1624   :  { %20773 = vmatpush3.msra.mxu1 %v22921_v12 }
0x1625   :  { %20775 = vmatmul.mubr.f32.vlgmr.msra.gmra.mxu1 %v8793_v57  ;;  %20788 = vmatprep.subr.mxu1 %v22885_v61 }
0x1626   :  { %20742 = vmatmul.mubr.f32.vlgmr.msra.gmra.mxu0 %v8795_v0  ;;  %20789 = vmatpush3.msra.mxu1 %v22885_v61  ;;  %v9400_v61 = vsub.f32 %v22974_v38, %v22989_v41 }
0x1627   :  { %20756 = vmatpush3.msra.mxu0 %v22892_v3  ;;  %20796 = vmatprep.mubr.f32.mxu1 %v22946_v42  ;;  %v23018_v3 = vand.u32 4294901760, %v22992_v45 }
0x1628   :  { %20757 = vmatprep.subr.mxu0 %v22895_v15  ;;  %20763 = vmatprep.mubr.f32.mxu0 %v8782_v37 }
0x1629   :  { %20790 = vmatprep.subr.mxu1 %v22887_v53  ;;  %20758 = vmatpush3.msra.mxu0 %v22895_v15  ;;  %v9407_v15 = vsub.f32 %v22982_v2, %v23006_v13  ;;  %v9414_v1 = vsub.f32 %v22992_v45, %v23018_v3 }
0x162a   :  { %20791 = vmatpush3.msra.mxu1 %v22887_v53  ;;  %20759 = vmatprep.subr.mxu0 %v22898_v5  ;;  %v9261_v53 = vsel %vm169_vm0, %v151_v20, 0 }
0x162b   :  { %20792 = vmatprep.subr.mxu1 %v22889_v9  ;;  %20760 = vmatpush3.msra.mxu0 %v22898_v5  ;;  %v9401_v5 = vand.u32 4294901760, %v9400_v61  ;;  %v9415_v25 = vand.u32 4294901760, %v9414_v1  ;;  %v19345_v61 = vld [vmem:[%s24448_s13] ss:$0 sm:$0xff] }
0x162c   :  { %20793 = vmatpush3.msra.mxu1 %v22889_v9  ;;  %20761 = vmatprep.subr.mxu0 %v22924_v14  ;;  %v9408_v9 = vand.u32 4294901760, %v9407_v15 }
0x162d   :  { %20794 = vmatprep.subr.mxu1 %v22921_v12  ;;  %20762 = vmatpush3.msra.mxu0 %v22924_v14  ;;  %v23055_v14 = vand.u32 4294901760, %v9261_v53 }
0x162e   :  { %20795 = vmatpush3.msra.mxu1 %v22921_v12  ;;  %20764 = vmatmul.mubr.f32.vlgmr.msra.gmra.mxu0 %v22957_v48  ;;  %v9335_v12 = vsub.f32 %v23010_v11, %v9334_v58 }
0x162f   :  { %20777 = vmatprep.subr.mxu0 %v22903_v6  ;;  %20797 = vmatmul.mubr.f32.vlgmr.msra.gmra.mxu1 %v22954_v43  ;;  %v23072_v28 = vsub.f32 %v9261_v53, %v23055_v14 }
0x1630   :  { %20778 = vmatpush3.msra.mxu0 %v22903_v6  ;;  %20785 = vmatprep.mubr.f32.mxu0 %v22946_v42  ;;  %v9344_v6 = vand.u32 4294901760, %v23053_v23  ;;  %v9336_v29 = vand.u32 4294901760, %v9335_v12  ;;  %v9422_v42 = vand.u32 4294901760, %v9421_v26 }
0x1631   :  { %20779 = vmatprep.subr.mxu0 %v22906_v7  ;;  %20813 = vmatprep.subr.mxu1 %v9401_v5  ;;  %v9364_v37 = vand.u32 4294901760, %v23072_v28 }
0x1632   :  { %20780 = vmatpush3.msra.mxu0 %v22906_v7  ;;  %20814 = vmatpush3.msra.mxu1 %v9401_v5  ;;  %v9345_v7 = vsub.f32 %v23053_v23, %v9344_v6 }
0x1633   :  { %20781 = vmatprep.subr.mxu0 %v22909_v33  ;;  %20815 = vmatprep.subr.mxu1 %v9408_v9  ;;  %v9365_v39 = vsub.f32 %v23072_v28, %v9364_v37 }
0x1634   :  { %20782 = vmatpush3.msra.mxu0 %v22909_v33  ;;  %20816 = vmatpush3.msra.mxu1 %v9408_v9  ;;  %v9355_v33 = vsub.f32 %v23063_v24, %v9354_v32 }
0x1635   :  { %20783 = vmatprep.subr.mxu0 %v22929_v16  ;;  %20817 = vmatprep.subr.mxu1 %v9415_v25 }
0x1636   :  { %20784 = vmatpush3.msra.mxu0 %v22929_v16  ;;  %20818 = vmatpush3.msra.mxu1 %v9415_v25  ;;  %v9346_v16 = vand.u32 4294901760, %v9345_v7  ;;  %v9356_v40 = vand.u32 4294901760, %v9355_v33 }
0x1637   :  { %20786 = vmatmul.mubr.f32.vlgmr.msra.gmra.mxu0 %v22954_v43  ;;  %20799 = vmatprep.subr.mxu0 %v22960_v51  ;;  %v9366_v43 = vand.u32 4294901760, %v9365_v39 }
0x1638   :  { %20800 = vmatpush3.msra.mxu0 %v22960_v51  ;;  %20807 = vmatprep.mubr.f32.mxu0 %v9336_v29 }
0x1639   :  { %20801 = vmatprep.subr.mxu0 %v22968_v59  ;;  %20819 = vmatprep.subr.mxu1 %v9422_v42 }
0x163a   :  { %20802 = vmatpush3.msra.mxu0 %v22968_v59  ;;  %20820 = vmatpush3.msra.mxu1 %v9422_v42 }
0x163b   :  { %20803 = vmatprep.subr.mxu0 %v22976_v30  ;;  %20821 = vmatprep.mubr.f32.mxu1 %v22985_v8 }
0x163c   :  { %20804 = vmatpush3.msra.mxu0 %v22976_v30  ;;  %20822 = vmatmul.mubr.f32.vlgmr.msra.gmra.mxu1 %v23033_v21 }
0x163d   :  { %20805 = vmatprep.subr.mxu0 %v22994_v10  ;;  %20841 = vmatprep.subr.mxu1 %v22960_v51 }
0x163e   :  { %20806 = vmatpush3.msra.mxu0 %v22994_v10  ;;  %20842 = vmatpush3.msra.mxu1 %v22960_v51 }
0x163f   :  { %20808 = vmatmul.mubr.f32.vlgmr.msra.gmra.mxu0 %v9346_v16  ;;  %20827 = vmatprep.subr.mxu0 %v22974_v38 }
0x1640   :  { %20828 = vmatpush3.msra.mxu0 %v22974_v38  ;;  %20810 = vmatprep.mubr.f32.mxu0 %v9356_v40 }
0x1641   :  { %20829 = vmatprep.subr.mxu0 %v22982_v2  ;;  %20843 = vmatprep.subr.mxu1 %v22968_v59 }
0x1642   :  { %20830 = vmatpush3.msra.mxu0 %v22982_v2  ;;  %20824 = vmatprep.mubr.f32.mxu1 %v23038_v22 }
0x1643   :  { %20811 = vmatmul.mubr.f32.gmra.mxu0 %v9366_v43  ;;  %20831 = vmatprep.subr.mxu0 %v22992_v45 }
0x1644   :  { %20844 = vmatpush3.msra.mxu1 %v22968_v59  ;;  %20832 = vmatpush3.msra.mxu0 %v22992_v45 }
0x1645   :  { %20825 = vmatmul.mubr.f32.gmra.mxu1 %v23055_v14  ;;  %20845 = vmatprep.subr.mxu1 %v22976_v30 }
0x1646   :  { %20833 = vmatprep.subr.mxu0 %v23021_v18  ;;  %20846 = vmatpush3.msra.mxu1 %v22976_v30 }
0x1647   :  { %20834 = vmatpush3.msra.mxu0 %v23021_v18  ;;  %20835 = vmatprep.mubr.f32.mxu0 %v23010_v11 }
0x1648   :  { %20847 = vmatprep.subr.mxu1 %v22994_v10  ;;  %20836 = vmatmul.mubr.f32.vlgmr.msra.gmra.mxu0 %v23053_v23 }
0x1649   :  { %20848 = vmatpush3.msra.mxu1 %v22994_v10  ;;  %20849 = vmatprep.mubr.f32.mxu1 %v9334_v58 }
0x164a   :  { %20855 = vmatprep.subr.mxu0 %v22989_v41  ;;  %20850 = vmatmul.mubr.f32.vlgmr.msra.gmra.mxu1 %v9344_v6 }
0x164b   :  { %20856 = vmatpush3.msra.mxu0 %v22989_v41  ;;  %20869 = vmatprep.subr.mxu1 %v22960_v51 }
0x164c   :  { %20857 = vmatprep.subr.mxu0 %v23006_v13  ;;  %20870 = vmatpush3.msra.mxu1 %v22960_v51 }
0x164d   :  { %20838 = vmatprep.mubr.f32.mxu0 %v23063_v24  ;;  %20858 = vmatpush3.msra.mxu0 %v23006_v13 }
0x164e   :  { %20871 = vmatprep.subr.mxu1 %v22968_v59  ;;  %20839 = vmatmul.mubr.f32.gmra.mxu0 %v23072_v28 }
0x164f   :  { %20852 = vmatprep.mubr.f32.mxu1 %v9354_v32  ;;  %20859 = vmatprep.subr.mxu0 %v23018_v3 }
0x1650   :  { %20872 = vmatpush3.msra.mxu1 %v22968_v59  ;;  %20860 = vmatpush3.msra.mxu0 %v23018_v3 }
0x1651   :  { %20853 = vmatmul.mubr.f32.gmra.mxu1 %v9364_v37  ;;  %20873 = vmatprep.subr.mxu1 %v22976_v30 }
0x1652   :  { %20861 = vmatprep.subr.mxu0 %v23046_v4  ;;  %20874 = vmatpush3.msra.mxu1 %v22976_v30 }
0x1653   :  { %20862 = vmatpush3.msra.mxu0 %v23046_v4  ;;  %20863 = vmatprep.mubr.f32.mxu0 %v22985_v8 }
0x1654   :  { %20875 = vmatprep.subr.mxu1 %v22994_v10  ;;  %20864 = vmatmul.mubr.f32.vlgmr.msra.gmra.mxu0 %v23033_v21 }
0x1655   :  { %20876 = vmatpush3.msra.mxu1 %v22994_v10  ;;  %20877 = vmatprep.mubr.f32.mxu1 %v22985_v8 }
0x1656   :  { %20878 = vmatmul.mubr.f32.vlgmr.msra.gmra.mxu1 %v23033_v21  ;;  %20866 = vmatprep.mubr.f32.mxu0 %v23038_v22 }
0x1657   :  { %20880 = vmatprep.mubr.f32.mxu1 %v23038_v22  ;;  %20883 = vmatprep.subr.mxu0 %v22038_v55 }
0x1658   :  { %20867 = vmatmul.mubr.f32.gmra.mxu0 %v23055_v14  ;;  %20890 = vmatprep.subr.mxu1 %v22038_v55 }
0x1659   :  { %20887 = vmatprep.mubr.msk.f32.mxu0 %vm22039_vm1, %v22038_v55 }
0x165a   :  { %20881 = vmatmul.mubr.f32.gmra.mxu1 %v23055_v14 }
0x165b   :  { %20894 = vmatprep.mubr.msk.f32.mxu1 %vm22039_vm1, %v22038_v55 }
0x16dd   :  { %v20754_v50 = vpop.f32.mrf.mxu1 }
0x16df   :  { %v8888_v54 = vpop.f32.mrf.mxu1 }
0x16e5   :  { %v20776_v59 = vpop.f32.mrf.mxu1 }
0x16e6   :  { %v20743_v47 = vpop.f32.mrf.mxu0 }
0x16e7   :  { %v8798_v48 = vadd.f32 %v20743_v47, %v19344_v44  ;;  %v9058_v38 = vpop.f32.mrf.mxu1 }
0x16e8   :  { %v8787_v52 = vpop.f32.mrf.mxu0 }
0x16e9   :  { %v8895_v51 = vadd.f32 %v20754_v50, %v8798_v48  ;;  %v8788_v2 = vadd.f32 %v19344_v44, %v8787_v52 }
0x16eb   :  { %v8889_v34 = vadd.f32 %v8888_v54, %v8788_v2 }
0x16ee   :  { %v20765_v56 = vpop.f32.mrf.mxu0 }
0x16ef   :  { %v8982_v57 = vadd.f32 %v20765_v56, %v8895_v51  ;;  %v20798_v49 = vpop.f32.mrf.mxu1 }
0x16f0   :  { %v8974_v30 = vpop.f32.mrf.mxu0 }
0x16f1   :  { %v9067_v60 = vadd.f32 %v20776_v59, %v8982_v57  ;;  %v9230_v41 = vpop.f32.mrf.mxu1  ;;  %v8975_v13 = vadd.f32 %v8974_v30, %v8889_v34 }
0x16f3   :  { %v9059_v18 = vadd.f32 %v9058_v38, %v8975_v13 }
0x16f7   :  { %v20787_v62 = vpop.f32.mrf.mxu0 }
0x16f8   :  { %v9156_v0 = vadd.f32 %v20787_v62, %v9067_v60 }
0x16f9   :  { %v9149_v45 = vpop.f32.mrf.mxu0 }
0x16fa   :  { %v23150_v8 = vadd.f32 %v20798_v49, %v9156_v0  ;;  %v9150_v21 = vadd.f32 %v9149_v45, %v9059_v18 }
0x16fc   :  { %v20823_v10 = vpop.f32.mrf.mxu1  ;;  %v23159_v1 = vadd.f32 %v9230_v41, %v9150_v21 }
0x16fe   :  { %v9459_v17 = vpop.f32.mrf.mxu1  ;;  %v9883_v24 = vsel %vm712_vm2, %v23159_v1, 0 }
0x16ff   :  { %v20809_v63 = vpop.f32.mrf.mxu0  ;;  %v23165_v32 = vand.u32 4294901760, %v9883_v24 }
0x1700   :  { %v9349_v5 = vadd.f32 %v20809_v63, %v19345_v61 }
0x1701   :  { %v9338_v11 = vpop.f32.mrf.mxu0  ;;  %v9959_v40 = vsub.f32 %v9883_v24, %v23165_v32 }
0x1702   :  { %v9339_v23 = vadd.f32 %v19345_v61, %v9338_v11  ;;  %v9466_v14 = vadd.f32 %v20823_v10, %v9349_v5 }
0x1703   :  { %v20812_v3 = vpop.f32.mrf.mxu0  ;;  %v9960_v56 = vand.u32 4294901760, %v9959_v40 }
0x1704   :  { %v9369_v19 = vadd.f32 %v20812_v3, %v19345_v61  ;;  %v9460_v26 = vadd.f32 %v9459_v17, %v9339_v23 }
0x1705   :  { %v20826_v20 = vpop.f32.mrf.mxu1  ;;  %v23155_v15 = vpop.f32.mrf.mxu0  ;;  %v9961_v41 = vsub.f32 %v9959_v40, %v9960_v56 }
0x1706   :  { %v9478_v58 = vadd.f32 %v20826_v20, %v9369_v19 }
0x1707   :  { %v23157_v22 = vpop.f32.mrf.mxu1  ;;  %v9962_v13 = vand.u32 4294901760, %v9961_v41 }
0x1708   :  { %v20837_v53 = vpop.f32.mrf.mxu0 }
0x1709   :  { %v9565_v6 = vadd.f32 %v20837_v53, %v9466_v14 }
0x170a   :  { %v20851_v4 = vpop.f32.mrf.mxu1  ;;  %v9557_v9 = vpop.f32.mrf.mxu0 }
0x170b   :  { %v9558_v42 = vadd.f32 %v9557_v9, %v9460_v26  ;;  %v9664_v33 = vadd.f32 %v20851_v4, %v9565_v6 }
0x170c   :  { %v9655_v12 = vpop.f32.mrf.mxu1 }
0x170d   :  { %v9656_v43 = vadd.f32 %v9655_v12, %v9558_v42 }
0x170e   :  { %v20840_v25 = vpop.f32.mrf.mxu0 }
0x170f   :  { %v9579_v28 = vadd.f32 %v20840_v25, %v9478_v58  ;;  %v155_v25 = vld [vmem:[%s24480_s1] sm:$0x3] }
0x1710   :  { %v23163_v29 = vpop.f32.mrf.mxu0  ;;  %vm156_vm6 = vcmp.eq.f32.partialorder %v155_v25, 0.0 }
0x1711   :  { %v20854_v7 = vpop.f32.mrf.mxu1 }
0x1712   :  { %v9680_v37 = vadd.f32 %v20854_v7, %v9579_v28 }
0x1713   :  { %v23167_v16 = vpop.f32.mrf.mxu1 }
0x1714   :  { %v20865_v39 = vpop.f32.mrf.mxu0 }
0x1715   :  { %v9769_v44 = vadd.f32 %v20865_v39, %v9664_v33 }
0x1716   :  { %v20879_v47 = vpop.f32.mrf.mxu1  ;;  %v9762_v48 = vpop.f32.mrf.mxu0 }
0x1717   :  { %v23170_v50 = vadd.f32 %v20879_v47, %v9769_v44  ;;  %v9763_v51 = vadd.f32 %v9762_v48, %v9656_v43 }
0x1718   :  { %v9855_v52 = vpop.f32.mrf.mxu1  ;;  %v20868_v54 = vpop.f32.mrf.mxu0 }
0x1719   :  { %v23172_v57 = vadd.f32 %v9855_v52, %v9763_v51  ;;  %v9781_v59 = vadd.f32 %v20868_v54, %v9680_v37  ;;  %v9889_v60 = vsel %vm712_vm2, %v23170_v50, 0 }
0x171a   :  { %v20882_v38 = vpop.f32.mrf.mxu1  ;;  %v9920_v30 = vand.u32 4294901760, %v9889_v60  ;;  %v23207_v3 = vpop.f32.mrf.mxu0 }
0x171b   :  { %v23176_v49 = vadd.f32 %v20882_v38, %v9781_v59  ;;  %v9886_v62 = vsel %vm712_vm2, %v23172_v57, 0 }
0x171c   :  { %20884 = vmatpush3.xpose.msra.mxu0 %v9920_v30  ;;  %v9998_v0 = vsub.f32 %v9889_v60, %v9920_v30  ;;  %v9923_v2 = vand.u32 4294901760, %v9886_v62  ;;  %v23209_v20 = vpop.f32.mrf.mxu1 }
0x171d   :  { %20885 = vmatprep.subr.mxu0 %v22038_v55 }
0x171e   :  { %v10005_v45 = vsub.f32 %v9886_v62, %v9923_v2  ;;  %v9999_v10 = vand.u32 4294901760, %v9998_v0 }
0x1720   :  { %20886 = vmatpush3.xpose.msra.mxu0 %v9923_v2  ;;  %v10000_v34 = vsub.f32 %v9998_v0, %v9999_v10  ;;  %v10006_v63 = vand.u32 4294901760, %v10005_v45 }
0x1721   :  { %20897 = vmatprep.subr.mxu0 %v22038_v55 }
0x1722   :  { %v10001_v11 = vand.u32 4294901760, %v10000_v34  ;;  %v10007_v17 = vsub.f32 %v10005_v45, %v10006_v63 }
0x1723   :  { %20888 = vmatmul.mubr.f32.vlgmr.msra.gmra.mxu0 %v9962_v13 }
0x1724   :  { %20891 = vmatpush3.xpose.msra.mxu1 %v10001_v11  ;;  %20898 = vmatpush3.xpose.msra.mxu0 %v9998_v0  ;;  %v10008_v61 = vand.u32 4294901760, %v10007_v17 }
0x1725   :  { %20892 = vmatprep.subr.mxu1 %v22038_v55  ;;  %20899 = vmatprep.subr.mxu0 %v22038_v55 }
0x1726   :  { %20901 = vmatprep.mubr.msk.f32.mxu0 %vm22039_vm1, %v22038_v55 }
0x1728   :  { %20893 = vmatpush3.xpose.msra.mxu1 %v10008_v61  ;;  %20900 = vmatpush3.xpose.msra.mxu0 %v10005_v45 }
0x1729   :  { %20904 = vmatprep.subr.mxu1 %v22038_v55  ;;  %20911 = vmatprep.subr.mxu0 %v22038_v55 }
0x172b   :  { %20895 = vmatmul.mubr.f32.vlgmr.msra.gmra.mxu1 %v23165_v32  ;;  %20902 = vmatmul.mubr.f32.vlgmr.msra.gmra.mxu0 %v9959_v40 }
0x172c   :  { %20905 = vmatpush3.xpose.msra.mxu1 %v9920_v30  ;;  %20912 = vmatpush3.xpose.msra.mxu0 %v9999_v10 }
0x172d   :  { %20906 = vmatprep.subr.mxu1 %v22038_v55  ;;  %20913 = vmatprep.subr.mxu0 %v22038_v55 }
0x172e   :  { %20908 = vmatprep.mubr.msk.f32.mxu1 %vm22039_vm1, %v22038_v55  ;;  %20915 = vmatprep.mubr.msk.f32.mxu0 %vm22039_vm1, %v22038_v55 }
0x1730   :  { %20907 = vmatpush3.xpose.msra.mxu1 %v9923_v2  ;;  %20914 = vmatpush3.xpose.msra.mxu0 %v10006_v63 }
0x1731   :  { %20918 = vmatprep.subr.mxu1 %v22038_v55  ;;  %20925 = vmatprep.subr.mxu0 %v22038_v55 }
0x1733   :  { %20909 = vmatmul.mubr.f32.vlgmr.msra.gmra.mxu1 %v9960_v56  ;;  %20916 = vmatmul.mubr.f32.vlgmr.msra.gmra.mxu0 %v23165_v32 }
0x1734   :  { %20919 = vmatpush3.xpose.msra.mxu1 %v9920_v30  ;;  %20922 = vmatprep.mubr.msk.f32.mxu1 %vm22039_vm1, %v22038_v55 }
0x1735   :  { %20920 = vmatprep.subr.mxu1 %v22038_v55  ;;  %20929 = vmatprep.mubr.msk.f32.mxu0 %vm22039_vm1, %v22038_v55 }
0x1738   :  { %20921 = vmatpush3.xpose.msra.mxu1 %v9923_v2 }
0x1739   :  { %20932 = vmatprep.subr.mxu1 %v22038_v55 }
0x173b   :  { %20923 = vmatmul.mubr.f32.vlgmr.msra.gmra.mxu1 %v23165_v32  ;;  %v23215_v32 = vsel %vm156_vm6, -inf, %v22038_v55 }
0x173c   :  { %20936 = vmatprep.mubr.msk.f32.mxu1 %vm22039_vm1, %v22038_v55  ;;  %v23220_v33 = vrot.slane %v23215_v32, %v1167_v36 }
0x17e3   :  { %v9964_v18 = vpop.f32.mrf.mxu0 }
0x17e5   :  { %v20889_v19 = vpop.f32.mrf.mxu0 }
0x17eb   :  { %v10045_v21 = vpop.f32.mrf.mxu1  ;;  %v10121_v58 = vpop.f32.mrf.mxu0 }
0x17ec   :  { %v10046_v4 = vadd.f32 %v10045_v21, %v9964_v18 }
0x17ed   :  { %v20896_v53 = vpop.f32.mrf.mxu1  ;;  %v20903_v5 = vpop.f32.mrf.mxu0 }
0x17ee   :  { %v10122_v14 = vadd.f32 %v10121_v58, %v10046_v4 }
0x17f3   :  { %v10196_v9 = vpop.f32.mrf.mxu1  ;;  %v10273_v23 = vpop.f32.mrf.mxu0 }
0x17f4   :  { %v10197_v26 = vadd.f32 %v10196_v9, %v10122_v14 }
0x17f5   :  { %v20910_v12 = vpop.f32.mrf.mxu1  ;;  %v20917_v24 = vpop.f32.mrf.mxu0 }
0x17f6   :  { %v10274_v6 = vadd.f32 %v10273_v23, %v10197_v26 }
0x17fb   :  { %v10346_v28 = vpop.f32.mrf.mxu1 }
0x17fc   :  { %v10347_v42 = vadd.f32 %v10346_v28, %v10274_v6 }
0x17fd   :  { %v20924_v7 = vpop.f32.mrf.mxu1 }
0x17fe   :  { %v10350_v37 = vmul.f32 0.35355338, %v10347_v42 }
0x1800   :  { %v10351_v39 = vfloor.f32 %v10350_v37 }
0x1802   :  { %v10356_v40 = vadd.f32 %v23220_v33, %v10351_v39 }
0x1804   :  { %v10357_v43 = vsel %vm4406_vm4, %v10356_v40, -inf }
0x1805   :  { %10358 = vmax.xlane.f32.xlu0 %v10357_v43 }
0x181b   :  { %10370 = vrot.lane.b32.xlu0 %v23170_v50, %s22041_s30 }
0x181f   :  { %10838 = vrot.lane.b32.xlu0 %v23172_v57, %s22043_s4 }
0x188e   :  { %v10359_v44 = vpop.xlane.xlu0 %10358 }
0x188f   :  { %v10360_v47 = vsub.f32 %v10356_v40, %v10359_v44 }
0x1891   :  { %v10361_v48 = vmul.f32 1.442695, %v10360_v47 }
0x1892   :  { %v10371_v51 = vpop.permute.xlu0 %10370 }
0x1893   :  { %21860 = vpow2.f32 %v10361_v48  ;;  %v10406_v52 = vand.u32 4294901760, %v10371_v51 }
0x1895   :  { %v23228_v36 = vsub.f32 %v10371_v51, %v10406_v52  ;;  %20926 = vmatpush3.msra.mxu0 %v10406_v52 }
0x1896   :  { %20927 = vmatprep.subr.mxu0 %v22038_v55  ;;  %v10839_v34 = vpop.permute.xlu0 %10838 }
0x1897   :  { %v10485_v54 = vand.u32 4294901760, %v23228_v36  ;;  %v10844_v11 = vsel %vm712_vm2, %v10839_v34, 0 }
0x1898   :  { %v23248_v19 = vand.u32 4294901760, %v10844_v11 }
0x1899   :  { %v10486_v56 = vsub.f32 %v23228_v36, %v10485_v54 }
0x189a   :  { %v23256_v5 = vsub.f32 %v10844_v11, %v23248_v19 }
0x189b   :  { %v10487_v59 = vand.u32 4294901760, %v10486_v56 }
0x189c   :  { %v10963_v12 = vand.u32 4294901760, %v23256_v5 }
0x189d   :  { %20933 = vmatpush3.msra.mxu1 %v10487_v59 }
0x189e   :  { %20934 = vmatprep.subr.mxu1 %v22038_v55  ;;  %v10964_v28 = vsub.f32 %v23256_v5, %v10963_v12 }
0x18a0   :  { %v21861_v60 = vpop.eup %21860  ;;  %v10965_v37 = vand.u32 4294901760, %v10964_v28 }
0x18a1   :  { %v10363_v38 = vsel %vm4406_vm4, %v21861_v60, 0.0 }
0x18a2   :  { %10364 = vadd.xlane.f32.xlu1 %v10363_v38 }
0x18b3   :  { %10368 = vrot.lane.b32.xlu1 %v23172_v57, %s22041_s30 }
0x18b7   :  { %10840 = vrot.lane.b32.xlu1 %v23170_v50, %s22043_s4 }
0x18bb   :  { %10836 = vrot.lane.b32.xlu1 %v23159_v1, %s22043_s4 }
0x192b   :  { %v10365_v30 = vpop.xlane.xlu1 %10364 }
0x192c   :  { %21862 = vrcp.f32 %v10365_v30 }
0x192f   :  { %v10369_v62 = vpop.permute.xlu1 %10368 }
0x1930   :  { %v10409_v0 = vand.u32 4294901760, %v10369_v62 }
0x1932   :  { %v10491_v2 = vsub.f32 %v10369_v62, %v10409_v0  ;;  %20928 = vmatpush3.msra.mxu0 %v10409_v0 }
0x1933   :  { %v10841_v41 = vpop.permute.xlu1 %10840  ;;  %20939 = vmatprep.subr.mxu0 %v22038_v55 }
0x1934   :  { %v10492_v45 = vand.u32 4294901760, %v10491_v2  ;;  %v10846_v10 = vsel %vm712_vm2, %v10841_v41, 0 }
0x1935   :  { %v23245_v13 = vand.u32 4294901760, %v10846_v10 }
0x1936   :  { %v10493_v63 = vsub.f32 %v10491_v2, %v10492_v45 }
0x1937   :  { %v23251_v21 = vsub.f32 %v10846_v10, %v23245_v13  ;;  %v10837_v23 = vpop.permute.xlu1 %10836 }
0x1938   :  { %v10494_v17 = vand.u32 4294901760, %v10493_v63  ;;  %v10842_v26 = vsel %vm712_vm2, %v10837_v23, 0 }
0x1939   :  { %v21863_v61 = vpop.eup %21862  ;;  %v10956_v4 = vand.u32 4294901760, %v23251_v21  ;;  %v10915_v7 = vand.u32 4294901760, %v10842_v26 }
0x193a   :  { %v10367_v18 = vmul.f32 %v21863_v61, %v21861_v60  ;;  %20935 = vmatpush3.msra.mxu1 %v10494_v17 }
0x193b   :  { %20946 = vmatprep.subr.mxu1 %v22038_v55  ;;  %v10957_v24 = vsub.f32 %v23251_v21, %v10956_v4  ;;  %v10916_v39 = vsub.f32 %v10842_v26, %v10915_v7 }
0x193c   :  { %v10375_v58 = vsel %vm4406_vm4, %v10367_v18, 0 }
0x193d   :  { %v10444_v53 = vand.u32 4294901760, %v10375_v58  ;;  %v10958_v42 = vand.u32 4294901760, %v10957_v24  ;;  %v10917_v40 = vand.u32 4294901760, %v10916_v39 }
0x193f   :  { %v10445_v9 = vsub.f32 %v10375_v58, %v10444_v53  ;;  %20937 = vmatmul.mubr.f32.vlgmr.msra.gmra.mxu1 %v10444_v53  ;;  %v10918_v43 = vsub.f32 %v10916_v39, %v10917_v40 }
0x1940   :  { %20947 = vmatpush3.msra.mxu1 %v10406_v52  ;;  %20950 = vmatprep.mubr.msk.f32.mxu1 %vm22039_vm1, %v22038_v55 }
0x1941   :  { %20948 = vmatprep.subr.mxu1 %v22038_v55  ;;  %v10446_v14 = vand.u32 4294901760, %v10445_v9  ;;  %v10919_v44 = vand.u32 4294901760, %v10918_v43 }
0x1942   :  { %20949 = vmatpush3.msra.mxu1 %v10409_v0 }
0x1943   :  { %20960 = vmatprep.subr.mxu1 %v22038_v55  ;;  %20951 = vmatmul.mubr.f32.vlgmr.msra.gmra.mxu1 %v10446_v14  ;;  %v10447_v25 = vsub.f32 %v10445_v9, %v10446_v14 }
0x1944   :  { %20961 = vmatpush3.msra.mxu1 %v10406_v52  ;;  %20964 = vmatprep.mubr.msk.f32.mxu1 %vm22039_vm1, %v22038_v55 }
0x1945   :  { %20962 = vmatprep.subr.mxu1 %v22038_v55  ;;  %v10448_v6 = vand.u32 4294901760, %v10447_v25 }
0x1946   :  { %20963 = vmatpush3.msra.mxu1 %v10409_v0 }
0x1947   :  { %20974 = vmatprep.subr.mxu1 %v22038_v55  ;;  %20930 = vmatmul.mubr.f32.vlgmr.msra.gmra.mxu0 %v10448_v6 }
0x1948   :  { %20940 = vmatpush3.msra.mxu0 %v23228_v36  ;;  %20965 = vmatmul.mubr.f32.vlgmr.msra.gmra.mxu1 %v10444_v53 }
0x1949   :  { %20975 = vmatpush3.xpose.msra.mxu1 %v10958_v42  ;;  %20941 = vmatprep.subr.mxu0 %v22038_v55 }
0x194a   :  { %20942 = vmatpush3.msra.mxu0 %v10491_v2  ;;  %20943 = vmatprep.mubr.msk.f32.mxu0 %vm22039_vm1, %v22038_v55 }
0x194b   :  { %20953 = vmatprep.subr.mxu0 %v22038_v55  ;;  %20976 = vmatprep.subr.mxu1 %v22038_v55 }
0x194c   :  { %20944 = vmatmul.mubr.f32.vlgmr.msra.gmra.mxu0 %v10445_v9  ;;  %20978 = vmatprep.mubr.msk.f32.mxu1 %vm22039_vm1, %v22038_v55 }
0x194d   :  { %20954 = vmatpush3.msra.mxu0 %v10485_v54  ;;  %20977 = vmatpush3.xpose.msra.mxu1 %v10965_v37 }
0x194e   :  { %20955 = vmatprep.subr.mxu0 %v22038_v55  ;;  %20957 = vmatprep.mubr.msk.f32.mxu0 %vm22039_vm1, %v22038_v55 }
0x194f   :  { %20956 = vmatpush3.msra.mxu0 %v10492_v45  ;;  %20988 = vmatprep.subr.mxu1 %v22038_v55 }
0x1950   :  { %20967 = vmatprep.subr.mxu0 %v22038_v55  ;;  %20979 = vmatmul.mubr.f32.vlgmr.msra.gmra.mxu1 %v10915_v7 }
0x1951   :  { %20958 = vmatmul.mubr.f32.vlgmr.msra.gmra.mxu0 %v10444_v53  ;;  %20989 = vmatpush3.xpose.msra.mxu1 %v23245_v13 }
0x1952   :  { %20968 = vmatpush3.xpose.msra.mxu0 %v23245_v13  ;;  %20990 = vmatprep.subr.mxu1 %v22038_v55 }
0x1953   :  { %20969 = vmatprep.subr.mxu0 %v22038_v55  ;;  %20971 = vmatprep.mubr.msk.f32.mxu0 %vm22039_vm1, %v22038_v55 }
0x1954   :  { %20992 = vmatprep.mubr.msk.f32.mxu1 %vm22039_vm1, %v22038_v55 }
0x1955   :  { %20991 = vmatpush3.xpose.msra.mxu1 %v23248_v19 }
0x1956   :  { %20970 = vmatpush3.xpose.msra.mxu0 %v23248_v19  ;;  %21002 = vmatprep.subr.mxu1 %v22038_v55 }
0x1957   :  { %20981 = vmatprep.subr.mxu0 %v22038_v55 }
0x1958   :  { %20993 = vmatmul.mubr.f32.vlgmr.msra.gmra.mxu1 %v10917_v40 }
0x1959   :  { %20972 = vmatmul.mubr.f32.vlgmr.msra.gmra.mxu0 %v10919_v44  ;;  %21003 = vmatpush3.xpose.msra.mxu1 %v23245_v13 }
0x195a   :  { %20982 = vmatpush3.xpose.msra.mxu0 %v23251_v21  ;;  %21004 = vmatprep.subr.mxu1 %v22038_v55 }
0x195b   :  { %20983 = vmatprep.subr.mxu0 %v22038_v55  ;;  %20985 = vmatprep.mubr.msk.f32.mxu0 %vm22039_vm1, %v22038_v55 }
0x195c   :  { %21006 = vmatprep.mubr.msk.f32.mxu1 %vm22039_vm1, %v22038_v55 }
0x195d   :  { %21005 = vmatpush3.xpose.msra.mxu1 %v23248_v19 }
0x195e   :  { %20984 = vmatpush3.xpose.msra.mxu0 %v23256_v5  ;;  %21016 = vmatprep.subr.mxu1 %v22038_v55 }
0x195f   :  { %20995 = vmatprep.subr.mxu0 %v22038_v55 }
0x1960   :  { %21007 = vmatmul.mubr.f32.vlgmr.msra.gmra.mxu1 %v10915_v7 }
0x1961   :  { %20986 = vmatmul.mubr.f32.vlgmr.msra.gmra.mxu0 %v10916_v39  ;;  %21020 = vmatprep.mubr.msk.f32.mxu1 %vm22039_vm1, %v22038_v55 }
0x1962   :  { %20996 = vmatpush3.xpose.msra.mxu0 %v10956_v4  ;;  %20999 = vmatprep.mubr.msk.f32.mxu0 %vm22039_vm1, %v22038_v55 }
0x1963   :  { %20997 = vmatprep.subr.mxu0 %v22038_v55 }
0x1966   :  { %20998 = vmatpush3.xpose.msra.mxu0 %v10963_v12 }
0x1967   :  { %21009 = vmatprep.subr.mxu0 %v22038_v55 }
0x1969   :  { %21000 = vmatmul.mubr.f32.vlgmr.msra.gmra.mxu0 %v10915_v7 }
0x196a   :  { %21013 = vmatprep.mubr.msk.f32.mxu0 %vm22039_vm1, %v22038_v55 }
0x19ff   :  { %v10531_v47 = vpop.f32.mrf.mxu1 }
0x1a01   :  { %v20938_v48 = vpop.f32.mrf.mxu1 }
0x1a03   :  { %v10682_v51 = vpop.f32.mrf.mxu1 }
0x1a05   :  { %v20952_v52 = vpop.f32.mrf.mxu1 }
0x1a07   :  { %v10450_v36 = vpop.f32.mrf.mxu0 }
0x1a08   :  { %v10532_v54 = vadd.f32 %v10531_v47, %v10450_v36  ;;  %v10832_v56 = vpop.f32.mrf.mxu1 }
0x1a09   :  { %v20931_v59 = vpop.f32.mrf.mxu0 }
0x1a0a   :  { %v20966_v60 = vpop.f32.mrf.mxu1 }
0x1a0c   :  { %v10607_v38 = vpop.f32.mrf.mxu0 }
0x1a0d   :  { %v10608_v30 = vadd.f32 %v10607_v38, %v10532_v54 }
0x1a0e   :  { %v20945_v62 = vpop.f32.mrf.mxu0 }
0x1a0f   :  { %v10683_v0 = vadd.f32 %v10682_v51, %v10608_v30 }
0x1a10   :  { %v11002_v2 = vpop.f32.mrf.mxu1 }
0x1a11   :  { %v10759_v41 = vpop.f32.mrf.mxu0 }
0x1a12   :  { %v10760_v45 = vadd.f32 %v10759_v41, %v10683_v0  ;;  %v20980_v10 = vpop.f32.mrf.mxu1 }
0x1a13   :  { %v20959_v34 = vpop.f32.mrf.mxu0 }
0x1a14   :  { %v23326_v63 = vadd.f32 %v10832_v56, %v10760_v45 }
0x1a18   :  { %v11153_v13 = vpop.f32.mrf.mxu1 }
0x1a19   :  { %v10921_v11 = vpop.f32.mrf.mxu0 }
0x1a1a   :  { %v20994_v17 = vpop.f32.mrf.mxu1  ;;  %v11003_v21 = vadd.f32 %v11002_v2, %v10921_v11 }
0x1a1b   :  { %v20973_v61 = vpop.f32.mrf.mxu0 }
0x1a20   :  { %v11303_v18 = vpop.f32.mrf.mxu1 }
0x1a21   :  { %v11078_v19 = vpop.f32.mrf.mxu0 }
0x1a22   :  { %v21008_v58 = vpop.f32.mrf.mxu1  ;;  %v11079_v5 = vadd.f32 %v11078_v19, %v11003_v21 }
0x1a23   :  { %v20987_v53 = vpop.f32.mrf.mxu0 }
0x1a24   :  { %v11154_v4 = vadd.f32 %v11153_v13, %v11079_v5 }
0x1a29   :  { %v11230_v9 = vpop.f32.mrf.mxu0 }
0x1a2a   :  { %v11231_v23 = vadd.f32 %v11230_v9, %v11154_v4 }
0x1a2b   :  { %v21001_v14 = vpop.f32.mrf.mxu0 }
0x1a2c   :  { %v11304_v12 = vadd.f32 %v11303_v18, %v11231_v23 }
0x1a2e   :  { %v11307_v24 = vmul.f32 0.35355338, %v11304_v12 }
0x1a30   :  { %v11308_v25 = vfloor.f32 %v11307_v24 }
0x1a32   :  { %v11309_v26 = vadd.f32 %v11308_v25, %v23220_v33 }
0x1a34   :  { %v11310_v6 = vsel %vm4406_vm4, %v11309_v26, -inf }
0x1a35   :  { %11311 = vmax.xlane.f32.xlu0 %v11310_v6 }
0x1a4b   :  { %11323 = vrot.lane.b32.xlu0 %v23170_v50, %s22042_s12 }
0x1a4f   :  { %11793 = vrot.lane.b32.xlu0 %v23170_v50, %s22046_s10 }
0x1a53   :  { %11789 = vrot.lane.b32.xlu0 %v23159_v1, %s22046_s10 }
0x1abe   :  { %v11312_v28 = vpop.xlane.xlu0 %11311 }
0x1abf   :  { %v11313_v42 = vsub.f32 %v11309_v26, %v11312_v28 }
0x1ac1   :  { %v11314_v7 = vmul.f32 1.442695, %v11313_v42 }
0x1ac2   :  { %v11324_v37 = vpop.permute.xlu0 %11323 }
0x1ac3   :  { %21864 = vpow2.f32 %v11314_v7  ;;  %v11359_v39 = vand.u32 4294901760, %v11324_v37 }
0x1ac5   :  { %v23336_v40 = vsub.f32 %v11324_v37, %v11359_v39  ;;  %21010 = vmatpush3.msra.mxu0 %v11359_v39 }
0x1ac6   :  { %21011 = vmatprep.subr.mxu0 %v22038_v55  ;;  %v11794_v56 = vpop.permute.xlu0 %11793 }
0x1ac7   :  { %v11438_v43 = vand.u32 4294901760, %v23336_v40  ;;  %v11799_v60 = vsel %vm712_vm2, %v11794_v56, 0 }
0x1ac8   :  { %v23351_v0 = vand.u32 4294901760, %v11799_v60 }
0x1ac9   :  { %v11439_v44 = vsub.f32 %v23336_v40, %v11438_v43 }
0x1aca   :  { %v23355_v34 = vsub.f32 %v11799_v60, %v23351_v0  ;;  %v11790_v21 = vpop.permute.xlu0 %11789 }
0x1acb   :  { %v11440_v47 = vand.u32 4294901760, %v11439_v44  ;;  %v11795_v9 = vsel %vm712_vm2, %v11790_v21, 0 }
0x1acc   :  { %v11909_v61 = vand.u32 4294901760, %v23355_v34  ;;  %v11868_v12 = vand.u32 4294901760, %v11795_v9 }
0x1acd   :  { %21017 = vmatpush3.msra.mxu1 %v11440_v47 }
0x1ace   :  { %21018 = vmatprep.subr.mxu1 %v22038_v55  ;;  %v11910_v53 = vsub.f32 %v23355_v34, %v11909_v61  ;;  %v11869_v25 = vsub.f32 %v11795_v9, %v11868_v12 }
0x1ad0   :  { %v21865_v48 = vpop.eup %21864  ;;  %v11911_v14 = vand.u32 4294901760, %v11910_v53  ;;  %v11870_v6 = vand.u32 4294901760, %v11869_v25 }
0x1ad1   :  { %v11316_v51 = vsel %vm4406_vm4, %v21865_v48, 0.0 }
0x1ad2   :  { %11317 = vadd.xlane.f32.xlu1 %v11316_v51  ;;  %v11871_v28 = vsub.f32 %v11869_v25, %v11870_v6 }
0x1ad4   :  { %v11872_v42 = vand.u32 4294901760, %v11871_v28 }
0x1ae3   :  { %11321 = vrot.lane.b32.xlu1 %v23172_v57, %s22042_s12 }
0x1ae7   :  { %11791 = vrot.lane.b32.xlu1 %v23172_v57, %s22046_s10 }
0x1b5b   :  { %v11318_v52 = vpop.xlane.xlu1 %11317 }
0x1b5c   :  { %21866 = vrcp.f32 %v11318_v52 }
0x1b5f   :  { %v11322_v36 = vpop.permute.xlu1 %11321 }
0x1b60   :  { %v11362_v54 = vand.u32 4294901760, %v11322_v36 }
0x1b62   :  { %v11444_v59 = vsub.f32 %v11322_v36, %v11362_v54  ;;  %21012 = vmatpush3.msra.mxu0 %v11362_v54 }
0x1b63   :  { %21023 = vmatprep.subr.mxu0 %v22038_v55  ;;  %v11792_v30 = vpop.permute.xlu1 %11791 }
0x1b64   :  { %v11445_v38 = vand.u32 4294901760, %v11444_v59  ;;  %v11797_v41 = vsel %vm712_vm2, %v11792_v30, 0 }
0x1b65   :  { %v23357_v13 = vand.u32 4294901760, %v11797_v41 }
0x1b66   :  { %v11446_v62 = vsub.f32 %v11444_v59, %v11445_v38 }
0x1b67   :  { %v23363_v18 = vsub.f32 %v11797_v41, %v23357_v13 }
0x1b68   :  { %v11447_v2 = vand.u32 4294901760, %v11446_v62 }
0x1b69   :  { %v21867_v45 = vpop.eup %21866  ;;  %v11916_v5 = vand.u32 4294901760, %v23363_v18 }
0x1b6a   :  { %v11320_v10 = vmul.f32 %v21867_v45, %v21865_v48  ;;  %21019 = vmatpush3.msra.mxu1 %v11447_v2 }
0x1b6b   :  { %21030 = vmatprep.subr.mxu1 %v22038_v55  ;;  %v11917_v24 = vsub.f32 %v23363_v18, %v11916_v5 }
0x1b6c   :  { %v11328_v11 = vsel %vm4406_vm4, %v11320_v10, 0 }
0x1b6d   :  { %v11397_v17 = vand.u32 4294901760, %v11328_v11  ;;  %v11918_v26 = vand.u32 4294901760, %v11917_v24 }
0x1b6f   :  { %v11398_v19 = vsub.f32 %v11328_v11, %v11397_v17  ;;  %21021 = vmatmul.mubr.f32.vlgmr.msra.gmra.mxu1 %v11397_v17 }
0x1b70   :  { %21031 = vmatpush3.msra.mxu1 %v11359_v39  ;;  %21034 = vmatprep.mubr.msk.f32.mxu1 %vm22039_vm1, %v22038_v55 }
0x1b71   :  { %21032 = vmatprep.subr.mxu1 %v22038_v55  ;;  %v11399_v58 = vand.u32 4294901760, %v11398_v19 }
0x1b72   :  { %21033 = vmatpush3.msra.mxu1 %v11362_v54 }
0x1b73   :  { %21044 = vmatprep.subr.mxu1 %v22038_v55  ;;  %21035 = vmatmul.mubr.f32.vlgmr.msra.gmra.mxu1 %v11399_v58  ;;  %v11400_v4 = vsub.f32 %v11398_v19, %v11399_v58 }
0x1b74   :  { %21045 = vmatpush3.msra.mxu1 %v11359_v39  ;;  %21048 = vmatprep.mubr.msk.f32.mxu1 %vm22039_vm1, %v22038_v55 }
0x1b75   :  { %21046 = vmatprep.subr.mxu1 %v22038_v55  ;;  %v11401_v23 = vand.u32 4294901760, %v11400_v4 }
0x1b76   :  { %21047 = vmatpush3.msra.mxu1 %v11362_v54 }
0x1b77   :  { %21058 = vmatprep.subr.mxu1 %v22038_v55  ;;  %21014 = vmatmul.mubr.f32.vlgmr.msra.gmra.mxu0 %v11401_v23 }
0x1b78   :  { %21024 = vmatpush3.msra.mxu0 %v23336_v40  ;;  %21049 = vmatmul.mubr.f32.vlgmr.msra.gmra.mxu1 %v11397_v17 }
0x1b79   :  { %21059 = vmatpush3.xpose.msra.mxu1 %v11911_v14  ;;  %21025 = vmatprep.subr.mxu0 %v22038_v55 }
0x1b7a   :  { %21026 = vmatpush3.msra.mxu0 %v11444_v59  ;;  %21027 = vmatprep.mubr.msk.f32.mxu0 %vm22039_vm1, %v22038_v55 }
0x1b7b   :  { %21037 = vmatprep.subr.mxu0 %v22038_v55  ;;  %21060 = vmatprep.subr.mxu1 %v22038_v55 }
0x1b7c   :  { %21028 = vmatmul.mubr.f32.vlgmr.msra.gmra.mxu0 %v11398_v19  ;;  %21062 = vmatprep.mubr.msk.f32.mxu1 %vm22039_vm1, %v22038_v55 }
0x1b7d   :  { %21038 = vmatpush3.msra.mxu0 %v11438_v43  ;;  %21061 = vmatpush3.xpose.msra.mxu1 %v11918_v26 }
0x1b7e   :  { %21039 = vmatprep.subr.mxu0 %v22038_v55  ;;  %21041 = vmatprep.mubr.msk.f32.mxu0 %vm22039_vm1, %v22038_v55 }
0x1b7f   :  { %21040 = vmatpush3.msra.mxu0 %v11445_v38  ;;  %21072 = vmatprep.subr.mxu1 %v22038_v55 }
0x1b80   :  { %21051 = vmatprep.subr.mxu0 %v22038_v55  ;;  %21063 = vmatmul.mubr.f32.vlgmr.msra.gmra.mxu1 %v11868_v12 }
0x1b81   :  { %21042 = vmatmul.mubr.f32.vlgmr.msra.gmra.mxu0 %v11397_v17  ;;  %21073 = vmatpush3.xpose.msra.mxu1 %v23351_v0 }
0x1b82   :  { %21052 = vmatpush3.xpose.msra.mxu0 %v23351_v0  ;;  %21074 = vmatprep.subr.mxu1 %v22038_v55 }
0x1b83   :  { %21053 = vmatprep.subr.mxu0 %v22038_v55  ;;  %21055 = vmatprep.mubr.msk.f32.mxu0 %vm22039_vm1, %v22038_v55 }
0x1b84   :  { %21076 = vmatprep.mubr.msk.f32.mxu1 %vm22039_vm1, %v22038_v55 }
0x1b85   :  { %21075 = vmatpush3.xpose.msra.mxu1 %v23357_v13 }
0x1b86   :  { %21054 = vmatpush3.xpose.msra.mxu0 %v23357_v13  ;;  %21086 = vmatprep.subr.mxu1 %v22038_v55 }
0x1b87   :  { %21065 = vmatprep.subr.mxu0 %v22038_v55 }
0x1b88   :  { %21077 = vmatmul.mubr.f32.vlgmr.msra.gmra.mxu1 %v11870_v6 }
0x1b89   :  { %21056 = vmatmul.mubr.f32.vlgmr.msra.gmra.mxu0 %v11872_v42  ;;  %21087 = vmatpush3.xpose.msra.mxu1 %v23351_v0 }
0x1b8a   :  { %21066 = vmatpush3.xpose.msra.mxu0 %v23355_v34  ;;  %21088 = vmatprep.subr.mxu1 %v22038_v55 }
0x1b8b   :  { %21067 = vmatprep.subr.mxu0 %v22038_v55  ;;  %21069 = vmatprep.mubr.msk.f32.mxu0 %vm22039_vm1, %v22038_v55 }
0x1b8c   :  { %21090 = vmatprep.mubr.msk.f32.mxu1 %vm22039_vm1, %v22038_v55 }
0x1b8d   :  { %21089 = vmatpush3.xpose.msra.mxu1 %v23357_v13 }
0x1b8e   :  { %21068 = vmatpush3.xpose.msra.mxu0 %v23363_v18  ;;  %21100 = vmatprep.subr.mxu1 %v22038_v55 }
0x1b8f   :  { %21079 = vmatprep.subr.mxu0 %v22038_v55 }
0x1b90   :  { %21091 = vmatmul.mubr.f32.vlgmr.msra.gmra.mxu1 %v11868_v12 }
0x1b91   :  { %21070 = vmatmul.mubr.f32.vlgmr.msra.gmra.mxu0 %v11869_v25  ;;  %21104 = vmatprep.mubr.msk.f32.mxu1 %vm22039_vm1, %v22038_v55 }
0x1b92   :  { %21080 = vmatpush3.xpose.msra.mxu0 %v11909_v61  ;;  %21083 = vmatprep.mubr.msk.f32.mxu0 %vm22039_vm1, %v22038_v55 }
0x1b93   :  { %21081 = vmatprep.subr.mxu0 %v22038_v55 }
0x1b96   :  { %21082 = vmatpush3.xpose.msra.mxu0 %v11916_v5 }
0x1b97   :  { %21093 = vmatprep.subr.mxu0 %v22038_v55 }
0x1b99   :  { %21084 = vmatmul.mubr.f32.vlgmr.msra.gmra.mxu0 %v11868_v12 }
0x1b9a   :  { %21097 = vmatprep.mubr.msk.f32.mxu0 %vm22039_vm1, %v22038_v55 }
0x1c2f   :  { %v11484_v7 = vpop.f32.mrf.mxu1 }
0x1c31   :  { %v21022_v37 = vpop.f32.mrf.mxu1 }
0x1c33   :  { %v11635_v39 = vpop.f32.mrf.mxu1 }
0x1c35   :  { %v21036_v40 = vpop.f32.mrf.mxu1 }
0x1c37   :  { %v11403_v43 = vpop.f32.mrf.mxu0 }
0x1c38   :  { %v11485_v44 = vadd.f32 %v11484_v7, %v11403_v43  ;;  %v11785_v47 = vpop.f32.mrf.mxu1 }
0x1c39   :  { %v21015_v48 = vpop.f32.mrf.mxu0 }
0x1c3a   :  { %v21050_v51 = vpop.f32.mrf.mxu1 }
0x1c3c   :  { %v11560_v52 = vpop.f32.mrf.mxu0 }
0x1c3d   :  { %v11561_v36 = vadd.f32 %v11560_v52, %v11485_v44 }
0x1c3e   :  { %v21029_v54 = vpop.f32.mrf.mxu0 }
0x1c3f   :  { %v11636_v56 = vadd.f32 %v11635_v39, %v11561_v36 }
0x1c40   :  { %v11955_v59 = vpop.f32.mrf.mxu1 }
0x1c41   :  { %v11712_v60 = vpop.f32.mrf.mxu0 }
0x1c42   :  { %v11713_v38 = vadd.f32 %v11712_v60, %v11636_v56  ;;  %v21064_v30 = vpop.f32.mrf.mxu1 }
0x1c43   :  { %v21043_v62 = vpop.f32.mrf.mxu0 }
0x1c44   :  { %v23432_v0 = vadd.f32 %v11785_v47, %v11713_v38 }
0x1c48   :  { %v12106_v2 = vpop.f32.mrf.mxu1 }
0x1c49   :  { %v11874_v41 = vpop.f32.mrf.mxu0 }
0x1c4a   :  { %v21078_v45 = vpop.f32.mrf.mxu1  ;;  %v11956_v11 = vadd.f32 %v11955_v59, %v11874_v41 }
0x1c4b   :  { %v21057_v10 = vpop.f32.mrf.mxu0 }
0x1c50   :  { %v12256_v34 = vpop.f32.mrf.mxu1 }
0x1c51   :  { %v12031_v13 = vpop.f32.mrf.mxu0 }
0x1c52   :  { %v21092_v17 = vpop.f32.mrf.mxu1  ;;  %v12032_v18 = vadd.f32 %v12031_v13, %v11956_v11 }
0x1c53   :  { %v21071_v61 = vpop.f32.mrf.mxu0 }
0x1c54   :  { %v12107_v19 = vadd.f32 %v12106_v2, %v12032_v18 }
0x1c59   :  { %v12183_v21 = vpop.f32.mrf.mxu0 }
0x1c5a   :  { %v12184_v58 = vadd.f32 %v12183_v21, %v12107_v19 }
0x1c5b   :  { %v21085_v53 = vpop.f32.mrf.mxu0 }
0x1c5c   :  { %v12257_v5 = vadd.f32 %v12256_v34, %v12184_v58 }
0x1c5e   :  { %v12260_v4 = vmul.f32 0.35355338, %v12257_v5 }
0x1c60   :  { %v12261_v9 = vfloor.f32 %v12260_v4 }
0x1c62   :  { %v12262_v23 = vadd.f32 %v12261_v9, %v23220_v33 }
0x1c64   :  { %v12263_v14 = vsel %vm4406_vm4, %v12262_v23, -inf }
0x1c65   :  { %12264 = vmax.xlane.f32.xlu1 %v12263_v14 }
0x1c76   :  { %12274 = vrot.lane.b32.xlu1 %v23172_v57, %s22045_s5 }
0x1c7a   :  { %12746 = vrot.lane.b32.xlu1 %v23170_v50, %s22049_s18 }
0x1c7e   :  { %12742 = vrot.lane.b32.xlu1 %v23159_v1, %s22049_s18 }
0x1cee   :  { %v12265_v12 = vpop.xlane.xlu1 %12264 }
0x1cef   :  { %v12266_v24 = vsub.f32 %v12262_v23, %v12265_v12 }
0x1cf1   :  { %v12267_v25 = vmul.f32 1.442695, %v12266_v24 }
0x1cf2   :  { %v12275_v28 = vpop.permute.xlu1 %12274 }
0x1cf3   :  { %21868 = vpow2.f32 %v12267_v25  ;;  %v12315_v42 = vand.u32 4294901760, %v12275_v28 }
0x1cf5   :  { %v23447_v37 = vsub.f32 %v12275_v28, %v12315_v42 }
0x1cf6   :  { %v12747_v40 = vpop.permute.xlu1 %12746 }
0x1cf7   :  { %v12398_v43 = vand.u32 4294901760, %v23447_v37  ;;  %v12752_v47 = vsel %vm712_vm2, %v12747_v40, 0 }
0x1cf8   :  { %v23456_v54 = vand.u32 4294901760, %v12752_v47 }
0x1cf9   :  { %v12399_v52 = vsub.f32 %v23447_v37, %v12398_v43 }
0x1cfa   :  { %v23460_v62 = vsub.f32 %v12752_v47, %v23456_v54  ;;  %v12743_v11 = vpop.permute.xlu1 %12742 }
0x1cfb   :  { %v12400_v38 = vand.u32 4294901760, %v12399_v52  ;;  %v12748_v21 = vsel %vm712_vm2, %v12743_v11, 0 }
0x1cfc   :  { %v12862_v10 = vand.u32 4294901760, %v23460_v62  ;;  %v12821_v5 = vand.u32 4294901760, %v12748_v21 }
0x1cfe   :  { %v12863_v61 = vsub.f32 %v23460_v62, %v12862_v10  ;;  %v12822_v9 = vsub.f32 %v12748_v21, %v12821_v5 }
0x1d00   :  { %v21869_v26 = vpop.eup %21868  ;;  %v12864_v53 = vand.u32 4294901760, %v12863_v61  ;;  %v12823_v14 = vand.u32 4294901760, %v12822_v9 }
0x1d01   :  { %v12269_v6 = vsel %vm4406_vm4, %v21869_v26, 0.0 }
0x1d02   :  { %12270 = vadd.xlane.f32.xlu0 %v12269_v6  ;;  %v12824_v12 = vsub.f32 %v12822_v9, %v12823_v14 }
0x1d04   :  { %v12825_v24 = vand.u32 4294901760, %v12824_v12 }
0x1d18   :  { %12276 = vrot.lane.b32.xlu0 %v23170_v50, %s22045_s5 }
0x1d1c   :  { %12744 = vrot.lane.b32.xlu0 %v23172_v57, %s22049_s18 }
0x1d8b   :  { %v12271_v7 = vpop.xlane.xlu0 %12270 }
0x1d8c   :  { %21870 = vrcp.f32 %v12271_v7 }
0x1d8f   :  { %v12277_v1 = vpop.permute.xlu0 %12276 }
0x1d90   :  { %v12312_v39 = vand.u32 4294901760, %v12277_v1 }
0x1d92   :  { %v12390_v44 = vsub.f32 %v12277_v1, %v12312_v39  ;;  %21094 = vmatpush3.msra.mxu0 %v12312_v39 }
0x1d93   :  { %21095 = vmatprep.subr.mxu0 %v22038_v55  ;;  %v12745_v51 = vpop.permute.xlu0 %12744 }
0x1d94   :  { %v12391_v48 = vand.u32 4294901760, %v12390_v44  ;;  %21096 = vmatpush3.msra.mxu0 %v12315_v42  ;;  %v12750_v59 = vsel %vm712_vm2, %v12745_v51, 0 }
0x1d95   :  { %21107 = vmatprep.subr.mxu0 %v22038_v55  ;;  %v23462_v2 = vand.u32 4294901760, %v12750_v59 }
0x1d96   :  { %v12392_v36 = vsub.f32 %v12390_v44, %v12391_v48 }
0x1d97   :  { %v23469_v34 = vsub.f32 %v12750_v59, %v23462_v2 }
0x1d98   :  { %v12393_v56 = vand.u32 4294901760, %v12392_v36 }
0x1d99   :  { %v21871_v60 = vpop.eup %21870  ;;  %v12869_v18 = vand.u32 4294901760, %v23469_v34 }
0x1d9a   :  { %v12273_v30 = vmul.f32 %v21871_v60, %v21869_v26  ;;  %21101 = vmatpush3.msra.mxu1 %v12393_v56 }
0x1d9b   :  { %21102 = vmatprep.subr.mxu1 %v22038_v55  ;;  %v12870_v4 = vsub.f32 %v23469_v34, %v12869_v18 }
0x1d9c   :  { %21103 = vmatpush3.msra.mxu1 %v12400_v38  ;;  %v12281_v41 = vsel %vm4406_vm4, %v12273_v30, 0 }
0x1d9d   :  { %21114 = vmatprep.subr.mxu1 %v22038_v55  ;;  %v12350_v45 = vand.u32 4294901760, %v12281_v41  ;;  %v12871_v23 = vand.u32 4294901760, %v12870_v4 }
0x1d9f   :  { %v12351_v13 = vsub.f32 %v12281_v41, %v12350_v45  ;;  %21105 = vmatmul.mubr.f32.vlgmr.msra.gmra.mxu1 %v12350_v45 }
0x1da0   :  { %21115 = vmatpush3.msra.mxu1 %v12312_v39  ;;  %21118 = vmatprep.mubr.msk.f32.mxu1 %vm22039_vm1, %v22038_v55 }
0x1da1   :  { %21116 = vmatprep.subr.mxu1 %v22038_v55  ;;  %v12352_v17 = vand.u32 4294901760, %v12351_v13 }
0x1da2   :  { %21117 = vmatpush3.msra.mxu1 %v12315_v42 }
0x1da3   :  { %21128 = vmatprep.subr.mxu1 %v22038_v55  ;;  %21119 = vmatmul.mubr.f32.vlgmr.msra.gmra.mxu1 %v12352_v17  ;;  %v12353_v19 = vsub.f32 %v12351_v13, %v12352_v17 }
0x1da4   :  { %21129 = vmatpush3.msra.mxu1 %v12312_v39  ;;  %21132 = vmatprep.mubr.msk.f32.mxu1 %vm22039_vm1, %v22038_v55 }
0x1da5   :  { %21130 = vmatprep.subr.mxu1 %v22038_v55  ;;  %v12354_v58 = vand.u32 4294901760, %v12353_v19 }
0x1da6   :  { %21131 = vmatpush3.msra.mxu1 %v12315_v42 }
0x1da7   :  { %21142 = vmatprep.subr.mxu1 %v22038_v55  ;;  %21098 = vmatmul.mubr.f32.vlgmr.msra.gmra.mxu0 %v12354_v58 }
0x1da8   :  { %21108 = vmatpush3.msra.mxu0 %v12390_v44  ;;  %21133 = vmatmul.mubr.f32.vlgmr.msra.gmra.mxu1 %v12350_v45 }
0x1da9   :  { %21143 = vmatpush3.xpose.msra.mxu1 %v12864_v53  ;;  %21109 = vmatprep.subr.mxu0 %v22038_v55 }
0x1daa   :  { %21110 = vmatpush3.msra.mxu0 %v23447_v37  ;;  %21111 = vmatprep.mubr.msk.f32.mxu0 %vm22039_vm1, %v22038_v55 }
0x1dab   :  { %21121 = vmatprep.subr.mxu0 %v22038_v55  ;;  %21144 = vmatprep.subr.mxu1 %v22038_v55 }
0x1dac   :  { %21112 = vmatmul.mubr.f32.vlgmr.msra.gmra.mxu0 %v12351_v13  ;;  %21146 = vmatprep.mubr.msk.f32.mxu1 %vm22039_vm1, %v22038_v55 }
0x1dad   :  { %21122 = vmatpush3.msra.mxu0 %v12391_v48  ;;  %21145 = vmatpush3.xpose.msra.mxu1 %v12871_v23 }
0x1dae   :  { %21123 = vmatprep.subr.mxu0 %v22038_v55  ;;  %21125 = vmatprep.mubr.msk.f32.mxu0 %vm22039_vm1, %v22038_v55 }
0x1daf   :  { %21124 = vmatpush3.msra.mxu0 %v12398_v43  ;;  %21156 = vmatprep.subr.mxu1 %v22038_v55 }
0x1db0   :  { %21135 = vmatprep.subr.mxu0 %v22038_v55  ;;  %21147 = vmatmul.mubr.f32.vlgmr.msra.gmra.mxu1 %v12821_v5 }
0x1db1   :  { %21126 = vmatmul.mubr.f32.vlgmr.msra.gmra.mxu0 %v12350_v45  ;;  %21157 = vmatpush3.xpose.msra.mxu1 %v23456_v54 }
0x1db2   :  { %21136 = vmatpush3.xpose.msra.mxu0 %v23456_v54  ;;  %21158 = vmatprep.subr.mxu1 %v22038_v55 }
0x1db3   :  { %21137 = vmatprep.subr.mxu0 %v22038_v55  ;;  %21139 = vmatprep.mubr.msk.f32.mxu0 %vm22039_vm1, %v22038_v55 }
0x1db4   :  { %21160 = vmatprep.mubr.msk.f32.mxu1 %vm22039_vm1, %v22038_v55 }
0x1db5   :  { %21159 = vmatpush3.xpose.msra.mxu1 %v23462_v2 }
0x1db6   :  { %21138 = vmatpush3.xpose.msra.mxu0 %v23462_v2  ;;  %21170 = vmatprep.subr.mxu1 %v22038_v55 }
0x1db7   :  { %21149 = vmatprep.subr.mxu0 %v22038_v55 }
0x1db8   :  { %21161 = vmatmul.mubr.f32.vlgmr.msra.gmra.mxu1 %v12823_v14 }
0x1db9   :  { %21140 = vmatmul.mubr.f32.vlgmr.msra.gmra.mxu0 %v12825_v24  ;;  %21171 = vmatpush3.xpose.msra.mxu1 %v23456_v54 }
0x1dba   :  { %21150 = vmatpush3.xpose.msra.mxu0 %v23460_v62  ;;  %21172 = vmatprep.subr.mxu1 %v22038_v55 }
0x1dbb   :  { %21151 = vmatprep.subr.mxu0 %v22038_v55  ;;  %21153 = vmatprep.mubr.msk.f32.mxu0 %vm22039_vm1, %v22038_v55 }
0x1dbc   :  { %21174 = vmatprep.mubr.msk.f32.mxu1 %vm22039_vm1, %v22038_v55 }
0x1dbd   :  { %21173 = vmatpush3.xpose.msra.mxu1 %v23462_v2 }
0x1dbe   :  { %21152 = vmatpush3.xpose.msra.mxu0 %v23469_v34  ;;  %21184 = vmatprep.subr.mxu1 %v22038_v55 }
0x1dbf   :  { %21163 = vmatprep.subr.mxu0 %v22038_v55 }
0x1dc0   :  { %21175 = vmatmul.mubr.f32.vlgmr.msra.gmra.mxu1 %v12821_v5 }
0x1dc1   :  { %21154 = vmatmul.mubr.f32.vlgmr.msra.gmra.mxu0 %v12822_v9  ;;  %21188 = vmatprep.mubr.msk.f32.mxu1 %vm22039_vm1, %v22038_v55 }
0x1dc2   :  { %21164 = vmatpush3.xpose.msra.mxu0 %v12862_v10  ;;  %21167 = vmatprep.mubr.msk.f32.mxu0 %vm22039_vm1, %v22038_v55 }
0x1dc3   :  { %21165 = vmatprep.subr.mxu0 %v22038_v55 }
0x1dc6   :  { %21166 = vmatpush3.xpose.msra.mxu0 %v12869_v18 }
0x1dc7   :  { %21177 = vmatprep.subr.mxu0 %v22038_v55 }
0x1dc9   :  { %21168 = vmatmul.mubr.f32.vlgmr.msra.gmra.mxu0 %v12821_v5 }
0x1dca   :  { %21181 = vmatprep.mubr.msk.f32.mxu0 %vm22039_vm1, %v22038_v55 }
0x1e5f   :  { %v12437_v25 = vpop.f32.mrf.mxu1 }
0x1e61   :  { %v21106_v26 = vpop.f32.mrf.mxu1 }
0x1e63   :  { %v12588_v6 = vpop.f32.mrf.mxu1 }
0x1e65   :  { %v21120_v28 = vpop.f32.mrf.mxu1 }
0x1e67   :  { %v12356_v42 = vpop.f32.mrf.mxu0 }
0x1e68   :  { %v12438_v7 = vadd.f32 %v12437_v25, %v12356_v42  ;;  %v12738_v37 = vpop.f32.mrf.mxu1 }
0x1e69   :  { %v21099_v1 = vpop.f32.mrf.mxu0 }
0x1e6a   :  { %v21134_v39 = vpop.f32.mrf.mxu1 }
0x1e6c   :  { %v12513_v40 = vpop.f32.mrf.mxu0 }
0x1e6d   :  { %v12514_v43 = vadd.f32 %v12513_v40, %v12438_v7 }
0x1e6e   :  { %v21113_v44 = vpop.f32.mrf.mxu0 }
0x1e6f   :  { %v12589_v47 = vadd.f32 %v12588_v6, %v12514_v43  ;;  %v21902_v6 = vld [vmem:[%s24448_s13] ss:$0 sm:$0xff] }
0x1e70   :  { %v12908_v48 = vpop.f32.mrf.mxu1  ;;  %v9359_v28 = vadd.f32 %v21902_v6, %v23155_v15 }
0x1e71   :  { %v12665_v51 = vpop.f32.mrf.mxu0 }
0x1e72   :  { %v12666_v52 = vadd.f32 %v12665_v51, %v12589_v47  ;;  %v21148_v36 = vpop.f32.mrf.mxu1  ;;  %v9472_v42 = vadd.f32 %v23157_v22, %v9359_v28  ;;  %v13717_v22 = vsel %vm712_vm2, %v23176_v49, 0 }
0x1e73   :  { %v21127_v54 = vpop.f32.mrf.mxu0  ;;  %v23569_v47 = vand.u32 4294901760, %v13717_v22 }
0x1e74   :  { %v23538_v56 = vadd.f32 %v12738_v37, %v12666_v52  ;;  %v9572_v7 = vadd.f32 %v23163_v29, %v9472_v42 }
0x1e75   :  { %v23575_v52 = vsub.f32 %v13717_v22, %v23569_v47 }
0x1e76   :  { %v9672_v1 = vadd.f32 %v23167_v16, %v9572_v7 }
0x1e78   :  { %v13059_v59 = vpop.f32.mrf.mxu1  ;;  %v9775_v40 = vadd.f32 %v23207_v3, %v9672_v1 }
0x1e79   :  { %v12827_v60 = vpop.f32.mrf.mxu0 }
0x1e7a   :  { %v21162_v38 = vpop.f32.mrf.mxu1  ;;  %v12909_v41 = vadd.f32 %v12908_v48, %v12827_v60  ;;  %v13827_v60 = vand.u32 4294901760, %v23575_v52 }
0x1e7b   :  { %v21141_v30 = vpop.f32.mrf.mxu0 }
0x1e80   :  { %v13209_v62 = vpop.f32.mrf.mxu1 }
0x1e81   :  { %v12984_v2 = vpop.f32.mrf.mxu0 }
0x1e82   :  { %v21176_v45 = vpop.f32.mrf.mxu1  ;;  %v12985_v34 = vadd.f32 %v12984_v2, %v12909_v41  ;;  %v13828_v2 = vsub.f32 %v23575_v52, %v13827_v60 }
0x1e83   :  { %v21155_v10 = vpop.f32.mrf.mxu0  ;;  %v13711_v45 = vsel %vm712_vm2, %v23150_v8, 0 }
0x1e84   :  { %v13060_v13 = vadd.f32 %v13059_v59, %v12985_v34  ;;  %v13786_v34 = vand.u32 4294901760, %v13711_v45 }
0x1e89   :  { %v13136_v11 = vpop.f32.mrf.mxu0 }
0x1e8a   :  { %v13137_v17 = vadd.f32 %v13136_v11, %v13060_v13  ;;  %v13829_v13 = vand.u32 4294901760, %v13828_v2 }
0x1e8b   :  { %v21169_v61 = vpop.f32.mrf.mxu0 }
0x1e8c   :  { %v13210_v18 = vadd.f32 %v13209_v62, %v13137_v17  ;;  %v13787_v17 = vsub.f32 %v13711_v45, %v13786_v34 }
0x1e8e   :  { %v13213_v19 = vmul.f32 0.35355338, %v13210_v18  ;;  %v13788_v18 = vand.u32 4294901760, %v13787_v17 }
0x1e90   :  { %v13214_v21 = vfloor.f32 %v13213_v19  ;;  %v13789_v19 = vsub.f32 %v13787_v17, %v13788_v18 }
0x1e92   :  { %v13215_v58 = vadd.f32 %v13214_v21, %v23220_v33  ;;  %v13790_v21 = vand.u32 4294901760, %v13789_v19 }
0x1e94   :  { %v13216_v53 = vsel %vm4406_vm4, %v13215_v58, -inf }
0x1e95   :  { %13217 = vmax.xlane.f32.xlu0 %v13216_v53 }
0x1eab   :  { %13229 = vrot.lane.b32.xlu0 %v23170_v50, %s22048_s27 }
0x1f1e   :  { %v13218_v5 = vpop.xlane.xlu0 %13217 }
0x1f1f   :  { %v13219_v4 = vsub.f32 %v13215_v58, %v13218_v5 }
0x1f21   :  { %v13220_v9 = vmul.f32 1.442695, %v13219_v4 }
0x1f22   :  { %v13230_v23 = vpop.permute.xlu0 %13229 }
0x1f23   :  { %21872 = vpow2.f32 %v13220_v9  ;;  %v13265_v14 = vand.u32 4294901760, %v13230_v23 }
0x1f25   :  { %v23544_v12 = vsub.f32 %v13230_v23, %v13265_v14  ;;  %21178 = vmatpush3.msra.mxu0 %v13265_v14 }
0x1f26   :  { %21179 = vmatprep.subr.mxu0 %v22038_v55 }
0x1f27   :  { %v13344_v24 = vand.u32 4294901760, %v23544_v12 }
0x1f29   :  { %v13345_v33 = vsub.f32 %v23544_v12, %v13344_v24 }
0x1f2b   :  { %v13346_v25 = vand.u32 4294901760, %v13345_v33 }
0x1f2d   :  { %21185 = vmatpush3.msra.mxu1 %v13346_v25 }
0x1f2e   :  { %21186 = vmatprep.subr.mxu1 %v22038_v55 }
0x1f30   :  { %v21873_v50 = vpop.eup %21872 }
0x1f31   :  { %v13222_v26 = vsel %vm4406_vm4, %v21873_v50, 0.0 }
0x1f32   :  { %13223 = vadd.xlane.f32.xlu1 %v13222_v26 }
0x1f43   :  { %13227 = vrot.lane.b32.xlu1 %v23172_v57, %s22048_s27  ;;  %v23565_v57 = vadd.f32 %v23209_v20, %v9775_v40 }
0x1f45   :  { %v13714_v16 = vsel %vm712_vm2, %v23565_v57, 0 }
0x1f46   :  { %v23577_v20 = vand.u32 4294901760, %v13714_v16 }
0x1f48   :  { %v23582_v38 = vsub.f32 %v13714_v16, %v23577_v20 }
0x1f4a   :  { %v13834_v41 = vand.u32 4294901760, %v23582_v38 }
0x1f4c   :  { %v13835_v11 = vsub.f32 %v23582_v38, %v13834_v41 }
0x1f4e   :  { %v13836_v61 = vand.u32 4294901760, %v13835_v11 }
0x1fbb   :  { %v13224_v37 = vpop.xlane.xlu1 %13223 }
0x1fbc   :  { %21874 = vrcp.f32 %v13224_v37 }
0x1fbf   :  { %v13228_v39 = vpop.permute.xlu1 %13227 }
0x1fc0   :  { %v13268_v43 = vand.u32 4294901760, %v13228_v39 }
0x1fc2   :  { %v13350_v44 = vsub.f32 %v13228_v39, %v13268_v43  ;;  %21180 = vmatpush3.msra.mxu0 %v13268_v43 }
0x1fc3   :  { %21191 = vmatprep.subr.mxu0 %v22038_v55 }
0x1fc4   :  { %v13351_v15 = vand.u32 4294901760, %v13350_v44 }
0x1fc6   :  { %v13352_v29 = vsub.f32 %v13350_v44, %v13351_v15 }
0x1fc8   :  { %v13353_v48 = vand.u32 4294901760, %v13352_v29 }
0x1fc9   :  { %v21875_v3 = vpop.eup %21874 }
0x1fca   :  { %v13226_v51 = vmul.f32 %v21875_v3, %v21873_v50  ;;  %21187 = vmatpush3.msra.mxu1 %v13353_v48 }
0x1fcb   :  { %21198 = vmatprep.subr.mxu1 %v22038_v55 }
0x1fcc   :  { %v13234_v36 = vsel %vm4406_vm4, %v13226_v51, 0 }
0x1fcd   :  { %v13303_v54 = vand.u32 4294901760, %v13234_v36 }
0x1fcf   :  { %v13304_v59 = vsub.f32 %v13234_v36, %v13303_v54  ;;  %21189 = vmatmul.mubr.f32.vlgmr.msra.gmra.mxu1 %v13303_v54 }
0x1fd0   :  { %21199 = vmatpush3.msra.mxu1 %v13265_v14  ;;  %21202 = vmatprep.mubr.msk.f32.mxu1 %vm22039_vm1, %v22038_v55 }
0x1fd1   :  { %21200 = vmatprep.subr.mxu1 %v22038_v55  ;;  %v13305_v30 = vand.u32 4294901760, %v13304_v59 }
0x1fd2   :  { %21201 = vmatpush3.msra.mxu1 %v13268_v43 }
0x1fd3   :  { %21212 = vmatprep.subr.mxu1 %v22038_v55  ;;  %21203 = vmatmul.mubr.f32.vlgmr.msra.gmra.mxu1 %v13305_v30  ;;  %v13306_v62 = vsub.f32 %v13304_v59, %v13305_v30 }
0x1fd4   :  { %21213 = vmatpush3.msra.mxu1 %v13265_v14  ;;  %21216 = vmatprep.mubr.msk.f32.mxu1 %vm22039_vm1, %v22038_v55 }
0x1fd5   :  { %21214 = vmatprep.subr.mxu1 %v22038_v55  ;;  %v13307_v10 = vand.u32 4294901760, %v13306_v62 }
0x1fd6   :  { %21215 = vmatpush3.msra.mxu1 %v13268_v43 }
0x1fd7   :  { %21226 = vmatprep.subr.mxu1 %v22038_v55  ;;  %21182 = vmatmul.mubr.f32.vlgmr.msra.gmra.mxu0 %v13307_v10 }
0x1fd8   :  { %21192 = vmatpush3.msra.mxu0 %v23544_v12  ;;  %21217 = vmatmul.mubr.f32.vlgmr.msra.gmra.mxu1 %v13303_v54 }
0x1fd9   :  { %21227 = vmatpush3.xpose.msra.mxu1 %v13829_v13  ;;  %21193 = vmatprep.subr.mxu0 %v22038_v55 }
0x1fda   :  { %21194 = vmatpush3.msra.mxu0 %v13350_v44  ;;  %21195 = vmatprep.mubr.msk.f32.mxu0 %vm22039_vm1, %v22038_v55 }
0x1fdb   :  { %21205 = vmatprep.subr.mxu0 %v22038_v55  ;;  %21228 = vmatprep.subr.mxu1 %v22038_v55 }
0x1fdc   :  { %21196 = vmatmul.mubr.f32.vlgmr.msra.gmra.mxu0 %v13304_v59  ;;  %21230 = vmatprep.mubr.msk.f32.mxu1 %vm22039_vm1, %v22038_v55  ;;  %v23657_v59 = vrot.slane %v23215_v32, %v4867_v46 }
0x1fdd   :  { %21206 = vmatpush3.msra.mxu0 %v13344_v24  ;;  %21229 = vmatpush3.xpose.msra.mxu1 %v13836_v61 }
0x1fde   :  { %21207 = vmatprep.subr.mxu0 %v22038_v55  ;;  %21209 = vmatprep.mubr.msk.f32.mxu0 %vm22039_vm1, %v22038_v55 }
0x1fdf   :  { %21208 = vmatpush3.msra.mxu0 %v13351_v15  ;;  %21240 = vmatprep.subr.mxu1 %v22038_v55 }
0x1fe0   :  { %21219 = vmatprep.subr.mxu0 %v22038_v55  ;;  %21231 = vmatmul.mubr.f32.vlgmr.msra.gmra.mxu1 %v13786_v34 }
0x1fe1   :  { %21210 = vmatmul.mubr.f32.vlgmr.msra.gmra.mxu0 %v13303_v54  ;;  %21241 = vmatpush3.xpose.msra.mxu1 %v23569_v47 }
0x1fe2   :  { %21220 = vmatpush3.xpose.msra.mxu0 %v23569_v47  ;;  %21242 = vmatprep.subr.mxu1 %v22038_v55 }
0x1fe3   :  { %21221 = vmatprep.subr.mxu0 %v22038_v55  ;;  %21223 = vmatprep.mubr.msk.f32.mxu0 %vm22039_vm1, %v22038_v55 }
0x1fe4   :  { %21244 = vmatprep.mubr.msk.f32.mxu1 %vm22039_vm1, %v22038_v55 }
0x1fe5   :  { %21243 = vmatpush3.xpose.msra.mxu1 %v23577_v20 }
0x1fe6   :  { %21222 = vmatpush3.xpose.msra.mxu0 %v23577_v20  ;;  %21254 = vmatprep.subr.mxu1 %v22038_v55 }
0x1fe7   :  { %21233 = vmatprep.subr.mxu0 %v22038_v55 }
0x1fe8   :  { %21245 = vmatmul.mubr.f32.vlgmr.msra.gmra.mxu1 %v13788_v18 }
0x1fe9   :  { %21224 = vmatmul.mubr.f32.vlgmr.msra.gmra.mxu0 %v13790_v21  ;;  %21255 = vmatpush3.xpose.msra.mxu1 %v23569_v47 }
0x1fea   :  { %21234 = vmatpush3.xpose.msra.mxu0 %v23575_v52  ;;  %21256 = vmatprep.subr.mxu1 %v22038_v55 }
0x1feb   :  { %21235 = vmatprep.subr.mxu0 %v22038_v55  ;;  %21237 = vmatprep.mubr.msk.f32.mxu0 %vm22039_vm1, %v22038_v55 }
0x1fec   :  { %21258 = vmatprep.mubr.msk.f32.mxu1 %vm22039_vm1, %v22038_v55 }
0x1fed   :  { %21257 = vmatpush3.xpose.msra.mxu1 %v23577_v20 }
0x1fee   :  { %21236 = vmatpush3.xpose.msra.mxu0 %v23582_v38  ;;  %21268 = vmatprep.subr.mxu1 %v22038_v55 }
0x1fef   :  { %21247 = vmatprep.subr.mxu0 %v22038_v55 }
0x1ff0   :  { %21259 = vmatmul.mubr.f32.vlgmr.msra.gmra.mxu1 %v13786_v34 }
0x1ff1   :  { %21238 = vmatmul.mubr.f32.vlgmr.msra.gmra.mxu0 %v13787_v17  ;;  %21272 = vmatprep.mubr.msk.f32.mxu1 %vm22039_vm1, %v22038_v55 }
0x1ff2   :  { %21248 = vmatpush3.xpose.msra.mxu0 %v13827_v60  ;;  %21251 = vmatprep.mubr.msk.f32.mxu0 %vm22039_vm1, %v22038_v55 }
0x1ff3   :  { %21249 = vmatprep.subr.mxu0 %v22038_v55 }
0x1ff6   :  { %21250 = vmatpush3.xpose.msra.mxu0 %v13834_v41 }
0x1ff7   :  { %21261 = vmatprep.subr.mxu0 %v22038_v55 }
0x1ff9   :  { %21252 = vmatmul.mubr.f32.vlgmr.msra.gmra.mxu0 %v13786_v34 }
0x1ffa   :  { %21265 = vmatprep.mubr.msk.f32.mxu0 %vm22039_vm1, %v22038_v55 }
0x208f   :  { %v13390_v58 = vpop.f32.mrf.mxu1 }
0x2091   :  { %v21190_v53 = vpop.f32.mrf.mxu1 }
0x2093   :  { %v13541_v5 = vpop.f32.mrf.mxu1 }
0x2095   :  { %v21204_v4 = vpop.f32.mrf.mxu1 }
0x2097   :  { %v13309_v9 = vpop.f32.mrf.mxu0 }
0x2098   :  { %v13391_v23 = vadd.f32 %v13390_v58, %v13309_v9  ;;  %v13691_v14 = vpop.f32.mrf.mxu1 }
0x2099   :  { %v21183_v12 = vpop.f32.mrf.mxu0 }
0x209a   :  { %v21218_v24 = vpop.f32.mrf.mxu1 }
0x209c   :  { %v13466_v33 = vpop.f32.mrf.mxu0 }
0x209d   :  { %v13467_v25 = vadd.f32 %v13466_v33, %v13391_v23 }
0x209e   :  { %v21197_v50 = vpop.f32.mrf.mxu0 }
0x209f   :  { %v13542_v26 = vadd.f32 %v13541_v5, %v13467_v25 }
0x20a0   :  { %v13873_v6 = vpop.f32.mrf.mxu1 }
0x20a1   :  { %v13618_v28 = vpop.f32.mrf.mxu0 }
0x20a2   :  { %v13619_v42 = vadd.f32 %v13618_v28, %v13542_v26  ;;  %v21232_v7 = vpop.f32.mrf.mxu1 }
0x20a3   :  { %v21211_v37 = vpop.f32.mrf.mxu0 }
0x20a4   :  { %v23652_v1 = vadd.f32 %v13691_v14, %v13619_v42 }
0x20a8   :  { %v14024_v39 = vpop.f32.mrf.mxu1 }
0x20a9   :  { %v13792_v40 = vpop.f32.mrf.mxu0 }
0x20aa   :  { %v21246_v43 = vpop.f32.mrf.mxu1  ;;  %v13874_v29 = vadd.f32 %v13873_v6, %v13792_v40 }
0x20ab   :  { %v21225_v44 = vpop.f32.mrf.mxu0 }
0x20b0   :  { %v14174_v15 = vpop.f32.mrf.mxu1 }
0x20b1   :  { %v13949_v22 = vpop.f32.mrf.mxu0 }
0x20b2   :  { %v21260_v47 = vpop.f32.mrf.mxu1  ;;  %v13950_v16 = vadd.f32 %v13949_v22, %v13874_v29 }
0x20b3   :  { %v21239_v48 = vpop.f32.mrf.mxu0 }
0x20b4   :  { %v14025_v3 = vadd.f32 %v14024_v39, %v13950_v16 }
0x20b9   :  { %v14101_v51 = vpop.f32.mrf.mxu0 }
0x20ba   :  { %v14102_v52 = vadd.f32 %v14101_v51, %v14025_v3 }
0x20bb   :  { %v21253_v20 = vpop.f32.mrf.mxu0 }
0x20bc   :  { %v14175_v36 = vadd.f32 %v14174_v15, %v14102_v52 }
0x20be   :  { %v14178_v54 = vmul.f32 0.35355338, %v14175_v36 }
0x20c0   :  { %v14179_v60 = vfloor.f32 %v14178_v54 }
0x20c2   :  { %v14184_v38 = vadd.f32 %v23657_v59, %v14179_v60 }
0x20c4   :  { %v14185_v30 = vsel %vm4406_vm4, %v14184_v38, -inf }
0x20c5   :  { %14186 = vmax.xlane.f32.xlu0 %v14185_v30 }
0x20db   :  { %14198 = vrot.lane.b32.xlu0 %v23176_v49, %s22041_s30 }
0x20df   :  { %14668 = vrot.lane.b32.xlu0 %v23176_v49, %s22043_s4 }
0x20e3   :  { %14664 = vrot.lane.b32.xlu0 %v23150_v8, %s22043_s4 }
0x214e   :  { %v14187_v62 = vpop.xlane.xlu0 %14186 }
0x214f   :  { %v14188_v31 = vsub.f32 %v14184_v38, %v14187_v62 }
0x2151   :  { %v14189_v2 = vmul.f32 1.442695, %v14188_v31 }
0x2152   :  { %v14199_v46 = vpop.permute.xlu0 %14198 }
0x2153   :  { %21876 = vpow2.f32 %v14189_v2  ;;  %v14234_v32 = vand.u32 4294901760, %v14199_v46 }
0x2155   :  { %v23667_v41 = vsub.f32 %v14199_v46, %v14234_v32  ;;  %21262 = vmatpush3.msra.mxu0 %v14234_v32 }
0x2156   :  { %21263 = vmatprep.subr.mxu0 %v22038_v55  ;;  %v14669_v19 = vpop.permute.xlu0 %14668 }
0x2157   :  { %v14313_v45 = vand.u32 4294901760, %v23667_v41  ;;  %v14674_v58 = vsel %vm712_vm2, %v14669_v19, 0 }
0x2158   :  { %v23682_v9 = vand.u32 4294901760, %v14674_v58 }
0x2159   :  { %v14314_v10 = vsub.f32 %v23667_v41, %v14313_v45 }
0x215a   :  { %v23686_v33 = vsub.f32 %v14674_v58, %v23682_v9  ;;  %v14665_v7 = vpop.permute.xlu0 %14664 }
0x215b   :  { %v14315_v34 = vand.u32 4294901760, %v14314_v10  ;;  %v14670_v44 = vsel %vm712_vm2, %v14665_v7, 0 }
0x215c   :  { %v14784_v6 = vand.u32 4294901760, %v23686_v33  ;;  %v14743_v29 = vand.u32 4294901760, %v14670_v44 }
0x215d   :  { %21269 = vmatpush3.msra.mxu1 %v14315_v34 }
0x215e   :  { %21270 = vmatprep.subr.mxu1 %v22038_v55  ;;  %v14785_v39 = vsub.f32 %v23686_v33, %v14784_v6  ;;  %v14744_v48 = vsub.f32 %v14670_v44, %v14743_v29 }
0x2160   :  { %v21877_v13 = vpop.eup %21876  ;;  %v14786_v22 = vand.u32 4294901760, %v14785_v39  ;;  %v14745_v3 = vand.u32 4294901760, %v14744_v48 }
0x2161   :  { %v14191_v11 = vsel %vm4406_vm4, %v21877_v13, 0.0 }
0x2162   :  { %14192 = vadd.xlane.f32.xlu1 %v14191_v11  ;;  %v14746_v51 = vsub.f32 %v14744_v48, %v14745_v3 }
0x2164   :  { %v14747_v52 = vand.u32 4294901760, %v14746_v51 }
0x2173   :  { %14196 = vrot.lane.b32.xlu1 %v23565_v57, %s22041_s30 }
0x2177   :  { %14666 = vrot.lane.b32.xlu1 %v23565_v57, %s22043_s4  ;;  %s22053_s4 = smov [#allocation11]  }
0x21eb   :  { %v14193_v17 = vpop.xlane.xlu1 %14192 }
0x21ec   :  { %21878 = vrcp.f32 %v14193_v17 }
0x21ef   :  { %v14197_v61 = vpop.permute.xlu1 %14196 }
0x21f0   :  { %v14237_v18 = vand.u32 4294901760, %v14197_v61 }
0x21f2   :  { %v14319_v21 = vsub.f32 %v14197_v61, %v14237_v18  ;;  %21264 = vmatpush3.msra.mxu0 %v14237_v18 }
0x21f3   :  { %21275 = vmatprep.subr.mxu0 %v22038_v55  ;;  %v14667_v5 = vpop.permute.xlu1 %14666 }
0x21f4   :  { %v14320_v53 = vand.u32 4294901760, %v14319_v21  ;;  %v14672_v14 = vsel %vm712_vm2, %v14667_v5, 0 }
0x21f5   :  { %v23688_v25 = vand.u32 4294901760, %v14672_v14 }
0x21f6   :  { %v14321_v4 = vsub.f32 %v14319_v21, %v14320_v53 }
0x21f7   :  { %v23694_v28 = vsub.f32 %v14672_v14, %v23688_v25 }
0x21f8   :  { %v14322_v23 = vand.u32 4294901760, %v14321_v4 }
0x21f9   :  { %v21879_v12 = vpop.eup %21878  ;;  %v14791_v40 = vand.u32 4294901760, %v23694_v28 }
0x21fa   :  { %v14195_v24 = vmul.f32 %v21879_v12, %v21877_v13  ;;  %21271 = vmatpush3.msra.mxu1 %v14322_v23 }
0x21fb   :  { %21282 = vmatprep.subr.mxu1 %v22038_v55  ;;  %v14792_v47 = vsub.f32 %v23694_v28, %v14791_v40 }
0x21fc   :  { %v14203_v50 = vsel %vm4406_vm4, %v14195_v24, 0 }
0x21fd   :  { %v14272_v26 = vand.u32 4294901760, %v14203_v50  ;;  %v14793_v16 = vand.u32 4294901760, %v14792_v47 }
0x21ff   :  { %v14273_v42 = vsub.f32 %v14203_v50, %v14272_v26  ;;  %21273 = vmatmul.mubr.f32.vlgmr.msra.gmra.mxu1 %v14272_v26 }
0x2200   :  { %21283 = vmatpush3.msra.mxu1 %v14234_v32  ;;  %21286 = vmatprep.mubr.msk.f32.mxu1 %vm22039_vm1, %v22038_v55 }
0x2201   :  { %21284 = vmatprep.subr.mxu1 %v22038_v55  ;;  %v14274_v37 = vand.u32 4294901760, %v14273_v42 }
0x2202   :  { %21285 = vmatpush3.msra.mxu1 %v14237_v18 }
0x2203   :  { %21296 = vmatprep.subr.mxu1 %v22038_v55  ;;  %21287 = vmatmul.mubr.f32.vlgmr.msra.gmra.mxu1 %v14274_v37  ;;  %v14275_v43 = vsub.f32 %v14273_v42, %v14274_v37 }
0x2204   :  { %21297 = vmatpush3.msra.mxu1 %v14234_v32  ;;  %21300 = vmatprep.mubr.msk.f32.mxu1 %vm22039_vm1, %v22038_v55 }
0x2205   :  { %21298 = vmatprep.subr.mxu1 %v22038_v55  ;;  %v14276_v15 = vand.u32 4294901760, %v14275_v43 }
0x2206   :  { %21299 = vmatpush3.msra.mxu1 %v14237_v18 }
0x2207   :  { %21310 = vmatprep.subr.mxu1 %v22038_v55  ;;  %21266 = vmatmul.mubr.f32.vlgmr.msra.gmra.mxu0 %v14276_v15 }
0x2208   :  { %21276 = vmatpush3.msra.mxu0 %v23667_v41  ;;  %21301 = vmatmul.mubr.f32.vlgmr.msra.gmra.mxu1 %v14272_v26 }
0x2209   :  { %21311 = vmatpush3.xpose.msra.mxu1 %v14786_v22  ;;  %21277 = vmatprep.subr.mxu0 %v22038_v55 }
0x220a   :  { %21278 = vmatpush3.msra.mxu0 %v14319_v21  ;;  %21279 = vmatprep.mubr.msk.f32.mxu0 %vm22039_vm1, %v22038_v55 }
0x220b   :  { %21289 = vmatprep.subr.mxu0 %v22038_v55  ;;  %21312 = vmatprep.subr.mxu1 %v22038_v55 }
0x220c   :  { %21280 = vmatmul.mubr.f32.vlgmr.msra.gmra.mxu0 %v14273_v42  ;;  %21314 = vmatprep.mubr.msk.f32.mxu1 %vm22039_vm1, %v22038_v55 }
0x220d   :  { %21290 = vmatpush3.msra.mxu0 %v14313_v45  ;;  %21313 = vmatpush3.xpose.msra.mxu1 %v14793_v16 }
0x220e   :  { %21291 = vmatprep.subr.mxu0 %v22038_v55  ;;  %21293 = vmatprep.mubr.msk.f32.mxu0 %vm22039_vm1, %v22038_v55 }
0x220f   :  { %21292 = vmatpush3.msra.mxu0 %v14320_v53  ;;  %21324 = vmatprep.subr.mxu1 %v22038_v55 }
0x2210   :  { %21303 = vmatprep.subr.mxu0 %v22038_v55  ;;  %21315 = vmatmul.mubr.f32.vlgmr.msra.gmra.mxu1 %v14743_v29 }
0x2211   :  { %21294 = vmatmul.mubr.f32.vlgmr.msra.gmra.mxu0 %v14272_v26  ;;  %21325 = vmatpush3.xpose.msra.mxu1 %v23682_v9 }
0x2212   :  { %21304 = vmatpush3.xpose.msra.mxu0 %v23682_v9  ;;  %21326 = vmatprep.subr.mxu1 %v22038_v55 }
0x2213   :  { %21305 = vmatprep.subr.mxu0 %v22038_v55  ;;  %21307 = vmatprep.mubr.msk.f32.mxu0 %vm22039_vm1, %v22038_v55 }
0x2214   :  { %21328 = vmatprep.mubr.msk.f32.mxu1 %vm22039_vm1, %v22038_v55 }
0x2215   :  { %21327 = vmatpush3.xpose.msra.mxu1 %v23688_v25 }
0x2216   :  { %21306 = vmatpush3.xpose.msra.mxu0 %v23688_v25  ;;  %21338 = vmatprep.subr.mxu1 %v22038_v55 }
0x2217   :  { %21317 = vmatprep.subr.mxu0 %v22038_v55 }
0x2218   :  { %21329 = vmatmul.mubr.f32.vlgmr.msra.gmra.mxu1 %v14745_v3 }
0x2219   :  { %21308 = vmatmul.mubr.f32.vlgmr.msra.gmra.mxu0 %v14747_v52  ;;  %21339 = vmatpush3.xpose.msra.mxu1 %v23682_v9 }
0x221a   :  { %21318 = vmatpush3.xpose.msra.mxu0 %v23686_v33  ;;  %21340 = vmatprep.subr.mxu1 %v22038_v55 }
0x221b   :  { %21319 = vmatprep.subr.mxu0 %v22038_v55  ;;  %21321 = vmatprep.mubr.msk.f32.mxu0 %vm22039_vm1, %v22038_v55 }
0x221c   :  { %21342 = vmatprep.mubr.msk.f32.mxu1 %vm22039_vm1, %v22038_v55 }
0x221d   :  { %21341 = vmatpush3.xpose.msra.mxu1 %v23688_v25 }
0x221e   :  { %21320 = vmatpush3.xpose.msra.mxu0 %v23694_v28  ;;  %21352 = vmatprep.subr.mxu1 %v22038_v55 }
0x221f   :  { %21331 = vmatprep.subr.mxu0 %v22038_v55 }
0x2220   :  { %21343 = vmatmul.mubr.f32.vlgmr.msra.gmra.mxu1 %v14743_v29 }
0x2221   :  { %21322 = vmatmul.mubr.f32.vlgmr.msra.gmra.mxu0 %v14744_v48  ;;  %21356 = vmatprep.mubr.msk.f32.mxu1 %vm22039_vm1, %v22038_v55 }
0x2222   :  { %21332 = vmatpush3.xpose.msra.mxu0 %v14784_v6  ;;  %21335 = vmatprep.mubr.msk.f32.mxu0 %vm22039_vm1, %v22038_v55 }
0x2223   :  { %21333 = vmatprep.subr.mxu0 %v22038_v55 }
0x2226   :  { %21334 = vmatpush3.xpose.msra.mxu0 %v14791_v40 }
0x2227   :  { %21345 = vmatprep.subr.mxu0 %v22038_v55 }
0x2229   :  { %21336 = vmatmul.mubr.f32.vlgmr.msra.gmra.mxu0 %v14743_v29 }
0x222a   :  { %21349 = vmatprep.mubr.msk.f32.mxu0 %vm22039_vm1, %v22038_v55 }
0x22bf   :  { %v14359_v20 = vpop.f32.mrf.mxu1 }
0x22c1   :  { %v21274_v36 = vpop.f32.mrf.mxu1 }
0x22c3   :  { %v14510_v54 = vpop.f32.mrf.mxu1 }
0x22c5   :  { %v21288_v60 = vpop.f32.mrf.mxu1 }
0x22c7   :  { %v14278_v38 = vpop.f32.mrf.mxu0 }
0x22c8   :  { %v14360_v30 = vadd.f32 %v14359_v20, %v14278_v38  ;;  %v14660_v62 = vpop.f32.mrf.mxu1 }
0x22c9   :  { %v21267_v31 = vpop.f32.mrf.mxu0 }
0x22ca   :  { %v21302_v2 = vpop.f32.mrf.mxu1 }
0x22cc   :  { %v14435_v46 = vpop.f32.mrf.mxu0 }
0x22cd   :  { %v14436_v32 = vadd.f32 %v14435_v46, %v14360_v30 }
0x22ce   :  { %v21281_v41 = vpop.f32.mrf.mxu0 }
0x22cf   :  { %v14511_v45 = vadd.f32 %v14510_v54, %v14436_v32 }
0x22d0   :  { %v14830_v10 = vpop.f32.mrf.mxu1 }
0x22d1   :  { %v14587_v34 = vpop.f32.mrf.mxu0 }
0x22d2   :  { %v14588_v13 = vadd.f32 %v14587_v34, %v14511_v45  ;;  %v21316_v11 = vpop.f32.mrf.mxu1 }
0x22d3   :  { %v21295_v17 = vpop.f32.mrf.mxu0 }
0x22d4   :  { %v23763_v61 = vadd.f32 %v14660_v62, %v14588_v13 }
0x22d8   :  { %v14981_v18 = vpop.f32.mrf.mxu1 }
0x22d9   :  { %v14749_v19 = vpop.f32.mrf.mxu0 }
0x22da   :  { %v21330_v21 = vpop.f32.mrf.mxu1  ;;  %v14831_v4 = vadd.f32 %v14830_v10, %v14749_v19 }
0x22db   :  { %v21309_v58 = vpop.f32.mrf.mxu0 }
0x22e0   :  { %v15131_v53 = vpop.f32.mrf.mxu1 }
0x22e1   :  { %v14906_v5 = vpop.f32.mrf.mxu0 }
0x22e2   :  { %v21344_v9 = vpop.f32.mrf.mxu1  ;;  %v14907_v14 = vadd.f32 %v14906_v5, %v14831_v4 }
0x22e3   :  { %v21323_v23 = vpop.f32.mrf.mxu0 }
0x22e4   :  { %v14982_v12 = vadd.f32 %v14981_v18, %v14907_v14 }
0x22e9   :  { %v15058_v24 = vpop.f32.mrf.mxu0 }
0x22ea   :  { %v15059_v33 = vadd.f32 %v15058_v24, %v14982_v12 }
0x22eb   :  { %v21337_v25 = vpop.f32.mrf.mxu0 }
0x22ec   :  { %v15132_v50 = vadd.f32 %v15131_v53, %v15059_v33 }
0x22ee   :  { %v15135_v26 = vmul.f32 0.35355338, %v15132_v50 }
0x22f0   :  { %v15136_v6 = vfloor.f32 %v15135_v26 }
0x22f2   :  { %v15137_v28 = vadd.f32 %v15136_v6, %v23657_v59 }
0x22f4   :  { %v15138_v42 = vsel %vm4406_vm4, %v15137_v28, -inf }
0x22f5   :  { %15139 = vmax.xlane.f32.xlu1 %v15138_v42 }
0x2306   :  { %15149 = vrot.lane.b32.xlu1 %v23565_v57, %s22042_s12 }
0x230a   :  { %15621 = vrot.lane.b32.xlu1 %v23176_v49, %s22046_s10 }
0x230e   :  { %15617 = vrot.lane.b32.xlu1 %v23150_v8, %s22046_s10 }
0x237e   :  { %v15140_v7 = vpop.xlane.xlu1 %15139 }
0x237f   :  { %v15141_v37 = vsub.f32 %v15137_v28, %v15140_v7 }
0x2381   :  { %v15142_v39 = vmul.f32 1.442695, %v15141_v37 }
0x2382   :  { %v15150_v44 = vpop.permute.xlu1 %15149 }
0x2383   :  { %21880 = vpow2.f32 %v15142_v39  ;;  %v15190_v15 = vand.u32 4294901760, %v15150_v44 }
0x2385   :  { %v23778_v29 = vsub.f32 %v15150_v44, %v15190_v15 }
0x2386   :  { %v15622_v16 = vpop.permute.xlu1 %15621 }
0x2387   :  { %v15273_v3 = vand.u32 4294901760, %v23778_v29  ;;  %v15627_v52 = vsel %vm712_vm2, %v15622_v16, 0 }
0x2388   :  { %v23787_v38 = vand.u32 4294901760, %v15627_v52 }
0x2389   :  { %v15274_v54 = vsub.f32 %v23778_v29, %v15273_v3 }
0x238a   :  { %v23791_v32 = vsub.f32 %v15627_v52, %v23787_v38  ;;  %v15618_v17 = vpop.permute.xlu1 %15617 }
0x238b   :  { %v15275_v2 = vand.u32 4294901760, %v15274_v54  ;;  %v15623_v53 = vsel %vm712_vm2, %v15618_v17, 0 }
0x238c   :  { %v15737_v34 = vand.u32 4294901760, %v23791_v32  ;;  %v15696_v9 = vand.u32 4294901760, %v15623_v53 }
0x238e   :  { %v15738_v19 = vsub.f32 %v23791_v32, %v15737_v34  ;;  %v15697_v14 = vsub.f32 %v15623_v53, %v15696_v9 }
0x2390   :  { %v21881_v40 = vpop.eup %21880  ;;  %v15739_v4 = vand.u32 4294901760, %v15738_v19  ;;  %v15698_v24 = vand.u32 4294901760, %v15697_v14 }
0x2391   :  { %v15144_v43 = vsel %vm4406_vm4, %v21881_v40, 0.0 }
0x2392   :  { %15145 = vadd.xlane.f32.xlu0 %v15144_v43  ;;  %v15699_v33 = vsub.f32 %v15697_v14, %v15698_v24 }
0x2394   :  { %v15700_v25 = vand.u32 4294901760, %v15699_v33 }
0x23a8   :  { %15151 = vrot.lane.b32.xlu0 %v23176_v49, %s22042_s12 }
0x23ac   :  { %15619 = vrot.lane.b32.xlu0 %v23565_v57, %s22046_s10 }
0x241b   :  { %v15146_v22 = vpop.xlane.xlu0 %15145 }
0x241c   :  { %21882 = vrcp.f32 %v15146_v22 }
0x241f   :  { %v15152_v47 = vpop.permute.xlu0 %15151 }
0x2420   :  { %v15187_v48 = vand.u32 4294901760, %v15152_v47 }
0x2422   :  { %v15265_v51 = vsub.f32 %v15152_v47, %v15187_v48  ;;  %21346 = vmatpush3.msra.mxu0 %v15187_v48 }
0x2423   :  { %21347 = vmatprep.subr.mxu0 %v22038_v55  ;;  %v15620_v36 = vpop.permute.xlu0 %15619 }
0x2424   :  { %v15266_v20 = vand.u32 4294901760, %v15265_v51  ;;  %21348 = vmatpush3.msra.mxu0 %v15190_v15  ;;  %v15625_v62 = vsel %vm712_vm2, %v15620_v36, 0 }
0x2425   :  { %21359 = vmatprep.subr.mxu0 %v22038_v55  ;;  %v23793_v41 = vand.u32 4294901760, %v15625_v62 }
0x2426   :  { %v15267_v60 = vsub.f32 %v15265_v51, %v15266_v20 }
0x2427   :  { %v23800_v13 = vsub.f32 %v15625_v62, %v23793_v41 }
0x2428   :  { %v15268_v30 = vand.u32 4294901760, %v15267_v60 }
0x2429   :  { %v21883_v31 = vpop.eup %21882  ;;  %v15744_v21 = vand.u32 4294901760, %v23800_v13 }
0x242a   :  { %v15148_v46 = vmul.f32 %v21883_v31, %v21881_v40  ;;  %21353 = vmatpush3.msra.mxu1 %v15268_v30 }
0x242b   :  { %21354 = vmatprep.subr.mxu1 %v22038_v55  ;;  %v15745_v23 = vsub.f32 %v23800_v13, %v15744_v21 }
0x242c   :  { %21355 = vmatpush3.msra.mxu1 %v15275_v2  ;;  %v15156_v45 = vsel %vm4406_vm4, %v15148_v46, 0 }
0x242d   :  { %21366 = vmatprep.subr.mxu1 %v22038_v55  ;;  %v15225_v10 = vand.u32 4294901760, %v15156_v45  ;;  %v15746_v12 = vand.u32 4294901760, %v15745_v23 }
0x242f   :  { %v15226_v11 = vsub.f32 %v15156_v45, %v15225_v10  ;;  %21357 = vmatmul.mubr.f32.vlgmr.msra.gmra.mxu1 %v15225_v10 }
0x2430   :  { %21367 = vmatpush3.msra.mxu1 %v15187_v48  ;;  %21370 = vmatprep.mubr.msk.f32.mxu1 %vm22039_vm1, %v22038_v55 }
0x2431   :  { %21368 = vmatprep.subr.mxu1 %v22038_v55  ;;  %v15227_v18 = vand.u32 4294901760, %v15226_v11 }
0x2432   :  { %21369 = vmatpush3.msra.mxu1 %v15190_v15 }
0x2433   :  { %21380 = vmatprep.subr.mxu1 %v22038_v55  ;;  %21371 = vmatmul.mubr.f32.vlgmr.msra.gmra.mxu1 %v15227_v18  ;;  %v15228_v58 = vsub.f32 %v15226_v11, %v15227_v18 }
0x2434   :  { %21381 = vmatpush3.msra.mxu1 %v15187_v48  ;;  %21384 = vmatprep.mubr.msk.f32.mxu1 %vm22039_vm1, %v22038_v55 }
0x2435   :  { %21382 = vmatprep.subr.mxu1 %v22038_v55  ;;  %v15229_v5 = vand.u32 4294901760, %v15228_v58 }
0x2436   :  { %21383 = vmatpush3.msra.mxu1 %v15190_v15 }
0x2437   :  { %21394 = vmatprep.subr.mxu1 %v22038_v55  ;;  %21350 = vmatmul.mubr.f32.vlgmr.msra.gmra.mxu0 %v15229_v5 }
0x2438   :  { %21360 = vmatpush3.msra.mxu0 %v15265_v51  ;;  %21385 = vmatmul.mubr.f32.vlgmr.msra.gmra.mxu1 %v15225_v10 }
0x2439   :  { %21395 = vmatpush3.xpose.msra.mxu1 %v15739_v4  ;;  %21361 = vmatprep.subr.mxu0 %v22038_v55 }
0x243a   :  { %21362 = vmatpush3.msra.mxu0 %v23778_v29  ;;  %21363 = vmatprep.mubr.msk.f32.mxu0 %vm22039_vm1, %v22038_v55 }
0x243b   :  { %21373 = vmatprep.subr.mxu0 %v22038_v55  ;;  %21396 = vmatprep.subr.mxu1 %v22038_v55 }
0x243c   :  { %21364 = vmatmul.mubr.f32.vlgmr.msra.gmra.mxu0 %v15226_v11  ;;  %21398 = vmatprep.mubr.msk.f32.mxu1 %vm22039_vm1, %v22038_v55 }
0x243d   :  { %21374 = vmatpush3.msra.mxu0 %v15266_v20  ;;  %21397 = vmatpush3.xpose.msra.mxu1 %v15746_v12 }
0x243e   :  { %21375 = vmatprep.subr.mxu0 %v22038_v55  ;;  %21377 = vmatprep.mubr.msk.f32.mxu0 %vm22039_vm1, %v22038_v55 }
0x243f   :  { %21376 = vmatpush3.msra.mxu0 %v15273_v3  ;;  %21408 = vmatprep.subr.mxu1 %v22038_v55 }
0x2440   :  { %21387 = vmatprep.subr.mxu0 %v22038_v55  ;;  %21399 = vmatmul.mubr.f32.vlgmr.msra.gmra.mxu1 %v15696_v9 }
0x2441   :  { %21378 = vmatmul.mubr.f32.vlgmr.msra.gmra.mxu0 %v15225_v10  ;;  %21409 = vmatpush3.xpose.msra.mxu1 %v23787_v38 }
0x2442   :  { %21388 = vmatpush3.xpose.msra.mxu0 %v23787_v38  ;;  %21410 = vmatprep.subr.mxu1 %v22038_v55 }
0x2443   :  { %21389 = vmatprep.subr.mxu0 %v22038_v55  ;;  %21391 = vmatprep.mubr.msk.f32.mxu0 %vm22039_vm1, %v22038_v55 }
0x2444   :  { %21412 = vmatprep.mubr.msk.f32.mxu1 %vm22039_vm1, %v22038_v55 }
0x2445   :  { %21411 = vmatpush3.xpose.msra.mxu1 %v23793_v41 }
0x2446   :  { %21390 = vmatpush3.xpose.msra.mxu0 %v23793_v41  ;;  %21422 = vmatprep.subr.mxu1 %v22038_v55 }
0x2447   :  { %21401 = vmatprep.subr.mxu0 %v22038_v55 }
0x2448   :  { %21413 = vmatmul.mubr.f32.vlgmr.msra.gmra.mxu1 %v15698_v24 }
0x2449   :  { %21392 = vmatmul.mubr.f32.vlgmr.msra.gmra.mxu0 %v15700_v25  ;;  %21423 = vmatpush3.xpose.msra.mxu1 %v23787_v38 }
0x244a   :  { %21402 = vmatpush3.xpose.msra.mxu0 %v23791_v32  ;;  %21424 = vmatprep.subr.mxu1 %v22038_v55 }
0x244b   :  { %21403 = vmatprep.subr.mxu0 %v22038_v55  ;;  %21405 = vmatprep.mubr.msk.f32.mxu0 %vm22039_vm1, %v22038_v55 }
0x244c   :  { %21426 = vmatprep.mubr.msk.f32.mxu1 %vm22039_vm1, %v22038_v55 }
0x244d   :  { %21425 = vmatpush3.xpose.msra.mxu1 %v23793_v41 }
0x244e   :  { %21404 = vmatpush3.xpose.msra.mxu0 %v23800_v13  ;;  %21436 = vmatprep.subr.mxu1 %v22038_v55 }
0x244f   :  { %21415 = vmatprep.subr.mxu0 %v22038_v55 }
0x2450   :  { %21427 = vmatmul.mubr.f32.vlgmr.msra.gmra.mxu1 %v15696_v9 }
0x2451   :  { %21406 = vmatmul.mubr.f32.vlgmr.msra.gmra.mxu0 %v15697_v14  ;;  %21440 = vmatprep.mubr.msk.f32.mxu1 %vm22039_vm1, %v22038_v55 }
0x2452   :  { %21416 = vmatpush3.xpose.msra.mxu0 %v15737_v34  ;;  %21419 = vmatprep.mubr.msk.f32.mxu0 %vm22039_vm1, %v22038_v55 }
0x2453   :  { %21417 = vmatprep.subr.mxu0 %v22038_v55 }
0x2456   :  { %21418 = vmatpush3.xpose.msra.mxu0 %v15744_v21 }
0x2457   :  { %21429 = vmatprep.subr.mxu0 %v22038_v55 }
0x2459   :  { %21420 = vmatmul.mubr.f32.vlgmr.msra.gmra.mxu0 %v15696_v9 }
0x245a   :  { %21433 = vmatprep.mubr.msk.f32.mxu0 %vm22039_vm1, %v22038_v55 }
0x24ef   :  { %v15312_v50 = vpop.f32.mrf.mxu1 }
0x24f1   :  { %v21358_v26 = vpop.f32.mrf.mxu1 }
0x24f3   :  { %v15463_v6 = vpop.f32.mrf.mxu1 }
0x24f5   :  { %v21372_v28 = vpop.f32.mrf.mxu1 }
0x24f7   :  { %v15231_v42 = vpop.f32.mrf.mxu0 }
0x24f8   :  { %v15313_v7 = vadd.f32 %v15312_v50, %v15231_v42  ;;  %v15613_v37 = vpop.f32.mrf.mxu1 }
0x24f9   :  { %v21351_v39 = vpop.f32.mrf.mxu0 }
0x24fa   :  { %v21386_v40 = vpop.f32.mrf.mxu1 }
0x24fc   :  { %v15388_v43 = vpop.f32.mrf.mxu0 }
0x24fd   :  { %v15389_v44 = vadd.f32 %v15388_v43, %v15313_v7 }
0x24fe   :  { %v21365_v15 = vpop.f32.mrf.mxu0 }
0x24ff   :  { %v15464_v22 = vadd.f32 %v15463_v6, %v15389_v44 }
0x2500   :  { %v15783_v29 = vpop.f32.mrf.mxu1 }
0x2501   :  { %v15540_v47 = vpop.f32.mrf.mxu0 }
0x2502   :  { %v15541_v48 = vadd.f32 %v15540_v47, %v15464_v22  ;;  %v21400_v16 = vpop.f32.mrf.mxu1 }
0x2503   :  { %v21379_v3 = vpop.f32.mrf.mxu0 }
0x2504   :  { %v23869_v51 = vadd.f32 %v15613_v37, %v15541_v48 }
0x2508   :  { %v15934_v52 = vpop.f32.mrf.mxu1 }
0x2509   :  { %v15702_v20 = vpop.f32.mrf.mxu0 }
0x250a   :  { %v21414_v36 = vpop.f32.mrf.mxu1  ;;  %v15784_v30 = vadd.f32 %v15783_v29, %v15702_v20 }
0x250b   :  { %v21393_v54 = vpop.f32.mrf.mxu0 }
0x2510   :  { %v16084_v60 = vpop.f32.mrf.mxu1 }
0x2511   :  { %v15859_v38 = vpop.f32.mrf.mxu0 }
0x2512   :  { %v21428_v62 = vpop.f32.mrf.mxu1  ;;  %v15860_v2 = vadd.f32 %v15859_v38, %v15784_v30 }
0x2513   :  { %v21407_v31 = vpop.f32.mrf.mxu0 }
0x2514   :  { %v15935_v46 = vadd.f32 %v15934_v52, %v15860_v2 }
0x2519   :  { %v16011_v32 = vpop.f32.mrf.mxu0 }
0x251a   :  { %v16012_v41 = vadd.f32 %v16011_v32, %v15935_v46 }
0x251b   :  { %v21421_v45 = vpop.f32.mrf.mxu0 }
0x251c   :  { %v16085_v10 = vadd.f32 %v16084_v60, %v16012_v41 }
0x251e   :  { %v16088_v34 = vmul.f32 0.35355338, %v16085_v10 }
0x2520   :  { %v16089_v13 = vfloor.f32 %v16088_v34 }
0x2522   :  { %v16090_v11 = vadd.f32 %v16089_v13, %v23657_v59 }
0x2524   :  { %v16091_v17 = vsel %vm4406_vm4, %v16090_v11, -inf }
0x2525   :  { %16092 = vmax.xlane.f32.xlu0 %v16091_v17 }
0x253b   :  { %16104 = vrot.lane.b32.xlu0 %v23176_v49, %s22045_s5 }
0x253f   :  { %16574 = vrot.lane.b32.xlu0 %v23176_v49, %s22049_s18 }
0x2543   :  { %16570 = vrot.lane.b32.xlu0 %v23150_v8, %s22049_s18 }
0x25ae   :  { %v16093_v18 = vpop.xlane.xlu0 %16092 }
0x25af   :  { %v16094_v19 = vsub.f32 %v16090_v11, %v16093_v18 }
0x25b1   :  { %v16095_v21 = vmul.f32 1.442695, %v16094_v19 }
0x25b2   :  { %v16105_v58 = vpop.permute.xlu0 %16104 }
0x25b3   :  { %21884 = vpow2.f32 %v16095_v21  ;;  %v16140_v53 = vand.u32 4294901760, %v16105_v58 }
0x25b5   :  { %v23879_v5 = vsub.f32 %v16105_v58, %v16140_v53  ;;  %21430 = vmatpush3.msra.mxu0 %v16140_v53 }
0x25b6   :  { %21431 = vmatprep.subr.mxu0 %v22038_v55  ;;  %v16575_v25 = vpop.permute.xlu0 %16574 }
0x25b7   :  { %v16219_v4 = vand.u32 4294901760, %v23879_v5  ;;  %v16580_v26 = vsel %vm712_vm2, %v16575_v25, 0 }
0x25b8   :  { %v23894_v7 = vand.u32 4294901760, %v16580_v26 }
0x25b9   :  { %v16220_v9 = vsub.f32 %v23879_v5, %v16219_v4 }
0x25ba   :  { %v23898_v44 = vsub.f32 %v16580_v26, %v23894_v7  ;;  %v16571_v3 = vpop.permute.xlu0 %16570 }
0x25bb   :  { %v16221_v23 = vand.u32 4294901760, %v16220_v9  ;;  %v16576_v60 = vsel %vm712_vm2, %v16571_v3, 0 }
0x25bc   :  { %v16690_v47 = vand.u32 4294901760, %v23898_v44  ;;  %v16649_v62 = vand.u32 4294901760, %v16576_v60 }
0x25bd   :  { %21437 = vmatpush3.msra.mxu1 %v16221_v23 }
0x25be   :  { %21438 = vmatprep.subr.mxu1 %v22038_v55  ;;  %v16691_v20 = vsub.f32 %v23898_v44, %v16690_v47  ;;  %v16650_v2 = vsub.f32 %v16576_v60, %v16649_v62 }
0x25c0   :  { %v21885_v8 = vpop.eup %21884  ;;  %v16692_v30 = vand.u32 4294901760, %v16691_v20  ;;  %v16651_v32 = vand.u32 4294901760, %v16650_v2 }
0x25c1   :  { %v16097_v14 = vsel %vm4406_vm4, %v21885_v8, 0.0 }
0x25c2   :  { %16098 = vadd.xlane.f32.xlu1 %v16097_v14  ;;  %v16652_v41 = vsub.f32 %v16650_v2, %v16651_v32 }
0x25c4   :  { %v16653_v45 = vand.u32 4294901760, %v16652_v41 }
0x25d3   :  { %16102 = vrot.lane.b32.xlu1 %v23565_v57, %s22045_s5  ;;  %s19326_s5 = sshll.u32 %s22053_s4, 4  ;;  %s19327_s5 = int_to_ptr.vmem [resolvable:$true] %s19326_s5 }
0x25d4   :  { %p22008_p12 = scmp.lt.s32.totalorder %s19327_s5, %s19327_s5 }
0x25d7   :  { %16572 = vrot.lane.b32.xlu1 %v23565_v57, %s22049_s18 }
0x264b   :  { %v16099_v12 = vpop.xlane.xlu1 %16098 }
0x264c   :  { %21886 = vrcp.f32 %v16099_v12 }
0x264f   :  { %v16103_v24 = vpop.permute.xlu1 %16102 }
0x2650   :  { %v16143_v33 = vand.u32 4294901760, %v16103_v24 }
0x2652   :  { %v16225_v50 = vsub.f32 %v16103_v24, %v16143_v33  ;;  %21432 = vmatpush3.msra.mxu0 %v16143_v33 }
0x2653   :  { %21443 = vmatprep.subr.mxu0 %v22038_v55  ;;  %v16573_v28 = vpop.permute.xlu1 %16572 }
0x2654   :  { %v16226_v6 = vand.u32 4294901760, %v16225_v50  ;;  %v16578_v39 = vsel %vm712_vm2, %v16573_v28, 0 }
0x2655   :  { %v23900_v15 = vand.u32 4294901760, %v16578_v39 }
0x2656   :  { %v16227_v42 = vsub.f32 %v16225_v50, %v16226_v6 }
0x2657   :  { %v23906_v48 = vsub.f32 %v16578_v39, %v23900_v15 }
0x2658   :  { %v16228_v37 = vand.u32 4294901760, %v16227_v42 }
0x2659   :  { %v21887_v40 = vpop.eup %21886  ;;  %v16697_v36 = vand.u32 4294901760, %v23906_v48 }
0x265a   :  { %v16101_v43 = vmul.f32 %v21887_v40, %v21885_v8  ;;  %21439 = vmatpush3.msra.mxu1 %v16228_v37 }
0x265b   :  { %21450 = vmatprep.subr.mxu1 %v22038_v55  ;;  %v16698_v31 = vsub.f32 %v23906_v48, %v16697_v36 }
0x265c   :  { %v16109_v22 = vsel %vm4406_vm4, %v16101_v43, 0 }
0x265d   :  { %v16178_v29 = vand.u32 4294901760, %v16109_v22  ;;  %v16699_v46 = vand.u32 4294901760, %v16698_v31 }
0x265f   :  { %v16179_v16 = vsub.f32 %v16109_v22, %v16178_v29  ;;  %21441 = vmatmul.mubr.f32.vlgmr.msra.gmra.mxu1 %v16178_v29 }
0x2660   :  { %21451 = vmatpush3.msra.mxu1 %v16140_v53  ;;  %21454 = vmatprep.mubr.msk.f32.mxu1 %vm22039_vm1, %v22038_v55 }
0x2661   :  { %21452 = vmatprep.subr.mxu1 %v22038_v55  ;;  %v16180_v52 = vand.u32 4294901760, %v16179_v16 }
0x2662   :  { %21453 = vmatpush3.msra.mxu1 %v16143_v33 }
0x2663   :  { %21464 = vmatprep.subr.mxu1 %v22038_v55  ;;  %21455 = vmatmul.mubr.f32.vlgmr.msra.gmra.mxu1 %v16180_v52  ;;  %v16181_v54 = vsub.f32 %v16179_v16, %v16180_v52 }
0x2664   :  { %21465 = vmatpush3.msra.mxu1 %v16140_v53  ;;  %21468 = vmatprep.mubr.msk.f32.mxu1 %vm22039_vm1, %v22038_v55 }
0x2665   :  { %21466 = vmatprep.subr.mxu1 %v22038_v55  ;;  %v16182_v38 = vand.u32 4294901760, %v16181_v54 }
0x2666   :  { %21467 = vmatpush3.msra.mxu1 %v16143_v33 }
0x2667   :  { %21478 = vmatprep.subr.mxu1 %v22038_v55  ;;  %21434 = vmatmul.mubr.f32.vlgmr.msra.gmra.mxu0 %v16182_v38 }
0x2668   :  { %21444 = vmatpush3.msra.mxu0 %v23879_v5  ;;  %21469 = vmatmul.mubr.f32.vlgmr.msra.gmra.mxu1 %v16178_v29 }
0x2669   :  { %21479 = vmatpush3.xpose.msra.mxu1 %v16692_v30  ;;  %21445 = vmatprep.subr.mxu0 %v22038_v55 }
0x266a   :  { %21446 = vmatpush3.msra.mxu0 %v16225_v50  ;;  %21447 = vmatprep.mubr.msk.f32.mxu0 %vm22039_vm1, %v22038_v55 }
0x266b   :  { %21457 = vmatprep.subr.mxu0 %v22038_v55  ;;  %21480 = vmatprep.subr.mxu1 %v22038_v55 }
0x266c   :  { %21448 = vmatmul.mubr.f32.vlgmr.msra.gmra.mxu0 %v16179_v16  ;;  %21482 = vmatprep.mubr.msk.f32.mxu1 %vm22039_vm1, %v22038_v55 }
0x266d   :  { %21458 = vmatpush3.msra.mxu0 %v16219_v4  ;;  %21481 = vmatpush3.xpose.msra.mxu1 %v16699_v46 }
0x266e   :  { %21459 = vmatprep.subr.mxu0 %v22038_v55  ;;  %21461 = vmatprep.mubr.msk.f32.mxu0 %vm22039_vm1, %v22038_v55 }
0x266f   :  { %21460 = vmatpush3.msra.mxu0 %v16226_v6  ;;  %21492 = vmatprep.subr.mxu1 %v22038_v55 }
0x2670   :  { %21471 = vmatprep.subr.mxu0 %v22038_v55  ;;  %21483 = vmatmul.mubr.f32.vlgmr.msra.gmra.mxu1 %v16649_v62 }
0x2671   :  { %21462 = vmatmul.mubr.f32.vlgmr.msra.gmra.mxu0 %v16178_v29  ;;  %21493 = vmatpush3.xpose.msra.mxu1 %v23894_v7 }
0x2672   :  { %21472 = vmatpush3.xpose.msra.mxu0 %v23894_v7  ;;  %21494 = vmatprep.subr.mxu1 %v22038_v55 }
0x2673   :  { %21473 = vmatprep.subr.mxu0 %v22038_v55  ;;  %21475 = vmatprep.mubr.msk.f32.mxu0 %vm22039_vm1, %v22038_v55 }
0x2674   :  { %21496 = vmatprep.mubr.msk.f32.mxu1 %vm22039_vm1, %v22038_v55 }
0x2675   :  { %21495 = vmatpush3.xpose.msra.mxu1 %v23900_v15 }
0x2676   :  { %21474 = vmatpush3.xpose.msra.mxu0 %v23900_v15  ;;  %21506 = vmatprep.subr.mxu1 %v22038_v55 }
0x2677   :  { %21485 = vmatprep.subr.mxu0 %v22038_v55 }
0x2678   :  { %21497 = vmatmul.mubr.f32.vlgmr.msra.gmra.mxu1 %v16651_v32 }
0x2679   :  { %21476 = vmatmul.mubr.f32.vlgmr.msra.gmra.mxu0 %v16653_v45  ;;  %21507 = vmatpush3.xpose.msra.mxu1 %v23894_v7 }
0x267a   :  { %21486 = vmatpush3.xpose.msra.mxu0 %v23898_v44  ;;  %21508 = vmatprep.subr.mxu1 %v22038_v55 }
0x267b   :  { %21487 = vmatprep.subr.mxu0 %v22038_v55  ;;  %21489 = vmatprep.mubr.msk.f32.mxu0 %vm22039_vm1, %v22038_v55 }
0x267c   :  { %21510 = vmatprep.mubr.msk.f32.mxu1 %vm22039_vm1, %v22038_v55 }
0x267d   :  { %21509 = vmatpush3.xpose.msra.mxu1 %v23900_v15 }
0x267e   :  { %21488 = vmatpush3.xpose.msra.mxu0 %v23906_v48  ;;  %21520 = vmatprep.subr.mxu1 %v22038_v55 }
0x267f   :  { %21499 = vmatprep.subr.mxu0 %v22038_v55 }
0x2680   :  { %21511 = vmatmul.mubr.f32.vlgmr.msra.gmra.mxu1 %v16649_v62 }
0x2681   :  { %21490 = vmatmul.mubr.f32.vlgmr.msra.gmra.mxu0 %v16650_v2  ;;  %21524 = vmatprep.mubr.msk.f32.mxu1 %vm22039_vm1, %v22038_v55 }
0x2682   :  { %21500 = vmatpush3.xpose.msra.mxu0 %v16690_v47  ;;  %21503 = vmatprep.mubr.msk.f32.mxu0 %vm22039_vm1, %v22038_v55 }
0x2683   :  { %21501 = vmatprep.subr.mxu0 %v22038_v55 }
0x2686   :  { %21502 = vmatpush3.xpose.msra.mxu0 %v16697_v36 }
0x2687   :  { %21513 = vmatprep.subr.mxu0 %v22038_v55 }
0x2689   :  { %21504 = vmatmul.mubr.f32.vlgmr.msra.gmra.mxu0 %v16649_v62 }
0x268a   :  { %21517 = vmatprep.mubr.msk.f32.mxu0 %vm22039_vm1, %v22038_v55 }
0x271f   :  { %v16265_v10 = vpop.f32.mrf.mxu1 }
0x2721   :  { %v21442_v34 = vpop.f32.mrf.mxu1 }
0x2723   :  { %v16416_v13 = vpop.f32.mrf.mxu1 }
0x2725   :  { %v21456_v11 = vpop.f32.mrf.mxu1 }
0x2727   :  { %v16184_v17 = vpop.f32.mrf.mxu0 }
0x2728   :  { %v16266_v18 = vadd.f32 %v16265_v10, %v16184_v17  ;;  %v16566_v19 = vpop.f32.mrf.mxu1 }
0x2729   :  { %v21435_v21 = vpop.f32.mrf.mxu0 }
0x272a   :  { %v21470_v58 = vpop.f32.mrf.mxu1 }
0x272c   :  { %v16341_v53 = vpop.f32.mrf.mxu0 }
0x272d   :  { %v16342_v5 = vadd.f32 %v16341_v53, %v16266_v18 }
0x272e   :  { %v21449_v4 = vpop.f32.mrf.mxu0 }
0x272f   :  { %v16417_v9 = vadd.f32 %v16416_v13, %v16342_v5 }
0x2730   :  { %v16736_v23 = vpop.f32.mrf.mxu1 }
0x2731   :  { %v16493_v8 = vpop.f32.mrf.mxu0 }
0x2732   :  { %v16494_v14 = vadd.f32 %v16493_v8, %v16417_v9  ;;  %v21484_v12 = vpop.f32.mrf.mxu1 }
0x2733   :  { %v21463_v24 = vpop.f32.mrf.mxu0  ;;  %v9880_v12 = vld [vmem:[#allocation8 + $0x18] sm:$0xff] }
0x2734   :  { %v16567_v33 = vadd.f32 %v16566_v19, %v16494_v14  ;;  %v9879_v24 = vld [vmem:[#allocation8 + $0x10] sm:$0xff] }
0x2738   :  { %v16887_v25 = vpop.f32.mrf.mxu1 }
0x2739   :  { %v16655_v50 = vpop.f32.mrf.mxu0 }
0x273a   :  { %v21498_v26 = vpop.f32.mrf.mxu1  ;;  %v16737_v7 = vadd.f32 %v16736_v23, %v16655_v50  ;;  %v24027_v50 = vand.u32 4294901760, %v9879_v24 }
0x273b   :  { %v21477_v6 = vpop.f32.mrf.mxu0 }
0x2740   :  { %v17037_v28 = vpop.f32.mrf.mxu1 }
0x2741   :  { %v16812_v42 = vpop.f32.mrf.mxu0 }
0x2742   :  { %v21512_v37 = vpop.f32.mrf.mxu1  ;;  %v16813_v40 = vadd.f32 %v16812_v42, %v16737_v7 }
0x2743   :  { %v21491_v39 = vpop.f32.mrf.mxu0 }
0x2744   :  { %v16888_v43 = vadd.f32 %v16887_v25, %v16813_v40  ;;  %v24025_v25 = vand.u32 4294901760, %v9880_v12 }
0x2746   :  { %v24032_v6 = vsub.f32 %v9880_v12, %v24025_v25 }
0x2748   :  { %v24043_v42 = vand.u32 4294901760, %v24032_v6 }
0x2749   :  { %v16964_v44 = vpop.f32.mrf.mxu0 }
0x274a   :  { %v16965_v15 = vadd.f32 %v16964_v44, %v16888_v43  ;;  %v17667_v39 = vsub.f32 %v24032_v6, %v24043_v42 }
0x274b   :  { %v21505_v22 = vpop.f32.mrf.mxu0 }
0x274c   :  { %v17038_v29 = vadd.f32 %v17037_v28, %v16965_v15  ;;  %v24035_v28 = vsub.f32 %v9879_v24, %v24027_v50  ;;  %v17668_v44 = vand.u32 4294901760, %v17667_v39 }
0x274e   :  { %v17041_v47 = vmul.f32 0.35355338, %v17038_v29  ;;  %v24046_v7 = vand.u32 4294901760, %v24035_v28  ;;  %v9877_v29 = vld [vmem:[#allocation8] sm:$0xff] }
0x2750   :  { %v17042_v48 = vfloor.f32 %v17041_v47  ;;  %v17674_v40 = vsub.f32 %v24035_v28, %v24046_v7 }
0x2752   :  { %v17043_v16 = vadd.f32 %v17042_v48, %v23657_v59  ;;  %v17675_v15 = vand.u32 4294901760, %v17674_v40  ;;  %v24061_v48 = vand.u32 4294901760, %v9877_v29 }
0x2754   :  { %v17044_v3 = vsel %vm4406_vm4, %v17043_v16, -inf }
0x2755   :  { %17045 = vmax.xlane.f32.xlu1 %v17044_v3  ;;  %v24064_v3 = vsub.f32 %v9877_v29, %v24061_v48 }
0x2766   :  { %17055 = vrot.lane.b32.xlu1 %v23565_v57, %s22048_s27 }
0x276a   :  { %13696 = vrot.lane.b32.xlu1 %v23432_v0, %s22034_s29 }
0x276e   :  { %17524 = vrot.lane.b32.xlu1 %v23869_v51, %s22034_s29 }
0x2772   :  { %17528 = vrot.lane.b32.xlu1 %v16567_v33, %s22052_s28  ;;  %v9878_v33 = vld [vmem:[#allocation8 + $0x8] sm:$0xff] }
0x2773   :  { %v24029_v26 = vand.u32 4294901760, %v9878_v33 }
0x27de   :  { %v17046_v52 = vpop.xlane.xlu1 %17045 }
0x27df   :  { %v17047_v20 = vsub.f32 %v17043_v16, %v17046_v52 }
0x27e1   :  { %v17048_v36 = vmul.f32 1.442695, %v17047_v20  ;;  %v24069_v20 = vand.u32 4294901760, %v24064_v3 }
0x27e2   :  { %v17056_v0 = vpop.permute.xlu1 %17055 }
0x27e3   :  { %21888 = vpow2.f32 %v17048_v36  ;;  %v17096_v57 = vand.u32 4294901760, %v17056_v0 }
0x27e5   :  { %v17178_v60 = vsub.f32 %v17056_v0, %v17096_v57 }
0x27e6   :  { %v13697_v2 = vpop.permute.xlu1 %13696 }
0x27e7   :  { %v17179_v62 = vand.u32 4294901760, %v17178_v60 }
0x27f0   :  { %v21889_v54 = vpop.eup %21888 }
0x27f1   :  { %v17050_v59 = vsel %vm4406_vm4, %v21889_v54, 0.0 }
0x27f2   :  { %17051 = vadd.xlane.f32.xlu0 %v17050_v59 }
0x2808   :  { %17057 = vrot.lane.b32.xlu0 %v23176_v49, %s22048_s27 }
0x280c   :  { %13700 = vrot.lane.b32.xlu0 %v23538_v56, %s22052_s28  ;;  %v17180_v56 = vsub.f32 %v17178_v60, %v17179_v62 }
0x280e   :  { %v17181_v11 = vand.u32 4294901760, %v17180_v56 }
0x2810   :  { %13704 = vrot.lane.b32.xlu0 %v23652_v1, %s22051_s14  ;;  %v13707_v1 = vsel %vm712_vm2, %v23326_v63, %v13697_v2 }
0x287b   :  { %v17052_v51 = vpop.xlane.xlu0 %17051 }
0x287c   :  { %21890 = vrcp.f32 %v17052_v51 }
0x287f   :  { %v17058_v38 = vpop.permute.xlu0 %17057 }
0x2880   :  { %v17093_v30 = vand.u32 4294901760, %v17058_v38 }
0x2882   :  { %v17171_v31 = vsub.f32 %v17058_v38, %v17093_v30  ;;  %21514 = vmatpush3.msra.mxu0 %v17093_v30 }
0x2883   :  { %21515 = vmatprep.subr.mxu0 %v22038_v55  ;;  %v13701_v49 = vpop.permute.xlu0 %13700 }
0x2884   :  { %v17172_v46 = vand.u32 4294901760, %v17171_v31  ;;  %21516 = vmatpush3.msra.mxu0 %v17096_v57  ;;  %v13708_v41 = vsel %vm4406_vm4, %v13707_v1, %v13701_v49 }
0x2885   :  { %21527 = vmatprep.subr.mxu0 %v22038_v55 }
0x2886   :  { %v17173_v32 = vsub.f32 %v17171_v31, %v17172_v46 }
0x2887   :  { %v13705_v45 = vpop.permute.xlu0 %13704 }
0x2888   :  { %v17174_v10 = vand.u32 4294901760, %v17173_v32  ;;  %v13709_v34 = vsel %vm4408_vm5, %v13708_v41, %v13705_v45  ;;  %v17525_v32 = vpop.permute.xlu1 %17524 }
0x2889   :  { %v21891_v13 = vpop.eup %21890  ;;  %v17545_v18 = vsel %vm169_vm0, %v13709_v34, 0  ;;  %v17535_v45 = vsel %vm712_vm2, %v23763_v61, %v17525_v32 }
0x288a   :  { %v17054_v17 = vmul.f32 %v21891_v13, %v21889_v54  ;;  %21521 = vmatpush3.msra.mxu1 %v17174_v10  ;;  %v24001_v21 = vand.u32 4294901760, %v17545_v18  ;;  %v17688_v54 = vsub.f32 %v24064_v3, %v24069_v20 }
0x288b   :  { %21522 = vmatprep.subr.mxu1 %v22038_v55 }
0x288c   :  { %21523 = vmatpush3.msra.mxu1 %v17181_v11  ;;  %v17062_v19 = vsel %vm4406_vm4, %v17054_v17, 0  ;;  %v24007_v5 = vsub.f32 %v17545_v18, %v24001_v21  ;;  %v17529_v41 = vpop.permute.xlu1 %17528 }
0x288d   :  { %21534 = vmatprep.subr.mxu1 %v22038_v55  ;;  %v17131_v63 = vand.u32 4294901760, %v17062_v19  ;;  %v17536_v10 = vsel %vm4406_vm4, %v17535_v45, %v17529_v41 }
0x288e   :  { %v17621_v23 = vand.u32 4294901760, %v24007_v5 }
0x288f   :  { %v17132_v58 = vsub.f32 %v17062_v19, %v17131_v63  ;;  %21525 = vmatmul.mubr.f32.vlgmr.msra.gmra.mxu1 %v17131_v63 }
0x2890   :  { %21535 = vmatpush3.msra.mxu1 %v17093_v30  ;;  %21538 = vmatprep.mubr.msk.f32.mxu1 %vm22039_vm1, %v22038_v55  ;;  %v17622_v8 = vsub.f32 %v24007_v5, %v17621_v23 }
0x2891   :  { %21536 = vmatprep.subr.mxu1 %v22038_v55  ;;  %v17133_v53 = vand.u32 4294901760, %v17132_v58 }
0x2892   :  { %21537 = vmatpush3.msra.mxu1 %v17096_v57  ;;  %v17623_v14 = vand.u32 4294901760, %v17622_v8 }
0x2893   :  { %21548 = vmatprep.subr.mxu1 %v22038_v55  ;;  %21539 = vmatmul.mubr.f32.vlgmr.msra.gmra.mxu1 %v17133_v53  ;;  %v17134_v4 = vsub.f32 %v17132_v58, %v17133_v53  ;;  %v19346_v53 = vld [vmem:[%s24450_s15] ss:$0 sm:$0xff] }
0x2894   :  { %21549 = vmatpush3.msra.mxu1 %v17093_v30  ;;  %21552 = vmatprep.mubr.msk.f32.mxu1 %vm22039_vm1, %v22038_v55 }
0x2895   :  { %21550 = vmatprep.subr.mxu1 %v22038_v55  ;;  %v17135_v9 = vand.u32 4294901760, %v17134_v4 }
0x2896   :  { %21551 = vmatpush3.msra.mxu1 %v17096_v57  ;;  %v17689_v57 = vand.u32 4294901760, %v17688_v54 }
0x2897   :  { %21518 = vmatmul.mubr.f32.vlgmr.msra.gmra.mxu0 %v17135_v9  ;;  %21553 = vmatmul.mubr.f32.vlgmr.msra.gmra.mxu1 %v17131_v63 }
0x2898   :  { %21528 = vmatpush3.msra.mxu0 %v17171_v31  ;;  %21574 = vmatprep.mubr.f32.mxu1 %v24001_v21 }
0x2899   :  { %21529 = vmatprep.subr.mxu0 %v22038_v55  ;;  %21531 = vmatprep.mubr.msk.f32.mxu0 %vm22039_vm1, %v22038_v55 }
0x289a   :  { %21530 = vmatpush3.msra.mxu0 %v17178_v60  ;;  %21566 = vmatprep.subr.mxu1 %v17668_v44 }
0x289b   :  { %21541 = vmatprep.subr.mxu0 %v22038_v55  ;;  %21532 = vmatmul.mubr.f32.vlgmr.msra.gmra.mxu0 %v17132_v58 }
0x289c   :  { %21542 = vmatpush3.msra.mxu0 %v17172_v46  ;;  %21545 = vmatprep.mubr.msk.f32.mxu0 %vm22039_vm1, %v22038_v55 }
0x289d   :  { %21543 = vmatprep.subr.mxu0 %v22038_v55  ;;  %v24038_v55 = vsub.f32 %v9878_v33, %v24029_v26  ;;  %21567 = vmatpush3.msra.mxu1 %v17668_v44 }
0x289e   :  { %21544 = vmatpush3.msra.mxu0 %v17179_v62  ;;  %21568 = vmatprep.subr.mxu1 %v17675_v15 }
0x289f   :  { %21546 = vmatmul.mubr.f32.vlgmr.msra.gmra.mxu0 %v17131_v63  ;;  %21555 = vmatprep.subr.mxu0 %v24025_v25  ;;  %v24049_v37 = vand.u32 4294901760, %v24038_v55 }
0x28a0   :  { %21563 = vmatprep.mubr.f32.mxu0 %v17623_v14  ;;  %21556 = vmatpush3.msra.mxu0 %v24025_v25 }
0x28a1   :  { %21557 = vmatprep.subr.mxu0 %v24027_v50  ;;  %v17681_v43 = vsub.f32 %v24038_v55, %v24049_v37  ;;  %21569 = vmatpush3.msra.mxu1 %v17675_v15 }
0x28a2   :  { %21558 = vmatpush3.msra.mxu0 %v24027_v50 }
0x28a3   :  { %21559 = vmatprep.subr.mxu0 %v24029_v26  ;;  %v17682_v22 = vand.u32 4294901760, %v17681_v43 }
0x28a4   :  { %21560 = vmatpush3.msra.mxu0 %v24029_v26 }
0x28a5   :  { %21570 = vmatprep.subr.mxu1 %v17682_v22  ;;  %21561 = vmatprep.subr.mxu0 %v24061_v48 }
0x28a6   :  { %21571 = vmatpush3.msra.mxu1 %v17682_v22  ;;  %21562 = vmatpush3.msra.mxu0 %v24061_v48 }
0x28a7   :  { %21577 = vmatprep.subr.mxu0 %v24032_v6  ;;  %21572 = vmatprep.subr.mxu1 %v17689_v57 }
0x28a8   :  { %21573 = vmatpush3.msra.mxu1 %v17689_v57  ;;  %v18127_v57 = vld [vmem:[#allocation10 + $0x18] sm:$0xff] }
0x28a9   :  { %21588 = vmatprep.subr.mxu1 %v24025_v25 }
0x294f   :  { %v17218_v47 = vpop.f32.mrf.mxu1 }
0x2951   :  { %v21526_v16 = vpop.f32.mrf.mxu1 }
0x2953   :  { %v17369_v52 = vpop.f32.mrf.mxu1 }
0x2955   :  { %v21540_v36 = vpop.f32.mrf.mxu1 }
0x2957   :  { %v17137_v59 = vpop.f32.mrf.mxu0  ;;  %v17519_v0 = vpop.f32.mrf.mxu1 }
0x2958   :  { %v17219_v38 = vadd.f32 %v17218_v47, %v17137_v59 }
0x2959   :  { %v21519_v51 = vpop.f32.mrf.mxu0  ;;  %v21554_v60 = vpop.f32.mrf.mxu1 }
0x295a   :  { %v18126_v51 = vld [vmem:[#allocation10 + $0x10] sm:$0xff] }
0x295b   :  { %v17294_v30 = vpop.f32.mrf.mxu0 }
0x295c   :  { %v17295_v62 = vadd.f32 %v17294_v30, %v17219_v38  ;;  %v24130_v38 = vand.u32 4294901760, %v18126_v51  ;;  %v18125_v30 = vld [vmem:[#allocation10 + $0x8] sm:$0xff] }
0x295d   :  { %v21533_v31 = vpop.f32.mrf.mxu0 }
0x295e   :  { %v17370_v2 = vadd.f32 %v17369_v52, %v17295_v62  ;;  %v24138_v31 = vsub.f32 %v18126_v51, %v24130_v38  ;;  %v18674_v51 = vld [vmem:[%s24455_s20 + $0x18] sm:$0xff] }
0x295f   :  { %v17446_v49 = vpop.f32.mrf.mxu0 }
0x2960   :  { %v17447_v46 = vadd.f32 %v17446_v49, %v17370_v2  ;;  %v24140_v2 = vand.u32 4294901760, %v18125_v30  ;;  %v18124_v49 = vld [vmem:[#allocation10] sm:$0xff] }
0x2961   :  { %v21547_v56 = vpop.f32.mrf.mxu0  ;;  %v24152_v32 = vand.u32 4294901760, %v18124_v49 }
0x2962   :  { %v17520_v1 = vadd.f32 %v17519_v0, %v17447_v46  ;;  %v24147_v56 = vand.u32 4294901760, %v24138_v31 }
0x2964   :  { %17532 = vrot.lane.b32.xlu0 %v17520_v1, %s22051_s14  ;;  %v24150_v1 = vsub.f32 %v18125_v30, %v24140_v2  ;;  %v18265_v45 = vsub.f32 %v24138_v31, %v24147_v56 }
0x29d6   :  { %v17533_v34 = vpop.permute.xlu0 %17532 }
0x29d7   :  { %v17537_v13 = vsel %vm4408_vm5, %v17536_v10, %v17533_v34  ;;  %v24159_v10 = vand.u32 4294901760, %v24150_v1  ;;  %v24162_v34 = vsub.f32 %v18124_v49, %v24152_v32 }
0x29d8   :  { %v17548_v11 = vsel %vm169_vm0, %v17537_v13, 0  ;;  %v18266_v13 = vand.u32 4294901760, %v18265_v45 }
0x29d9   :  { %v17629_v17 = vand.u32 4294901760, %v17548_v11 }
0x29db   :  { %v17630_v18 = vsub.f32 %v17548_v11, %v17629_v17  ;;  %21575 = vmatmul.mubr.f32.vlgmr.msra.gmra.mxu1 %v17629_v17  ;;  %v18272_v11 = vsub.f32 %v24150_v1, %v24159_v10 }
0x29dc   :  { %21589 = vmatpush3.msra.mxu1 %v24025_v25  ;;  %21596 = vmatprep.mubr.f32.mxu1 %v17621_v23 }
0x29dd   :  { %v17631_v19 = vand.u32 4294901760, %v17630_v18  ;;  %21590 = vmatprep.subr.mxu1 %v24027_v50 }
0x29de   :  { %21591 = vmatpush3.msra.mxu1 %v24027_v50 }
0x29df   :  { %v17632_v61 = vsub.f32 %v17630_v18, %v17631_v19  ;;  %21592 = vmatprep.subr.mxu1 %v24029_v26 }
0x29e0   :  { %21593 = vmatpush3.msra.mxu1 %v24029_v26 }
0x29e1   :  { %v17633_v63 = vand.u32 4294901760, %v17632_v61  ;;  %21594 = vmatprep.subr.mxu1 %v24061_v48 }
0x29e2   :  { %21595 = vmatpush3.msra.mxu1 %v24061_v48 }
0x29e3   :  { %21597 = vmatmul.mubr.f32.vlgmr.msra.gmra.mxu1 %v17631_v19  ;;  %21610 = vmatprep.subr.mxu1 %v24025_v25 }
0x29e4   :  { %21564 = vmatmul.mubr.f32.vlgmr.msra.gmra.mxu0 %v17633_v63  ;;  %21611 = vmatpush3.msra.mxu1 %v24025_v25 }
0x29e5   :  { %21578 = vmatpush3.msra.mxu0 %v24032_v6  ;;  %21618 = vmatprep.mubr.f32.mxu1 %v24001_v21 }
0x29e6   :  { %21579 = vmatprep.subr.mxu0 %v24035_v28  ;;  %21585 = vmatprep.mubr.f32.mxu0 %v24007_v5 }
0x29e7   :  { %21612 = vmatprep.subr.mxu1 %v24027_v50  ;;  %21580 = vmatpush3.msra.mxu0 %v24035_v28 }
0x29e8   :  { %21613 = vmatpush3.msra.mxu1 %v24027_v50  ;;  %21581 = vmatprep.subr.mxu0 %v24038_v55 }
0x29e9   :  { %21614 = vmatprep.subr.mxu1 %v24029_v26  ;;  %21582 = vmatpush3.msra.mxu0 %v24038_v55 }
0x29ea   :  { %21615 = vmatpush3.msra.mxu1 %v24029_v26  ;;  %21583 = vmatprep.subr.mxu0 %v24064_v3 }
0x29eb   :  { %21616 = vmatprep.subr.mxu1 %v24061_v48  ;;  %21584 = vmatpush3.msra.mxu0 %v24064_v3 }
0x29ec   :  { %21617 = vmatpush3.msra.mxu1 %v24061_v48  ;;  %21586 = vmatmul.mubr.f32.vlgmr.msra.gmra.mxu0 %v17630_v18  ;;  %v18273_v18 = vand.u32 4294901760, %v18272_v11 }
0x29ed   :  { %21599 = vmatprep.subr.mxu0 %v24043_v42  ;;  %21619 = vmatmul.mubr.f32.vlgmr.msra.gmra.mxu1 %v17629_v17 }
0x29ee   :  { %21600 = vmatpush3.msra.mxu0 %v24043_v42  ;;  %21607 = vmatprep.mubr.f32.mxu0 %v24001_v21 }
0x29ef   :  { %21601 = vmatprep.subr.mxu0 %v24046_v7 }
0x29f0   :  { %21602 = vmatpush3.msra.mxu0 %v24046_v7 }
0x29f1   :  { %21603 = vmatprep.subr.mxu0 %v24049_v37 }
0x29f2   :  { %21604 = vmatpush3.msra.mxu0 %v24049_v37 }
0x29f3   :  { %21605 = vmatprep.subr.mxu0 %v24069_v20 }
0x29f4   :  { %21606 = vmatpush3.msra.mxu0 %v24069_v20 }
0x29f5   :  { %21608 = vmatmul.mubr.f32.vlgmr.msra.gmra.mxu0 %v17629_v17  ;;  %v24169_v17 = vand.u32 4294901760, %v24162_v34 }
0x29f7   :  { %v18279_v19 = vsub.f32 %v24162_v34, %v24169_v17 }
0x29f9   :  { %v18280_v61 = vand.u32 4294901760, %v18279_v19 }
0x2a9b   :  { %v21576_v5 = vpop.f32.mrf.mxu1 }
0x2a9d   :  { %v17726_v8 = vpop.f32.mrf.mxu1 }
0x2aa3   :  { %v21598_v12 = vpop.f32.mrf.mxu1 }
0x2aa4   :  { %v21565_v58 = vpop.f32.mrf.mxu0 }
0x2aa5   :  { %v17636_v4 = vadd.f32 %v21565_v58, %v19346_v53  ;;  %v17896_v26 = vpop.f32.mrf.mxu1 }
0x2aa6   :  { %v17625_v21 = vpop.f32.mrf.mxu0 }
0x2aa7   :  { %v17626_v9 = vadd.f32 %v19346_v53, %v17625_v21  ;;  %v17733_v14 = vadd.f32 %v21576_v5, %v17636_v4 }
0x2aa9   :  { %v17727_v25 = vadd.f32 %v17726_v8, %v17626_v9 }
0x2aac   :  { %v21587_v23 = vpop.f32.mrf.mxu0 }
0x2aad   :  { %v17820_v33 = vadd.f32 %v21587_v23, %v17733_v14  ;;  %v21620_v28 = vpop.f32.mrf.mxu1  ;;  %v19347_v23 = vld [vmem:[%s24451_s16] ss:$0 sm:$0xff]  ;;  %s22003_s16 = scalar_lea.vmem %s19327_s5, 256 }
0x2aae   :  { %v17812_v24 = vpop.f32.mrf.mxu0  ;;  %p22004_p11 = scmp.ne.s32.totalorder %s19327_s5, %s22003_s16  ;;  %p22009_p13 = scmp.lt.s32.totalorder %s22003_s16, %s22003_s16 }
0x2aaf   :  { %v17813_v50 = vadd.f32 %v17812_v24, %v17727_v25  ;;  %v17905_v6 = vadd.f32 %v21598_v12, %v17820_v33  ;;  %v18068_v43 = vpop.f32.mrf.mxu1  ;;  %v19348_v12 = vld [vmem:[%s24452_s17] ss:$0 sm:$0xff] }
0x2ab0   :  { %p22010_p0 = por %p22009_p13, %p22008_p12 }
0x2ab1   :  { %v17897_v7 = vadd.f32 %v17896_v26, %v17813_v50 }
0x2ab2   :  { %p22011_p1 = pnand %p22010_p0, %p22004_p11 }
0x2ab5   :  { %v21609_v55 = vpop.f32.mrf.mxu0 }
0x2ab6   :  { %v17994_v42 = vadd.f32 %v21609_v55, %v17905_v6 }
0x2ab7   :  { %v17987_v37 = vpop.f32.mrf.mxu0 }
0x2ab8   :  { %v18075_v39 = vadd.f32 %v21620_v28, %v17994_v42  ;;  %v17988_v40 = vadd.f32 %v17987_v37, %v17897_v7 }
0x2aba   :  { %v18069_v44 = vadd.f32 %v18068_v43, %v17988_v40  ;;  %v18079_v15 = vadd.f32 %v18075_v39, %v22948_v35 }
0x2abc   :  { %v18085_v22 = vsel %vm169_vm0, %v18079_v15, 0.0  ;;  %v18078_v29 = vadd.f32 %v18069_v44, %v22941_v27  ;;  %v24125_v27 = vand.u32 4294901760, %v18127_v57 }
0x2abd   :  { %18086 = vadd.xlane.f32.xlu0 %v18085_v22 }
0x2abe   :  { %v18082_v47 = vsel %vm169_vm0, %v18078_v29, 0.0  ;;  %v24128_v60 = vsub.f32 %v18127_v57, %v24125_v27  ;;  %21621 = vmatprep.subr.mxu0 %v24125_v27 }
0x2abf   :  { %18083 = vadd.xlane.f32.xlu1 %v18082_v47  ;;  %21622 = vmatpush3.msra.mxu0 %v24125_v27 }
0x2ac0   :  { %v24135_v62 = vand.u32 4294901760, %v24128_v60  ;;  %21623 = vmatprep.subr.mxu0 %v24130_v38 }
0x2ac1   :  { %21624 = vmatpush3.msra.mxu0 %v24130_v38 }
0x2ac2   :  { %v18258_v46 = vsub.f32 %v24128_v60, %v24135_v62  ;;  %21625 = vmatprep.subr.mxu0 %v24140_v2 }
0x2ac3   :  { %21626 = vmatpush3.msra.mxu0 %v24140_v2 }
0x2ac4   :  { %v18259_v41 = vand.u32 4294901760, %v18258_v46  ;;  %21627 = vmatprep.subr.mxu0 %v24152_v32 }
0x2ac5   :  { %21628 = vmatpush3.msra.mxu0 %v24152_v32 }
0x2ac6   :  { %21632 = vmatprep.subr.mxu1 %v18259_v41  ;;  %21643 = vmatprep.subr.mxu0 %v24128_v60 }
0x2ac7   :  { %21633 = vmatpush3.msra.mxu1 %v18259_v41  ;;  %v18672_v41 = vld [vmem:[%s24455_s20 + $0x8] sm:$0xff] }
0x2ac8   :  { %21634 = vmatprep.subr.mxu1 %v18266_v13 }
0x2ac9   :  { %21635 = vmatpush3.msra.mxu1 %v18266_v13  ;;  %v24299_v13 = vand.u32 4294901760, %v18672_v41 }
0x2aca   :  { %21636 = vmatprep.subr.mxu1 %v18273_v18 }
0x2acb   :  { %21637 = vmatpush3.msra.mxu1 %v18273_v18 }
0x2acc   :  { %21638 = vmatprep.subr.mxu1 %v18280_v61 }
0x2acd   :  { %21639 = vmatpush3.msra.mxu1 %v18280_v61  ;;  %v24313_v61 = vsub.f32 %v18672_v41, %v24299_v13 }
0x2ace   :  { %21654 = vmatprep.subr.mxu1 %v24125_v27 }
0x2b46   :  { %v18087_v48 = vpop.xlane.xlu0 %18086 }
0x2b47   :  { %v18089_v16 = vmul.f32 0.03125, %v18087_v48  ;;  %v18677_v48 = vld [vmem:[%s24455_s20 + $0x30] sm:$0xff] }
0x2b48   :  { %v18084_v3 = vpop.xlane.xlu1 %18083 }
0x2b49   :  { %v18091_v52 = vsub.f32 %v18079_v15, %v18089_v16  ;;  %v18088_v20 = vmul.f32 0.03125, %v18084_v3  ;;  %v24230_v3 = vand.u32 4294901760, %v18677_v48 }
0x2b4b   :  { %v18090_v36 = vsub.f32 %v18078_v29, %v18088_v20  ;;  %v18093_v54 = vmul.f32 %v18091_v52, %v18091_v52  ;;  %v18678_v29 = vld [vmem:[%s24455_s20 + $0x38] sm:$0xff] }
0x2b4c   :  { %v24222_v47 = vand.u32 4294901760, %v18678_v29 }
0x2b4d   :  { %v18097_v59 = vsel %vm169_vm0, %v18093_v54, 0.0  ;;  %v18092_v0 = vmul.f32 %v18090_v36, %v18090_v36 }
0x2b4e   :  { %18098 = vadd.xlane.f32.xlu1 %v18097_v59  ;;  %v24228_v16 = vsub.f32 %v18678_v29, %v24222_v47  ;;  %v18675_v59 = vld [vmem:[%s24455_s20 + $0x20] sm:$0xff] }
0x2b4f   :  { %v18094_v35 = vsel %vm169_vm0, %v18092_v0, 0.0 }
0x2b50   :  { %18095 = vadd.xlane.f32.xlu0 %v18094_v35  ;;  %v24238_v20 = vand.u32 4294901760, %v24228_v16 }
0x2b52   :  { %v18806_v0 = vsub.f32 %v24228_v16, %v24238_v20 }
0x2bd7   :  { %v18099_v63 = vpop.xlane.xlu1 %18098 }
0x2bd8   :  { %v18101_v58 = vmul.f32 0.03125, %v18099_v63 }
0x2bd9   :  { %v18096_v53 = vpop.xlane.xlu0 %18095 }
0x2bda   :  { %v18103_v5 = vadd.f32 1e-05, %v18101_v58  ;;  %v18100_v21 = vmul.f32 0.03125, %v18096_v53 }
0x2bdc   :  { %21892 = vrsqrt.f32 %v18103_v5  ;;  %v18102_v4 = vadd.f32 1e-05, %v18100_v21  ;;  %v24324_v5 = vand.u32 4294901760, %v24313_v61 }
0x2bde   :  { %21894 = vrsqrt.f32 %v18102_v4 }
0x2be9   :  { %v21893_v9 = vpop.eup %21892 }
0x2bea   :  { %v18107_v8 = vmul.f32 %v21893_v9, %v18091_v52  ;;  %v18676_v52 = vld [vmem:[%s24455_s20 + $0x28] sm:$0xff] }
0x2beb   :  { %v21895_v14 = vpop.eup %21894  ;;  %v24243_v54 = vand.u32 4294901760, %v18676_v52 }
0x2bec   :  { %v18106_v24 = vmul.f32 %v21895_v14, %v18090_v36  ;;  %v18115_v33 = vmul.f32 %v19347_v23, %v18107_v8  ;;  %v24241_v36 = vsub.f32 %v18677_v48, %v24230_v3 }
0x2bed   :  { %v24256_v57 = vsub.f32 %v18676_v52, %v24243_v54 }
0x2bee   :  { %v18114_v25 = vmul.f32 %v19347_v23, %v18106_v24  ;;  %v24181_v50 = vadd.f32 %v19348_v12, %v18115_v33  ;;  %v24253_v35 = vand.u32 4294901760, %v24241_v36  ;;  %v18848_v23 = vsub.f32 %v24313_v61, %v24324_v5 }
0x2bef   :  { %v24268_v30 = vand.u32 4294901760, %v24256_v57 }
0x2bf0   :  { %v24183_v26 = vadd.f32 %v19348_v12, %v18114_v25  ;;  %v18139_v6 = vsel %vm169_vm0, %v24181_v50, 0  ;;  %v18849_v14 = vand.u32 4294901760, %v18848_v23  ;;  %v19349_v25 = vld [vmem:[%s24454_s19] ss:$0 sm:$0xff] }
0x2bf1   :  { %v18220_v28 = vand.u32 4294901760, %v18139_v6  ;;  %v18820_v46 = vsub.f32 %v24256_v57, %v24268_v30 }
0x2bf2   :  { %v18136_v55 = vsel %vm169_vm0, %v24183_v26, 0 }
0x2bf3   :  { %v18210_v42 = vand.u32 4294901760, %v18136_v55  ;;  %v18221_v7 = vsub.f32 %v18139_v6, %v18220_v28  ;;  %v18821_v45 = vand.u32 4294901760, %v18820_v46 }
0x2bf5   :  { %21640 = vmatprep.mubr.f32.mxu1 %v18210_v42  ;;  %v18211_v37 = vsub.f32 %v18136_v55, %v18210_v42  ;;  %v18222_v39 = vand.u32 4294901760, %v18221_v7 }
0x2bf6   :  { %21641 = vmatmul.mubr.f32.vlgmr.msra.gmra.mxu1 %v18220_v28 }
0x2bf7   :  { %21655 = vmatpush3.msra.mxu1 %v24125_v27  ;;  %v18212_v40 = vand.u32 4294901760, %v18211_v37  ;;  %v18223_v44 = vsub.f32 %v18221_v7, %v18222_v39 }
0x2bf8   :  { %21656 = vmatprep.subr.mxu1 %v24130_v38 }
0x2bf9   :  { %21657 = vmatpush3.msra.mxu1 %v24130_v38  ;;  %21662 = vmatprep.mubr.f32.mxu1 %v18212_v40  ;;  %v18213_v43 = vsub.f32 %v18211_v37, %v18212_v40  ;;  %v18224_v22 = vand.u32 4294901760, %v18223_v44 }
0x2bfa   :  { %21658 = vmatprep.subr.mxu1 %v24140_v2 }
0x2bfb   :  { %21659 = vmatpush3.msra.mxu1 %v24140_v2  ;;  %v18214_v15 = vand.u32 4294901760, %v18213_v43 }
0x2bfc   :  { %21660 = vmatprep.subr.mxu1 %v24152_v32 }
0x2bfd   :  { %21661 = vmatpush3.msra.mxu1 %v24152_v32  ;;  %21629 = vmatprep.mubr.f32.mxu0 %v18214_v15 }
0x2bfe   :  { %21663 = vmatmul.mubr.f32.vlgmr.msra.gmra.mxu1 %v18222_v39  ;;  %21676 = vmatprep.subr.mxu1 %v24125_v27 }
0x2bff   :  { %21630 = vmatmul.mubr.f32.vlgmr.msra.gmra.mxu0 %v18224_v22  ;;  %21677 = vmatpush3.msra.mxu1 %v24125_v27  ;;  %v24258_v27 = vand.u32 4294901760, %v18675_v59 }
0x2c00   :  { %21644 = vmatpush3.msra.mxu0 %v24128_v60  ;;  %21684 = vmatprep.mubr.f32.mxu1 %v18210_v42  ;;  %v18807_v60 = vand.u32 4294901760, %v18806_v0 }
0x2c01   :  { %21645 = vmatprep.subr.mxu0 %v24138_v31  ;;  %21651 = vmatprep.mubr.f32.mxu0 %v18211_v37 }
0x2c02   :  { %21678 = vmatprep.subr.mxu1 %v24130_v38  ;;  %21646 = vmatpush3.msra.mxu0 %v24138_v31  ;;  %v24274_v31 = vand.u32 4294901760, %v18674_v51 }
0x2c03   :  { %21679 = vmatpush3.msra.mxu1 %v24130_v38  ;;  %21647 = vmatprep.subr.mxu0 %v24150_v1  ;;  %v18813_v38 = vsub.f32 %v24241_v36, %v24253_v35 }
0x2c04   :  { %21680 = vmatprep.subr.mxu1 %v24140_v2  ;;  %21648 = vmatpush3.msra.mxu0 %v24150_v1 }
0x2c05   :  { %21681 = vmatpush3.msra.mxu1 %v24140_v2  ;;  %21649 = vmatprep.subr.mxu0 %v24162_v34  ;;  %v18673_v2 = vld [vmem:[%s24455_s20 + $0x10] sm:$0xff]  ;;  %v18814_v49 = vand.u32 4294901760, %v18813_v38 }
0x2c06   :  { %21682 = vmatprep.subr.mxu1 %v24152_v32  ;;  %21650 = vmatpush3.msra.mxu0 %v24162_v34  ;;  %v24285_v1 = vand.u32 4294901760, %v18673_v2 }
0x2c07   :  { %21683 = vmatpush3.msra.mxu1 %v24152_v32  ;;  %21652 = vmatmul.mubr.f32.vlgmr.msra.gmra.mxu0 %v18221_v7  ;;  %v24288_v32 = vsub.f32 %v18674_v51, %v24274_v31 }
0x2c08   :  { %21665 = vmatprep.subr.mxu0 %v24135_v62  ;;  %21685 = vmatmul.mubr.f32.vlgmr.msra.gmra.mxu1 %v18220_v28  ;;  %v24297_v34 = vsub.f32 %v18673_v2, %v24285_v1 }
0x2c09   :  { %21666 = vmatpush3.msra.mxu0 %v24135_v62  ;;  %21673 = vmatprep.mubr.f32.mxu0 %v18210_v42  ;;  %v24271_v62 = vsub.f32 %v18675_v59, %v24258_v27  ;;  %v24303_v11 = vand.u32 4294901760, %v24288_v32 }
0x2c0a   :  { %21667 = vmatprep.subr.mxu0 %v24147_v56  ;;  %21706 = vmatprep.subr.mxu1 %v18807_v60  ;;  %v24310_v19 = vand.u32 4294901760, %v24297_v34 }
0x2c0b   :  { %21668 = vmatpush3.msra.mxu0 %v24147_v56  ;;  %v24283_v56 = vand.u32 4294901760, %v24271_v62  ;;  %21707 = vmatpush3.msra.mxu1 %v18807_v60  ;;  %v18834_v58 = vsub.f32 %v24288_v32, %v24303_v11 }
0x2c0c   :  { %21669 = vmatprep.subr.mxu0 %v24159_v10  ;;  %21708 = vmatprep.subr.mxu1 %v18814_v49  ;;  %v18841_v53 = vsub.f32 %v24297_v34, %v24310_v19 }
0x2c0d   :  { %21670 = vmatpush3.msra.mxu0 %v24159_v10  ;;  %v18827_v10 = vsub.f32 %v24271_v62, %v24283_v56  ;;  %21709 = vmatpush3.msra.mxu1 %v18814_v49  ;;  %v18835_v4 = vand.u32 4294901760, %v18834_v58 }
0x2c0e   :  { %21671 = vmatprep.subr.mxu0 %v24169_v17  ;;  %21710 = vmatprep.subr.mxu1 %v18821_v45  ;;  %v18842_v9 = vand.u32 4294901760, %v18841_v53 }
0x2c0f   :  { %21672 = vmatpush3.msra.mxu0 %v24169_v17  ;;  %v18671_v17 = vld [vmem:[%s24455_s20] sm:$0xff]  ;;  %v18828_v18 = vand.u32 4294901760, %v18827_v10  ;;  %21711 = vmatpush3.msra.mxu1 %v18821_v45 }
0x2c10   :  { %21674 = vmatmul.mubr.f32.vlgmr.msra.gmra.mxu0 %v18220_v28  ;;  %21687 = vmatprep.subr.mxu0 %v24222_v47  ;;  %v24315_v63 = vand.u32 4294901760, %v18671_v17 }
0x2c11   :  { %21688 = vmatpush3.msra.mxu0 %v24222_v47  ;;  %21712 = vmatprep.subr.mxu1 %v18828_v18 }
0x2c12   :  { %21689 = vmatprep.subr.mxu0 %v24230_v3  ;;  %v24327_v21 = vsub.f32 %v18671_v17, %v24315_v63  ;;  %21713 = vmatpush3.msra.mxu1 %v18828_v18 }
0x2c13   :  { %21690 = vmatpush3.msra.mxu0 %v24230_v3  ;;  %21714 = vmatprep.subr.mxu1 %v18835_v4 }
0x2c14   :  { %21691 = vmatprep.subr.mxu0 %v24243_v54  ;;  %v24334_v8 = vand.u32 4294901760, %v24327_v21  ;;  %21715 = vmatpush3.msra.mxu1 %v18835_v4 }
0x2c15   :  { %21692 = vmatpush3.msra.mxu0 %v24243_v54  ;;  %21716 = vmatprep.subr.mxu1 %v18842_v9 }
0x2c16   :  { %21693 = vmatprep.subr.mxu0 %v24258_v27  ;;  %v18855_v12 = vsub.f32 %v24327_v21, %v24334_v8  ;;  %21717 = vmatpush3.msra.mxu1 %v18842_v9 }
0x2c17   :  { %21694 = vmatpush3.msra.mxu0 %v24258_v27  ;;  %21718 = vmatprep.subr.mxu1 %v18849_v14 }
0x2c18   :  { %21695 = vmatprep.subr.mxu0 %v24274_v31  ;;  %v18856_v24 = vand.u32 4294901760, %v18855_v12  ;;  %21719 = vmatpush3.msra.mxu1 %v18849_v14 }
0x2c19   :  { %21696 = vmatpush3.msra.mxu0 %v24274_v31 }
0x2c1a   :  { %21697 = vmatprep.subr.mxu0 %v24285_v1  ;;  %21720 = vmatprep.subr.mxu1 %v18856_v24 }
0x2c1b   :  { %21698 = vmatpush3.msra.mxu0 %v24285_v1  ;;  %21721 = vmatpush3.msra.mxu1 %v18856_v24 }
0x2c1c   :  { %21699 = vmatprep.subr.mxu0 %v24299_v13  ;;  %21744 = vmatprep.subr.mxu1 %v24222_v47 }
0x2c1d   :  { %21700 = vmatpush3.msra.mxu0 %v24299_v13 }
0x2c1e   :  { %21701 = vmatprep.subr.mxu0 %v24315_v63 }
0x2c1f   :  { %21702 = vmatpush3.msra.mxu0 %v24315_v63 }
0x2c20   :  { %21725 = vmatprep.subr.mxu0 %v24228_v16 }
0x2cb6   :  { %v21642_v6 = vpop.f32.mrf.mxu1 }
0x2cb8   :  { %v18317_v37 = vpop.f32.mrf.mxu1 }
0x2cbe   :  { %v21664_v40 = vpop.f32.mrf.mxu1 }
0x2cbf   :  { %v21631_v33 = vpop.f32.mrf.mxu0 }
0x2cc0   :  { %v18227_v55 = vadd.f32 %v21631_v33, %v19349_v25  ;;  %v18487_v29 = vpop.f32.mrf.mxu1 }
0x2cc1   :  { %v18216_v28 = vpop.f32.mrf.mxu0 }
0x2cc2   :  { %v18217_v42 = vadd.f32 %v19349_v25, %v18216_v28  ;;  %v18324_v39 = vadd.f32 %v21642_v6, %v18227_v55 }
0x2cc4   :  { %v18318_v15 = vadd.f32 %v18317_v37, %v18217_v42 }
0x2cc7   :  { %v21653_v7 = vpop.f32.mrf.mxu0 }
0x2cc8   :  { %v18411_v44 = vadd.f32 %v21653_v7, %v18324_v39  ;;  %v21686_v52 = vpop.f32.mrf.mxu1 }
0x2cc9   :  { %v18403_v43 = vpop.f32.mrf.mxu0 }
0x2cca   :  { %v18404_v22 = vadd.f32 %v18403_v43, %v18318_v15  ;;  %v18496_v48 = vadd.f32 %v21664_v40, %v18411_v44  ;;  %v18659_v49 = vpop.f32.mrf.mxu1 }
0x2ccc   :  { %v18488_v51 = vadd.f32 %v18487_v29, %v18404_v22 }
0x2cd0   :  { %v21675_v59 = vpop.f32.mrf.mxu0 }
0x2cd1   :  { %v18585_v0 = vadd.f32 %v21675_v59, %v18496_v48 }
0x2cd2   :  { %v18578_v60 = vpop.f32.mrf.mxu0 }
0x2cd3   :  { %v18666_v38 = vadd.f32 %v21686_v52, %v18585_v0  ;;  %v18579_v2 = vadd.f32 %v18578_v60, %v18488_v51 }
0x2cd5   :  { %v18670_v46 = vmax.f32 %v18666_v38, 0.0  ;;  %v18660_v41 = vadd.f32 %v18659_v49, %v18579_v2  ;;  %v19351_v38 = vld [vmem:[%s24457_s22] ss:$0 sm:$0xff] }
0x2cd7   :  { %v18691_v45 = vsel %vm18686_vm7, %v18670_v46, 0  ;;  %v18669_v10 = vmax.f32 %v18660_v41, 0.0  ;;  %v19352_v46 = vld [vmem:[%s24458_s23] ss:$0 sm:$0xff] }
0x2cd8   :  { %v24344_v17 = vand.u32 4294901760, %v18691_v45 }
0x2cd9   :  { %v18688_v18 = vsel %vm18686_vm7, %v18669_v10, 0 }
0x2cda   :  { %v18777_v58 = vsub.f32 %v18691_v45, %v24344_v17  ;;  %v18766_v53 = vand.u32 4294901760, %v18688_v18 }
0x2cdc   :  { %v18778_v4 = vand.u32 4294901760, %v18777_v58  ;;  %v18767_v9 = vsub.f32 %v18688_v18, %v18766_v53  ;;  %21722 = vmatprep.mubr.f32.mxu1 %v18766_v53 }
0x2cdd   :  { %21723 = vmatmul.mubr.f32.vlgmr.msra.gmra.mxu1 %v24344_v17 }
0x2cde   :  { %21745 = vmatpush3.msra.mxu1 %v24222_v47  ;;  %v18768_v23 = vand.u32 4294901760, %v18767_v9  ;;  %v18779_v14 = vsub.f32 %v18777_v58, %v18778_v4 }
0x2cdf   :  { %21746 = vmatprep.subr.mxu1 %v24230_v3 }
0x2ce0   :  { %21747 = vmatpush3.msra.mxu1 %v24230_v3  ;;  %21760 = vmatprep.mubr.f32.mxu1 %v18768_v23  ;;  %v18769_v12 = vsub.f32 %v18767_v9, %v18768_v23  ;;  %v18780_v33 = vand.u32 4294901760, %v18779_v14 }
0x2ce1   :  { %21748 = vmatprep.subr.mxu1 %v24243_v54 }
0x2ce2   :  { %21749 = vmatpush3.msra.mxu1 %v24243_v54  ;;  %v18770_v24 = vand.u32 4294901760, %v18769_v12 }
0x2ce3   :  { %21750 = vmatprep.subr.mxu1 %v24258_v27 }
0x2ce4   :  { %21751 = vmatpush3.msra.mxu1 %v24258_v27  ;;  %21703 = vmatprep.mubr.f32.mxu0 %v18770_v24 }
0x2ce5   :  { %21752 = vmatprep.subr.mxu1 %v24274_v31  ;;  %21704 = vmatmul.mubr.f32.vlgmr.msra.gmra.mxu0 %v18780_v33 }
0x2ce6   :  { %21726 = vmatpush3.msra.mxu0 %v24228_v16  ;;  %21753 = vmatpush3.msra.mxu1 %v24274_v31  ;;  %v19350_v16 = vld [vmem:[%s24456_s21] ss:$0 sm:$0xff] }
0x2ce7   :  { %21727 = vmatprep.subr.mxu0 %v24241_v36  ;;  %21741 = vmatprep.mubr.f32.mxu0 %v18767_v9 }
0x2ce8   :  { %21754 = vmatprep.subr.mxu1 %v24285_v1  ;;  %21728 = vmatpush3.msra.mxu0 %v24241_v36 }
0x2ce9   :  { %21755 = vmatpush3.msra.mxu1 %v24285_v1  ;;  %21729 = vmatprep.subr.mxu0 %v24256_v57 }
0x2cea   :  { %21756 = vmatprep.subr.mxu1 %v24299_v13  ;;  %21730 = vmatpush3.msra.mxu0 %v24256_v57 }
0x2ceb   :  { %21757 = vmatpush3.msra.mxu1 %v24299_v13  ;;  %21731 = vmatprep.subr.mxu0 %v24271_v62 }
0x2cec   :  { %21758 = vmatprep.subr.mxu1 %v24315_v63  ;;  %21732 = vmatpush3.msra.mxu0 %v24271_v62 }
0x2ced   :  { %21759 = vmatpush3.msra.mxu1 %v24315_v63  ;;  %21733 = vmatprep.subr.mxu0 %v24288_v32 }
0x2cee   :  { %21761 = vmatmul.mubr.f32.vlgmr.msra.gmra.mxu1 %v18778_v4  ;;  %21782 = vmatprep.subr.mxu1 %v24222_v47 }
0x2cef   :  { %21734 = vmatpush3.msra.mxu0 %v24288_v32  ;;  %21783 = vmatpush3.msra.mxu1 %v24222_v47 }
0x2cf0   :  { %21798 = vmatprep.mubr.f32.mxu1 %v18766_v53  ;;  %21735 = vmatprep.subr.mxu0 %v24297_v34 }
0x2cf1   :  { %21784 = vmatprep.subr.mxu1 %v24230_v3  ;;  %21736 = vmatpush3.msra.mxu0 %v24297_v34 }
0x2cf2   :  { %21785 = vmatpush3.msra.mxu1 %v24230_v3  ;;  %21737 = vmatprep.subr.mxu0 %v24313_v61 }
0x2cf3   :  { %21786 = vmatprep.subr.mxu1 %v24243_v54  ;;  %21738 = vmatpush3.msra.mxu0 %v24313_v61 }
0x2cf4   :  { %21787 = vmatpush3.msra.mxu1 %v24243_v54  ;;  %21739 = vmatprep.subr.mxu0 %v24327_v21 }
0x2cf5   :  { %21788 = vmatprep.subr.mxu1 %v24258_v27  ;;  %21740 = vmatpush3.msra.mxu0 %v24327_v21 }
0x2cf6   :  { %21789 = vmatpush3.msra.mxu1 %v24258_v27  ;;  %21742 = vmatmul.mubr.f32.vlgmr.msra.gmra.mxu0 %v18777_v58 }
0x2cf7   :  { %21763 = vmatprep.subr.mxu0 %v24238_v20  ;;  %21790 = vmatprep.subr.mxu1 %v24274_v31 }
0x2cf8   :  { %21764 = vmatpush3.msra.mxu0 %v24238_v20  ;;  %21779 = vmatprep.mubr.f32.mxu0 %v18766_v53 }
0x2cf9   :  { %21791 = vmatpush3.msra.mxu1 %v24274_v31  ;;  %21765 = vmatprep.subr.mxu0 %v24253_v35 }
0x2cfa   :  { %21792 = vmatprep.subr.mxu1 %v24285_v1  ;;  %21766 = vmatpush3.msra.mxu0 %v24253_v35 }
0x2cfb   :  { %21793 = vmatpush3.msra.mxu1 %v24285_v1  ;;  %21767 = vmatprep.subr.mxu0 %v24268_v30 }
0x2cfc   :  { %21794 = vmatprep.subr.mxu1 %v24299_v13  ;;  %21768 = vmatpush3.msra.mxu0 %v24268_v30 }
0x2cfd   :  { %21795 = vmatpush3.msra.mxu1 %v24299_v13  ;;  %21769 = vmatprep.subr.mxu0 %v24283_v56 }
0x2cfe   :  { %21796 = vmatprep.subr.mxu1 %v24315_v63  ;;  %21770 = vmatpush3.msra.mxu0 %v24283_v56 }
0x2cff   :  { %21797 = vmatpush3.msra.mxu1 %v24315_v63  ;;  %21771 = vmatprep.subr.mxu0 %v24303_v11 }
0x2d00   :  { %21799 = vmatmul.mubr.f32.vlgmr.msra.gmra.mxu1 %v24344_v17  ;;  %21772 = vmatpush3.msra.mxu0 %v24303_v11 }
0x2d01   :  { %21773 = vmatprep.subr.mxu0 %v24310_v19 }
0x2d02   :  { %21774 = vmatpush3.msra.mxu0 %v24310_v19 }
0x2d03   :  { %21775 = vmatprep.subr.mxu0 %v24324_v5 }
0x2d04   :  { %21776 = vmatpush3.msra.mxu0 %v24324_v5 }
0x2d05   :  { %21777 = vmatprep.subr.mxu0 %v24334_v8 }
0x2d06   :  { %21778 = vmatpush3.msra.mxu0 %v24334_v8 }
0x2d07   :  { %21780 = vmatmul.mubr.f32.vlgmr.msra.gmra.mxu0 %v24344_v17 }
0x2d9d   :  { %v21724_v3 = vpop.f32.mrf.mxu1 }
0x2d9f   :  { %v18893_v57 = vpop.f32.mrf.mxu1 }
0x2da5   :  { %v21705_v47 = vpop.f32.mrf.mxu0 }
0x2da6   :  { %v18783_v36 = vadd.f32 %v21705_v47, %v19350_v16 }
0x2da7   :  { %v18772_v20 = vpop.f32.mrf.mxu0 }
0x2da8   :  { %v18773_v35 = vadd.f32 %v19350_v16, %v18772_v20  ;;  %v18900_v27 = vadd.f32 %v21724_v3, %v18783_v36 }
0x2daa   :  { %v18894_v56 = vadd.f32 %v18893_v57, %v18773_v35 }
0x2dae   :  { %v21762_v30 = vpop.f32.mrf.mxu1 }
0x2db0   :  { %v19075_v32 = vpop.f32.mrf.mxu1 }
0x2db6   :  { %v21743_v54 = vpop.f32.mrf.mxu0 }
0x2db7   :  { %v18995_v31 = vadd.f32 %v21743_v54, %v18900_v27 }
0x2db8   :  { %v18987_v62 = vpop.f32.mrf.mxu0 }
0x2db9   :  { %v18988_v1 = vadd.f32 %v18987_v62, %v18894_v56  ;;  %v19084_v34 = vadd.f32 %v21762_v30, %v18995_v31 }
0x2dbb   :  { %v19076_v61 = vadd.f32 %v19075_v32, %v18988_v1 }
0x2dc0   :  { %v21800_v13 = vpop.f32.mrf.mxu1 }
0x2dc2   :  { %v19263_v8 = vpop.f32.mrf.mxu1 }
0x2dc7   :  { %v21781_v11 = vpop.f32.mrf.mxu0 }
0x2dc8   :  { %v19185_v19 = vadd.f32 %v21781_v11, %v19084_v34 }
0x2dc9   :  { %v19178_v63 = vpop.f32.mrf.mxu0 }
0x2dca   :  { %v19270_v5 = vadd.f32 %v21800_v13, %v19185_v19  ;;  %v19179_v21 = vadd.f32 %v19178_v63, %v19076_v61 }
0x2dcc   :  { %v19264_v25 = vadd.f32 %v19263_v8, %v19179_v21  ;;  %v19274_v6 = vadd.f32 %v19270_v5, %v24181_v50 }
0x2dce   :  { %v19280_v28 = vsel %vm169_vm0, %v19274_v6, 0.0  ;;  %v19273_v55 = vadd.f32 %v19264_v25, %v24183_v26 }
0x2dcf   :  { %19281 = vadd.xlane.f32.xlu1 %v19280_v28 }
0x2dd0   :  { %v19277_v42 = vsel %vm169_vm0, %v19273_v55, 0.0 }
0x2dd1   :  { %19278 = vadd.xlane.f32.xlu0 %v19277_v42 }
0x2e58   :  { %v19282_v7 = vpop.xlane.xlu1 %19281 }
0x2e59   :  { %v19284_v37 = vmul.f32 0.03125, %v19282_v7 }
0x2e5a   :  { %v19279_v39 = vpop.xlane.xlu0 %19278 }
0x2e5b   :  { %v19286_v40 = vsub.f32 %v19274_v6, %v19284_v37  ;;  %v19283_v43 = vmul.f32 0.03125, %v19279_v39 }
0x2e5d   :  { %v19285_v44 = vsub.f32 %v19273_v55, %v19283_v43  ;;  %v19288_v15 = vmul.f32 %v19286_v40, %v19286_v40 }
0x2e5f   :  { %v19292_v22 = vsel %vm169_vm0, %v19288_v15, 0.0  ;;  %v19287_v29 = vmul.f32 %v19285_v44, %v19285_v44 }
0x2e60   :  { %19293 = vadd.xlane.f32.xlu1 %v19292_v22 }
0x2e61   :  { %v19289_v50 = vsel %vm169_vm0, %v19287_v29, 0.0 }
0x2e62   :  { %19290 = vadd.xlane.f32.xlu0 %v19289_v50 }
0x2ee9   :  { %v19294_v48 = vpop.xlane.xlu1 %19293 }
0x2eea   :  { %v19296_v26 = vmul.f32 0.03125, %v19294_v48 }
0x2eeb   :  { %v19291_v52 = vpop.xlane.xlu0 %19290 }
0x2eec   :  { %v19298_v59 = vadd.f32 1e-05, %v19296_v26  ;;  %v19295_v0 = vmul.f32 0.03125, %v19291_v52 }
0x2eee   :  { %21896 = vrsqrt.f32 %v19298_v59  ;;  %v19297_v51 = vadd.f32 1e-05, %v19295_v0 }
0x2ef0   :  { %21898 = vrsqrt.f32 %v19297_v51 }
0x2efb   :  { %v21897_v60 = vpop.eup %21896 }
0x2efc   :  { %v19302_v2 = vmul.f32 %v21897_v60, %v19286_v40 }
0x2efd   :  { %v21899_v49 = vpop.eup %21898 }
0x2efe   :  { %v19301_v41 = vmul.f32 %v21899_v49, %v19285_v44  ;;  %v19310_v45 = vmul.f32 %v19351_v38, %v19302_v2 }
0x2f00   :  { %v19309_v10 = vmul.f32 %v19351_v38, %v19301_v41  ;;  %v19318_v17 = vadd.f32 %v19352_v46, %v19310_v45 }
0x2f02   :  { %v19317_v18 = vadd.f32 %v19352_v46, %v19309_v10  ;;  %19320 = vst.msk [vmem:[#allocation11 + $0x8] sm:$0xff] %vm169_vm0, %v19318_v17 }
0x2f04   :  { %19319 = vst.msk [vmem:[#allocation11] sm:$0xff] %vm169_vm0, %v19317_v18 }
0x2f05   :  { %22014 = shalt.err (!%p22011_p1)
}
0x2f06   :  { %19332 = dma.vmem_to_hbm [thread:$0]  %s19327_s5, 256, %s24459_s24, [#allocation4], %s22033_s2, %s22033_s2, %s22034_s29  }
0x2f07   :  { %22029 = dma.done.wait [#allocation4], 256  }
0x2f08   :  { %22030 = vsyncadd [#allocation4], 4294967040 }
0x2f09   :  { %19336 = vsyncpa [#allocation3], 1 }
0x2f0a   :  { %19337 = vsyncpa [#allocation6], 1 }
0x2f0b   :  { %19338 = vsyncpa [#allocation9], 1 }
0x2f0c   :  { %19339 = vsyncpa [#allocation4], 1 }

</bundles_post_ra>
